<compile_context>
chip_gen: v7x
topology: tpu7x:2x2x1
jax: 0.10.0
libtpu: 0.0.40
codegen_flags: <defaults>
</compile_context>

<pallas_src>
import functools

import jax
import jax.numpy as jnp
from jax.experimental import pallas as pl
from jax.experimental.pallas import tpu as pltpu


# Matmul operand dtype (accumulation / bias / ReLU are always f32).
COMPUTE_DTYPE = jnp.bfloat16


# ---------------------------------------------------------------------------
# Fused network kernel (one grid step == one image).
#
# Activation layout ("parity-grouped planes"): a layer input that is split
# mod G in both spatial dims is stored as a 2D (G*G*5*5, C) array, row index
#   ((gh*G + gw) * 5 + i) * 5 + j   <->  spatial position (G*i + gh, G*j + gw)
# With that layout, every 3x3/stride-2 tap needed for one whole output-parity
# group (25 output positions) is a single contiguous 25-row slice, so each
# output group is ONE (25, 9*C_in) x (9*C_in, C_out) matmul.  Positions beyond
# the valid output extent are junk-but-finite and are never read downstream.
# Group sizes per layer: input mod-8 (64 groups), conv1 out mod-4 (16),
# conv2 out mod-2 (4), conv3 out natural order (1).
# ---------------------------------------------------------------------------
def _network_kernel(x_ref, w1c_ref, b1c_ref, w2c_ref, b2c_ref, w3c_ref,
                    b3c_ref, w1f_ref, b1f_ref, w2h_ref, b2h_ref,
                    o_ref, a1_ref, a2_ref):
    f32 = jnp.float32

    def conv_group(load, w, b, g_in, rh, rw):
        """One output-parity group of a 3x3/stride-2 conv (+bias+ReLU)."""
        taps = []
        for kh in range(3):
            for kw in range(3):
                th, tw = 2 * rh + kh, 2 * rw + kw
                gh, ch = th % g_in, th // g_in
                gw, cw = tw % g_in, tw // g_in
                start = ((gh * g_in + gw) * 5 + ch) * 5 + cw
                taps.append(load(start))                 # (25, C_in), contiguous
        patch = jnp.concatenate(taps, axis=1)            # (25, 9*C_in)
        acc = jnp.dot(patch, w, preferred_element_type=f32)
        return jnp.maximum(acc + b, 0.0)                  # (25, C_out), f32

    # ---- conv1: 40x40x20 -> 19x19x32, output stored as 16 mod-4 groups ----
    w1c = w1c_ref[...]
    b1c = b1c_ref[...].astype(f32)
    load0 = lambda s: x_ref[0, s:s + 25, :]
    for rh in range(4):
        for rw in range(4):
            g = rh * 4 + rw
            out = conv_group(load0, w1c, b1c, 8, rh, rw)
            a1_ref[g * 25:(g + 1) * 25, :] = out.astype(a1_ref.dtype)

    # ---- conv2: 19x19x32 -> 9x9x64, output stored as 4 mod-2 groups ----
    w2c = w2c_ref[...]
    b2c = b2c_ref[...].astype(f32)
    load1 = lambda s: a1_ref[s:s + 25, :]
    for rh in range(2):
        for rw in range(2):
            g = rh * 2 + rw
            out = conv_group(load1, w2c, b2c, 4, rh, rw)
            a2_ref[g * 25:(g + 1) * 25, :] = out.astype(a2_ref.dtype)

    # ---- conv3: 9x9x64 -> 4x4x128, natural row-major (5x5 incl. junk) ----
    w3c = w3c_ref[...]
    b3c = b3c_ref[...].astype(f32)
    load2 = lambda s: a2_ref[s:s + 25, :]
    a3 = conv_group(load2, w3c, b3c, 2, 0, 0).astype(COMPUTE_DTYPE)  # (25,128)

    # ---- flatten (valid 4x4 block) + fc1 + fused heads, all in VMEM ----
    # xfc[wcol, hrow*128 + c] = conv3_out[hrow, wcol, c]
    xfc = jnp.concatenate([a3[a * 5:a * 5 + 4, :] for a in range(4)], axis=1)
    h = b1f_ref[...].astype(f32)                               # (1, 512)
    for wcol in range(4):
        h = h + jnp.dot(xfc[wcol:wcol + 1, :], w1f_ref[wcol],
                        preferred_element_type=f32)
    h = jnp.maximum(h, 0.0).astype(COMPUTE_DTYPE)
    out = jnp.dot(h, w2h_ref[...], preferred_element_type=f32)  # (1, 128)
    o_ref[0] = out + b2h_ref[...]


def _fused_forward(x0, prep):
    """x0: (N, 1600, 20) parity-grouped input in COMPUTE_DTYPE -> (N, NHP) f32."""
    n, _, c_in = x0.shape
    nhp = prep["fc2_w"].shape[1]

    out = pl.pallas_call(
        _network_kernel,
        out_shape=jax.ShapeDtypeStruct((n, 1, nhp), jnp.float32),
        grid=(n,),
        in_specs=[
            pl.BlockSpec((1, 1600, c_in), lambda i: (i, 0, 0)),
            pl.BlockSpec(prep["c1_w"].shape, lambda i: (0, 0)),
            pl.BlockSpec(prep["c1_b"].shape, lambda i: (0, 0)),
            pl.BlockSpec(prep["c2_w"].shape, lambda i: (0, 0)),
            pl.BlockSpec(prep["c2_b"].shape, lambda i: (0, 0)),
            pl.BlockSpec(prep["c3_w"].shape, lambda i: (0, 0)),
            pl.BlockSpec(prep["c3_b"].shape, lambda i: (0, 0)),
            pl.BlockSpec(prep["fc1_w"].shape, lambda i: (0, 0, 0)),
            pl.BlockSpec(prep["fc1_b"].shape, lambda i: (0, 0)),
            pl.BlockSpec(prep["fc2_w"].shape, lambda i: (0, 0)),
            pl.BlockSpec(prep["fc2_b"].shape, lambda i: (0, 0)),
        ],
        out_specs=pl.BlockSpec((1, 1, nhp), lambda i: (i, 0, 0)),
        scratch_shapes=[
            pltpu.VMEM((400, 32), COMPUTE_DTYPE),   # conv1 output (16 groups x 25)
            pltpu.VMEM((100, 64), COMPUTE_DTYPE),   # conv2 output (4 groups x 25)
        ],
        compiler_params=pltpu.CompilerParams(
            dimension_semantics=("parallel",)),
    )(x0, prep["c1_w"], prep["c1_b"], prep["c2_w"], prep["c2_b"],
      prep["c3_w"], prep["c3_b"], prep["fc1_w"], prep["fc1_b"],
      prep["fc2_w"], prep["fc2_b"])
    return out[:, 0, :]


# ---------------------------------------------------------------------------
# Network forward (matches the PyTorch module semantics).
# ---------------------------------------------------------------------------
def network_forward(prep, state, *, action_size):
    """state: (N, 20, 40, 40) float32, NCHW (PyTorch convention)."""
    n, c, h, w = state.shape
    assert (c, h, w) == (20, 40, 40), (c, h, w)
    # One-time input transform: NCHW -> mod-8 parity-grouped (N, 1600, 20).
    x = state.reshape(n, c, h // 8, 8, w // 8, 8)
    x = jnp.transpose(x, (0, 3, 5, 2, 4, 1))        # (n, gh, gw, i, j, c)
    x = x.reshape(n, (h // 8) * (w // 8) * 64, c).astype(COMPUTE_DTYPE)

    heads = _fused_forward(x, prep)                  # (N, 128) f32
    action_values = heads[:, :action_size]
    # PyTorch: state_value = self.fc2s(x)[0]  -> first batch row, shape (1,)
    state_value = heads[0, action_size:action_size + 1]
    return action_values, state_value


# ---------------------------------------------------------------------------
# Parameters: init in PyTorch layout, relayout/cast exactly once.
# ---------------------------------------------------------------------------
def init_params(key, action_size):
    ks = jax.random.split(key, 12)
    s = 0.05
    return {
        "conv1_w": jax.random.normal(ks[0], (32, 20, 3, 3), jnp.float32) * s,
        "conv1_b": jax.random.normal(ks[1], (32,), jnp.float32) * s,
        "conv2_w": jax.random.normal(ks[2], (64, 32, 3, 3), jnp.float32) * s,
        "conv2_b": jax.random.normal(ks[3], (64,), jnp.float32) * s,
        "conv3_w": jax.random.normal(ks[4], (128, 64, 3, 3), jnp.float32) * s,
        "conv3_b": jax.random.normal(ks[5], (128,), jnp.float32) * s,
        "fc1_w": jax.random.normal(ks[6], (512, 128 * 4 * 4), jnp.float32) * s,
        "fc1_b": jax.random.normal(ks[7], (512,), jnp.float32) * s,
        "fc2a_w": jax.random.normal(ks[8], (action_size, 512), jnp.float32) * s,
        "fc2a_b": jax.random.normal(ks[9], (action_size,), jnp.float32) * s,
        "fc2s_w": jax.random.normal(ks[10], (1, 512), jnp.float32) * s,
        "fc2s_b": jax.random.normal(ks[11], (1,), jnp.float32) * s,
    }


def prepare_params(params):
    """One-time conversion of PyTorch-layout params into kernel layout."""
    cd = COMPUTE_DTYPE

    def conv_w(w):                 # (OC, IC, 3, 3) -> (9*IC, OC); row = (kh*3+kw)*IC + ic
        oc, ic, kh, kw = w.shape
        return jnp.transpose(w, (2, 3, 1, 0)).reshape(kh * kw * ic, oc).astype(cd)

    def bias_row(b):
        return b.reshape(1, -1).astype(jnp.float32)

    # fc1: PyTorch flatten order is (c, h, w); kernel consumes xfc[w, h*128+c],
    # so permute the weight rows once to (w, h, c) order and block by w.
    w1 = params["fc1_w"].reshape(512, 128, 4, 4)             # (j, c, h, w)
    w1 = jnp.transpose(w1, (3, 2, 1, 0)).reshape(4, 4 * 128, 512).astype(cd)

    # Fuse the two heads into one matmul and zero-pad to 128 output columns
    # so the kernel's HBM store is a lane-dense (1, 128) row.
    a = params["fc2a_w"].shape[0]
    nhp = max(128, ((a + 1 + 127) // 128) * 128)
    w2 = jnp.concatenate([params["fc2a_w"], params["fc2s_w"]], axis=0)
    w2 = jnp.pad(w2, ((0, nhp - (a + 1)), (0, 0))).T.astype(cd)          # (512, nhp)
    b2 = jnp.concatenate([params["fc2a_b"], params["fc2s_b"]], axis=0)
    b2 = jnp.pad(b2, (0, nhp - (a + 1))).reshape(1, nhp).astype(jnp.float32)

    return {
        "c1_w": conv_w(params["conv1_w"]), "c1_b": bias_row(params["conv1_b"]),
        "c2_w": conv_w(params["conv2_w"]), "c2_b": bias_row(params["conv2_b"]),
        "c3_w": conv_w(params["conv3_w"]), "c3_b": bias_row(params["conv3_b"]),
        "fc1_w": w1, "fc1_b": bias_row(params["fc1_b"]),
        "fc2_w": w2, "fc2_b": b2,
    }


if __name__ == "__main__":
    key = jax.random.PRNGKey(0)
    pkey, xkey = jax.random.split(key)

    action_size = 6
    params = init_params(pkey, action_size)
    prep = prepare_params(params)     # one-time weight relayout / bf16 cast

    # Spatial size must reduce to 4x4 after three valid 3x3 stride-2 convs:
    # 40 -> 19 -> 9 -> 4, so flatten size = 128*4*4 = 2048 matches fc1.
    state = jax.random.normal(xkey, (2, 20, 40, 40), jnp.float32)

    fwd = jax.jit(functools.partial(network_forward, action_size=action_size))
    action_values, state_value = fwd(prep, state)
    jax.block_until_ready((action_values, state_value))

    assert action_values.shape == (2, action_size), action_values.shape
    assert state_value.shape == (1,), state_value.shape
    print("KERNEL_OK")
</pallas_src>

<mosaic_0001>
module attributes {stable_mosaic.version = 11 : i64} {
  func.func @_network_kernel(%arg0: i32, %arg1: memref<1x1600x20xbf16, #tpu.memory_space<vmem>>, %arg2: memref<180x32xbf16, #tpu.memory_space<vmem>>, %arg3: memref<1x32xf32, #tpu.memory_space<vmem>>, %arg4: memref<288x64xbf16, #tpu.memory_space<vmem>>, %arg5: memref<1x64xf32, #tpu.memory_space<vmem>>, %arg6: memref<576x128xbf16, #tpu.memory_space<vmem>>, %arg7: memref<1x128xf32, #tpu.memory_space<vmem>>, %arg8: memref<4x512x512xbf16, #tpu.memory_space<vmem>>, %arg9: memref<1x512xf32, #tpu.memory_space<vmem>>, %arg10: memref<512x128xbf16, #tpu.memory_space<vmem>>, %arg11: memref<1x128xf32, #tpu.memory_space<vmem>>, %arg12: memref<1x1x128xf32, #tpu.memory_space<vmem>>, %arg13: memref<400x32xbf16, #tpu.memory_space<vmem>>, %arg14: memref<100x64xbf16, #tpu.memory_space<vmem>>) attributes {dimension_semantics = [#tpu.dimension_semantics<parallel>], iteration_bounds = array<i64: 2>, scalar_prefetch = 0 : i64, scratch_operands = 2 : i64, tpu.core_type = #tpu.core_type<tc>, window_params = [{transform_indices = @transform_0, window_bounds = array<i64: 1, 1600, 20>}, {pipeline_mode = #tpu.pipeline_mode<synchronous>, transform_indices = @transform_1, window_bounds = array<i64: 180, 32>}, {pipeline_mode = #tpu.pipeline_mode<synchronous>, transform_indices = @transform_2, window_bounds = array<i64: 1, 32>}, {pipeline_mode = #tpu.pipeline_mode<synchronous>, transform_indices = @transform_3, window_bounds = array<i64: 288, 64>}, {pipeline_mode = #tpu.pipeline_mode<synchronous>, transform_indices = @transform_4, window_bounds = array<i64: 1, 64>}, {pipeline_mode = #tpu.pipeline_mode<synchronous>, transform_indices = @transform_5, window_bounds = array<i64: 576, 128>}, {pipeline_mode = #tpu.pipeline_mode<synchronous>, transform_indices = @transform_6, window_bounds = array<i64: 1, 128>}, {pipeline_mode = #tpu.pipeline_mode<synchronous>, transform_indices = @transform_7, window_bounds = array<i64: 4, 512, 512>}, {pipeline_mode = #tpu.pipeline_mode<synchronous>, transform_indices = @transform_8, window_bounds = array<i64: 1, 512>}, {pipeline_mode = #tpu.pipeline_mode<synchronous>, transform_indices = @transform_9, window_bounds = array<i64: 512, 128>}, {pipeline_mode = #tpu.pipeline_mode<synchronous>, transform_indices = @transform_10, window_bounds = array<i64: 1, 128>}, {transform_indices = @transform_11, window_bounds = array<i64: 1, 1, 128>}]} {
    %c0 = arith.constant 0 : index
    %c0_0 = arith.constant 0 : index
    %0 = vector.load %arg2[%c0, %c0_0] : memref<180x32xbf16, #tpu.memory_space<vmem>>, vector<180x32xbf16>
    %c0_1 = arith.constant 0 : index
    %c0_2 = arith.constant 0 : index
    %1 = vector.load %arg3[%c0_1, %c0_2] : memref<1x32xf32, #tpu.memory_space<vmem>>, vector<1x32xf32>
    %c0_3 = arith.constant 0 : index
    %c0_4 = arith.constant 0 : index
    %c0_5 = arith.constant 0 : index
    %2 = vector.load %arg1[%c0_3, %c0_4, %c0_5] : memref<1x1600x20xbf16, #tpu.memory_space<vmem>>, vector<1x25x20xbf16>
    %3 = vector.shape_cast %2 : vector<1x25x20xbf16> to vector<25x20xbf16>
    %c0_6 = arith.constant 0 : index
    %c25 = arith.constant 25 : index
    %c0_7 = arith.constant 0 : index
    %4 = vector.load %arg1[%c0_6, %c25, %c0_7] : memref<1x1600x20xbf16, #tpu.memory_space<vmem>>, vector<1x25x20xbf16>
    %5 = vector.shape_cast %4 : vector<1x25x20xbf16> to vector<25x20xbf16>
    %c0_8 = arith.constant 0 : index
    %c50 = arith.constant 50 : index
    %c0_9 = arith.constant 0 : index
    %6 = vector.load %arg1[%c0_8, %c50, %c0_9] : memref<1x1600x20xbf16, #tpu.memory_space<vmem>>, vector<1x25x20xbf16>
    %7 = vector.shape_cast %6 : vector<1x25x20xbf16> to vector<25x20xbf16>
    %c0_10 = arith.constant 0 : index
    %c200 = arith.constant 200 : index
    %c0_11 = arith.constant 0 : index
    %8 = vector.load %arg1[%c0_10, %c200, %c0_11] : memref<1x1600x20xbf16, #tpu.memory_space<vmem>>, vector<1x25x20xbf16>
    %9 = vector.shape_cast %8 : vector<1x25x20xbf16> to vector<25x20xbf16>
    %c0_12 = arith.constant 0 : index
    %c225 = arith.constant 225 : index
    %c0_13 = arith.constant 0 : index
    %10 = vector.load %arg1[%c0_12, %c225, %c0_13] : memref<1x1600x20xbf16, #tpu.memory_space<vmem>>, vector<1x25x20xbf16>
    %11 = vector.shape_cast %10 : vector<1x25x20xbf16> to vector<25x20xbf16>
    %c0_14 = arith.constant 0 : index
    %c250 = arith.constant 250 : index
    %c0_15 = arith.constant 0 : index
    %12 = vector.load %arg1[%c0_14, %c250, %c0_15] : memref<1x1600x20xbf16, #tpu.memory_space<vmem>>, vector<1x25x20xbf16>
    %13 = vector.shape_cast %12 : vector<1x25x20xbf16> to vector<25x20xbf16>
    %c0_16 = arith.constant 0 : index
    %c400 = arith.constant 400 : index
    %c0_17 = arith.constant 0 : index
    %14 = vector.load %arg1[%c0_16, %c400, %c0_17] : memref<1x1600x20xbf16, #tpu.memory_space<vmem>>, vector<1x25x20xbf16>
    %15 = vector.shape_cast %14 : vector<1x25x20xbf16> to vector<25x20xbf16>
    %c0_18 = arith.constant 0 : index
    %c425 = arith.constant 425 : index
    %c0_19 = arith.constant 0 : index
    %16 = vector.load %arg1[%c0_18, %c425, %c0_19] : memref<1x1600x20xbf16, #tpu.memory_space<vmem>>, vector<1x25x20xbf16>
    %17 = vector.shape_cast %16 : vector<1x25x20xbf16> to vector<25x20xbf16>
    %c0_20 = arith.constant 0 : index
    %c450 = arith.constant 450 : index
    %c0_21 = arith.constant 0 : index
    %18 = vector.load %arg1[%c0_20, %c450, %c0_21] : memref<1x1600x20xbf16, #tpu.memory_space<vmem>>, vector<1x25x20xbf16>
    %19 = vector.shape_cast %18 : vector<1x25x20xbf16> to vector<25x20xbf16>
    %20 = tpu.concatenate %3, %5, %7, %9, %11, %13, %15, %17, %19 in 1 : vector<25x20xbf16>, vector<25x20xbf16>, vector<25x20xbf16>, vector<25x20xbf16>, vector<25x20xbf16>, vector<25x20xbf16>, vector<25x20xbf16>, vector<25x20xbf16>, vector<25x20xbf16> -> vector<25x180xbf16>
    %cst = arith.constant dense<0.000000e+00> : vector<25x32xf32>
    %21 = tpu.matmul %20, %0, %cst {dimension_numbers = #tpu.dot_dimension_numbers<[1], [0], [0], [1], [0, 0, 1, 1], [], []>} : vector<25x180xbf16>, vector<180x32xbf16>, vector<25x32xf32> -> vector<25x32xf32>
    %22 = vector.broadcast %1 : vector<1x32xf32> to vector<25x32xf32>
    %23 = arith.addf %21, %22 : vector<25x32xf32>
    %cst_22 = arith.constant 0.000000e+00 : f32
    %24 = vector.broadcast %cst_22 : f32 to vector<25x32xf32>
    %25 = arith.maximumf %23, %24 : vector<25x32xf32>
    %26 = arith.truncf %25 : vector<25x32xf32> to vector<25x32xbf16>
    %c0_23 = arith.constant 0 : index
    %c0_24 = arith.constant 0 : index
    %27 = vector.load %arg13[%c0_23, %c0_24] : memref<400x32xbf16, #tpu.memory_space<vmem>>, vector<25x32xbf16>
    tpu.vector_store %arg13[%c0_23, %c0_24], %26 {strides = array<i32>} : memref<400x32xbf16, #tpu.memory_space<vmem>>, vector<25x32xbf16>,
    %c0_25 = arith.constant 0 : index
    %c50_26 = arith.constant 50 : index
    %c0_27 = arith.constant 0 : index
    %28 = vector.load %arg1[%c0_25, %c50_26, %c0_27] : memref<1x1600x20xbf16, #tpu.memory_space<vmem>>, vector<1x25x20xbf16>
    %29 = vector.shape_cast %28 : vector<1x25x20xbf16> to vector<25x20xbf16>
    %c0_28 = arith.constant 0 : index
    %c75 = arith.constant 75 : index
    %c0_29 = arith.constant 0 : index
    %30 = vector.load %arg1[%c0_28, %c75, %c0_29] : memref<1x1600x20xbf16, #tpu.memory_space<vmem>>, vector<1x25x20xbf16>
    %31 = vector.shape_cast %30 : vector<1x25x20xbf16> to vector<25x20xbf16>
    %c0_30 = arith.constant 0 : index
    %c100 = arith.constant 100 : index
    %c0_31 = arith.constant 0 : index
    %32 = vector.load %arg1[%c0_30, %c100, %c0_31] : memref<1x1600x20xbf16, #tpu.memory_space<vmem>>, vector<1x25x20xbf16>
    %33 = vector.shape_cast %32 : vector<1x25x20xbf16> to vector<25x20xbf16>
    %c0_32 = arith.constant 0 : index
    %c250_33 = arith.constant 250 : index
    %c0_34 = arith.constant 0 : index
    %34 = vector.load %arg1[%c0_32, %c250_33, %c0_34] : memref<1x1600x20xbf16, #tpu.memory_space<vmem>>, vector<1x25x20xbf16>
    %35 = vector.shape_cast %34 : vector<1x25x20xbf16> to vector<25x20xbf16>
    %c0_35 = arith.constant 0 : index
    %c275 = arith.constant 275 : index
    %c0_36 = arith.constant 0 : index
    %36 = vector.load %arg1[%c0_35, %c275, %c0_36] : memref<1x1600x20xbf16, #tpu.memory_space<vmem>>, vector<1x25x20xbf16>
    %37 = vector.shape_cast %36 : vector<1x25x20xbf16> to vector<25x20xbf16>
    %c0_37 = arith.constant 0 : index
    %c300 = arith.constant 300 : index
    %c0_38 = arith.constant 0 : index
    %38 = vector.load %arg1[%c0_37, %c300, %c0_38] : memref<1x1600x20xbf16, #tpu.memory_space<vmem>>, vector<1x25x20xbf16>
    %39 = vector.shape_cast %38 : vector<1x25x20xbf16> to vector<25x20xbf16>
    %c0_39 = arith.constant 0 : index
    %c450_40 = arith.constant 450 : index
    %c0_41 = arith.constant 0 : index
    %40 = vector.load %arg1[%c0_39, %c450_40, %c0_41] : memref<1x1600x20xbf16, #tpu.memory_space<vmem>>, vector<1x25x20xbf16>
    %41 = vector.shape_cast %40 : vector<1x25x20xbf16> to vector<25x20xbf16>
    %c0_42 = arith.constant 0 : index
    %c475 = arith.constant 475 : index
    %c0_43 = arith.constant 0 : index
    %42 = vector.load %arg1[%c0_42, %c475, %c0_43] : memref<1x1600x20xbf16, #tpu.memory_space<vmem>>, vector<1x25x20xbf16>
    %43 = vector.shape_cast %42 : vector<1x25x20xbf16> to vector<25x20xbf16>
    %c0_44 = arith.constant 0 : index
    %c500 = arith.constant 500 : index
    %c0_45 = arith.constant 0 : index
    %44 = vector.load %arg1[%c0_44, %c500, %c0_45] : memref<1x1600x20xbf16, #tpu.memory_space<vmem>>, vector<1x25x20xbf16>
    %45 = vector.shape_cast %44 : vector<1x25x20xbf16> to vector<25x20xbf16>
    %46 = tpu.concatenate %29, %31, %33, %35, %37, %39, %41, %43, %45 in 1 : vector<25x20xbf16>, vector<25x20xbf16>, vector<25x20xbf16>, vector<25x20xbf16>, vector<25x20xbf16>, vector<25x20xbf16>, vector<25x20xbf16>, vector<25x20xbf16>, vector<25x20xbf16> -> vector<25x180xbf16>
    %cst_46 = arith.constant dense<0.000000e+00> : vector<25x32xf32>
    %47 = tpu.matmul %46, %0, %cst_46 {dimension_numbers = #tpu.dot_dimension_numbers<[1], [0], [0], [1], [0, 0, 1, 1], [], []>} : vector<25x180xbf16>, vector<180x32xbf16>, vector<25x32xf32> -> vector<25x32xf32>
    %48 = vector.broadcast %1 : vector<1x32xf32> to vector<25x32xf32>
    %49 = arith.addf %47, %48 : vector<25x32xf32>
    %cst_47 = arith.constant 0.000000e+00 : f32
    %50 = vector.broadcast %cst_47 : f32 to vector<25x32xf32>
    %51 = arith.maximumf %49, %50 : vector<25x32xf32>
    %52 = arith.truncf %51 : vector<25x32xf32> to vector<25x32xbf16>
    %c25_48 = arith.constant 25 : index
    %c0_49 = arith.constant 0 : index
    %53 = vector.load %arg13[%c25_48, %c0_49] : memref<400x32xbf16, #tpu.memory_space<vmem>>, vector<25x32xbf16>
    tpu.vector_store %arg13[%c25_48, %c0_49], %52 {strides = array<i32>} : memref<400x32xbf16, #tpu.memory_space<vmem>>, vector<25x32xbf16>,
    %c0_50 = arith.constant 0 : index
    %c100_51 = arith.constant 100 : index
    %c0_52 = arith.constant 0 : index
    %54 = vector.load %arg1[%c0_50, %c100_51, %c0_52] : memref<1x1600x20xbf16, #tpu.memory_space<vmem>>, vector<1x25x20xbf16>
    %55 = vector.shape_cast %54 : vector<1x25x20xbf16> to vector<25x20xbf16>
    %c0_53 = arith.constant 0 : index
    %c125 = arith.constant 125 : index
    %c0_54 = arith.constant 0 : index
    %56 = vector.load %arg1[%c0_53, %c125, %c0_54] : memref<1x1600x20xbf16, #tpu.memory_space<vmem>>, vector<1x25x20xbf16>
    %57 = vector.shape_cast %56 : vector<1x25x20xbf16> to vector<25x20xbf16>
    %c0_55 = arith.constant 0 : index
    %c150 = arith.constant 150 : index
    %c0_56 = arith.constant 0 : index
    %58 = vector.load %arg1[%c0_55, %c150, %c0_56] : memref<1x1600x20xbf16, #tpu.memory_space<vmem>>, vector<1x25x20xbf16>
    %59 = vector.shape_cast %58 : vector<1x25x20xbf16> to vector<25x20xbf16>
    %c0_57 = arith.constant 0 : index
    %c300_58 = arith.constant 300 : index
    %c0_59 = arith.constant 0 : index
    %60 = vector.load %arg1[%c0_57, %c300_58, %c0_59] : memref<1x1600x20xbf16, #tpu.memory_space<vmem>>, vector<1x25x20xbf16>
    %61 = vector.shape_cast %60 : vector<1x25x20xbf16> to vector<25x20xbf16>
    %c0_60 = arith.constant 0 : index
    %c325 = arith.constant 325 : index
    %c0_61 = arith.constant 0 : index
    %62 = vector.load %arg1[%c0_60, %c325, %c0_61] : memref<1x1600x20xbf16, #tpu.memory_space<vmem>>, vector<1x25x20xbf16>
    %63 = vector.shape_cast %62 : vector<1x25x20xbf16> to vector<25x20xbf16>
    %c0_62 = arith.constant 0 : index
    %c350 = arith.constant 350 : index
    %c0_63 = arith.constant 0 : index
    %64 = vector.load %arg1[%c0_62, %c350, %c0_63] : memref<1x1600x20xbf16, #tpu.memory_space<vmem>>, vector<1x25x20xbf16>
    %65 = vector.shape_cast %64 : vector<1x25x20xbf16> to vector<25x20xbf16>
    %c0_64 = arith.constant 0 : index
    %c500_65 = arith.constant 500 : index
    %c0_66 = arith.constant 0 : index
    %66 = vector.load %arg1[%c0_64, %c500_65, %c0_66] : memref<1x1600x20xbf16, #tpu.memory_space<vmem>>, vector<1x25x20xbf16>
    %67 = vector.shape_cast %66 : vector<1x25x20xbf16> to vector<25x20xbf16>
    %c0_67 = arith.constant 0 : index
    %c525 = arith.constant 525 : index
    %c0_68 = arith.constant 0 : index
    %68 = vector.load %arg1[%c0_67, %c525, %c0_68] : memref<1x1600x20xbf16, #tpu.memory_space<vmem>>, vector<1x25x20xbf16>
    %69 = vector.shape_cast %68 : vector<1x25x20xbf16> to vector<25x20xbf16>
    %c0_69 = arith.constant 0 : index
    %c550 = arith.constant 550 : index
    %c0_70 = arith.constant 0 : index
    %70 = vector.load %arg1[%c0_69, %c550, %c0_70] : memref<1x1600x20xbf16, #tpu.memory_space<vmem>>, vector<1x25x20xbf16>
    %71 = vector.shape_cast %70 : vector<1x25x20xbf16> to vector<25x20xbf16>
    %72 = tpu.concatenate %55, %57, %59, %61, %63, %65, %67, %69, %71 in 1 : vector<25x20xbf16>, vector<25x20xbf16>, vector<25x20xbf16>, vector<25x20xbf16>, vector<25x20xbf16>, vector<25x20xbf16>, vector<25x20xbf16>, vector<25x20xbf16>, vector<25x20xbf16> -> vector<25x180xbf16>
    %cst_71 = arith.constant dense<0.000000e+00> : vector<25x32xf32>
    %73 = tpu.matmul %72, %0, %cst_71 {dimension_numbers = #tpu.dot_dimension_numbers<[1], [0], [0], [1], [0, 0, 1, 1], [], []>} : vector<25x180xbf16>, vector<180x32xbf16>, vector<25x32xf32> -> vector<25x32xf32>
    %74 = vector.broadcast %1 : vector<1x32xf32> to vector<25x32xf32>
    %75 = arith.addf %73, %74 : vector<25x32xf32>
    %cst_72 = arith.constant 0.000000e+00 : f32
    %76 = vector.broadcast %cst_72 : f32 to vector<25x32xf32>
    %77 = arith.maximumf %75, %76 : vector<25x32xf32>
    %78 = arith.truncf %77 : vector<25x32xf32> to vector<25x32xbf16>
    %c50_73 = arith.constant 50 : index
    %c0_74 = arith.constant 0 : index
    %79 = vector.load %arg13[%c50_73, %c0_74] : memref<400x32xbf16, #tpu.memory_space<vmem>>, vector<25x32xbf16>
    tpu.vector_store %arg13[%c50_73, %c0_74], %78 {strides = array<i32>} : memref<400x32xbf16, #tpu.memory_space<vmem>>, vector<25x32xbf16>,
    %c0_75 = arith.constant 0 : index
    %c150_76 = arith.constant 150 : index
    %c0_77 = arith.constant 0 : index
    %80 = vector.load %arg1[%c0_75, %c150_76, %c0_77] : memref<1x1600x20xbf16, #tpu.memory_space<vmem>>, vector<1x25x20xbf16>
    %81 = vector.shape_cast %80 : vector<1x25x20xbf16> to vector<25x20xbf16>
    %c0_78 = arith.constant 0 : index
    %c175 = arith.constant 175 : index
    %c0_79 = arith.constant 0 : index
    %82 = vector.load %arg1[%c0_78, %c175, %c0_79] : memref<1x1600x20xbf16, #tpu.memory_space<vmem>>, vector<1x25x20xbf16>
    %83 = vector.shape_cast %82 : vector<1x25x20xbf16> to vector<25x20xbf16>
    %c0_80 = arith.constant 0 : index
    %c1 = arith.constant 1 : index
    %c0_81 = arith.constant 0 : index
    %84 = vector.load %arg1[%c0_80, %c1, %c0_81] : memref<1x1600x20xbf16, #tpu.memory_space<vmem>>, vector<1x25x20xbf16>
    %85 = vector.shape_cast %84 : vector<1x25x20xbf16> to vector<25x20xbf16>
    %c0_82 = arith.constant 0 : index
    %c350_83 = arith.constant 350 : index
    %c0_84 = arith.constant 0 : index
    %86 = vector.load %arg1[%c0_82, %c350_83, %c0_84] : memref<1x1600x20xbf16, #tpu.memory_space<vmem>>, vector<1x25x20xbf16>
    %87 = vector.shape_cast %86 : vector<1x25x20xbf16> to vector<25x20xbf16>
    %c0_85 = arith.constant 0 : index
    %c375 = arith.constant 375 : index
    %c0_86 = arith.constant 0 : index
    %88 = vector.load %arg1[%c0_85, %c375, %c0_86] : memref<1x1600x20xbf16, #tpu.memory_space<vmem>>, vector<1x25x20xbf16>
    %89 = vector.shape_cast %88 : vector<1x25x20xbf16> to vector<25x20xbf16>
    %c0_87 = arith.constant 0 : index
    %c201 = arith.constant 201 : index
    %c0_88 = arith.constant 0 : index
    %90 = vector.load %arg1[%c0_87, %c201, %c0_88] : memref<1x1600x20xbf16, #tpu.memory_space<vmem>>, vector<1x25x20xbf16>
    %91 = vector.shape_cast %90 : vector<1x25x20xbf16> to vector<25x20xbf16>
    %c0_89 = arith.constant 0 : index
    %c550_90 = arith.constant 550 : index
    %c0_91 = arith.constant 0 : index
    %92 = vector.load %arg1[%c0_89, %c550_90, %c0_91] : memref<1x1600x20xbf16, #tpu.memory_space<vmem>>, vector<1x25x20xbf16>
    %93 = vector.shape_cast %92 : vector<1x25x20xbf16> to vector<25x20xbf16>
    %c0_92 = arith.constant 0 : index
    %c575 = arith.constant 575 : index
    %c0_93 = arith.constant 0 : index
    %94 = vector.load %arg1[%c0_92, %c575, %c0_93] : memref<1x1600x20xbf16, #tpu.memory_space<vmem>>, vector<1x25x20xbf16>
    %95 = vector.shape_cast %94 : vector<1x25x20xbf16> to vector<25x20xbf16>
    %c0_94 = arith.constant 0 : index
    %c401 = arith.constant 401 : index
    %c0_95 = arith.constant 0 : index
    %96 = vector.load %arg1[%c0_94, %c401, %c0_95] : memref<1x1600x20xbf16, #tpu.memory_space<vmem>>, vector<1x25x20xbf16>
    %97 = vector.shape_cast %96 : vector<1x25x20xbf16> to vector<25x20xbf16>
    %98 = tpu.concatenate %81, %83, %85, %87, %89, %91, %93, %95, %97 in 1 : vector<25x20xbf16>, vector<25x20xbf16>, vector<25x20xbf16>, vector<25x20xbf16>, vector<25x20xbf16>, vector<25x20xbf16>, vector<25x20xbf16>, vector<25x20xbf16>, vector<25x20xbf16> -> vector<25x180xbf16>
    %cst_96 = arith.constant dense<0.000000e+00> : vector<25x32xf32>
    %99 = tpu.matmul %98, %0, %cst_96 {dimension_numbers = #tpu.dot_dimension_numbers<[1], [0], [0], [1], [0, 0, 1, 1], [], []>} : vector<25x180xbf16>, vector<180x32xbf16>, vector<25x32xf32> -> vector<25x32xf32>
    %100 = vector.broadcast %1 : vector<1x32xf32> to vector<25x32xf32>
    %101 = arith.addf %99, %100 : vector<25x32xf32>
    %cst_97 = arith.constant 0.000000e+00 : f32
    %102 = vector.broadcast %cst_97 : f32 to vector<25x32xf32>
    %103 = arith.maximumf %101, %102 : vector<25x32xf32>
    %104 = arith.truncf %103 : vector<25x32xf32> to vector<25x32xbf16>
    %c75_98 = arith.constant 75 : index
    %c0_99 = arith.constant 0 : index
    %105 = vector.load %arg13[%c75_98, %c0_99] : memref<400x32xbf16, #tpu.memory_space<vmem>>, vector<25x32xbf16>
    tpu.vector_store %arg13[%c75_98, %c0_99], %104 {strides = array<i32>} : memref<400x32xbf16, #tpu.memory_space<vmem>>, vector<25x32xbf16>,
    %c0_100 = arith.constant 0 : index
    %c400_101 = arith.constant 400 : index
    %c0_102 = arith.constant 0 : index
    %106 = vector.load %arg1[%c0_100, %c400_101, %c0_102] : memref<1x1600x20xbf16, #tpu.memory_space<vmem>>, vector<1x25x20xbf16>
    %107 = vector.shape_cast %106 : vector<1x25x20xbf16> to vector<25x20xbf16>
    %c0_103 = arith.constant 0 : index
    %c425_104 = arith.constant 425 : index
    %c0_105 = arith.constant 0 : index
    %108 = vector.load %arg1[%c0_103, %c425_104, %c0_105] : memref<1x1600x20xbf16, #tpu.memory_space<vmem>>, vector<1x25x20xbf16>
    %109 = vector.shape_cast %108 : vector<1x25x20xbf16> to vector<25x20xbf16>
    %c0_106 = arith.constant 0 : index
    %c450_107 = arith.constant 450 : index
    %c0_108 = arith.constant 0 : index
    %110 = vector.load %arg1[%c0_106, %c450_107, %c0_108] : memref<1x1600x20xbf16, #tpu.memory_space<vmem>>, vector<1x25x20xbf16>
    %111 = vector.shape_cast %110 : vector<1x25x20xbf16> to vector<25x20xbf16>
    %c0_109 = arith.constant 0 : index
    %c600 = arith.constant 600 : index
    %c0_110 = arith.constant 0 : index
    %112 = vector.load %arg1[%c0_109, %c600, %c0_110] : memref<1x1600x20xbf16, #tpu.memory_space<vmem>>, vector<1x25x20xbf16>
    %113 = vector.shape_cast %112 : vector<1x25x20xbf16> to vector<25x20xbf16>
    %c0_111 = arith.constant 0 : index
    %c625 = arith.constant 625 : index
    %c0_112 = arith.constant 0 : index
    %114 = vector.load %arg1[%c0_111, %c625, %c0_112] : memref<1x1600x20xbf16, #tpu.memory_space<vmem>>, vector<1x25x20xbf16>
    %115 = vector.shape_cast %114 : vector<1x25x20xbf16> to vector<25x20xbf16>
    %c0_113 = arith.constant 0 : index
    %c650 = arith.constant 650 : index
    %c0_114 = arith.constant 0 : index
    %116 = vector.load %arg1[%c0_113, %c650, %c0_114] : memref<1x1600x20xbf16, #tpu.memory_space<vmem>>, vector<1x25x20xbf16>
    %117 = vector.shape_cast %116 : vector<1x25x20xbf16> to vector<25x20xbf16>
    %c0_115 = arith.constant 0 : index
    %c800 = arith.constant 800 : index
    %c0_116 = arith.constant 0 : index
    %118 = vector.load %arg1[%c0_115, %c800, %c0_116] : memref<1x1600x20xbf16, #tpu.memory_space<vmem>>, vector<1x25x20xbf16>
    %119 = vector.shape_cast %118 : vector<1x25x20xbf16> to vector<25x20xbf16>
    %c0_117 = arith.constant 0 : index
    %c825 = arith.constant 825 : index
    %c0_118 = arith.constant 0 : index
    %120 = vector.load %arg1[%c0_117, %c825, %c0_118] : memref<1x1600x20xbf16, #tpu.memory_space<vmem>>, vector<1x25x20xbf16>
    %121 = vector.shape_cast %120 : vector<1x25x20xbf16> to vector<25x20xbf16>
    %c0_119 = arith.constant 0 : index
    %c850 = arith.constant 850 : index
    %c0_120 = arith.constant 0 : index
    %122 = vector.load %arg1[%c0_119, %c850, %c0_120] : memref<1x1600x20xbf16, #tpu.memory_space<vmem>>, vector<1x25x20xbf16>
    %123 = vector.shape_cast %122 : vector<1x25x20xbf16> to vector<25x20xbf16>
    %124 = tpu.concatenate %107, %109, %111, %113, %115, %117, %119, %121, %123 in 1 : vector<25x20xbf16>, vector<25x20xbf16>, vector<25x20xbf16>, vector<25x20xbf16>, vector<25x20xbf16>, vector<25x20xbf16>, vector<25x20xbf16>, vector<25x20xbf16>, vector<25x20xbf16> -> vector<25x180xbf16>
    %cst_121 = arith.constant dense<0.000000e+00> : vector<25x32xf32>
    %125 = tpu.matmul %124, %0, %cst_121 {dimension_numbers = #tpu.dot_dimension_numbers<[1], [0], [0], [1], [0, 0, 1, 1], [], []>} : vector<25x180xbf16>, vector<180x32xbf16>, vector<25x32xf32> -> vector<25x32xf32>
    %126 = vector.broadcast %1 : vector<1x32xf32> to vector<25x32xf32>
    %127 = arith.addf %125, %126 : vector<25x32xf32>
    %cst_122 = arith.constant 0.000000e+00 : f32
    %128 = vector.broadcast %cst_122 : f32 to vector<25x32xf32>
    %129 = arith.maximumf %127, %128 : vector<25x32xf32>
    %130 = arith.truncf %129 : vector<25x32xf32> to vector<25x32xbf16>
    %c100_123 = arith.constant 100 : index
    %c0_124 = arith.constant 0 : index
    %131 = vector.load %arg13[%c100_123, %c0_124] : memref<400x32xbf16, #tpu.memory_space<vmem>>, vector<25x32xbf16>
    tpu.vector_store %arg13[%c100_123, %c0_124], %130 {strides = array<i32>} : memref<400x32xbf16, #tpu.memory_space<vmem>>, vector<25x32xbf16>,
    %c0_125 = arith.constant 0 : index
    %c450_126 = arith.constant 450 : index
    %c0_127 = arith.constant 0 : index
    %132 = vector.load %arg1[%c0_125, %c450_126, %c0_127] : memref<1x1600x20xbf16, #tpu.memory_space<vmem>>, vector<1x25x20xbf16>
    %133 = vector.shape_cast %132 : vector<1x25x20xbf16> to vector<25x20xbf16>
    %c0_128 = arith.constant 0 : index
    %c475_129 = arith.constant 475 : index
    %c0_130 = arith.constant 0 : index
    %134 = vector.load %arg1[%c0_128, %c475_129, %c0_130] : memref<1x1600x20xbf16, #tpu.memory_space<vmem>>, vector<1x25x20xbf16>
    %135 = vector.shape_cast %134 : vector<1x25x20xbf16> to vector<25x20xbf16>
    %c0_131 = arith.constant 0 : index
    %c500_132 = arith.constant 500 : index
    %c0_133 = arith.constant 0 : index
    %136 = vector.load %arg1[%c0_131, %c500_132, %c0_133] : memref<1x1600x20xbf16, #tpu.memory_space<vmem>>, vector<1x25x20xbf16>
    %137 = vector.shape_cast %136 : vector<1x25x20xbf16> to vector<25x20xbf16>
    %c0_134 = arith.constant 0 : index
    %c650_135 = arith.constant 650 : index
    %c0_136 = arith.constant 0 : index
    %138 = vector.load %arg1[%c0_134, %c650_135, %c0_136] : memref<1x1600x20xbf16, #tpu.memory_space<vmem>>, vector<1x25x20xbf16>
    %139 = vector.shape_cast %138 : vector<1x25x20xbf16> to vector<25x20xbf16>
    %c0_137 = arith.constant 0 : index
    %c675 = arith.constant 675 : index
    %c0_138 = arith.constant 0 : index
    %140 = vector.load %arg1[%c0_137, %c675, %c0_138] : memref<1x1600x20xbf16, #tpu.memory_space<vmem>>, vector<1x25x20xbf16>
    %141 = vector.shape_cast %140 : vector<1x25x20xbf16> to vector<25x20xbf16>
    %c0_139 = arith.constant 0 : index
    %c700 = arith.constant 700 : index
    %c0_140 = arith.constant 0 : index
    %142 = vector.load %arg1[%c0_139, %c700, %c0_140] : memref<1x1600x20xbf16, #tpu.memory_space<vmem>>, vector<1x25x20xbf16>
    %143 = vector.shape_cast %142 : vector<1x25x20xbf16> to vector<25x20xbf16>
    %c0_141 = arith.constant 0 : index
    %c850_142 = arith.constant 850 : index
    %c0_143 = arith.constant 0 : index
    %144 = vector.load %arg1[%c0_141, %c850_142, %c0_143] : memref<1x1600x20xbf16, #tpu.memory_space<vmem>>, vector<1x25x20xbf16>
    %145 = vector.shape_cast %144 : vector<1x25x20xbf16> to vector<25x20xbf16>
    %c0_144 = arith.constant 0 : index
    %c875 = arith.constant 875 : index
    %c0_145 = arith.constant 0 : index
    %146 = vector.load %arg1[%c0_144, %c875, %c0_145] : memref<1x1600x20xbf16, #tpu.memory_space<vmem>>, vector<1x25x20xbf16>
    %147 = vector.shape_cast %146 : vector<1x25x20xbf16> to vector<25x20xbf16>
    %c0_146 = arith.constant 0 : index
    %c900 = arith.constant 900 : index
    %c0_147 = arith.constant 0 : index
    %148 = vector.load %arg1[%c0_146, %c900, %c0_147] : memref<1x1600x20xbf16, #tpu.memory_space<vmem>>, vector<1x25x20xbf16>
    %149 = vector.shape_cast %148 : vector<1x25x20xbf16> to vector<25x20xbf16>
    %150 = tpu.concatenate %133, %135, %137, %139, %141, %143, %145, %147, %149 in 1 : vector<25x20xbf16>, vector<25x20xbf16>, vector<25x20xbf16>, vector<25x20xbf16>, vector<25x20xbf16>, vector<25x20xbf16>, vector<25x20xbf16>, vector<25x20xbf16>, vector<25x20xbf16> -> vector<25x180xbf16>
    %cst_148 = arith.constant dense<0.000000e+00> : vector<25x32xf32>
    %151 = tpu.matmul %150, %0, %cst_148 {dimension_numbers = #tpu.dot_dimension_numbers<[1], [0], [0], [1], [0, 0, 1, 1], [], []>} : vector<25x180xbf16>, vector<180x32xbf16>, vector<25x32xf32> -> vector<25x32xf32>
    %152 = vector.broadcast %1 : vector<1x32xf32> to vector<25x32xf32>
    %153 = arith.addf %151, %152 : vector<25x32xf32>
    %cst_149 = arith.constant 0.000000e+00 : f32
    %154 = vector.broadcast %cst_149 : f32 to vector<25x32xf32>
    %155 = arith.maximumf %153, %154 : vector<25x32xf32>
    %156 = arith.truncf %155 : vector<25x32xf32> to vector<25x32xbf16>
    %c125_150 = arith.constant 125 : index
    %c0_151 = arith.constant 0 : index
    %157 = vector.load %arg13[%c125_150, %c0_151] : memref<400x32xbf16, #tpu.memory_space<vmem>>, vector<25x32xbf16>
    tpu.vector_store %arg13[%c125_150, %c0_151], %156 {strides = array<i32>} : memref<400x32xbf16, #tpu.memory_space<vmem>>, vector<25x32xbf16>,
    %c0_152 = arith.constant 0 : index
    %c500_153 = arith.constant 500 : index
    %c0_154 = arith.constant 0 : index
    %158 = vector.load %arg1[%c0_152, %c500_153, %c0_154] : memref<1x1600x20xbf16, #tpu.memory_space<vmem>>, vector<1x25x20xbf16>
    %159 = vector.shape_cast %158 : vector<1x25x20xbf16> to vector<25x20xbf16>
    %c0_155 = arith.constant 0 : index
    %c525_156 = arith.constant 525 : index
    %c0_157 = arith.constant 0 : index
    %160 = vector.load %arg1[%c0_155, %c525_156, %c0_157] : memref<1x1600x20xbf16, #tpu.memory_space<vmem>>, vector<1x25x20xbf16>
    %161 = vector.shape_cast %160 : vector<1x25x20xbf16> to vector<25x20xbf16>
    %c0_158 = arith.constant 0 : index
    %c550_159 = arith.constant 550 : index
    %c0_160 = arith.constant 0 : index
    %162 = vector.load %arg1[%c0_158, %c550_159, %c0_160] : memref<1x1600x20xbf16, #tpu.memory_space<vmem>>, vector<1x25x20xbf16>
    %163 = vector.shape_cast %162 : vector<1x25x20xbf16> to vector<25x20xbf16>
    %c0_161 = arith.constant 0 : index
    %c700_162 = arith.constant 700 : index
    %c0_163 = arith.constant 0 : index
    %164 = vector.load %arg1[%c0_161, %c700_162, %c0_163] : memref<1x1600x20xbf16, #tpu.memory_space<vmem>>, vector<1x25x20xbf16>
    %165 = vector.shape_cast %164 : vector<1x25x20xbf16> to vector<25x20xbf16>
    %c0_164 = arith.constant 0 : index
    %c725 = arith.constant 725 : index
    %c0_165 = arith.constant 0 : index
    %166 = vector.load %arg1[%c0_164, %c725, %c0_165] : memref<1x1600x20xbf16, #tpu.memory_space<vmem>>, vector<1x25x20xbf16>
    %167 = vector.shape_cast %166 : vector<1x25x20xbf16> to vector<25x20xbf16>
    %c0_166 = arith.constant 0 : index
    %c750 = arith.constant 750 : index
    %c0_167 = arith.constant 0 : index
    %168 = vector.load %arg1[%c0_166, %c750, %c0_167] : memref<1x1600x20xbf16, #tpu.memory_space<vmem>>, vector<1x25x20xbf16>
    %169 = vector.shape_cast %168 : vector<1x25x20xbf16> to vector<25x20xbf16>
    %c0_168 = arith.constant 0 : index
    %c900_169 = arith.constant 900 : index
    %c0_170 = arith.constant 0 : index
    %170 = vector.load %arg1[%c0_168, %c900_169, %c0_170] : memref<1x1600x20xbf16, #tpu.memory_space<vmem>>, vector<1x25x20xbf16>
    %171 = vector.shape_cast %170 : vector<1x25x20xbf16> to vector<25x20xbf16>
    %c0_171 = arith.constant 0 : index
    %c925 = arith.constant 925 : index
    %c0_172 = arith.constant 0 : index
    %172 = vector.load %arg1[%c0_171, %c925, %c0_172] : memref<1x1600x20xbf16, #tpu.memory_space<vmem>>, vector<1x25x20xbf16>
    %173 = vector.shape_cast %172 : vector<1x25x20xbf16> to vector<25x20xbf16>
    %c0_173 = arith.constant 0 : index
    %c950 = arith.constant 950 : index
    %c0_174 = arith.constant 0 : index
    %174 = vector.load %arg1[%c0_173, %c950, %c0_174] : memref<1x1600x20xbf16, #tpu.memory_space<vmem>>, vector<1x25x20xbf16>
    %175 = vector.shape_cast %174 : vector<1x25x20xbf16> to vector<25x20xbf16>
    %176 = tpu.concatenate %159, %161, %163, %165, %167, %169, %171, %173, %175 in 1 : vector<25x20xbf16>, vector<25x20xbf16>, vector<25x20xbf16>, vector<25x20xbf16>, vector<25x20xbf16>, vector<25x20xbf16>, vector<25x20xbf16>, vector<25x20xbf16>, vector<25x20xbf16> -> vector<25x180xbf16>
    %cst_175 = arith.constant dense<0.000000e+00> : vector<25x32xf32>
    %177 = tpu.matmul %176, %0, %cst_175 {dimension_numbers = #tpu.dot_dimension_numbers<[1], [0], [0], [1], [0, 0, 1, 1], [], []>} : vector<25x180xbf16>, vector<180x32xbf16>, vector<25x32xf32> -> vector<25x32xf32>
    %178 = vector.broadcast %1 : vector<1x32xf32> to vector<25x32xf32>
    %179 = arith.addf %177, %178 : vector<25x32xf32>
    %cst_176 = arith.constant 0.000000e+00 : f32
    %180 = vector.broadcast %cst_176 : f32 to vector<25x32xf32>
    %181 = arith.maximumf %179, %180 : vector<25x32xf32>
    %182 = arith.truncf %181 : vector<25x32xf32> to vector<25x32xbf16>
    %c150_177 = arith.constant 150 : index
    %c0_178 = arith.constant 0 : index
    %183 = vector.load %arg13[%c150_177, %c0_178] : memref<400x32xbf16, #tpu.memory_space<vmem>>, vector<25x32xbf16>
    tpu.vector_store %arg13[%c150_177, %c0_178], %182 {strides = array<i32>} : memref<400x32xbf16, #tpu.memory_space<vmem>>, vector<25x32xbf16>,
    %c0_179 = arith.constant 0 : index
    %c550_180 = arith.constant 550 : index
    %c0_181 = arith.constant 0 : index
    %184 = vector.load %arg1[%c0_179, %c550_180, %c0_181] : memref<1x1600x20xbf16, #tpu.memory_space<vmem>>, vector<1x25x20xbf16>
    %185 = vector.shape_cast %184 : vector<1x25x20xbf16> to vector<25x20xbf16>
    %c0_182 = arith.constant 0 : index
    %c575_183 = arith.constant 575 : index
    %c0_184 = arith.constant 0 : index
    %186 = vector.load %arg1[%c0_182, %c575_183, %c0_184] : memref<1x1600x20xbf16, #tpu.memory_space<vmem>>, vector<1x25x20xbf16>
    %187 = vector.shape_cast %186 : vector<1x25x20xbf16> to vector<25x20xbf16>
    %c0_185 = arith.constant 0 : index
    %c401_186 = arith.constant 401 : index
    %c0_187 = arith.constant 0 : index
    %188 = vector.load %arg1[%c0_185, %c401_186, %c0_187] : memref<1x1600x20xbf16, #tpu.memory_space<vmem>>, vector<1x25x20xbf16>
    %189 = vector.shape_cast %188 : vector<1x25x20xbf16> to vector<25x20xbf16>
    %c0_188 = arith.constant 0 : index
    %c750_189 = arith.constant 750 : index
    %c0_190 = arith.constant 0 : index
    %190 = vector.load %arg1[%c0_188, %c750_189, %c0_190] : memref<1x1600x20xbf16, #tpu.memory_space<vmem>>, vector<1x25x20xbf16>
    %191 = vector.shape_cast %190 : vector<1x25x20xbf16> to vector<25x20xbf16>
    %c0_191 = arith.constant 0 : index
    %c775 = arith.constant 775 : index
    %c0_192 = arith.constant 0 : index
    %192 = vector.load %arg1[%c0_191, %c775, %c0_192] : memref<1x1600x20xbf16, #tpu.memory_space<vmem>>, vector<1x25x20xbf16>
    %193 = vector.shape_cast %192 : vector<1x25x20xbf16> to vector<25x20xbf16>
    %c0_193 = arith.constant 0 : index
    %c601 = arith.constant 601 : index
    %c0_194 = arith.constant 0 : index
    %194 = vector.load %arg1[%c0_193, %c601, %c0_194] : memref<1x1600x20xbf16, #tpu.memory_space<vmem>>, vector<1x25x20xbf16>
    %195 = vector.shape_cast %194 : vector<1x25x20xbf16> to vector<25x20xbf16>
    %c0_195 = arith.constant 0 : index
    %c950_196 = arith.constant 950 : index
    %c0_197 = arith.constant 0 : index
    %196 = vector.load %arg1[%c0_195, %c950_196, %c0_197] : memref<1x1600x20xbf16, #tpu.memory_space<vmem>>, vector<1x25x20xbf16>
    %197 = vector.shape_cast %196 : vector<1x25x20xbf16> to vector<25x20xbf16>
    %c0_198 = arith.constant 0 : index
    %c975 = arith.constant 975 : index
    %c0_199 = arith.constant 0 : index
    %198 = vector.load %arg1[%c0_198, %c975, %c0_199] : memref<1x1600x20xbf16, #tpu.memory_space<vmem>>, vector<1x25x20xbf16>
    %199 = vector.shape_cast %198 : vector<1x25x20xbf16> to vector<25x20xbf16>
    %c0_200 = arith.constant 0 : index
    %c801 = arith.constant 801 : index
    %c0_201 = arith.constant 0 : index
    %200 = vector.load %arg1[%c0_200, %c801, %c0_201] : memref<1x1600x20xbf16, #tpu.memory_space<vmem>>, vector<1x25x20xbf16>
    %201 = vector.shape_cast %200 : vector<1x25x20xbf16> to vector<25x20xbf16>
    %202 = tpu.concatenate %185, %187, %189, %191, %193, %195, %197, %199, %201 in 1 : vector<25x20xbf16>, vector<25x20xbf16>, vector<25x20xbf16>, vector<25x20xbf16>, vector<25x20xbf16>, vector<25x20xbf16>, vector<25x20xbf16>, vector<25x20xbf16>, vector<25x20xbf16> -> vector<25x180xbf16>
    %cst_202 = arith.constant dense<0.000000e+00> : vector<25x32xf32>
    %203 = tpu.matmul %202, %0, %cst_202 {dimension_numbers = #tpu.dot_dimension_numbers<[1], [0], [0], [1], [0, 0, 1, 1], [], []>} : vector<25x180xbf16>, vector<180x32xbf16>, vector<25x32xf32> -> vector<25x32xf32>
    %204 = vector.broadcast %1 : vector<1x32xf32> to vector<25x32xf32>
    %205 = arith.addf %203, %204 : vector<25x32xf32>
    %cst_203 = arith.constant 0.000000e+00 : f32
    %206 = vector.broadcast %cst_203 : f32 to vector<25x32xf32>
    %207 = arith.maximumf %205, %206 : vector<25x32xf32>
    %208 = arith.truncf %207 : vector<25x32xf32> to vector<25x32xbf16>
    %c175_204 = arith.constant 175 : index
    %c0_205 = arith.constant 0 : index
    %209 = vector.load %arg13[%c175_204, %c0_205] : memref<400x32xbf16, #tpu.memory_space<vmem>>, vector<25x32xbf16>
    tpu.vector_store %arg13[%c175_204, %c0_205], %208 {strides = array<i32>} : memref<400x32xbf16, #tpu.memory_space<vmem>>, vector<25x32xbf16>,
    %c0_206 = arith.constant 0 : index
    %c800_207 = arith.constant 800 : index
    %c0_208 = arith.constant 0 : index
    %210 = vector.load %arg1[%c0_206, %c800_207, %c0_208] : memref<1x1600x20xbf16, #tpu.memory_space<vmem>>, vector<1x25x20xbf16>
    %211 = vector.shape_cast %210 : vector<1x25x20xbf16> to vector<25x20xbf16>
    %c0_209 = arith.constant 0 : index
    %c825_210 = arith.constant 825 : index
    %c0_211 = arith.constant 0 : index
    %212 = vector.load %arg1[%c0_209, %c825_210, %c0_211] : memref<1x1600x20xbf16, #tpu.memory_space<vmem>>, vector<1x25x20xbf16>
    %213 = vector.shape_cast %212 : vector<1x25x20xbf16> to vector<25x20xbf16>
    %c0_212 = arith.constant 0 : index
    %c850_213 = arith.constant 850 : index
    %c0_214 = arith.constant 0 : index
    %214 = vector.load %arg1[%c0_212, %c850_213, %c0_214] : memref<1x1600x20xbf16, #tpu.memory_space<vmem>>, vector<1x25x20xbf16>
    %215 = vector.shape_cast %214 : vector<1x25x20xbf16> to vector<25x20xbf16>
    %c0_215 = arith.constant 0 : index
    %c1000 = arith.constant 1000 : index
    %c0_216 = arith.constant 0 : index
    %216 = vector.load %arg1[%c0_215, %c1000, %c0_216] : memref<1x1600x20xbf16, #tpu.memory_space<vmem>>, vector<1x25x20xbf16>
    %217 = vector.shape_cast %216 : vector<1x25x20xbf16> to vector<25x20xbf16>
    %c0_217 = arith.constant 0 : index
    %c1025 = arith.constant 1025 : index
    %c0_218 = arith.constant 0 : index
    %218 = vector.load %arg1[%c0_217, %c1025, %c0_218] : memref<1x1600x20xbf16, #tpu.memory_space<vmem>>, vector<1x25x20xbf16>
    %219 = vector.shape_cast %218 : vector<1x25x20xbf16> to vector<25x20xbf16>
    %c0_219 = arith.constant 0 : index
    %c1050 = arith.constant 1050 : index
    %c0_220 = arith.constant 0 : index
    %220 = vector.load %arg1[%c0_219, %c1050, %c0_220] : memref<1x1600x20xbf16, #tpu.memory_space<vmem>>, vector<1x25x20xbf16>
    %221 = vector.shape_cast %220 : vector<1x25x20xbf16> to vector<25x20xbf16>
    %c0_221 = arith.constant 0 : index
    %c1200 = arith.constant 1200 : index
    %c0_222 = arith.constant 0 : index
    %222 = vector.load %arg1[%c0_221, %c1200, %c0_222] : memref<1x1600x20xbf16, #tpu.memory_space<vmem>>, vector<1x25x20xbf16>
    %223 = vector.shape_cast %222 : vector<1x25x20xbf16> to vector<25x20xbf16>
    %c0_223 = arith.constant 0 : index
    %c1225 = arith.constant 1225 : index
    %c0_224 = arith.constant 0 : index
    %224 = vector.load %arg1[%c0_223, %c1225, %c0_224] : memref<1x1600x20xbf16, #tpu.memory_space<vmem>>, vector<1x25x20xbf16>
    %225 = vector.shape_cast %224 : vector<1x25x20xbf16> to vector<25x20xbf16>
    %c0_225 = arith.constant 0 : index
    %c1250 = arith.constant 1250 : index
    %c0_226 = arith.constant 0 : index
    %226 = vector.load %arg1[%c0_225, %c1250, %c0_226] : memref<1x1600x20xbf16, #tpu.memory_space<vmem>>, vector<1x25x20xbf16>
    %227 = vector.shape_cast %226 : vector<1x25x20xbf16> to vector<25x20xbf16>
    %228 = tpu.concatenate %211, %213, %215, %217, %219, %221, %223, %225, %227 in 1 : vector<25x20xbf16>, vector<25x20xbf16>, vector<25x20xbf16>, vector<25x20xbf16>, vector<25x20xbf16>, vector<25x20xbf16>, vector<25x20xbf16>, vector<25x20xbf16>, vector<25x20xbf16> -> vector<25x180xbf16>
    %cst_227 = arith.constant dense<0.000000e+00> : vector<25x32xf32>
    %229 = tpu.matmul %228, %0, %cst_227 {dimension_numbers = #tpu.dot_dimension_numbers<[1], [0], [0], [1], [0, 0, 1, 1], [], []>} : vector<25x180xbf16>, vector<180x32xbf16>, vector<25x32xf32> -> vector<25x32xf32>
    %230 = vector.broadcast %1 : vector<1x32xf32> to vector<25x32xf32>
    %231 = arith.addf %229, %230 : vector<25x32xf32>
    %cst_228 = arith.constant 0.000000e+00 : f32
    %232 = vector.broadcast %cst_228 : f32 to vector<25x32xf32>
    %233 = arith.maximumf %231, %232 : vector<25x32xf32>
    %234 = arith.truncf %233 : vector<25x32xf32> to vector<25x32xbf16>
    %c200_229 = arith.constant 200 : index
    %c0_230 = arith.constant 0 : index
    %235 = vector.load %arg13[%c200_229, %c0_230] : memref<400x32xbf16, #tpu.memory_space<vmem>>, vector<25x32xbf16>
    tpu.vector_store %arg13[%c200_229, %c0_230], %234 {strides = array<i32>} : memref<400x32xbf16, #tpu.memory_space<vmem>>, vector<25x32xbf16>,
    %c0_231 = arith.constant 0 : index
    %c850_232 = arith.constant 850 : index
    %c0_233 = arith.constant 0 : index
    %236 = vector.load %arg1[%c0_231, %c850_232, %c0_233] : memref<1x1600x20xbf16, #tpu.memory_space<vmem>>, vector<1x25x20xbf16>
    %237 = vector.shape_cast %236 : vector<1x25x20xbf16> to vector<25x20xbf16>
    %c0_234 = arith.constant 0 : index
    %c875_235 = arith.constant 875 : index
    %c0_236 = arith.constant 0 : index
    %238 = vector.load %arg1[%c0_234, %c875_235, %c0_236] : memref<1x1600x20xbf16, #tpu.memory_space<vmem>>, vector<1x25x20xbf16>
    %239 = vector.shape_cast %238 : vector<1x25x20xbf16> to vector<25x20xbf16>
    %c0_237 = arith.constant 0 : index
    %c900_238 = arith.constant 900 : index
    %c0_239 = arith.constant 0 : index
    %240 = vector.load %arg1[%c0_237, %c900_238, %c0_239] : memref<1x1600x20xbf16, #tpu.memory_space<vmem>>, vector<1x25x20xbf16>
    %241 = vector.shape_cast %240 : vector<1x25x20xbf16> to vector<25x20xbf16>
    %c0_240 = arith.constant 0 : index
    %c1050_241 = arith.constant 1050 : index
    %c0_242 = arith.constant 0 : index
    %242 = vector.load %arg1[%c0_240, %c1050_241, %c0_242] : memref<1x1600x20xbf16, #tpu.memory_space<vmem>>, vector<1x25x20xbf16>
    %243 = vector.shape_cast %242 : vector<1x25x20xbf16> to vector<25x20xbf16>
    %c0_243 = arith.constant 0 : index
    %c1075 = arith.constant 1075 : index
    %c0_244 = arith.constant 0 : index
    %244 = vector.load %arg1[%c0_243, %c1075, %c0_244] : memref<1x1600x20xbf16, #tpu.memory_space<vmem>>, vector<1x25x20xbf16>
    %245 = vector.shape_cast %244 : vector<1x25x20xbf16> to vector<25x20xbf16>
    %c0_245 = arith.constant 0 : index
    %c1100 = arith.constant 1100 : index
    %c0_246 = arith.constant 0 : index
    %246 = vector.load %arg1[%c0_245, %c1100, %c0_246] : memref<1x1600x20xbf16, #tpu.memory_space<vmem>>, vector<1x25x20xbf16>
    %247 = vector.shape_cast %246 : vector<1x25x20xbf16> to vector<25x20xbf16>
    %c0_247 = arith.constant 0 : index
    %c1250_248 = arith.constant 1250 : index
    %c0_249 = arith.constant 0 : index
    %248 = vector.load %arg1[%c0_247, %c1250_248, %c0_249] : memref<1x1600x20xbf16, #tpu.memory_space<vmem>>, vector<1x25x20xbf16>
    %249 = vector.shape_cast %248 : vector<1x25x20xbf16> to vector<25x20xbf16>
    %c0_250 = arith.constant 0 : index
    %c1275 = arith.constant 1275 : index
    %c0_251 = arith.constant 0 : index
    %250 = vector.load %arg1[%c0_250, %c1275, %c0_251] : memref<1x1600x20xbf16, #tpu.memory_space<vmem>>, vector<1x25x20xbf16>
    %251 = vector.shape_cast %250 : vector<1x25x20xbf16> to vector<25x20xbf16>
    %c0_252 = arith.constant 0 : index
    %c1300 = arith.constant 1300 : index
    %c0_253 = arith.constant 0 : index
    %252 = vector.load %arg1[%c0_252, %c1300, %c0_253] : memref<1x1600x20xbf16, #tpu.memory_space<vmem>>, vector<1x25x20xbf16>
    %253 = vector.shape_cast %252 : vector<1x25x20xbf16> to vector<25x20xbf16>
    %254 = tpu.concatenate %237, %239, %241, %243, %245, %247, %249, %251, %253 in 1 : vector<25x20xbf16>, vector<25x20xbf16>, vector<25x20xbf16>, vector<25x20xbf16>, vector<25x20xbf16>, vector<25x20xbf16>, vector<25x20xbf16>, vector<25x20xbf16>, vector<25x20xbf16> -> vector<25x180xbf16>
    %cst_254 = arith.constant dense<0.000000e+00> : vector<25x32xf32>
    %255 = tpu.matmul %254, %0, %cst_254 {dimension_numbers = #tpu.dot_dimension_numbers<[1], [0], [0], [1], [0, 0, 1, 1], [], []>} : vector<25x180xbf16>, vector<180x32xbf16>, vector<25x32xf32> -> vector<25x32xf32>
    %256 = vector.broadcast %1 : vector<1x32xf32> to vector<25x32xf32>
    %257 = arith.addf %255, %256 : vector<25x32xf32>
    %cst_255 = arith.constant 0.000000e+00 : f32
    %258 = vector.broadcast %cst_255 : f32 to vector<25x32xf32>
    %259 = arith.maximumf %257, %258 : vector<25x32xf32>
    %260 = arith.truncf %259 : vector<25x32xf32> to vector<25x32xbf16>
    %c225_256 = arith.constant 225 : index
    %c0_257 = arith.constant 0 : index
    %261 = vector.load %arg13[%c225_256, %c0_257] : memref<400x32xbf16, #tpu.memory_space<vmem>>, vector<25x32xbf16>
    tpu.vector_store %arg13[%c225_256, %c0_257], %260 {strides = array<i32>} : memref<400x32xbf16, #tpu.memory_space<vmem>>, vector<25x32xbf16>,
    %c0_258 = arith.constant 0 : index
    %c900_259 = arith.constant 900 : index
    %c0_260 = arith.constant 0 : index
    %262 = vector.load %arg1[%c0_258, %c900_259, %c0_260] : memref<1x1600x20xbf16, #tpu.memory_space<vmem>>, vector<1x25x20xbf16>
    %263 = vector.shape_cast %262 : vector<1x25x20xbf16> to vector<25x20xbf16>
    %c0_261 = arith.constant 0 : index
    %c925_262 = arith.constant 925 : index
    %c0_263 = arith.constant 0 : index
    %264 = vector.load %arg1[%c0_261, %c925_262, %c0_263] : memref<1x1600x20xbf16, #tpu.memory_space<vmem>>, vector<1x25x20xbf16>
    %265 = vector.shape_cast %264 : vector<1x25x20xbf16> to vector<25x20xbf16>
    %c0_264 = arith.constant 0 : index
    %c950_265 = arith.constant 950 : index
    %c0_266 = arith.constant 0 : index
    %266 = vector.load %arg1[%c0_264, %c950_265, %c0_266] : memref<1x1600x20xbf16, #tpu.memory_space<vmem>>, vector<1x25x20xbf16>
    %267 = vector.shape_cast %266 : vector<1x25x20xbf16> to vector<25x20xbf16>
    %c0_267 = arith.constant 0 : index
    %c1100_268 = arith.constant 1100 : index
    %c0_269 = arith.constant 0 : index
    %268 = vector.load %arg1[%c0_267, %c1100_268, %c0_269] : memref<1x1600x20xbf16, #tpu.memory_space<vmem>>, vector<1x25x20xbf16>
    %269 = vector.shape_cast %268 : vector<1x25x20xbf16> to vector<25x20xbf16>
    %c0_270 = arith.constant 0 : index
    %c1125 = arith.constant 1125 : index
    %c0_271 = arith.constant 0 : index
    %270 = vector.load %arg1[%c0_270, %c1125, %c0_271] : memref<1x1600x20xbf16, #tpu.memory_space<vmem>>, vector<1x25x20xbf16>
    %271 = vector.shape_cast %270 : vector<1x25x20xbf16> to vector<25x20xbf16>
    %c0_272 = arith.constant 0 : index
    %c1150 = arith.constant 1150 : index
    %c0_273 = arith.constant 0 : index
    %272 = vector.load %arg1[%c0_272, %c1150, %c0_273] : memref<1x1600x20xbf16, #tpu.memory_space<vmem>>, vector<1x25x20xbf16>
    %273 = vector.shape_cast %272 : vector<1x25x20xbf16> to vector<25x20xbf16>
    %c0_274 = arith.constant 0 : index
    %c1300_275 = arith.constant 1300 : index
    %c0_276 = arith.constant 0 : index
    %274 = vector.load %arg1[%c0_274, %c1300_275, %c0_276] : memref<1x1600x20xbf16, #tpu.memory_space<vmem>>, vector<1x25x20xbf16>
    %275 = vector.shape_cast %274 : vector<1x25x20xbf16> to vector<25x20xbf16>
    %c0_277 = arith.constant 0 : index
    %c1325 = arith.constant 1325 : index
    %c0_278 = arith.constant 0 : index
    %276 = vector.load %arg1[%c0_277, %c1325, %c0_278] : memref<1x1600x20xbf16, #tpu.memory_space<vmem>>, vector<1x25x20xbf16>
    %277 = vector.shape_cast %276 : vector<1x25x20xbf16> to vector<25x20xbf16>
    %c0_279 = arith.constant 0 : index
    %c1350 = arith.constant 1350 : index
    %c0_280 = arith.constant 0 : index
    %278 = vector.load %arg1[%c0_279, %c1350, %c0_280] : memref<1x1600x20xbf16, #tpu.memory_space<vmem>>, vector<1x25x20xbf16>
    %279 = vector.shape_cast %278 : vector<1x25x20xbf16> to vector<25x20xbf16>
    %280 = tpu.concatenate %263, %265, %267, %269, %271, %273, %275, %277, %279 in 1 : vector<25x20xbf16>, vector<25x20xbf16>, vector<25x20xbf16>, vector<25x20xbf16>, vector<25x20xbf16>, vector<25x20xbf16>, vector<25x20xbf16>, vector<25x20xbf16>, vector<25x20xbf16> -> vector<25x180xbf16>
    %cst_281 = arith.constant dense<0.000000e+00> : vector<25x32xf32>
    %281 = tpu.matmul %280, %0, %cst_281 {dimension_numbers = #tpu.dot_dimension_numbers<[1], [0], [0], [1], [0, 0, 1, 1], [], []>} : vector<25x180xbf16>, vector<180x32xbf16>, vector<25x32xf32> -> vector<25x32xf32>
    %282 = vector.broadcast %1 : vector<1x32xf32> to vector<25x32xf32>
    %283 = arith.addf %281, %282 : vector<25x32xf32>
    %cst_282 = arith.constant 0.000000e+00 : f32
    %284 = vector.broadcast %cst_282 : f32 to vector<25x32xf32>
    %285 = arith.maximumf %283, %284 : vector<25x32xf32>
    %286 = arith.truncf %285 : vector<25x32xf32> to vector<25x32xbf16>
    %c250_283 = arith.constant 250 : index
    %c0_284 = arith.constant 0 : index
    %287 = vector.load %arg13[%c250_283, %c0_284] : memref<400x32xbf16, #tpu.memory_space<vmem>>, vector<25x32xbf16>
    tpu.vector_store %arg13[%c250_283, %c0_284], %286 {strides = array<i32>} : memref<400x32xbf16, #tpu.memory_space<vmem>>, vector<25x32xbf16>,
    %c0_285 = arith.constant 0 : index
    %c950_286 = arith.constant 950 : index
    %c0_287 = arith.constant 0 : index
    %288 = vector.load %arg1[%c0_285, %c950_286, %c0_287] : memref<1x1600x20xbf16, #tpu.memory_space<vmem>>, vector<1x25x20xbf16>
    %289 = vector.shape_cast %288 : vector<1x25x20xbf16> to vector<25x20xbf16>
    %c0_288 = arith.constant 0 : index
    %c975_289 = arith.constant 975 : index
    %c0_290 = arith.constant 0 : index
    %290 = vector.load %arg1[%c0_288, %c975_289, %c0_290] : memref<1x1600x20xbf16, #tpu.memory_space<vmem>>, vector<1x25x20xbf16>
    %291 = vector.shape_cast %290 : vector<1x25x20xbf16> to vector<25x20xbf16>
    %c0_291 = arith.constant 0 : index
    %c801_292 = arith.constant 801 : index
    %c0_293 = arith.constant 0 : index
    %292 = vector.load %arg1[%c0_291, %c801_292, %c0_293] : memref<1x1600x20xbf16, #tpu.memory_space<vmem>>, vector<1x25x20xbf16>
    %293 = vector.shape_cast %292 : vector<1x25x20xbf16> to vector<25x20xbf16>
    %c0_294 = arith.constant 0 : index
    %c1150_295 = arith.constant 1150 : index
    %c0_296 = arith.constant 0 : index
    %294 = vector.load %arg1[%c0_294, %c1150_295, %c0_296] : memref<1x1600x20xbf16, #tpu.memory_space<vmem>>, vector<1x25x20xbf16>
    %295 = vector.shape_cast %294 : vector<1x25x20xbf16> to vector<25x20xbf16>
    %c0_297 = arith.constant 0 : index
    %c1175 = arith.constant 1175 : index
    %c0_298 = arith.constant 0 : index
    %296 = vector.load %arg1[%c0_297, %c1175, %c0_298] : memref<1x1600x20xbf16, #tpu.memory_space<vmem>>, vector<1x25x20xbf16>
    %297 = vector.shape_cast %296 : vector<1x25x20xbf16> to vector<25x20xbf16>
    %c0_299 = arith.constant 0 : index
    %c1001 = arith.constant 1001 : index
    %c0_300 = arith.constant 0 : index
    %298 = vector.load %arg1[%c0_299, %c1001, %c0_300] : memref<1x1600x20xbf16, #tpu.memory_space<vmem>>, vector<1x25x20xbf16>
    %299 = vector.shape_cast %298 : vector<1x25x20xbf16> to vector<25x20xbf16>
    %c0_301 = arith.constant 0 : index
    %c1350_302 = arith.constant 1350 : index
    %c0_303 = arith.constant 0 : index
    %300 = vector.load %arg1[%c0_301, %c1350_302, %c0_303] : memref<1x1600x20xbf16, #tpu.memory_space<vmem>>, vector<1x25x20xbf16>
    %301 = vector.shape_cast %300 : vector<1x25x20xbf16> to vector<25x20xbf16>
    %c0_304 = arith.constant 0 : index
    %c1375 = arith.constant 1375 : index
    %c0_305 = arith.constant 0 : index
    %302 = vector.load %arg1[%c0_304, %c1375, %c0_305] : memref<1x1600x20xbf16, #tpu.memory_space<vmem>>, vector<1x25x20xbf16>
    %303 = vector.shape_cast %302 : vector<1x25x20xbf16> to vector<25x20xbf16>
    %c0_306 = arith.constant 0 : index
    %c1201 = arith.constant 1201 : index
    %c0_307 = arith.constant 0 : index
    %304 = vector.load %arg1[%c0_306, %c1201, %c0_307] : memref<1x1600x20xbf16, #tpu.memory_space<vmem>>, vector<1x25x20xbf16>
    %305 = vector.shape_cast %304 : vector<1x25x20xbf16> to vector<25x20xbf16>
    %306 = tpu.concatenate %289, %291, %293, %295, %297, %299, %301, %303, %305 in 1 : vector<25x20xbf16>, vector<25x20xbf16>, vector<25x20xbf16>, vector<25x20xbf16>, vector<25x20xbf16>, vector<25x20xbf16>, vector<25x20xbf16>, vector<25x20xbf16>, vector<25x20xbf16> -> vector<25x180xbf16>
    %cst_308 = arith.constant dense<0.000000e+00> : vector<25x32xf32>
    %307 = tpu.matmul %306, %0, %cst_308 {dimension_numbers = #tpu.dot_dimension_numbers<[1], [0], [0], [1], [0, 0, 1, 1], [], []>} : vector<25x180xbf16>, vector<180x32xbf16>, vector<25x32xf32> -> vector<25x32xf32>
    %308 = vector.broadcast %1 : vector<1x32xf32> to vector<25x32xf32>
    %309 = arith.addf %307, %308 : vector<25x32xf32>
    %cst_309 = arith.constant 0.000000e+00 : f32
    %310 = vector.broadcast %cst_309 : f32 to vector<25x32xf32>
    %311 = arith.maximumf %309, %310 : vector<25x32xf32>
    %312 = arith.truncf %311 : vector<25x32xf32> to vector<25x32xbf16>
    %c275_310 = arith.constant 275 : index
    %c0_311 = arith.constant 0 : index
    %313 = vector.load %arg13[%c275_310, %c0_311] : memref<400x32xbf16, #tpu.memory_space<vmem>>, vector<25x32xbf16>
    tpu.vector_store %arg13[%c275_310, %c0_311], %312 {strides = array<i32>} : memref<400x32xbf16, #tpu.memory_space<vmem>>, vector<25x32xbf16>,
    %c0_312 = arith.constant 0 : index
    %c1200_313 = arith.constant 1200 : index
    %c0_314 = arith.constant 0 : index
    %314 = vector.load %arg1[%c0_312, %c1200_313, %c0_314] : memref<1x1600x20xbf16, #tpu.memory_space<vmem>>, vector<1x25x20xbf16>
    %315 = vector.shape_cast %314 : vector<1x25x20xbf16> to vector<25x20xbf16>
    %c0_315 = arith.constant 0 : index
    %c1225_316 = arith.constant 1225 : index
    %c0_317 = arith.constant 0 : index
    %316 = vector.load %arg1[%c0_315, %c1225_316, %c0_317] : memref<1x1600x20xbf16, #tpu.memory_space<vmem>>, vector<1x25x20xbf16>
    %317 = vector.shape_cast %316 : vector<1x25x20xbf16> to vector<25x20xbf16>
    %c0_318 = arith.constant 0 : index
    %c1250_319 = arith.constant 1250 : index
    %c0_320 = arith.constant 0 : index
    %318 = vector.load %arg1[%c0_318, %c1250_319, %c0_320] : memref<1x1600x20xbf16, #tpu.memory_space<vmem>>, vector<1x25x20xbf16>
    %319 = vector.shape_cast %318 : vector<1x25x20xbf16> to vector<25x20xbf16>
    %c0_321 = arith.constant 0 : index
    %c1400 = arith.constant 1400 : index
    %c0_322 = arith.constant 0 : index
    %320 = vector.load %arg1[%c0_321, %c1400, %c0_322] : memref<1x1600x20xbf16, #tpu.memory_space<vmem>>, vector<1x25x20xbf16>
    %321 = vector.shape_cast %320 : vector<1x25x20xbf16> to vector<25x20xbf16>
    %c0_323 = arith.constant 0 : index
    %c1425 = arith.constant 1425 : index
    %c0_324 = arith.constant 0 : index
    %322 = vector.load %arg1[%c0_323, %c1425, %c0_324] : memref<1x1600x20xbf16, #tpu.memory_space<vmem>>, vector<1x25x20xbf16>
    %323 = vector.shape_cast %322 : vector<1x25x20xbf16> to vector<25x20xbf16>
    %c0_325 = arith.constant 0 : index
    %c1450 = arith.constant 1450 : index
    %c0_326 = arith.constant 0 : index
    %324 = vector.load %arg1[%c0_325, %c1450, %c0_326] : memref<1x1600x20xbf16, #tpu.memory_space<vmem>>, vector<1x25x20xbf16>
    %325 = vector.shape_cast %324 : vector<1x25x20xbf16> to vector<25x20xbf16>
    %c0_327 = arith.constant 0 : index
    %c5 = arith.constant 5 : index
    %c0_328 = arith.constant 0 : index
    %326 = vector.load %arg1[%c0_327, %c5, %c0_328] : memref<1x1600x20xbf16, #tpu.memory_space<vmem>>, vector<1x25x20xbf16>
    %327 = vector.shape_cast %326 : vector<1x25x20xbf16> to vector<25x20xbf16>
    %c0_329 = arith.constant 0 : index
    %c30 = arith.constant 30 : index
    %c0_330 = arith.constant 0 : index
    %328 = vector.load %arg1[%c0_329, %c30, %c0_330] : memref<1x1600x20xbf16, #tpu.memory_space<vmem>>, vector<1x25x20xbf16>
    %329 = vector.shape_cast %328 : vector<1x25x20xbf16> to vector<25x20xbf16>
    %c0_331 = arith.constant 0 : index
    %c55 = arith.constant 55 : index
    %c0_332 = arith.constant 0 : index
    %330 = vector.load %arg1[%c0_331, %c55, %c0_332] : memref<1x1600x20xbf16, #tpu.memory_space<vmem>>, vector<1x25x20xbf16>
    %331 = vector.shape_cast %330 : vector<1x25x20xbf16> to vector<25x20xbf16>
    %332 = tpu.concatenate %315, %317, %319, %321, %323, %325, %327, %329, %331 in 1 : vector<25x20xbf16>, vector<25x20xbf16>, vector<25x20xbf16>, vector<25x20xbf16>, vector<25x20xbf16>, vector<25x20xbf16>, vector<25x20xbf16>, vector<25x20xbf16>, vector<25x20xbf16> -> vector<25x180xbf16>
    %cst_333 = arith.constant dense<0.000000e+00> : vector<25x32xf32>
    %333 = tpu.matmul %332, %0, %cst_333 {dimension_numbers = #tpu.dot_dimension_numbers<[1], [0], [0], [1], [0, 0, 1, 1], [], []>} : vector<25x180xbf16>, vector<180x32xbf16>, vector<25x32xf32> -> vector<25x32xf32>
    %334 = vector.broadcast %1 : vector<1x32xf32> to vector<25x32xf32>
    %335 = arith.addf %333, %334 : vector<25x32xf32>
    %cst_334 = arith.constant 0.000000e+00 : f32
    %336 = vector.broadcast %cst_334 : f32 to vector<25x32xf32>
    %337 = arith.maximumf %335, %336 : vector<25x32xf32>
    %338 = arith.truncf %337 : vector<25x32xf32> to vector<25x32xbf16>
    %c300_335 = arith.constant 300 : index
    %c0_336 = arith.constant 0 : index
    %339 = vector.load %arg13[%c300_335, %c0_336] : memref<400x32xbf16, #tpu.memory_space<vmem>>, vector<25x32xbf16>
    tpu.vector_store %arg13[%c300_335, %c0_336], %338 {strides = array<i32>} : memref<400x32xbf16, #tpu.memory_space<vmem>>, vector<25x32xbf16>,
    %c0_337 = arith.constant 0 : index
    %c1250_338 = arith.constant 1250 : index
    %c0_339 = arith.constant 0 : index
    %340 = vector.load %arg1[%c0_337, %c1250_338, %c0_339] : memref<1x1600x20xbf16, #tpu.memory_space<vmem>>, vector<1x25x20xbf16>
    %341 = vector.shape_cast %340 : vector<1x25x20xbf16> to vector<25x20xbf16>
    %c0_340 = arith.constant 0 : index
    %c1275_341 = arith.constant 1275 : index
    %c0_342 = arith.constant 0 : index
    %342 = vector.load %arg1[%c0_340, %c1275_341, %c0_342] : memref<1x1600x20xbf16, #tpu.memory_space<vmem>>, vector<1x25x20xbf16>
    %343 = vector.shape_cast %342 : vector<1x25x20xbf16> to vector<25x20xbf16>
    %c0_343 = arith.constant 0 : index
    %c1300_344 = arith.constant 1300 : index
    %c0_345 = arith.constant 0 : index
    %344 = vector.load %arg1[%c0_343, %c1300_344, %c0_345] : memref<1x1600x20xbf16, #tpu.memory_space<vmem>>, vector<1x25x20xbf16>
    %345 = vector.shape_cast %344 : vector<1x25x20xbf16> to vector<25x20xbf16>
    %c0_346 = arith.constant 0 : index
    %c1450_347 = arith.constant 1450 : index
    %c0_348 = arith.constant 0 : index
    %346 = vector.load %arg1[%c0_346, %c1450_347, %c0_348] : memref<1x1600x20xbf16, #tpu.memory_space<vmem>>, vector<1x25x20xbf16>
    %347 = vector.shape_cast %346 : vector<1x25x20xbf16> to vector<25x20xbf16>
    %c0_349 = arith.constant 0 : index
    %c1475 = arith.constant 1475 : index
    %c0_350 = arith.constant 0 : index
    %348 = vector.load %arg1[%c0_349, %c1475, %c0_350] : memref<1x1600x20xbf16, #tpu.memory_space<vmem>>, vector<1x25x20xbf16>
    %349 = vector.shape_cast %348 : vector<1x25x20xbf16> to vector<25x20xbf16>
    %c0_351 = arith.constant 0 : index
    %c1500 = arith.constant 1500 : index
    %c0_352 = arith.constant 0 : index
    %350 = vector.load %arg1[%c0_351, %c1500, %c0_352] : memref<1x1600x20xbf16, #tpu.memory_space<vmem>>, vector<1x25x20xbf16>
    %351 = vector.shape_cast %350 : vector<1x25x20xbf16> to vector<25x20xbf16>
    %c0_353 = arith.constant 0 : index
    %c55_354 = arith.constant 55 : index
    %c0_355 = arith.constant 0 : index
    %352 = vector.load %arg1[%c0_353, %c55_354, %c0_355] : memref<1x1600x20xbf16, #tpu.memory_space<vmem>>, vector<1x25x20xbf16>
    %353 = vector.shape_cast %352 : vector<1x25x20xbf16> to vector<25x20xbf16>
    %c0_356 = arith.constant 0 : index
    %c80 = arith.constant 80 : index
    %c0_357 = arith.constant 0 : index
    %354 = vector.load %arg1[%c0_356, %c80, %c0_357] : memref<1x1600x20xbf16, #tpu.memory_space<vmem>>, vector<1x25x20xbf16>
    %355 = vector.shape_cast %354 : vector<1x25x20xbf16> to vector<25x20xbf16>
    %c0_358 = arith.constant 0 : index
    %c105 = arith.constant 105 : index
    %c0_359 = arith.constant 0 : index
    %356 = vector.load %arg1[%c0_358, %c105, %c0_359] : memref<1x1600x20xbf16, #tpu.memory_space<vmem>>, vector<1x25x20xbf16>
    %357 = vector.shape_cast %356 : vector<1x25x20xbf16> to vector<25x20xbf16>
    %358 = tpu.concatenate %341, %343, %345, %347, %349, %351, %353, %355, %357 in 1 : vector<25x20xbf16>, vector<25x20xbf16>, vector<25x20xbf16>, vector<25x20xbf16>, vector<25x20xbf16>, vector<25x20xbf16>, vector<25x20xbf16>, vector<25x20xbf16>, vector<25x20xbf16> -> vector<25x180xbf16>
    %cst_360 = arith.constant dense<0.000000e+00> : vector<25x32xf32>
    %359 = tpu.matmul %358, %0, %cst_360 {dimension_numbers = #tpu.dot_dimension_numbers<[1], [0], [0], [1], [0, 0, 1, 1], [], []>} : vector<25x180xbf16>, vector<180x32xbf16>, vector<25x32xf32> -> vector<25x32xf32>
    %360 = vector.broadcast %1 : vector<1x32xf32> to vector<25x32xf32>
    %361 = arith.addf %359, %360 : vector<25x32xf32>
    %cst_361 = arith.constant 0.000000e+00 : f32
    %362 = vector.broadcast %cst_361 : f32 to vector<25x32xf32>
    %363 = arith.maximumf %361, %362 : vector<25x32xf32>
    %364 = arith.truncf %363 : vector<25x32xf32> to vector<25x32xbf16>
    %c325_362 = arith.constant 325 : index
    %c0_363 = arith.constant 0 : index
    %365 = vector.load %arg13[%c325_362, %c0_363] : memref<400x32xbf16, #tpu.memory_space<vmem>>, vector<25x32xbf16>
    tpu.vector_store %arg13[%c325_362, %c0_363], %364 {strides = array<i32>} : memref<400x32xbf16, #tpu.memory_space<vmem>>, vector<25x32xbf16>,
    %c0_364 = arith.constant 0 : index
    %c1300_365 = arith.constant 1300 : index
    %c0_366 = arith.constant 0 : index
    %366 = vector.load %arg1[%c0_364, %c1300_365, %c0_366] : memref<1x1600x20xbf16, #tpu.memory_space<vmem>>, vector<1x25x20xbf16>
    %367 = vector.shape_cast %366 : vector<1x25x20xbf16> to vector<25x20xbf16>
    %c0_367 = arith.constant 0 : index
    %c1325_368 = arith.constant 1325 : index
    %c0_369 = arith.constant 0 : index
    %368 = vector.load %arg1[%c0_367, %c1325_368, %c0_369] : memref<1x1600x20xbf16, #tpu.memory_space<vmem>>, vector<1x25x20xbf16>
    %369 = vector.shape_cast %368 : vector<1x25x20xbf16> to vector<25x20xbf16>
    %c0_370 = arith.constant 0 : index
    %c1350_371 = arith.constant 1350 : index
    %c0_372 = arith.constant 0 : index
    %370 = vector.load %arg1[%c0_370, %c1350_371, %c0_372] : memref<1x1600x20xbf16, #tpu.memory_space<vmem>>, vector<1x25x20xbf16>
    %371 = vector.shape_cast %370 : vector<1x25x20xbf16> to vector<25x20xbf16>
    %c0_373 = arith.constant 0 : index
    %c1500_374 = arith.constant 1500 : index
    %c0_375 = arith.constant 0 : index
    %372 = vector.load %arg1[%c0_373, %c1500_374, %c0_375] : memref<1x1600x20xbf16, #tpu.memory_space<vmem>>, vector<1x25x20xbf16>
    %373 = vector.shape_cast %372 : vector<1x25x20xbf16> to vector<25x20xbf16>
    %c0_376 = arith.constant 0 : index
    %c1525 = arith.constant 1525 : index
    %c0_377 = arith.constant 0 : index
    %374 = vector.load %arg1[%c0_376, %c1525, %c0_377] : memref<1x1600x20xbf16, #tpu.memory_space<vmem>>, vector<1x25x20xbf16>
    %375 = vector.shape_cast %374 : vector<1x25x20xbf16> to vector<25x20xbf16>
    %c0_378 = arith.constant 0 : index
    %c1550 = arith.constant 1550 : index
    %c0_379 = arith.constant 0 : index
    %376 = vector.load %arg1[%c0_378, %c1550, %c0_379] : memref<1x1600x20xbf16, #tpu.memory_space<vmem>>, vector<1x25x20xbf16>
    %377 = vector.shape_cast %376 : vector<1x25x20xbf16> to vector<25x20xbf16>
    %c0_380 = arith.constant 0 : index
    %c105_381 = arith.constant 105 : index
    %c0_382 = arith.constant 0 : index
    %378 = vector.load %arg1[%c0_380, %c105_381, %c0_382] : memref<1x1600x20xbf16, #tpu.memory_space<vmem>>, vector<1x25x20xbf16>
    %379 = vector.shape_cast %378 : vector<1x25x20xbf16> to vector<25x20xbf16>
    %c0_383 = arith.constant 0 : index
    %c130 = arith.constant 130 : index
    %c0_384 = arith.constant 0 : index
    %380 = vector.load %arg1[%c0_383, %c130, %c0_384] : memref<1x1600x20xbf16, #tpu.memory_space<vmem>>, vector<1x25x20xbf16>
    %381 = vector.shape_cast %380 : vector<1x25x20xbf16> to vector<25x20xbf16>
    %c0_385 = arith.constant 0 : index
    %c155 = arith.constant 155 : index
    %c0_386 = arith.constant 0 : index
    %382 = vector.load %arg1[%c0_385, %c155, %c0_386] : memref<1x1600x20xbf16, #tpu.memory_space<vmem>>, vector<1x25x20xbf16>
    %383 = vector.shape_cast %382 : vector<1x25x20xbf16> to vector<25x20xbf16>
    %384 = tpu.concatenate %367, %369, %371, %373, %375, %377, %379, %381, %383 in 1 : vector<25x20xbf16>, vector<25x20xbf16>, vector<25x20xbf16>, vector<25x20xbf16>, vector<25x20xbf16>, vector<25x20xbf16>, vector<25x20xbf16>, vector<25x20xbf16>, vector<25x20xbf16> -> vector<25x180xbf16>
    %cst_387 = arith.constant dense<0.000000e+00> : vector<25x32xf32>
    %385 = tpu.matmul %384, %0, %cst_387 {dimension_numbers = #tpu.dot_dimension_numbers<[1], [0], [0], [1], [0, 0, 1, 1], [], []>} : vector<25x180xbf16>, vector<180x32xbf16>, vector<25x32xf32> -> vector<25x32xf32>
    %386 = vector.broadcast %1 : vector<1x32xf32> to vector<25x32xf32>
    %387 = arith.addf %385, %386 : vector<25x32xf32>
    %cst_388 = arith.constant 0.000000e+00 : f32
    %388 = vector.broadcast %cst_388 : f32 to vector<25x32xf32>
    %389 = arith.maximumf %387, %388 : vector<25x32xf32>
    %390 = arith.truncf %389 : vector<25x32xf32> to vector<25x32xbf16>
    %c350_389 = arith.constant 350 : index
    %c0_390 = arith.constant 0 : index
    %391 = vector.load %arg13[%c350_389, %c0_390] : memref<400x32xbf16, #tpu.memory_space<vmem>>, vector<25x32xbf16>
    tpu.vector_store %arg13[%c350_389, %c0_390], %390 {strides = array<i32>} : memref<400x32xbf16, #tpu.memory_space<vmem>>, vector<25x32xbf16>,
    %c0_391 = arith.constant 0 : index
    %c1350_392 = arith.constant 1350 : index
    %c0_393 = arith.constant 0 : index
    %392 = vector.load %arg1[%c0_391, %c1350_392, %c0_393] : memref<1x1600x20xbf16, #tpu.memory_space<vmem>>, vector<1x25x20xbf16>
    %393 = vector.shape_cast %392 : vector<1x25x20xbf16> to vector<25x20xbf16>
    %c0_394 = arith.constant 0 : index
    %c1375_395 = arith.constant 1375 : index
    %c0_396 = arith.constant 0 : index
    %394 = vector.load %arg1[%c0_394, %c1375_395, %c0_396] : memref<1x1600x20xbf16, #tpu.memory_space<vmem>>, vector<1x25x20xbf16>
    %395 = vector.shape_cast %394 : vector<1x25x20xbf16> to vector<25x20xbf16>
    %c0_397 = arith.constant 0 : index
    %c1201_398 = arith.constant 1201 : index
    %c0_399 = arith.constant 0 : index
    %396 = vector.load %arg1[%c0_397, %c1201_398, %c0_399] : memref<1x1600x20xbf16, #tpu.memory_space<vmem>>, vector<1x25x20xbf16>
    %397 = vector.shape_cast %396 : vector<1x25x20xbf16> to vector<25x20xbf16>
    %c0_400 = arith.constant 0 : index
    %c1550_401 = arith.constant 1550 : index
    %c0_402 = arith.constant 0 : index
    %398 = vector.load %arg1[%c0_400, %c1550_401, %c0_402] : memref<1x1600x20xbf16, #tpu.memory_space<vmem>>, vector<1x25x20xbf16>
    %399 = vector.shape_cast %398 : vector<1x25x20xbf16> to vector<25x20xbf16>
    %c0_403 = arith.constant 0 : index
    %c1575 = arith.constant 1575 : index
    %c0_404 = arith.constant 0 : index
    %400 = vector.load %arg1[%c0_403, %c1575, %c0_404] : memref<1x1600x20xbf16, #tpu.memory_space<vmem>>, vector<1x25x20xbf16>
    %401 = vector.shape_cast %400 : vector<1x25x20xbf16> to vector<25x20xbf16>
    %c0_405 = arith.constant 0 : index
    %c1401 = arith.constant 1401 : index
    %c0_406 = arith.constant 0 : index
    %402 = vector.load %arg1[%c0_405, %c1401, %c0_406] : memref<1x1600x20xbf16, #tpu.memory_space<vmem>>, vector<1x25x20xbf16>
    %403 = vector.shape_cast %402 : vector<1x25x20xbf16> to vector<25x20xbf16>
    %c0_407 = arith.constant 0 : index
    %c155_408 = arith.constant 155 : index
    %c0_409 = arith.constant 0 : index
    %404 = vector.load %arg1[%c0_407, %c155_408, %c0_409] : memref<1x1600x20xbf16, #tpu.memory_space<vmem>>, vector<1x25x20xbf16>
    %405 = vector.shape_cast %404 : vector<1x25x20xbf16> to vector<25x20xbf16>
    %c0_410 = arith.constant 0 : index
    %c180 = arith.constant 180 : index
    %c0_411 = arith.constant 0 : index
    %406 = vector.load %arg1[%c0_410, %c180, %c0_411] : memref<1x1600x20xbf16, #tpu.memory_space<vmem>>, vector<1x25x20xbf16>
    %407 = vector.shape_cast %406 : vector<1x25x20xbf16> to vector<25x20xbf16>
    %c0_412 = arith.constant 0 : index
    %c6 = arith.constant 6 : index
    %c0_413 = arith.constant 0 : index
    %408 = vector.load %arg1[%c0_412, %c6, %c0_413] : memref<1x1600x20xbf16, #tpu.memory_space<vmem>>, vector<1x25x20xbf16>
    %409 = vector.shape_cast %408 : vector<1x25x20xbf16> to vector<25x20xbf16>
    %410 = tpu.concatenate %393, %395, %397, %399, %401, %403, %405, %407, %409 in 1 : vector<25x20xbf16>, vector<25x20xbf16>, vector<25x20xbf16>, vector<25x20xbf16>, vector<25x20xbf16>, vector<25x20xbf16>, vector<25x20xbf16>, vector<25x20xbf16>, vector<25x20xbf16> -> vector<25x180xbf16>
    %cst_414 = arith.constant dense<0.000000e+00> : vector<25x32xf32>
    %411 = tpu.matmul %410, %0, %cst_414 {dimension_numbers = #tpu.dot_dimension_numbers<[1], [0], [0], [1], [0, 0, 1, 1], [], []>} : vector<25x180xbf16>, vector<180x32xbf16>, vector<25x32xf32> -> vector<25x32xf32>
    %412 = vector.broadcast %1 : vector<1x32xf32> to vector<25x32xf32>
    %413 = arith.addf %411, %412 : vector<25x32xf32>
    %cst_415 = arith.constant 0.000000e+00 : f32
    %414 = vector.broadcast %cst_415 : f32 to vector<25x32xf32>
    %415 = arith.maximumf %413, %414 : vector<25x32xf32>
    %416 = arith.truncf %415 : vector<25x32xf32> to vector<25x32xbf16>
    %c375_416 = arith.constant 375 : index
    %c0_417 = arith.constant 0 : index
    %417 = vector.load %arg13[%c375_416, %c0_417] : memref<400x32xbf16, #tpu.memory_space<vmem>>, vector<25x32xbf16>
    tpu.vector_store %arg13[%c375_416, %c0_417], %416 {strides = array<i32>} : memref<400x32xbf16, #tpu.memory_space<vmem>>, vector<25x32xbf16>,
    %c0_418 = arith.constant 0 : index
    %c0_419 = arith.constant 0 : index
    %418 = vector.load %arg4[%c0_418, %c0_419] : memref<288x64xbf16, #tpu.memory_space<vmem>>, vector<288x64xbf16>
    %c0_420 = arith.constant 0 : index
    %c0_421 = arith.constant 0 : index
    %419 = vector.load %arg5[%c0_420, %c0_421] : memref<1x64xf32, #tpu.memory_space<vmem>>, vector<1x64xf32>
    %c0_422 = arith.constant 0 : index
    %c0_423 = arith.constant 0 : index
    %420 = vector.load %arg13[%c0_422, %c0_423] : memref<400x32xbf16, #tpu.memory_space<vmem>>, vector<25x32xbf16>
    %c25_424 = arith.constant 25 : index
    %c0_425 = arith.constant 0 : index
    %421 = vector.load %arg13[%c25_424, %c0_425] : memref<400x32xbf16, #tpu.memory_space<vmem>>, vector<25x32xbf16>
    %c50_426 = arith.constant 50 : index
    %c0_427 = arith.constant 0 : index
    %422 = vector.load %arg13[%c50_426, %c0_427] : memref<400x32xbf16, #tpu.memory_space<vmem>>, vector<25x32xbf16>
    %c100_428 = arith.constant 100 : index
    %c0_429 = arith.constant 0 : index
    %423 = vector.load %arg13[%c100_428, %c0_429] : memref<400x32xbf16, #tpu.memory_space<vmem>>, vector<25x32xbf16>
    %c125_430 = arith.constant 125 : index
    %c0_431 = arith.constant 0 : index
    %424 = vector.load %arg13[%c125_430, %c0_431] : memref<400x32xbf16, #tpu.memory_space<vmem>>, vector<25x32xbf16>
    %c150_432 = arith.constant 150 : index
    %c0_433 = arith.constant 0 : index
    %425 = vector.load %arg13[%c150_432, %c0_433] : memref<400x32xbf16, #tpu.memory_space<vmem>>, vector<25x32xbf16>
    %c200_434 = arith.constant 200 : index
    %c0_435 = arith.constant 0 : index
    %426 = vector.load %arg13[%c200_434, %c0_435] : memref<400x32xbf16, #tpu.memory_space<vmem>>, vector<25x32xbf16>
    %c225_436 = arith.constant 225 : index
    %c0_437 = arith.constant 0 : index
    %427 = vector.load %arg13[%c225_436, %c0_437] : memref<400x32xbf16, #tpu.memory_space<vmem>>, vector<25x32xbf16>
    %c250_438 = arith.constant 250 : index
    %c0_439 = arith.constant 0 : index
    %428 = vector.load %arg13[%c250_438, %c0_439] : memref<400x32xbf16, #tpu.memory_space<vmem>>, vector<25x32xbf16>
    %429 = tpu.concatenate %420, %421, %422, %423, %424, %425, %426, %427, %428 in 1 : vector<25x32xbf16>, vector<25x32xbf16>, vector<25x32xbf16>, vector<25x32xbf16>, vector<25x32xbf16>, vector<25x32xbf16>, vector<25x32xbf16>, vector<25x32xbf16>, vector<25x32xbf16> -> vector<25x288xbf16>
    %cst_440 = arith.constant dense<0.000000e+00> : vector<25x64xf32>
    %430 = tpu.matmul %429, %418, %cst_440 {dimension_numbers = #tpu.dot_dimension_numbers<[1], [0], [0], [1], [0, 0, 1, 1], [], []>} : vector<25x288xbf16>, vector<288x64xbf16>, vector<25x64xf32> -> vector<25x64xf32>
    %431 = vector.broadcast %419 : vector<1x64xf32> to vector<25x64xf32>
    %432 = arith.addf %430, %431 : vector<25x64xf32>
    %cst_441 = arith.constant 0.000000e+00 : f32
    %433 = vector.broadcast %cst_441 : f32 to vector<25x64xf32>
    %434 = arith.maximumf %432, %433 : vector<25x64xf32>
    %435 = arith.truncf %434 : vector<25x64xf32> to vector<25x64xbf16>
    %c0_442 = arith.constant 0 : index
    %c0_443 = arith.constant 0 : index
    %436 = vector.load %arg14[%c0_442, %c0_443] : memref<100x64xbf16, #tpu.memory_space<vmem>>, vector<25x64xbf16>
    tpu.vector_store %arg14[%c0_442, %c0_443], %435 {strides = array<i32>} : memref<100x64xbf16, #tpu.memory_space<vmem>>, vector<25x64xbf16>,
    %c50_444 = arith.constant 50 : index
    %c0_445 = arith.constant 0 : index
    %437 = vector.load %arg13[%c50_444, %c0_445] : memref<400x32xbf16, #tpu.memory_space<vmem>>, vector<25x32xbf16>
    %c75_446 = arith.constant 75 : index
    %c0_447 = arith.constant 0 : index
    %438 = vector.load %arg13[%c75_446, %c0_447] : memref<400x32xbf16, #tpu.memory_space<vmem>>, vector<25x32xbf16>
    %c1_448 = arith.constant 1 : index
    %c0_449 = arith.constant 0 : index
    %439 = vector.load %arg13[%c1_448, %c0_449] : memref<400x32xbf16, #tpu.memory_space<vmem>>, vector<25x32xbf16>
    %c150_450 = arith.constant 150 : index
    %c0_451 = arith.constant 0 : index
    %440 = vector.load %arg13[%c150_450, %c0_451] : memref<400x32xbf16, #tpu.memory_space<vmem>>, vector<25x32xbf16>
    %c175_452 = arith.constant 175 : index
    %c0_453 = arith.constant 0 : index
    %441 = vector.load %arg13[%c175_452, %c0_453] : memref<400x32xbf16, #tpu.memory_space<vmem>>, vector<25x32xbf16>
    %c101 = arith.constant 101 : index
    %c0_454 = arith.constant 0 : index
    %442 = vector.load %arg13[%c101, %c0_454] : memref<400x32xbf16, #tpu.memory_space<vmem>>, vector<25x32xbf16>
    %c250_455 = arith.constant 250 : index
    %c0_456 = arith.constant 0 : index
    %443 = vector.load %arg13[%c250_455, %c0_456] : memref<400x32xbf16, #tpu.memory_space<vmem>>, vector<25x32xbf16>
    %c275_457 = arith.constant 275 : index
    %c0_458 = arith.constant 0 : index
    %444 = vector.load %arg13[%c275_457, %c0_458] : memref<400x32xbf16, #tpu.memory_space<vmem>>, vector<25x32xbf16>
    %c201_459 = arith.constant 201 : index
    %c0_460 = arith.constant 0 : index
    %445 = vector.load %arg13[%c201_459, %c0_460] : memref<400x32xbf16, #tpu.memory_space<vmem>>, vector<25x32xbf16>
    %446 = tpu.concatenate %437, %438, %439, %440, %441, %442, %443, %444, %445 in 1 : vector<25x32xbf16>, vector<25x32xbf16>, vector<25x32xbf16>, vector<25x32xbf16>, vector<25x32xbf16>, vector<25x32xbf16>, vector<25x32xbf16>, vector<25x32xbf16>, vector<25x32xbf16> -> vector<25x288xbf16>
    %cst_461 = arith.constant dense<0.000000e+00> : vector<25x64xf32>
    %447 = tpu.matmul %446, %418, %cst_461 {dimension_numbers = #tpu.dot_dimension_numbers<[1], [0], [0], [1], [0, 0, 1, 1], [], []>} : vector<25x288xbf16>, vector<288x64xbf16>, vector<25x64xf32> -> vector<25x64xf32>
    %448 = vector.broadcast %419 : vector<1x64xf32> to vector<25x64xf32>
    %449 = arith.addf %447, %448 : vector<25x64xf32>
    %cst_462 = arith.constant 0.000000e+00 : f32
    %450 = vector.broadcast %cst_462 : f32 to vector<25x64xf32>
    %451 = arith.maximumf %449, %450 : vector<25x64xf32>
    %452 = arith.truncf %451 : vector<25x64xf32> to vector<25x64xbf16>
    %c25_463 = arith.constant 25 : index
    %c0_464 = arith.constant 0 : index
    %453 = vector.load %arg14[%c25_463, %c0_464] : memref<100x64xbf16, #tpu.memory_space<vmem>>, vector<25x64xbf16>
    tpu.vector_store %arg14[%c25_463, %c0_464], %452 {strides = array<i32>} : memref<100x64xbf16, #tpu.memory_space<vmem>>, vector<25x64xbf16>,
    %c200_465 = arith.constant 200 : index
    %c0_466 = arith.constant 0 : index
    %454 = vector.load %arg13[%c200_465, %c0_466] : memref<400x32xbf16, #tpu.memory_space<vmem>>, vector<25x32xbf16>
    %c225_467 = arith.constant 225 : index
    %c0_468 = arith.constant 0 : index
    %455 = vector.load %arg13[%c225_467, %c0_468] : memref<400x32xbf16, #tpu.memory_space<vmem>>, vector<25x32xbf16>
    %c250_469 = arith.constant 250 : index
    %c0_470 = arith.constant 0 : index
    %456 = vector.load %arg13[%c250_469, %c0_470] : memref<400x32xbf16, #tpu.memory_space<vmem>>, vector<25x32xbf16>
    %c300_471 = arith.constant 300 : index
    %c0_472 = arith.constant 0 : index
    %457 = vector.load %arg13[%c300_471, %c0_472] : memref<400x32xbf16, #tpu.memory_space<vmem>>, vector<25x32xbf16>
    %c325_473 = arith.constant 325 : index
    %c0_474 = arith.constant 0 : index
    %458 = vector.load %arg13[%c325_473, %c0_474] : memref<400x32xbf16, #tpu.memory_space<vmem>>, vector<25x32xbf16>
    %c350_475 = arith.constant 350 : index
    %c0_476 = arith.constant 0 : index
    %459 = vector.load %arg13[%c350_475, %c0_476] : memref<400x32xbf16, #tpu.memory_space<vmem>>, vector<25x32xbf16>
    %c5_477 = arith.constant 5 : index
    %c0_478 = arith.constant 0 : index
    %460 = vector.load %arg13[%c5_477, %c0_478] : memref<400x32xbf16, #tpu.memory_space<vmem>>, vector<25x32xbf16>
    %c30_479 = arith.constant 30 : index
    %c0_480 = arith.constant 0 : index
    %461 = vector.load %arg13[%c30_479, %c0_480] : memref<400x32xbf16, #tpu.memory_space<vmem>>, vector<25x32xbf16>
    %c55_481 = arith.constant 55 : index
    %c0_482 = arith.constant 0 : index
    %462 = vector.load %arg13[%c55_481, %c0_482] : memref<400x32xbf16, #tpu.memory_space<vmem>>, vector<25x32xbf16>
    %463 = tpu.concatenate %454, %455, %456, %457, %458, %459, %460, %461, %462 in 1 : vector<25x32xbf16>, vector<25x32xbf16>, vector<25x32xbf16>, vector<25x32xbf16>, vector<25x32xbf16>, vector<25x32xbf16>, vector<25x32xbf16>, vector<25x32xbf16>, vector<25x32xbf16> -> vector<25x288xbf16>
    %cst_483 = arith.constant dense<0.000000e+00> : vector<25x64xf32>
    %464 = tpu.matmul %463, %418, %cst_483 {dimension_numbers = #tpu.dot_dimension_numbers<[1], [0], [0], [1], [0, 0, 1, 1], [], []>} : vector<25x288xbf16>, vector<288x64xbf16>, vector<25x64xf32> -> vector<25x64xf32>
    %465 = vector.broadcast %419 : vector<1x64xf32> to vector<25x64xf32>
    %466 = arith.addf %464, %465 : vector<25x64xf32>
    %cst_484 = arith.constant 0.000000e+00 : f32
    %467 = vector.broadcast %cst_484 : f32 to vector<25x64xf32>
    %468 = arith.maximumf %466, %467 : vector<25x64xf32>
    %469 = arith.truncf %468 : vector<25x64xf32> to vector<25x64xbf16>
    %c50_485 = arith.constant 50 : index
    %c0_486 = arith.constant 0 : index
    %470 = vector.load %arg14[%c50_485, %c0_486] : memref<100x64xbf16, #tpu.memory_space<vmem>>, vector<25x64xbf16>
    tpu.vector_store %arg14[%c50_485, %c0_486], %469 {strides = array<i32>} : memref<100x64xbf16, #tpu.memory_space<vmem>>, vector<25x64xbf16>,
    %c250_487 = arith.constant 250 : index
    %c0_488 = arith.constant 0 : index
    %471 = vector.load %arg13[%c250_487, %c0_488] : memref<400x32xbf16, #tpu.memory_space<vmem>>, vector<25x32xbf16>
    %c275_489 = arith.constant 275 : index
    %c0_490 = arith.constant 0 : index
    %472 = vector.load %arg13[%c275_489, %c0_490] : memref<400x32xbf16, #tpu.memory_space<vmem>>, vector<25x32xbf16>
    %c201_491 = arith.constant 201 : index
    %c0_492 = arith.constant 0 : index
    %473 = vector.load %arg13[%c201_491, %c0_492] : memref<400x32xbf16, #tpu.memory_space<vmem>>, vector<25x32xbf16>
    %c350_493 = arith.constant 350 : index
    %c0_494 = arith.constant 0 : index
    %474 = vector.load %arg13[%c350_493, %c0_494] : memref<400x32xbf16, #tpu.memory_space<vmem>>, vector<25x32xbf16>
    %c375_495 = arith.constant 375 : index
    %c0_496 = arith.constant 0 : index
    %475 = vector.load %arg13[%c375_495, %c0_496] : memref<400x32xbf16, #tpu.memory_space<vmem>>, vector<25x32xbf16>
    %c301 = arith.constant 301 : index
    %c0_497 = arith.constant 0 : index
    %476 = vector.load %arg13[%c301, %c0_497] : memref<400x32xbf16, #tpu.memory_space<vmem>>, vector<25x32xbf16>
    %c55_498 = arith.constant 55 : index
    %c0_499 = arith.constant 0 : index
    %477 = vector.load %arg13[%c55_498, %c0_499] : memref<400x32xbf16, #tpu.memory_space<vmem>>, vector<25x32xbf16>
    %c80_500 = arith.constant 80 : index
    %c0_501 = arith.constant 0 : index
    %478 = vector.load %arg13[%c80_500, %c0_501] : memref<400x32xbf16, #tpu.memory_space<vmem>>, vector<25x32xbf16>
    %c6_502 = arith.constant 6 : index
    %c0_503 = arith.constant 0 : index
    %479 = vector.load %arg13[%c6_502, %c0_503] : memref<400x32xbf16, #tpu.memory_space<vmem>>, vector<25x32xbf16>
    %480 = tpu.concatenate %471, %472, %473, %474, %475, %476, %477, %478, %479 in 1 : vector<25x32xbf16>, vector<25x32xbf16>, vector<25x32xbf16>, vector<25x32xbf16>, vector<25x32xbf16>, vector<25x32xbf16>, vector<25x32xbf16>, vector<25x32xbf16>, vector<25x32xbf16> -> vector<25x288xbf16>
    %cst_504 = arith.constant dense<0.000000e+00> : vector<25x64xf32>
    %481 = tpu.matmul %480, %418, %cst_504 {dimension_numbers = #tpu.dot_dimension_numbers<[1], [0], [0], [1], [0, 0, 1, 1], [], []>} : vector<25x288xbf16>, vector<288x64xbf16>, vector<25x64xf32> -> vector<25x64xf32>
    %482 = vector.broadcast %419 : vector<1x64xf32> to vector<25x64xf32>
    %483 = arith.addf %481, %482 : vector<25x64xf32>
    %cst_505 = arith.constant 0.000000e+00 : f32
    %484 = vector.broadcast %cst_505 : f32 to vector<25x64xf32>
    %485 = arith.maximumf %483, %484 : vector<25x64xf32>
    %486 = arith.truncf %485 : vector<25x64xf32> to vector<25x64xbf16>
    %c75_506 = arith.constant 75 : index
    %c0_507 = arith.constant 0 : index
    %487 = vector.load %arg14[%c75_506, %c0_507] : memref<100x64xbf16, #tpu.memory_space<vmem>>, vector<25x64xbf16>
    tpu.vector_store %arg14[%c75_506, %c0_507], %486 {strides = array<i32>} : memref<100x64xbf16, #tpu.memory_space<vmem>>, vector<25x64xbf16>,
    %c0_508 = arith.constant 0 : index
    %c0_509 = arith.constant 0 : index
    %488 = vector.load %arg6[%c0_508, %c0_509] : memref<576x128xbf16, #tpu.memory_space<vmem>>, vector<576x128xbf16>
    %c0_510 = arith.constant 0 : index
    %c0_511 = arith.constant 0 : index
    %489 = vector.load %arg7[%c0_510, %c0_511] : memref<1x128xf32, #tpu.memory_space<vmem>>, vector<1x128xf32>
    %c0_512 = arith.constant 0 : index
    %c0_513 = arith.constant 0 : index
    %490 = vector.load %arg14[%c0_512, %c0_513] : memref<100x64xbf16, #tpu.memory_space<vmem>>, vector<25x64xbf16>
    %c25_514 = arith.constant 25 : index
    %c0_515 = arith.constant 0 : index
    %491 = vector.load %arg14[%c25_514, %c0_515] : memref<100x64xbf16, #tpu.memory_space<vmem>>, vector<25x64xbf16>
    %c1_516 = arith.constant 1 : index
    %c0_517 = arith.constant 0 : index
    %492 = vector.load %arg14[%c1_516, %c0_517] : memref<100x64xbf16, #tpu.memory_space<vmem>>, vector<25x64xbf16>
    %c50_518 = arith.constant 50 : index
    %c0_519 = arith.constant 0 : index
    %493 = vector.load %arg14[%c50_518, %c0_519] : memref<100x64xbf16, #tpu.memory_space<vmem>>, vector<25x64xbf16>
    %c75_520 = arith.constant 75 : index
    %c0_521 = arith.constant 0 : index
    %494 = vector.load %arg14[%c75_520, %c0_521] : memref<100x64xbf16, #tpu.memory_space<vmem>>, vector<25x64xbf16>
    %c51 = arith.constant 51 : index
    %c0_522 = arith.constant 0 : index
    %495 = vector.load %arg14[%c51, %c0_522] : memref<100x64xbf16, #tpu.memory_space<vmem>>, vector<25x64xbf16>
    %c5_523 = arith.constant 5 : index
    %c0_524 = arith.constant 0 : index
    %496 = vector.load %arg14[%c5_523, %c0_524] : memref<100x64xbf16, #tpu.memory_space<vmem>>, vector<25x64xbf16>
    %c30_525 = arith.constant 30 : index
    %c0_526 = arith.constant 0 : index
    %497 = vector.load %arg14[%c30_525, %c0_526] : memref<100x64xbf16, #tpu.memory_space<vmem>>, vector<25x64xbf16>
    %c6_527 = arith.constant 6 : index
    %c0_528 = arith.constant 0 : index
    %498 = vector.load %arg14[%c6_527, %c0_528] : memref<100x64xbf16, #tpu.memory_space<vmem>>, vector<25x64xbf16>
    %499 = tpu.concatenate %490, %491, %492, %493, %494, %495, %496, %497, %498 in 1 : vector<25x64xbf16>, vector<25x64xbf16>, vector<25x64xbf16>, vector<25x64xbf16>, vector<25x64xbf16>, vector<25x64xbf16>, vector<25x64xbf16>, vector<25x64xbf16>, vector<25x64xbf16> -> vector<25x576xbf16>
    %cst_529 = arith.constant dense<0.000000e+00> : vector<25x128xf32>
    %500 = tpu.matmul %499, %488, %cst_529 {dimension_numbers = #tpu.dot_dimension_numbers<[1], [0], [0], [1], [0, 0, 1, 1], [], []>} : vector<25x576xbf16>, vector<576x128xbf16>, vector<25x128xf32> -> vector<25x128xf32>
    %501 = vector.broadcast %489 : vector<1x128xf32> to vector<25x128xf32>
    %502 = arith.addf %500, %501 : vector<25x128xf32>
    %cst_530 = arith.constant 0.000000e+00 : f32
    %503 = vector.broadcast %cst_530 : f32 to vector<25x128xf32>
    %504 = arith.maximumf %502, %503 : vector<25x128xf32>
    %505 = arith.truncf %504 : vector<25x128xf32> to vector<25x128xbf16>
    %506 = vector.extract_strided_slice %505 {offsets = [0, 0], sizes = [4, 128], strides = [1, 1]} : vector<25x128xbf16> to vector<4x128xbf16>
    %507 = vector.extract_strided_slice %505 {offsets = [5, 0], sizes = [4, 128], strides = [1, 1]} : vector<25x128xbf16> to vector<4x128xbf16>
    %508 = vector.extract_strided_slice %505 {offsets = [10, 0], sizes = [4, 128], strides = [1, 1]} : vector<25x128xbf16> to vector<4x128xbf16>
    %509 = vector.extract_strided_slice %505 {offsets = [15, 0], sizes = [4, 128], strides = [1, 1]} : vector<25x128xbf16> to vector<4x128xbf16>
    %510 = tpu.concatenate %506, %507, %508, %509 in 1 : vector<4x128xbf16>, vector<4x128xbf16>, vector<4x128xbf16>, vector<4x128xbf16> -> vector<4x512xbf16>
    %c0_531 = arith.constant 0 : index
    %c0_532 = arith.constant 0 : index
    %511 = vector.load %arg9[%c0_531, %c0_532] : memref<1x512xf32, #tpu.memory_space<vmem>>, vector<1x512xf32>
    %512 = vector.extract_strided_slice %510 {offsets = [0, 0], sizes = [1, 512], strides = [1, 1]} : vector<4x512xbf16> to vector<1x512xbf16>
    %c0_533 = arith.constant 0 : index
    %c0_534 = arith.constant 0 : index
    %c0_535 = arith.constant 0 : index
    %513 = vector.load %arg8[%c0_533, %c0_534, %c0_535] : memref<4x512x512xbf16, #tpu.memory_space<vmem>>, vector<1x512x512xbf16>
    %514 = vector.shape_cast %513 : vector<1x512x512xbf16> to vector<512x512xbf16>
    %cst_536 = arith.constant dense<0.000000e+00> : vector<1x512xf32>
    %515 = tpu.matmul %512, %514, %cst_536 {dimension_numbers = #tpu.dot_dimension_numbers<[1], [0], [0], [1], [0, 0, 1, 1], [], []>} : vector<1x512xbf16>, vector<512x512xbf16>, vector<1x512xf32> -> vector<1x512xf32>
    %516 = arith.addf %511, %515 : vector<1x512xf32>
    %517 = vector.extract_strided_slice %510 {offsets = [1, 0], sizes = [1, 512], strides = [1, 1]} : vector<4x512xbf16> to vector<1x512xbf16>
    %c1_537 = arith.constant 1 : index
    %c0_538 = arith.constant 0 : index
    %c0_539 = arith.constant 0 : index
    %518 = vector.load %arg8[%c1_537, %c0_538, %c0_539] : memref<4x512x512xbf16, #tpu.memory_space<vmem>>, vector<1x512x512xbf16>
    %519 = vector.shape_cast %518 : vector<1x512x512xbf16> to vector<512x512xbf16>
    %cst_540 = arith.constant dense<0.000000e+00> : vector<1x512xf32>
    %520 = tpu.matmul %517, %519, %cst_540 {dimension_numbers = #tpu.dot_dimension_numbers<[1], [0], [0], [1], [0, 0, 1, 1], [], []>} : vector<1x512xbf16>, vector<512x512xbf16>, vector<1x512xf32> -> vector<1x512xf32>
    %521 = arith.addf %516, %520 : vector<1x512xf32>
    %522 = vector.extract_strided_slice %510 {offsets = [2, 0], sizes = [1, 512], strides = [1, 1]} : vector<4x512xbf16> to vector<1x512xbf16>
    %c2 = arith.constant 2 : index
    %c0_541 = arith.constant 0 : index
    %c0_542 = arith.constant 0 : index
    %523 = vector.load %arg8[%c2, %c0_541, %c0_542] : memref<4x512x512xbf16, #tpu.memory_space<vmem>>, vector<1x512x512xbf16>
    %524 = vector.shape_cast %523 : vector<1x512x512xbf16> to vector<512x512xbf16>
    %cst_543 = arith.constant dense<0.000000e+00> : vector<1x512xf32>
    %525 = tpu.matmul %522, %524, %cst_543 {dimension_numbers = #tpu.dot_dimension_numbers<[1], [0], [0], [1], [0, 0, 1, 1], [], []>} : vector<1x512xbf16>, vector<512x512xbf16>, vector<1x512xf32> -> vector<1x512xf32>
    %526 = arith.addf %521, %525 : vector<1x512xf32>
    %527 = vector.extract_strided_slice %510 {offsets = [3, 0], sizes = [1, 512], strides = [1, 1]} : vector<4x512xbf16> to vector<1x512xbf16>
    %c3 = arith.constant 3 : index
    %c0_544 = arith.constant 0 : index
    %c0_545 = arith.constant 0 : index
    %528 = vector.load %arg8[%c3, %c0_544, %c0_545] : memref<4x512x512xbf16, #tpu.memory_space<vmem>>, vector<1x512x512xbf16>
    %529 = vector.shape_cast %528 : vector<1x512x512xbf16> to vector<512x512xbf16>
    %cst_546 = arith.constant dense<0.000000e+00> : vector<1x512xf32>
    %530 = tpu.matmul %527, %529, %cst_546 {dimension_numbers = #tpu.dot_dimension_numbers<[1], [0], [0], [1], [0, 0, 1, 1], [], []>} : vector<1x512xbf16>, vector<512x512xbf16>, vector<1x512xf32> -> vector<1x512xf32>
    %531 = arith.addf %526, %530 : vector<1x512xf32>
    %cst_547 = arith.constant 0.000000e+00 : f32
    %532 = vector.broadcast %cst_547 : f32 to vector<1x512xf32>
    %533 = arith.maximumf %531, %532 : vector<1x512xf32>
    %534 = arith.truncf %533 : vector<1x512xf32> to vector<1x512xbf16>
    %c0_548 = arith.constant 0 : index
    %c0_549 = arith.constant 0 : index
    %535 = vector.load %arg10[%c0_548, %c0_549] : memref<512x128xbf16, #tpu.memory_space<vmem>>, vector<512x128xbf16>
    %cst_550 = arith.constant dense<0.000000e+00> : vector<1x128xf32>
    %536 = tpu.matmul %534, %535, %cst_550 {dimension_numbers = #tpu.dot_dimension_numbers<[1], [0], [0], [1], [0, 0, 1, 1], [], []>} : vector<1x512xbf16>, vector<512x128xbf16>, vector<1x128xf32> -> vector<1x128xf32>
    %c0_551 = arith.constant 0 : index
    %c0_552 = arith.constant 0 : index
    %537 = vector.load %arg11[%c0_551, %c0_552] : memref<1x128xf32, #tpu.memory_space<vmem>>, vector<1x128xf32>
    %538 = arith.addf %536, %537 : vector<1x128xf32>
    %c0_553 = arith.constant 0 : index
    %c0_554 = arith.constant 0 : index
    %c0_555 = arith.constant 0 : index
    %539 = vector.load %arg12[%c0_553, %c0_554, %c0_555] : memref<1x1x128xf32, #tpu.memory_space<vmem>>, vector<1x1x128xf32>
    %540 = vector.shape_cast %539 : vector<1x1x128xf32> to vector<1x128xf32>
    %541 = vector.shape_cast %538 : vector<1x128xf32> to vector<1x1x128xf32>
    tpu.vector_store %arg12[%c0_553, %c0_554, %c0_555], %541 {strides = array<i32>} : memref<1x1x128xf32, #tpu.memory_space<vmem>>, vector<1x1x128xf32>,
    return
  }
  func.func @transform_0(%arg0: i32) -> (i32, i32, i32) {
    %c0_i32 = arith.constant 0 : i32
    %c0_i32_0 = arith.constant 0 : i32
    %c0_i32_1 = arith.constant 0 : i32
    return %arg0, %c0_i32, %c0_i32_0 : i32, i32, i32
  }
  func.func @transform_1(%arg0: i32) -> (i32, i32) {
    %c0_i32 = arith.constant 0 : i32
    %c0_i32_0 = arith.constant 0 : i32
    %c0_i32_1 = arith.constant 0 : i32
    return %c0_i32, %c0_i32_0 : i32, i32
  }
  func.func @transform_2(%arg0: i32) -> (i32, i32) {
    %c0_i32 = arith.constant 0 : i32
    %c0_i32_0 = arith.constant 0 : i32
    %c0_i32_1 = arith.constant 0 : i32
    return %c0_i32, %c0_i32_0 : i32, i32
  }
  func.func @transform_3(%arg0: i32) -> (i32, i32) {
    %c0_i32 = arith.constant 0 : i32
    %c0_i32_0 = arith.constant 0 : i32
    %c0_i32_1 = arith.constant 0 : i32
    return %c0_i32, %c0_i32_0 : i32, i32
  }
  func.func @transform_4(%arg0: i32) -> (i32, i32) {
    %c0_i32 = arith.constant 0 : i32
    %c0_i32_0 = arith.constant 0 : i32
    %c0_i32_1 = arith.constant 0 : i32
    return %c0_i32, %c0_i32_0 : i32, i32
  }
  func.func @transform_5(%arg0: i32) -> (i32, i32) {
    %c0_i32 = arith.constant 0 : i32
    %c0_i32_0 = arith.constant 0 : i32
    %c0_i32_1 = arith.constant 0 : i32
    return %c0_i32, %c0_i32_0 : i32, i32
  }
  func.func @transform_6(%arg0: i32) -> (i32, i32) {
    %c0_i32 = arith.constant 0 : i32
    %c0_i32_0 = arith.constant 0 : i32
    %c0_i32_1 = arith.constant 0 : i32
    return %c0_i32, %c0_i32_0 : i32, i32
  }
  func.func @transform_7(%arg0: i32) -> (i32, i32, i32) {
    %c0_i32 = arith.constant 0 : i32
    %c0_i32_0 = arith.constant 0 : i32
    %c0_i32_1 = arith.constant 0 : i32
    %c0_i32_2 = arith.constant 0 : i32
    return %c0_i32, %c0_i32_0, %c0_i32_1 : i32, i32, i32
  }
  func.func @transform_8(%arg0: i32) -> (i32, i32) {
    %c0_i32 = arith.constant 0 : i32
    %c0_i32_0 = arith.constant 0 : i32
    %c0_i32_1 = arith.constant 0 : i32
    return %c0_i32, %c0_i32_0 : i32, i32
  }
  func.func @transform_9(%arg0: i32) -> (i32, i32) {
    %c0_i32 = arith.constant 0 : i32
    %c0_i32_0 = arith.constant 0 : i32
    %c0_i32_1 = arith.constant 0 : i32
    return %c0_i32, %c0_i32_0 : i32, i32
  }
  func.func @transform_10(%arg0: i32) -> (i32, i32) {
    %c0_i32 = arith.constant 0 : i32
    %c0_i32_0 = arith.constant 0 : i32
    %c0_i32_1 = arith.constant 0 : i32
    return %c0_i32, %c0_i32_0 : i32, i32
  }
  func.func @transform_11(%arg0: i32) -> (i32, i32, i32) {
    %c0_i32 = arith.constant 0 : i32
    %c0_i32_0 = arith.constant 0 : i32
    %c0_i32_1 = arith.constant 0 : i32
    return %arg0, %c0_i32, %c0_i32_0 : i32, i32, i32
  }
}

</mosaic_0001>

<bundles_post_ra>
// kernel: network_forward.1
= control target key start
LH: loop header
LB: loop body
LE: loop exit
PB: predicated region body
PF: predicated region fallthrough
CT: control target
= control target key end

     0   :  { %s15758_s17 = smov 0   ;;  %s21075_s0 = inlined_call_operand.vmem [shape: bf16[2,1600,20], index: 0, kind: input, shape index: {}]   ;;  %s21076_s1 = inlined_call_operand.vmem [shape: bf16[180,32], index: 1, kind: input, shape index: {}]   ;;  %s21077_s2 = inlined_call_operand.vmem [shape: f32[1,32], index: 2, kind: input, shape index: {}]   ;;  %s21078_s3 = inlined_call_operand.vmem [shape: bf16[288,64], index: 3, kind: input, shape index: {}]   ;;  %s21079_s4 = inlined_call_operand.vmem [shape: f32[1,64], index: 4, kind: input, shape index: {}]   ;;  %s21080_s5 = inlined_call_operand.vmem [shape: bf16[576,128], index: 5, kind: input, shape index: {}]   ;;  %s21081_s6 = inlined_call_operand.vmem [shape: f32[1,128], index: 6, kind: input, shape index: {}]   ;;  %s21082_s7 = inlined_call_operand.vmem [shape: bf16[4,512,512], index: 7, kind: input, shape index: {}]   ;;  %s21083_s8 = inlined_call_operand.vmem [shape: f32[1,512], index: 8, kind: input, shape index: {}]   ;;  %s21084_s9 = inlined_call_operand.vmem [shape: bf16[512,128], index: 9, kind: input, shape index: {}]   ;;  %s21085_s10 = inlined_call_operand.vmem [shape: f32[1,128], index: 10, kind: input, shape index: {}]   ;;  %s21086_s11 = inlined_call_operand.vmem [shape: f32[2,1,128], index: 11, kind: output, shape index: {}]  }
   0x1 LB: > { %s12720_s18 = sadd.s32 4294967295, %s15684_s17   ;;  %p12724_p0 = scmp.ge.s32.totalorder %s15684_s17, 1  ;;  %s15684_s17 = sphi %s15758_s17, %s21_s17  }
   0x2   : > { %p337_p1 = scmp.lt.s32.totalorder %s15684_s17, 3 }
   0x4   : > { %p338_p2 = pnand %p12724_p0, %p337_p1 }
   0x5   : > { %p375_p3 = scmp.lt.s32.totalorder (!%p338_p2), %s12720_s18, 1  ;;  %v15686_v0 = vmov (!%p338_p2), 0   ;;  %v14476_v1 = vld [vmem:[%s21076_s1] sm:$0xff] (!%p338_p2)   ;;  %v14479_v2 = vld [vmem:[%s21076_s1 + $0x8] sm:$0xff] (!%p338_p2)   ;;  %vm21112_vm0 = vcmask (!%p338_p2), 1046528   ;;  %v14482_v3 = vld [vmem:[%s21076_s1 + $0x10] sm:$0xff] (!%p338_p2)  }
   0x6   : > { %341 = sbr.rel (%p338_p2) target bundleno = 2526 (0x9de), region = 64  ;;  %750 = vmatprep.subr.bf16.mxu0 (!%p338_p2), %v15686_v0  ;;  %1076 = vmatprep.subr.bf16.mxu1 (!%p338_p2), %v15686_v0  ;;  %s15687_s29 = smov (!%p338_p2), 120   ;;  %v14485_v8 = vld [vmem:[%s21076_s1 + $0x18] sm:$0xff] (!%p338_p2)   ;;  %vm464_vm1 = vsmask.f32 (!%p338_p2), 7424  ;;  %v14488_v16 = vld [vmem:[%s21076_s1 + $0x20] sm:$0xff] (!%p338_p2)  }
   0x7   : > { %751 = vmatpush1.bf16.msra.mxu0 (!%p338_p2), %v14476_v1  ;;  %1077 = vmatpush1.bf16.msra.mxu1 (!%p338_p2), %v14476_v1  ;;  %s15688_s30 = smov (!%p338_p2), 60   ;;  %s15689_s16 = smov (!%p338_p2), 32   ;;  %vm21087_vm2 = vcmask (!%p338_p2), 1041408   ;;  %vm21088_vm3 = vsmask.f32 (!%p338_p2), 2304  ;;  %vm629_vm4 = vcmask (!%p338_p2), 326656  }
   0x8   : > { %752 = vmatprep.subr.bf16.mxu0 (!%p338_p2), %v15686_v0  ;;  %1078 = vmatprep.subr.bf16.mxu1 (!%p338_p2), %v15686_v0  ;;  %s15690_s19 = smov (!%p338_p2), 40   ;;  %s15691_s20 = smov (!%p338_p2), 20   ;;  %vm622_vm5 = vcmask (!%p338_p2), 162816   ;;  %vm634_vm6 = vcmask (!%p338_p2), 490496   ;;  %vm656_vm7 = vcmask (!%p338_p2), 97280   ;;  %vm661_vm8 = vcmask (!%p338_p2), 261120  }
   0x9   : > { %s15693_s22 = smov (!%p338_p2), 80   ;;  %s15694_s23 = smov (!%p338_p2), 12   ;;  %vm639_vm9 = vcmask (!%p338_p2), 654336   ;;  %vm644_vm10 = vcmask (!%p338_p2), 818176   ;;  %vm649_vm11 = vcmask (!%p338_p2), 982016   ;;  %vm21093_vm12 = vcmask (!%p338_p2), 424960  }
   0xa   : > { %vm21089_vm13 = vcmask (!%p338_p2), 1045504   ;;  %vm21092_vm14 = vcmask (!%p338_p2), 1044480   ;;  %vm21094_vm15 = vsmask.f32 (!%p338_p2), 5376  ;;  %s15695_s12 = smov (!%p338_p2), 64   ;;  %s15696_s25 = smov (!%p338_p2), 96  }
   0xb   : > { %753 = vmatpush1.bf16.msra.mxu0 (!%p338_p2), %v14479_v2  ;;  %1079 = vmatpush1.bf16.msra.mxu1 (!%p338_p2), %v14479_v2 }
   0xc   : > { %754 = vmatprep.subr.bf16.mxu0 (!%p338_p2), %v15686_v0  ;;  %1080 = vmatprep.subr.bf16.mxu1 (!%p338_p2), %v15686_v0 }
   0xd   : > { %s21237_s18 = smov (!%p375_p3, %s12720_s18), 1 }
   0xe   : > { %s14411_s21 = smul.u32 800, %s21237_s18  ;;  %s382_s24 = scalar_lea.vmem %s21086_s11, %s21237_s18 }
   0xf   : > { %755 = vmatpush1.bf16.msra.mxu0 %v14482_v3  ;;  %1081 = vmatpush1.bf16.msra.mxu1 %v14482_v3 }
  0x10   : > { %s15782_s26 = scalar_lea.vmem %s21075_s0, %s14411_s21  ;;  %756 = vmatprep.subr.bf16.mxu0 %v15686_v0  ;;  %1082 = vmatprep.subr.bf16.mxu1 %v15686_v0  ;;  %s15692_s21 = smov 100  }
  0x11   : > { %v14432_v4 = vld [vmem:[%s15782_s26 + $0xc8] sm:$0xff]   ;;  %v14434_v6 = vld [vmem:[%s15782_s26 + $0xe0] sm:$0xfe]   ;;  %v14436_v11 = vld [vmem:[%s15782_s26 + $0x18] sm:$0xfe]  }
  0x12   : > { %v14433_v5 = vld [vmem:[%s15782_s26 + $0x64] sm:$0xff]   ;;  %572 = vrot.lane.b32.xlu0 %v14432_v4, %s15687_s29  ;;  %v615_v9 = vrot.slane %v14434_v6, 1  ;;  %v495_v14 = vrot.slane %v14436_v11, 1  ;;  %v14438_v15 = vld [vmem:[%s15782_s26 + $0x2c] sm:$0x3f]   ;;  %v14445_v42 = vld [vmem:[%s15782_s26 + $0xd4] sm:$0xff]  }
  0x13   : > { %512 = vrot.lane.b32.xlu1 %v14433_v5, %s15688_s30  ;;  %v15794_v7 = vld [vmem:[%s15782_s26 + $0xe8] sm:$0x3f]   ;;  %v15803_v12 = vld [vmem:[%s15782_s26 + $0x20] sm:$0x3f]   ;;  %v14441_v18 = vld [vmem:[%s15782_s26 + $0x70] sm:$0xff]   ;;  %v876_v19 = vshll.u32 %v14438_v15, 16  ;;  %757 = vmatpush1.bf16.msra.mxu0 %v14485_v8 }
  0x14   : > { %v616_v10 = vrot.slane %v15794_v7, 1  ;;  %v496_v17 = vrot.slane %v15803_v12, 1  ;;  %v880_v20 = vshrl.u32 %v14438_v15, 16  ;;  %v14439_v21 = vld [vmem:[%s15782_s26 + $0x7c] sm:$0xfe]   ;;  %v14443_v22 = vld [vmem:[%s15782_s26 + $0xc] sm:$0xff]   ;;  %1083 = vmatpush1.bf16.msra.mxu1 %v14485_v8  ;;  %758 = vmatprep.subr.bf16.mxu0 %v15686_v0 }
  0x15   : > { %v15823_v24 = vld [vmem:[%s15782_s26 + $0x84] sm:$0x3f]   ;;  %1084 = vmatprep.subr.bf16.mxu1 %v15686_v0  ;;  %v878_v25 = vrot.slane %v876_v19, 1  ;;  %v555_v26 = vrot.slane %v14439_v21, 1  ;;  %v15830_v28 = vld [vmem:[%s15782_s26 + $0x78] sm:$0x1f]  }
  0x16   : > { %v617_v13 = vsel %vm21112_vm0, %v615_v9, %v616_v10  ;;  %v497_v23 = vsel %vm21112_vm0, %v495_v14, %v496_v17  ;;  %v556_v27 = vrot.slane %v15823_v24, 1  ;;  %v527_v29 = vshrl.u32 %v14441_v18, 16  ;;  %v15837_v35 = vld [vmem:[%s15782_s26 + $0x14] sm:$0x1f]   ;;  %v15848_v43 = vld [vmem:[%s15782_s26 + $0xdc] sm:$0x1f]  }
  0x17   : > { %618 = vrot.lane.b32.xlu1 %v617_v13, %s15689_s16  ;;  %498 = vrot.lane.b32.xlu0 %v497_v23, %s15690_s19  ;;  %v529_v30 = vshll.u32 %v14441_v18, 16  ;;  %v882_v31 = vor.u32 %v880_v20, %v878_v25  ;;  %v534_v34 = vshll.u32 %v15830_v28, 16  ;;  %v466_v36 = vshrl.u32 %v14443_v22, 16  ;;  %v14447_v46 = vld [vmem:[%s15782_s26 + $0x24] sm:$0xfe]   ;;  %v14497_v7 = vld [vmem:[%s21076_s1 + $0x38] sm:$0xff]  }
  0x18   : > { %759 = vmatpush1.bf16.msra.mxu0 %v14488_v16  ;;  %1085 = vmatpush1.bf16.msra.mxu1 %v14488_v16  ;;  %v557_v32 = vsel %vm21112_vm0, %v555_v26, %v556_v27  ;;  %v468_v37 = vshll.u32 %v14443_v22, 16  ;;  %v473_v40 = vshll.u32 %v15837_v35, 16  ;;  %v587_v48 = vshrl.u32 %v14445_v42, 16  ;;  %v14448_v53 = vld [vmem:[%s15782_s26 + $0x38] sm:$0x7f]  }
  0x19   : > { %v531_v33 = vrot.slane %v529_v30, 1  ;;  %760 = vmatprep.subr.bf16.mxu0 %v15686_v0  ;;  %1086 = vmatprep.subr.bf16.mxu1 %v15686_v0  ;;  %v15843_v39 = vrot.slane %v534_v34, 1  ;;  %v589_v49 = vshll.u32 %v14445_v42, 16  ;;  %v594_v50 = vshll.u32 %v15848_v43, 16  ;;  %v14449_v58 = vld [vmem:[%s15782_s26 + $0x30] sm:$0xfc]  }
  0x1a   : > { %v470_v41 = vrot.slane %v468_v37, 1  ;;  %v15852_v45 = vrot.slane %v473_v40, 1  ;;  %v869_v51 = vshrl.u32 %v14447_v46, 16  ;;  %v871_v52 = vshll.u32 %v14447_v46, 16  ;;  %v14452_v1 = vld [vmem:[%s15782_s26 + $0x90] sm:$0x3f]  }
  0x1b   : > { %885 = vrot.lane.b32.xlu1 %v882_v31, %s15691_s20  ;;  %558 = vrot.lane.b32.xlu0 %v557_v32, %s15692_s21  ;;  %v532_v38 = vor.u32 %v531_v33, %v527_v29  ;;  %v591_v55 = vrot.slane %v589_v49, 1  ;;  %v15860_v56 = vrot.slane %v594_v50, 1  ;;  %v898_v61 = vrot.slane %v14448_v53, 1  ;;  %v14453_v3 = vld [vmem:[%s15782_s26 + $0x88] sm:$0xfe]  }
  0x1c   : > { %v471_v47 = vor.u32 %v470_v41, %v466_v36  ;;  %v873_v57 = vrot.slane %v871_v52, 1  ;;  %v897_v62 = vrot.slane %v14449_v58, 1  ;;  %v936_v4 = vshll.u32 %v14452_v1, 16  ;;  %v14450_v6 = vld [vmem:[%s15782_s26 + $0x84] sm:$0x3f]  }
  0x1d   : > { %v537_v44 = vsel %vm464_vm1, %v532_v38, %v15843_v39  ;;  %v592_v59 = vor.u32 %v591_v55, %v587_v48  ;;  %v929_v8 = vshrl.u32 %v14453_v3, 16  ;;  %v931_v9 = vshll.u32 %v14453_v3, 16  ;;  %v14451_v11 = vld [vmem:[%s15782_s26 + $0x7c] sm:$0xfe]   ;;  %v14456_v16 = vld [vmem:[%s15782_s26 + $0xf4] sm:$0x3f]  }
  0x1e   : > { %v476_v54 = vsel %vm464_vm1, %v471_v47, %v15852_v45  ;;  %v874_v60 = vor.u32 %v873_v57, %v869_v51  ;;  %v899_v5 = vsel %vm21112_vm0, %v897_v62, %v898_v61  ;;  %v940_v13 = vshrl.u32 %v14452_v1, 16  ;;  %v14457_v19 = vld [vmem:[%s15782_s26 + $0xec] sm:$0xfe]   ;;  %v14455_v30 = vld [vmem:[%s15782_s26 + $0xe0] sm:$0xfe]  }
  0x1f   : > { %541 = vrot.lane.b32.xlu1 %v537_v44, %s15693_s22  ;;  %480 = vrot.lane.b32.xlu0 %v476_v54, %s15691_s20  ;;  %v597_v63 = vsel %vm464_vm1, %v592_v59, %v15860_v56  ;;  %v938_v14 = vrot.slane %v936_v4, 1  ;;  %v933_v15 = vrot.slane %v931_v9, 1  ;;  %v996_v21 = vshll.u32 %v14456_v16, 16  ;;  %v14458_v33 = vld [vmem:[%s15782_s26 + $0x9c] sm:$0x7f]  }
  0x20   : > { %v879_v2 = vsel %vm464_vm1, %v874_v60, %v878_v25  ;;  %v991_v22 = vshll.u32 %v14457_v19, 16  ;;  %v14454_v25 = vld [vmem:[%s15782_s26 + $0xe8] sm:$0x3f]   ;;  %v989_v26 = vshrl.u32 %v14457_v19, 16  ;;  %v1000_v32 = vshrl.u32 %v14456_v16, 16  ;;  %v14500_v16 = vld [vmem:[%s21076_s1 + $0x40] sm:$0xff]  }
  0x21   : > { %v934_v18 = vor.u32 %v933_v15, %v929_v8  ;;  %v942_v20 = vor.u32 %v940_v13, %v938_v14  ;;  %v998_v31 = vrot.slane %v996_v21, 1  ;;  %v14459_v34 = vld [vmem:[%s15782_s26 + $0x94] sm:$0xfc]   ;;  %v958_v38 = vrot.slane %v14458_v33, 1  ;;  %v14460_v42 = vld [vmem:[%s15782_s26 + $0x100] sm:$0x7f]  }
  0x22   : > { %v993_v29 = vrot.slane %v991_v22, 1  ;;  %v957_v40 = vrot.slane %v14459_v34, 1  ;;  %v14461_v44 = vld [vmem:[%s15782_s26 + $0xf8] sm:$0xfc]   ;;  %v1018_v47 = vrot.slane %v14460_v42, 1  ;;  %v477_v49 = vshrl.u32 %v15837_v35, 16 }
  0x23   : > { %601 = vrot.lane.b32.xlu1 %v597_v63, %s15694_s23  ;;  %883 = vrot.lane.b32.xlu0 %v879_v2, %s15691_s20  ;;  %v939_v23 = vsel %vm464_vm1, %v934_v18, %v938_v14  ;;  %v1002_v37 = vor.u32 %v1000_v32, %v998_v31  ;;  %v1017_v48 = vrot.slane %v14461_v44, 1  ;;  %v538_v51 = vshrl.u32 %v15830_v28, 16  ;;  %v14465_v53 = vld [vmem:[%s15782_s26 + $0x3c] sm:$0xfc]   ;;  %v14464_v54 = vld [vmem:[%s15782_s26 + $0x44] sm:$0x7f]  }
  0x24   : > { %v994_v36 = vor.u32 %v993_v29, %v989_v26  ;;  %v959_v46 = vsel %vm21112_vm0, %v957_v40, %v958_v38  ;;  %v479_v52 = vor.u32 %v477_v49, %v15852_v45  ;;  %v598_v35 = vshrl.u32 %v15848_v43, 16  ;;  %v14462_v57 = vld [vmem:[%s15782_s26 + $0x6c] sm:$0x1f]   ;;  %v14471_v62 = vld [vmem:[%s15782_s26 + $0xa0] sm:$0xfc]   ;;  %v14477_v26 = vld [vmem:[%s15782_s26 + $0xb4] sm:$0xff]  }
  0x25   : > { %v1019_v50 = vsel %vm21112_vm0, %v1017_v48, %v1018_v47  ;;  %v540_v55 = vor.u32 %v538_v51, %v15843_v39  ;;  %v1219_v58 = vshll.u32 %v14465_v53, 16  ;;  %v1224_v28 = vshll.u32 %v14464_v54, 16  ;;  %v14463_v12 = vld [vmem:[%s15782_s26 + $0xd0] sm:$0x1f]   ;;  %v14491_v43 = vld [vmem:[%s21076_s1 + $0x28] sm:$0xff]   ;;  %v14483_v40 = vld [vmem:[%s15782_s26 + $0x5c] sm:$0xff]  }
  0x26   : > { %v999_v41 = vsel %vm464_vm1, %v994_v36, %v998_v31  ;;  %v600_v45 = vor.u32 %v598_v35, %v15860_v56  ;;  %v1228_v60 = vshrl.u32 %v14464_v54, 16  ;;  %761 = vmatpush1.bf16.msra.mxu0 %v14491_v43  ;;  %v14494_v56 = vld [vmem:[%s21076_s1 + $0x30] sm:$0xff]   ;;  %v14467_v1 = vld [vmem:[%s15782_s26 + $0x48] sm:$0xf8]   ;;  %1087 = vmatpush1.bf16.msra.mxu1 %v14491_v43  ;;  %v1279_v4 = vshll.u32 %v14471_v62, 16 }
  0x27   : > { %902 = vrot.lane.b32.xlu1 %v898_v61, %s15690_s19  ;;  %900 = vrot.lane.b32.xlu0 %v899_v5, %s15690_s19  ;;  %v1221_v39 = vrot.slane %v1219_v58, 1  ;;  %v1226_v59 = vrot.slane %v1224_v28, 1  ;;  %v14466_v61 = vld [vmem:[%s15782_s26 + $0x50] sm:$0xff]   ;;  %v14470_v2 = vld [vmem:[%s15782_s26 + $0xa8] sm:$0x7f]   ;;  %v1245_v8 = vrot.slane %v14467_v1, 1 }
  0x28   : > { %762 = vmatprep.subr.bf16.mxu0 %v15686_v0  ;;  %1088 = vmatprep.subr.bf16.mxu1 %v15686_v0  ;;  %v1284_v9 = vshll.u32 %v14470_v2, 16  ;;  %v1281_v24 = vrot.slane %v1279_v4, 1  ;;  %v14475_v13 = vld [vmem:[%s15782_s26 + $0x104] sm:$0xfc]   ;;  %v1288_v15 = vshrl.u32 %v14470_v2, 16  ;;  %v14508_v34 = vld [vmem:[%s21076_s1 + $0x50] sm:$0xff]  }
  0x29   : > { %v1230_v3 = vor.u32 %v1228_v60, %v1226_v59  ;;  %v14474_v18 = vld [vmem:[%s15782_s26 + $0x10c] sm:$0x7f]   ;;  %v14469_v19 = vld [vmem:[%s15782_s26 + $0x94] sm:$0xfc]   ;;  %v1339_v22 = vshll.u32 %v14475_v13, 16  ;;  %v1337_v31 = vshrl.u32 %v14475_v13, 16 }
  0x2a   : > { %763 = vmatpush1.bf16.msra.mxu0 %v14494_v56  ;;  %1089 = vmatpush1.bf16.msra.mxu1 %v14494_v56  ;;  %v1286_v14 = vrot.slane %v1284_v9, 1  ;;  %v14473_v33 = vld [vmem:[%s15782_s26 + $0xf8] sm:$0xfc]   ;;  %v14487_v49 = vld [vmem:[%s15782_s26 + $0x8] sm:$0x1f]   ;;  %v1560_v54 = vshll.u32 %v14483_v40, 16 }
  0x2b   : > { %916 = vrot.lane.b32.xlu1 %v14450_v6, %s15688_s30  ;;  %914 = vrot.lane.b32.xlu0 %v14451_v11, %s15688_s30  ;;  %v1246_v6 = vrot.slane %v14466_v61, 1  ;;  %v14468_v11 = vld [vmem:[%s15782_s26 + $0x9c] sm:$0x7f]   ;;  %v1341_v32 = vrot.slane %v1339_v22, 1  ;;  %v14484_v44 = vld [vmem:[%s15782_s26 + $0x54] sm:$0xf8]  }
  0x2c   : > { %764 = vmatprep.subr.bf16.mxu0 %v15686_v0  ;;  %1090 = vmatprep.subr.bf16.mxu1 %v15686_v0  ;;  %v1591_v58 = vshrl.u32 %v14487_v49, 16  ;;  %v1594_v28 = vshll.u32 %v14487_v49, 16  ;;  %v1562_v60 = vrot.slane %v1560_v54, 1  ;;  %v1564_v61 = vshrl.u32 %v14483_v40, 16  ;;  %v14493_v2 = vld [vmem:[%s15782_s26 + $0xb8] sm:$0xf8]  }
  0x2d   : > { %v1342_v42 = vor.u32 %v1341_v32, %v1337_v31  ;;  %v14490_v22 = vld [vmem:[%s15782_s26 + $0xac] sm:$0xf8]  }
  0x2e   : > { %765 = vmatpush1.bf16.msra.mxu0 %v14497_v7  ;;  %1091 = vmatpush1.bf16.msra.mxu1 %v14497_v7  ;;  %v1596_v1 = vrot.slane %v1594_v28, 6  ;;  %v1630_v7 = vshll.u32 %v14493_v2, 16  ;;  %v14506_v31 = vld [vmem:[%s15782_s26 + $0xd0] sm:$0x1f]  }
  0x2f   : > { %945 = vrot.lane.b32.xlu1 %v942_v20, %s15693_s22  ;;  %943 = vrot.lane.b32.xlu0 %v939_v23, %s15693_s22  ;;  %v14504_v20 = vld [vmem:[%s21076_s1 + $0x48] sm:$0xff]   ;;  %v1290_v23 = vor.u32 %v1288_v15, %v1286_v14  ;;  %v14499_v15 = vld [vmem:[%s15782_s26 + $0x11c] sm:$0xf8]   ;;  %v1739_v49 = vshrl.u32 %v14506_v31, 16 }
  0x30   : > { %766 = vmatprep.subr.bf16.mxu0 %v15686_v0  ;;  %1092 = vmatprep.subr.bf16.mxu1 %v15686_v0  ;;  %v1632_v13 = vrot.slane %v1630_v7, 1 }
  0x32   : > { %767 = vmatpush1.bf16.msra.mxu0 %v14500_v16  ;;  %1093 = vmatpush1.bf16.msra.mxu1 %v14500_v16  ;;  %v14489_v16 = vld [vmem:[%s15782_s26 + $0xb4] sm:$0xff]  }
  0x33   : > { %976 = vrot.lane.b32.xlu1 %v14454_v25, %s15687_s29  ;;  %974 = vrot.lane.b32.xlu0 %v14455_v30, %s15687_s29  ;;  %v1344_v25 = vshll.u32 %v14474_v18, 16  ;;  %v14472_v30 = vld [vmem:[%s15782_s26 + $0x100] sm:$0x7f]  }
  0x34   : > { %768 = vmatprep.subr.bf16.mxu0 %v15686_v0  ;;  %1094 = vmatprep.subr.bf16.mxu1 %v15686_v0 }
  0x35   : > { %v1346_v36 = vrot.slane %v1344_v25, 1 }
  0x36   : > { %769 = vmatpush1.bf16.msra.mxu0 %v14504_v20  ;;  %1095 = vmatpush1.bf16.msra.mxu1 %v14504_v20  ;;  %v14501_v20 = vld [vmem:[%s15782_s26 + $0x64] sm:$0xff]  }
  0x37   : > { %1005 = vrot.lane.b32.xlu1 %v1002_v37, %s15694_s23  ;;  %1003 = vrot.lane.b32.xlu0 %v999_v41, %s15694_s23  ;;  %v1348_v37 = vshrl.u32 %v14474_v18, 16  ;;  %v14478_v41 = vld [vmem:[%s15782_s26 + $0xac] sm:$0xf8]  }
  0x38   : > { %770 = vmatprep.subr.bf16.mxu0 %v15686_v0  ;;  %1096 = vmatprep.subr.bf16.mxu1 %v15686_v0 }
  0x39   : > { %v1350_v48 = vor.u32 %v1348_v37, %v1346_v36  ;;  %v1702_v37 = vshrl.u32 %v14499_v15, 16 }
  0x3a   : > { %771 = vmatpush1.bf16.msra.mxu0 %v14508_v34  ;;  %1097 = vmatpush1.bf16.msra.mxu1 %v14508_v34  ;;  %v1660_v34 = vshll.u32 %v14501_v20, 16 }
  0x3b   : > { %962 = vrot.lane.b32.xlu1 %v958_v38, %s15692_s21  ;;  %960 = vrot.lane.b32.xlu0 %v959_v46, %s15692_s21  ;;  %v14480_v38 = vld [vmem:[%s15782_s26 + $0x118] sm:$0xff]   ;;  %v1306_v46 = vrot.slane %v14477_v26, 1  ;;  %v1704_v26 = vshll.u32 %v14499_v15, 16 }
  0x3c   : > { %772 = vmatprep.subr.bf16.mxu0 %v15686_v0  ;;  %1098 = vmatprep.subr.bf16.mxu1 %v15686_v0  ;;  %v1366_v51 = vrot.slane %v14480_v38, 1 }
  0x3f   : > { %1022 = vrot.lane.b32.xlu1 %v1018_v47, %s15689_s16  ;;  %1020 = vrot.lane.b32.xlu0 %v1019_v50, %s15689_s16  ;;  %v14486_v47 = vld [vmem:[%s15782_s26] sm:$0xff]   ;;  %v1305_v50 = vrot.slane %v14478_v41, 1  ;;  %v14495_v41 = vld [vmem:[%s15782_s26 + $0x118] sm:$0xff]  }
  0x40   : > { %v1583_v35 = vshrl.u32 %v14486_v47, 16 }
  0x42   : > { %v1585_v56 = vrot.slane %v1583_v35, 5  ;;  %v1742_v35 = vshll.u32 %v14506_v31, 16 }
  0x43   : > { %500 = vrot.lane.b32.xlu1 %v496_v17, %s15690_s19  ;;  %482 = vrot.lane.b32.xlu0 %v479_v52, %s15691_s20  ;;  %v1217_v17 = vshrl.u32 %v14465_v53, 16  ;;  %v1347_v52 = vsel %vm464_vm1, %v1342_v42, %v1346_v36  ;;  %v14481_v53 = vld [vmem:[%s15782_s26 + $0x110] sm:$0xf8]   ;;  %v1706_v42 = vrot.slane %v1704_v26, 1 }
  0x45   : > { %v1222_v63 = vor.u32 %v1221_v39, %v1217_v17  ;;  %v1365_v17 = vrot.slane %v14481_v53, 1  ;;  %v1553_v39 = vshrl.u32 %v14484_v44, 16 }
  0x47   : > { %543 = vrot.lane.b32.xlu1 %v540_v55, %s15693_s22  ;;  %514 = vrot.lane.b32.xlu0 %v14462_v57, %s15688_s30  ;;  %v1227_v5 = vsel %vm464_vm1, %v1222_v63, %v1226_v59  ;;  %v1555_v55 = vshll.u32 %v14484_v44, 16  ;;  %v1586_v57 = vshll.u32 %v14486_v47, 16  ;;  %v1593_v63 = vrot.slane %v1591_v58, 5  ;;  %v14511_v58 = vld [vmem:[%s15782_s26 + $0xd4] sm:$0xff]  }
  0x49   : > { %v1557_v43 = vrot.slane %v1555_v55, 1  ;;  %v1597_v9 = vor.u32 %v1596_v1, %v1593_v63  ;;  %v1947_v1 = vshll.u32 %v14511_v58, 16 }
  0x4b   : > { %603 = vrot.lane.b32.xlu1 %v600_v45, %s15694_s23  ;;  %574 = vrot.lane.b32.xlu0 %v14463_v12, %s15687_s29  ;;  %v14514_v45 = vld [vmem:[%s21076_s1 + $0x58] ss:$0 sps:$4 sm:$0x33]   ;;  %v1307_v12 = vsel %vm21112_vm0, %v1305_v50, %v1306_v46  ;;  %v1558_v4 = vor.u32 %v1557_v43, %v1553_v39  ;;  %v16034_v39 = vld [vmem:[%s15782_s26 + $0xdc] sm:$0x1f]  }
  0x4c   : > { %v15993_v59 = vsel %vm21087_vm2, %v14514_v45, 0  ;;  %vm21095_vm2 = vsmask.f32 4352 }
  0x4d   : > { %773 = vmatpush1.bf16.msra.mxu0 %v15993_v59  ;;  %1099 = vmatpush1.bf16.msra.mxu1 %v15993_v59 }
  0x4e   : > { %1425 = vmatprep.subr.bf16.mxu0 %v15686_v0  ;;  %1804 = vmatprep.subr.bf16.mxu1 %v15686_v0 }
  0x4f   : > { %620 = vrot.lane.b32.xlu1 %v616_v10, %s15689_s16  ;;  %560 = vrot.lane.b32.xlu0 %v556_v27, %s15692_s21  ;;  %v1277_v10 = vshrl.u32 %v14471_v62, 16  ;;  %v1247_v27 = vsel %vm21112_vm0, %v1245_v8, %v1246_v6  ;;  %v1588_v62 = vrot.slane %v1586_v57, 6  ;;  %v1707_v57 = vor.u32 %v1706_v42, %v1702_v37 }
  0x51   : > { %v1282_v21 = vor.u32 %v1281_v24, %v1277_v10  ;;  %v1589_v8 = vor.u32 %v1588_v62, %v1585_v56  ;;  %v1563_v10 = vsel %vm464_vm1, %v1558_v4, %v1562_v60  ;;  %v1744_v56 = vrot.slane %v1742_v35, 6  ;;  %v14515_v62 = vld [vmem:[%s15782_s26 + $0x138] sm:$0xff]   ;;  %v16043_v4 = vld [vmem:[%s15782_s26 + $0xe8] sm:$0x3f]  }
  0x52   : > { %v2007_v7 = vshll.u32 %v14515_v62, 16  ;;  %v1974_v15 = vrot.slane %v16043_v4, 1  ;;  %v14523_v35 = vld [vmem:[%s15782_s26 + $0x144] sm:$0xfe]  }
  0x53   : > { %1233 = vrot.lane.b32.xlu1 %v1230_v3, %s15691_s20  ;;  %1231 = vrot.lane.b32.xlu0 %v1227_v5, %s15691_s20  ;;  %v1287_v29 = vsel %vm464_vm1, %v1282_v21, %v1286_v14  ;;  %v1367_v3 = vsel %vm21112_vm0, %v1365_v17, %v1366_v51  ;;  %v14492_v5 = vld [vmem:[%s15782_s26 + $0xc0] sm:$0xff]   ;;  %v14502_v21 = vld [vmem:[%s15782_s26 + $0x6c] sm:$0x1f]  }
  0x54   : > { %v1635_v24 = vshll.u32 %v14492_v5, 16  ;;  %v14498_v14 = vld [vmem:[%s15782_s26 + $0x124] sm:$0xff]   ;;  %v1665_v36 = vshrl.u32 %v14502_v21, 16  ;;  %v1668_v38 = vshll.u32 %v14502_v21, 16 }
  0x55   : > { %v1709_v25 = vshll.u32 %v14498_v14, 16  ;;  %v1713_v32 = vshrl.u32 %v14498_v14, 16 }
  0x56   : > { %v1637_v18 = vrot.slane %v1635_v24, 1  ;;  %v1667_v53 = vrot.slane %v1665_v36, 5  ;;  %v1670_v55 = vrot.slane %v1668_v38, 6  ;;  %v1945_v24 = vshrl.u32 %v14511_v58, 16 }
  0x57   : > { %1250 = vrot.lane.b32.xlu1 %v1246_v6, %s15690_s19  ;;  %1248 = vrot.lane.b32.xlu0 %v1247_v27, %s15690_s19  ;;  %v1566_v6 = vor.u32 %v1564_v61, %v1562_v60  ;;  %v1598_v27 = vsel %vm21088_vm3, %v1589_v8, %v1597_v9  ;;  %v1711_v50 = vrot.slane %v1709_v25, 1 }
  0x58   : > { %v1671_v61 = vor.u32 %v1670_v55, %v1667_v53 }
  0x59   : > { %v1715_v17 = vor.u32 %v1713_v32, %v1711_v50  ;;  %v1712_v63 = vsel %vm464_vm1, %v1707_v57, %v1711_v50  ;;  %v16095_v57 = vld [vmem:[%s15782_s26 + $0x14c] sm:$0x3f]  }
  0x5b   : > { %1264 = vrot.lane.b32.xlu1 %v14468_v11, %s15688_s30  ;;  %1262 = vrot.lane.b32.xlu0 %v14469_v19, %s15688_s30  ;;  %v1628_v11 = vshrl.u32 %v14493_v2, 16  ;;  %v1639_v19 = vshrl.u32 %v14492_v5, 16  ;;  %v16047_v5 = vld [vmem:[%s15782_s26 + $0x140] sm:$0x1f]  }
  0x5f   : > { %1293 = vrot.lane.b32.xlu1 %v1290_v23, %s15693_s22  ;;  %1291 = vrot.lane.b32.xlu0 %v1287_v29, %s15693_s22  ;;  %v1633_v23 = vor.u32 %v1632_v13, %v1628_v11  ;;  %v14505_v29 = vld [vmem:[%s15782_s26 + $0xc8] sm:$0xff]   ;;  %v1952_v11 = vshll.u32 %v16034_v39, 16 }
  0x60   : > { %v1731_v44 = vshrl.u32 %v14505_v29, 16 }
  0x61   : > { %v1638_v40 = vsel %vm464_vm1, %v1633_v23, %v1637_v18  ;;  %v2009_v23 = vrot.slane %v2007_v7, 1  ;;  %v16122_v7 = vld [vmem:[%s21076_s1] sm:$0xff]  }
  0x62   : > { %v1733_v28 = vrot.slane %v1731_v44, 5  ;;  %v14517_v44 = vld [vmem:[%s15782_s26 + $0x12c] sm:$0xff]  }
  0x63   : > { %1324 = vrot.lane.b32.xlu1 %v14472_v30, %s15687_s29  ;;  %1322 = vrot.lane.b32.xlu0 %v14473_v33, %s15687_s29  ;;  %v1641_v30 = vor.u32 %v1639_v19, %v1637_v18  ;;  %v1657_v33 = vshrl.u32 %v14501_v20, 16  ;;  %v2005_v18 = vshrl.u32 %v14515_v62, 16  ;;  %v2012_v19 = vshll.u32 %v16047_v5, 16  ;;  %v16059_v20 = vld [vmem:[%s15782_s26 + $0x1a4] sm:$0x1f]  }
  0x64   : > { %v2072_v32 = vshll.u32 %v16059_v20, 16 }
  0x65   : > { %v16067_v31 = vrot.slane %v2012_v19, 1 }
  0x66   : > { %v16085_v50 = vrot.slane %v2072_v32, 1 }
  0x67   : > { %1353 = vrot.lane.b32.xlu1 %v1350_v48, %s15694_s23  ;;  %1351 = vrot.lane.b32.xlu0 %v1347_v52, %s15694_s23  ;;  %v1734_v48 = vshll.u32 %v14505_v29, 16  ;;  %v1662_v52 = vrot.slane %v1660_v34, 6  ;;  %v16064_v29 = vrot.slane %v1952_v11, 1  ;;  %v2010_v34 = vor.u32 %v2009_v23, %v2005_v18  ;;  %v14531_v23 = vld [vmem:[%s15782_s26 + $0x158] sm:$0x3f]  }
  0x69   : > { %v1736_v45 = vrot.slane %v1734_v48, 6  ;;  %v16081_v48 = vld [vmem:[%s15782_s26 + $0x1b0] sm:$0x3f]   ;;  %v2015_v53 = vsel %vm464_vm1, %v2010_v34, %v16067_v31 }
  0x6b   : > { %1310 = vrot.lane.b32.xlu1 %v1306_v46, %s15692_s21  ;;  %1308 = vrot.lane.b32.xlu0 %v1307_v12, %s15692_s21  ;;  %v14496_v46 = vld [vmem:[%s15782_s26 + $0x110] sm:$0xf8]   ;;  %v1741_v12 = vrot.slane %v1739_v49, 5 }
  0x6d   : > { %v1745_v9 = vor.u32 %v1744_v56, %v1741_v12  ;;  %v14520_v56 = vld [vmem:[%s15782_s26 + $0x190] sm:$0xff]  }
  0x6f   : > { %1370 = vrot.lane.b32.xlu1 %v1366_v51, %s15689_s16  ;;  %1368 = vrot.lane.b32.xlu0 %v1367_v3, %s15689_s16  ;;  %v1659_v51 = vrot.slane %v1657_v33, 5  ;;  %v14509_v3 = vld [vmem:[%s15782_s26 + $0xe0] sm:$0xfe]  }
  0x70   : > { %v1973_v14 = vrot.slane %v14509_v3, 1 }
  0x71   : > { %v1663_v60 = vor.u32 %v1662_v52, %v1659_v51  ;;  %v14525_v51 = vld [vmem:[%s15782_s26 + $0xf4] sm:$0x3f]  }
  0x72   : > { %v1975_v33 = vsel %vm21112_vm0, %v1973_v14, %v1974_v15  ;;  %v2275_v62 = vshll.u32 %v14525_v51, 16  ;;  %v14532_v14 = vld [vmem:[%s15782_s26 + $0x150] sm:$0xfe]  }
  0x73   : > { %1569 = vrot.lane.b32.xlu1 %v1566_v6, %s15691_s20  ;;  %1567 = vrot.lane.b32.xlu0 %v1563_v10, %s15691_s20  ;;  %v1672_v6 = vsel %vm21088_vm3, %v1663_v60, %v1671_v61  ;;  %v14518_v10 = vld [vmem:[%s15782_s26 + $0x19c] sm:$0xff]  }
  0x74   : > { %v2067_v25 = vshll.u32 %v14518_v10, 16  ;;  %v2065_v36 = vshrl.u32 %v14518_v10, 16  ;;  %v2277_v10 = vrot.slane %v2275_v62, 1 }
  0x76   : > { %v2069_v37 = vrot.slane %v2067_v25, 1  ;;  %v16141_v25 = vld [vmem:[%s21076_s1 + $0x8] sm:$0xff]  }
  0x77   : > { %1601 = vrot.lane.b32.xlu1 %v1598_v27, %s15690_s19  ;;  %1599 = vrot.lane.b32.xlu0 %v1589_v8, %s15690_s19  ;;  %v1737_v8 = vor.u32 %v1736_v45, %v1733_v28  ;;  %v1949_v27 = vrot.slane %v1947_v1, 1 }
  0x78   : > { %v2070_v55 = vor.u32 %v2069_v37, %v2065_v36 }
  0x79   : > { %v1746_v21 = vsel %vm21088_vm3, %v1737_v8, %v1745_v9  ;;  %v1950_v26 = vor.u32 %v1949_v27, %v1945_v24  ;;  %v2279_v24 = vshrl.u32 %v14525_v51, 16  ;;  %v14527_v27 = vld [vmem:[%s15782_s26 + $0x100] sm:$0x7f]  }
  0x7a   : > { %v2297_v34 = vrot.slane %v14527_v27, 1 }
  0x7b   : > { %1615 = vrot.lane.b32.xlu1 %v14489_v16, %s15688_s30  ;;  %1613 = vrot.lane.b32.xlu0 %v14490_v22, %s15688_s30  ;;  %v14507_v22 = vld [vmem:[%s15782_s26] sm:$0xff]  }
  0x7f   : > { %1644 = vrot.lane.b32.xlu1 %v1641_v30, %s15693_s22  ;;  %1642 = vrot.lane.b32.xlu0 %v1638_v40, %s15693_s22  ;;  %v1955_v40 = vsel %vm464_vm1, %v1950_v26, %v16064_v29  ;;  %v2281_v26 = vor.u32 %v2279_v24, %v2277_v10 }
  0x83   : > { %1689 = vrot.lane.b32.xlu1 %v14495_v41, %s15687_s29  ;;  %1687 = vrot.lane.b32.xlu0 %v14496_v46, %s15687_s29  ;;  %v14526_v41 = vld [vmem:[%s15782_s26 + $0xec] sm:$0xfe]  }
  0x84   : > { %v16029_v54 = vpop.permute.xlu0 %572  ;;  %v14521_v46 = vld [vmem:[%s15782_s26 + $0x1a8] sm:$0xfe]   ;;  %v2270_v45 = vshll.u32 %v14526_v41, 16 }
  0x85   : > { %v16025_v47 = vpop.permute.xlu1 %512  ;;  %v2093_v1 = vrot.slane %v14521_v46, 1  ;;  %v14513_v46 = vld [vmem:[%s15782_s26 + $0x18] sm:$0xfe]  }
  0x87   : > { %1718 = vrot.lane.b32.xlu1 %v1715_v17, %s15694_s23  ;;  %1716 = vrot.lane.b32.xlu0 %v1712_v63, %s15694_s23  ;;  %v2075_v63 = vsel %vm464_vm1, %v2070_v55, %v16085_v50 }
  0x89   : > { %v16037_v43 = vpop.permute.xlu1 %618  ;;  %v499_v2 = vpop.permute.xlu0 %498 }
  0x8b   : > { %1675 = vrot.lane.b32.xlu1 %v1672_v6, %s15692_s21  ;;  %1673 = vrot.lane.b32.xlu0 %v1663_v60, %s15692_s21  ;;  %v2268_v6 = vshrl.u32 %v14526_v41, 16  ;;  %v14503_v41 = vld [vmem:[%s15782_s26 + $0x20] sm:$0x3f]  }
  0x8d   : > { %v16053_v13 = vpop.permute.xlu1 %885  ;;  %v559_v16 = vpop.permute.xlu0 %558 }
  0x8f   : > { %1749 = vrot.lane.b32.xlu1 %v1746_v21, %s15689_s16  ;;  %1747 = vrot.lane.b32.xlu0 %v1737_v8, %s15689_s16  ;;  %v2272_v8 = vrot.slane %v2270_v45, 1  ;;  %v14528_v21 = vld [vmem:[%s15782_s26 + $0xf8] sm:$0xfc]  }
  0x90   : > { %v2296_v36 = vrot.slane %v14528_v21, 1  ;;  %v14536_v45 = vld [vmem:[%s15782_s26 + $0x1bc] sm:$0x3f]  }
  0x91   : > { %v542_v30 = vpop.permute.xlu1 %541  ;;  %v481_v38 = vpop.permute.xlu0 %480  ;;  %v2273_v19 = vor.u32 %v2272_v8, %v2268_v6 }
  0x92   : > { %v625_v42 = vsel %vm622_vm5, %v14507_v22, %v481_v38  ;;  %v2335_v38 = vshll.u32 %v14531_v23, 16  ;;  %v2298_v51 = vsel %vm21112_vm0, %v2296_v36, %v2297_v34  ;;  %v14539_v36 = vld [vmem:[%s15782_s26 + $0x15c] sm:$0xfc]  }
  0x93   : > { %v631_v49 = vsel %vm629_vm4, %v625_v42, %v499_v2  ;;  %1976 = vrot.lane.b32.xlu1 %v1975_v33, %s15690_s19  ;;  %1959 = vrot.lane.b32.xlu0 %v1955_v40, %s15691_s20  ;;  %v2094_v2 = vrot.slane %v16081_v48, 1  ;;  %v2278_v33 = vsel %vm464_vm1, %v2273_v19, %v2277_v10  ;;  %v16151_v40 = vld [vmem:[%s21076_s1 + $0x10] sm:$0xff]   ;;  %v2328_v42 = vshrl.u32 %v14532_v14, 16 }
  0x94   : > { %v636_v52 = vsel %vm634_vm6, %v631_v49, %v16025_v47 }
  0x95   : > { %v602_v58 = vpop.permute.xlu1 %601  ;;  %v641_v28 = vsel %vm639_vm9, %v636_v52, %v542_v30  ;;  %v16100_v17 = vpop.permute.xlu0 %883  ;;  %v2095_v11 = vsel %vm21112_vm0, %v2093_v1, %v2094_v2  ;;  %v2330_v30 = vshll.u32 %v14532_v14, 16  ;;  %v14529_v52 = vld [vmem:[%s15782_s26 + $0x14c] sm:$0x3f]  }
  0x96   : > { %v658_v12 = vsel %vm656_vm7, %v16029_v54, %v602_v58  ;;  %v646_v47 = vsel %vm644_vm10, %v641_v28, %v559_v16  ;;  %v2339_v58 = vshrl.u32 %v14531_v23, 16  ;;  %v16165_v28 = vld [vmem:[%s21076_s1 + $0x18] sm:$0xff]   ;;  %v1026_v1 = vsel %vm622_vm5, %v14513_v46, %v16100_v17  ;;  %v16201_v23 = vld [vmem:[%s21076_s1 + $0x28] sm:$0xff]  }
  0x97   : > { %2019 = vrot.lane.b32.xlu1 %v2015_v53, %s15693_s22  ;;  %v663_v60 = vsel %vm661_vm8, %v658_v12, %v16037_v43  ;;  %v651_v61 = vsel %vm649_vm11, %v646_v47, %v16029_v54  ;;  %1990 = vrot.lane.b32.xlu0 %v14517_v44, %s15688_s30  ;;  %v2033_v43 = vrot.slane %v14523_v35, 1  ;;  %v2034_v54 = vrot.slane %v16095_v57, 1  ;;  %v14537_v53 = vld [vmem:[%s15782_s26 + $0x1b4] sm:$0xfe]   ;;  %v14530_v12 = vld [vmem:[%s15782_s26 + $0x144] sm:$0xfe]  }
  0x98   : > { %12757 = vmatprep.mubr.msk.bf16.mxu0 %vm21093_vm12, %v663_v60  ;;  %v2332_v44 = vrot.slane %v2330_v30, 1  ;;  %v2337_v35 = vrot.slane %v2335_v38, 1  ;;  %v2388_v14 = vshrl.u32 %v14537_v53, 16  ;;  %v14542_v57 = vld [vmem:[%s15782_s26 + $0x38] sm:$0x7f]  }
  0x99   : > { %v16114_v3 = vpop.permute.xlu1 %902  ;;  %783 = vmatmul.mubr.bf16.vlgmr.msra.gmra.mrb[0].mxu0 %v651_v61  ;;  %v16117_v9 = vpop.permute.xlu0 %900  ;;  %v2035_v18 = vsel %vm21112_vm0, %v2033_v43, %v2034_v54  ;;  %v2390_v61 = vshll.u32 %v14537_v53, 16  ;;  %v16221_v53 = vld [vmem:[%s21076_s1 + $0x30] sm:$0xff]  }
  0x9a   : > { %1426 = vmatpush1.bf16.msra.mxu0 %v16122_v7  ;;  %v2333_v47 = vor.u32 %v2332_v44, %v2328_v42  ;;  %v2341_v6 = vor.u32 %v2339_v58, %v2337_v35  ;;  %v1031_v8 = vsel %vm629_vm4, %v1026_v1, %v16117_v9 }
  0x9b   : > { %2079 = vrot.lane.b32.xlu1 %v2075_v63, %s15694_s23  ;;  %1427 = vmatprep.subr.bf16.mxu0 %v15686_v0  ;;  %v16178_v63 = vld [vmem:[%s21076_s1 + $0x20] sm:$0xff]  }
  0x9c   : > { %2050 = vrot.lane.b32.xlu0 %v14520_v56, %s15687_s29  ;;  %v1029_v56 = vsel %vm622_vm5, %v14503_v41, %v16053_v13  ;;  %v2395_v13 = vshll.u32 %v14536_v45, 16  ;;  %v2338_v24 = vsel %vm464_vm1, %v2333_v47, %v2337_v35  ;;  %v2356_v47 = vrot.slane %v14539_v36, 1 }
  0x9d   : > { %v917_v16 = vpop.permute.xlu1 %916  ;;  %v915_v22 = vpop.permute.xlu0 %914  ;;  %v1033_v43 = vsel %vm629_vm4, %v1029_v56, %v16114_v3 }
  0x9e   : > { %1428 = vmatpush1.bf16.msra.mxu0 %v16141_v25  ;;  %v1037_v10 = vsel %vm634_vm6, %v1033_v43, %v917_v16  ;;  %v1035_v17 = vsel %vm634_vm6, %v1031_v8, %v915_v22  ;;  %v14538_v16 = vld [vmem:[%s15782_s26 + $0x164] sm:$0x7f]   ;;  %v2397_v30 = vrot.slane %v2395_v13, 1  ;;  %v16235_v43 = vld [vmem:[%s21076_s1 + $0x38] sm:$0xff]  }
  0x9f   : > { %2096 = vrot.lane.b32.xlu1 %v2095_v11, %s15689_s16  ;;  %1429 = vmatprep.subr.bf16.mxu0 %v15686_v0  ;;  %v14533_v11 = vld [vmem:[%s15782_s26 + $0x1b0] sm:$0x3f]  }
  0xa0   : > { %2036 = vrot.lane.b32.xlu0 %v2035_v18, %s15692_s21  ;;  %v2392_v18 = vrot.slane %v2390_v61, 1 }
  0xa1   : > { %v946_v32 = vpop.permute.xlu1 %945  ;;  %v944_v37 = vpop.permute.xlu0 %943 }
  0xa2   : > { %1430 = vmatpush1.bf16.msra.mxu0 %v16151_v40  ;;  %v1041_v3 = vsel %vm639_vm9, %v1037_v10, %v946_v32  ;;  %v1039_v19 = vsel %vm639_vm9, %v1035_v17, %v944_v37  ;;  %v2399_v32 = vshrl.u32 %v14536_v45, 16  ;;  %v2393_v41 = vor.u32 %v2392_v18, %v2388_v14  ;;  %v14540_v45 = vld [vmem:[%s15782_s26 + $0x1c8] sm:$0x7f]  }
  0xa3   : > { %2284 = vrot.lane.b32.xlu1 %v2281_v26, %s15691_s20  ;;  %1431 = vmatprep.subr.bf16.mxu0 %v15686_v0  ;;  %v1956_v14 = vshrl.u32 %v16034_v39, 16 }
  0xa4   : > { %2282 = vrot.lane.b32.xlu0 %v2278_v33, %s15691_s20  ;;  %v2398_v56 = vsel %vm464_vm1, %v2393_v41, %v2397_v30  ;;  %v16284_v41 = vld [vmem:[%s21076_s1 + $0x50] sm:$0xff]  }
  0xa5   : > { %v977_v49 = vpop.permute.xlu1 %976  ;;  %v975_v55 = vpop.permute.xlu0 %974 }
  0xa6   : > { %1432 = vmatpush1.bf16.msra.mxu0 %v16165_v28 }
  0xa7   : > { %2301 = vrot.lane.b32.xlu1 %v2297_v34, %s15690_s19  ;;  %1433 = vmatprep.subr.bf16.mxu0 %v15686_v0  ;;  %v14534_v34 = vld [vmem:[%s15782_s26 + $0x1a8] sm:$0xfe]  }
  0xa8   : > { %2299 = vrot.lane.b32.xlu0 %v2298_v51, %s15690_s19 }
  0xa9   : > { %v1006_v60 = vpop.permute.xlu1 %1005  ;;  %v1004_v62 = vpop.permute.xlu0 %1003 }
  0xaa   : > { %1434 = vmatpush1.bf16.msra.mxu0 %v16178_v63  ;;  %v1053_v37 = vsel %vm656_vm7, %v977_v49, %v1006_v60  ;;  %v1051_v42 = vsel %vm656_vm7, %v975_v55, %v1004_v62  ;;  %v14541_v60 = vld [vmem:[%s15782_s26 + $0x1c0] sm:$0xfc]  }
  0xab   : > { %2315 = vrot.lane.b32.xlu1 %v14529_v52, %s15688_s30  ;;  %1435 = vmatprep.subr.bf16.mxu0 %v15686_v0  ;;  %v2357_v52 = vrot.slane %v14538_v16, 1  ;;  %v2416_v17 = vrot.slane %v14541_v60, 1  ;;  %v16264_v16 = vld [vmem:[%s21076_s1 + $0x48] sm:$0xff]  }
  0xac   : > { %2313 = vrot.lane.b32.xlu0 %v14530_v12, %s15688_s30 }
  0xad   : > { %v963_v27 = vpop.permute.xlu1 %962  ;;  %v961_v21 = vpop.permute.xlu0 %960  ;;  %v2358_v10 = vsel %vm21112_vm0, %v2356_v47, %v2357_v52  ;;  %v14553_v47 = vld [vmem:[%s15782_s26 + $0x168] sm:$0xfc]  }
  0xae   : > { %v1045_v9 = vsel %vm644_vm10, %v1041_v3, %v963_v27  ;;  %1436 = vmatpush1.bf16.msra.mxu0 %v16201_v23  ;;  %v1043_v26 = vsel %vm644_vm10, %v1039_v19, %v961_v21  ;;  %v16249_v27 = vld [vmem:[%s21076_s1 + $0x40] sm:$0xff]  }
  0xaf   : > { %v16205_v22 = vsel %vm649_vm11, %v1045_v9, %v977_v49  ;;  %2344 = vrot.lane.b32.xlu1 %v2341_v6, %s15693_s22  ;;  %1437 = vmatprep.subr.bf16.mxu0 %v15686_v0  ;;  %v1047_v33 = vsel %vm649_vm11, %v1043_v26, %v975_v55  ;;  %v2401_v55 = vor.u32 %v2399_v32, %v2397_v30  ;;  %v14535_v6 = vld [vmem:[%s15782_s26 + $0x8] sm:$0x1f]  }
  0xb0   : > { %2342 = vrot.lane.b32.xlu0 %v2338_v24, %s15693_s22  ;;  %v1063_v44 = vrot.slane %v16205_v22, 1  ;;  %v1062_v35 = vrot.slane %v1047_v33, 1  ;;  %v2417_v24 = vrot.slane %v14540_v45, 1  ;;  %v2016_v22 = vshrl.u32 %v16047_v5, 16  ;;  %v14547_v30 = vld [vmem:[%s15782_s26 + $0x104] sm:$0xfc]  }
  0xb1   : > { %v1023_v38 = vpop.permute.xlu1 %1022  ;;  %v1021_v51 = vpop.permute.xlu0 %1020  ;;  %v1958_v26 = vor.u32 %v1956_v14, %v16064_v29 }
  0xb2   : > { %v1057_v46 = vsel %vm661_vm8, %v1053_v37, %v1023_v38  ;;  %1438 = vmatpush1.bf16.msra.mxu0 %v16221_v53  ;;  %v1055_v58 = vsel %vm661_vm8, %v1051_v42, %v1021_v51  ;;  %v1064_v13 = vsel %vm21112_vm0, %v1062_v35, %v1063_v44  ;;  %v2418_v19 = vsel %vm21112_vm0, %v2416_v17, %v2417_v24  ;;  %v14544_v38 = vld [vmem:[%s15782_s26 + $0x134] sm:$0x1f]   ;;  %v14546_v42 = vld [vmem:[%s15782_s26 + $0x10c] sm:$0x7f]  }
  0xb3   : > { %v1066_v49 = vrot.slane %v1057_v46, 1  ;;  %2375 = vrot.lane.b32.xlu1 %v14533_v11, %s15687_s29  ;;  %1439 = vmatprep.subr.bf16.mxu0 %v15686_v0  ;;  %v1065_v12 = vrot.slane %v1055_v58, 1  ;;  %v2618_v46 = vshll.u32 %v14547_v30, 16 }
  0xb4   : > { %2373 = vrot.lane.b32.xlu0 %v14534_v34, %s15687_s29  ;;  %v2076_v34 = vshrl.u32 %v16059_v20, 16  ;;  %v2018_v20 = vor.u32 %v2016_v22, %v16067_v31  ;;  %v2623_v31 = vshll.u32 %v14546_v42, 16  ;;  %v16339_v22 = vld [vmem:[%s15782_s26 + $0x17c] sm:$0xff]  }
  0xb5   : > { %v501_v61 = vpop.permute.xlu1 %500  ;;  %v483_v62 = vpop.permute.xlu0 %482  ;;  %v1067_v1 = vsel %vm21112_vm0, %v1065_v12, %v1066_v49  ;;  %v2620_v58 = vrot.slane %v2618_v46, 1  ;;  %v14548_v12 = vld [vmem:[%s15782_s26 + $0x118] sm:$0xff]  }
  0xb6   : > { %1440 = vmatpush1.bf16.msra.mxu0 %v16235_v43  ;;  %12777 = vmatprep.mubr.msk.bf16.mxu1 %vm21093_vm12, %v1067_v1  ;;  %v628_v11 = vsel %vm622_vm5, %v14535_v6, %v483_v62  ;;  %v2625_v45 = vrot.slane %v2623_v31, 1  ;;  %v14552_v6 = vld [vmem:[%s15782_s26 + $0x170] sm:$0x7f]   ;;  %v16363_v31 = vld [vmem:[%s15782_s26 + $0x124] sm:$0xff]  }
  0xb7   : > { %2404 = vrot.lane.b32.xlu1 %v2401_v55, %s15694_s23  ;;  %1109 = vmatmul.mubr.bf16.vlgmr.msra.gmra.mrb[0].mxu1 %v1064_v13  ;;  %v633_v9 = vsel %vm629_vm4, %v628_v11, %v501_v61  ;;  %v2678_v13 = vshll.u32 %v14553_v47, 16  ;;  %v14543_v11 = vld [vmem:[%s15782_s26 + $0x30] sm:$0xfc]  }
  0xb8   : > { %2402 = vrot.lane.b32.xlu0 %v2398_v56, %s15694_s23  ;;  %12778 = vmatprep.mubr.msk.bf16.mxu1 %vm21093_vm12, %v1066_v49  ;;  %v2616_v49 = vshrl.u32 %v14547_v30, 16  ;;  %v14549_v56 = vld [vmem:[%s15782_s26 + $0x110] sm:$0xf8]   ;;  %v2687_v30 = vshrl.u32 %v14552_v6, 16 }
  0xb9   : > { %v544_v8 = vpop.permute.xlu1 %543  ;;  %1441 = vmatprep.subr.bf16.mxu0 %v15686_v0  ;;  %v515_v3 = vpop.permute.xlu0 %514  ;;  %1805 = vmatpush1.bf16.msra.mxu1 %v16122_v7  ;;  %v2644_v17 = vrot.slane %v14549_v56, 1 }
  0xba   : > { %1442 = vmatpush1.bf16.msra.mxu0 %v16249_v27  ;;  %1806 = vmatprep.subr.bf16.mxu1 %v15686_v0  ;;  %v638_v39 = vsel %vm634_vm6, %v633_v9, %v515_v3  ;;  %v2621_v61 = vor.u32 %v2620_v58, %v2616_v49  ;;  %v2680_v3 = vrot.slane %v2678_v13, 1  ;;  %v14559_v9 = vld [vmem:[%s15782_s26 + $0x1cc] sm:$0xfc]   ;;  %v14561_v13 = vld [vmem:[%s15782_s26 + $0x174] sm:$0xf8]  }
  0xbb   : > { %2361 = vrot.lane.b32.xlu1 %v2357_v52, %s15692_s21  ;;  %1443 = vmatprep.subr.bf16.mxu0 %v15686_v0  ;;  %v643_v5 = vsel %vm639_vm9, %v638_v39, %v544_v8  ;;  %v14545_v52 = vld [vmem:[%s15782_s26 + $0x198] sm:$0x1f]   ;;  %v14554_v58 = vld [vmem:[%s15782_s26 + $0x1c8] sm:$0x7f]  }
  0xbc   : > { %2359 = vrot.lane.b32.xlu0 %v2358_v10, %s15692_s21  ;;  %v2626_v10 = vsel %vm464_vm1, %v2621_v61, %v2625_v45  ;;  %v14558_v39 = vld [vmem:[%s15782_s26 + $0x1d4] sm:$0x7f]  }
  0xbd   : > { %v604_v18 = vpop.permute.xlu1 %603  ;;  %v575_v21 = vpop.permute.xlu0 %574  ;;  %1807 = vmatpush1.bf16.msra.mxu1 %v16141_v25  ;;  %v2747_v61 = vshrl.u32 %v14558_v39, 16 }
  0xbe   : > { %1444 = vmatpush1.bf16.msra.mxu0 %v16264_v16  ;;  %v660_v32 = vsel %vm656_vm7, %v575_v21, %v604_v18  ;;  %1808 = vmatprep.subr.bf16.mxu1 %v15686_v0 }
  0xbf   : > { %2421 = vrot.lane.b32.xlu1 %v2417_v24, %s15689_s16  ;;  %1445 = vmatprep.subr.bf16.mxu0 %v15686_v0  ;;  %v2645_v24 = vrot.slane %v14548_v12, 1 }
  0xc0   : > { %2419 = vrot.lane.b32.xlu0 %v2418_v19, %s15689_s16  ;;  %1117 = vmatmul.mubr.bf16.gmra.mrb[4].mxu1 %v1063_v44  ;;  %v14550_v19 = vld [vmem:[%s15782_s26 + $0x164] sm:$0x7f]  }
  0xc1   : > { %v621_v33 = vpop.permute.xlu1 %620  ;;  %v561_v37 = vpop.permute.xlu0 %560  ;;  %1809 = vmatpush1.bf16.msra.mxu1 %v16151_v40  ;;  %v2646_v18 = vsel %vm21112_vm0, %v2644_v17, %v2645_v24 }
  0xc2   : > { %v665_v36 = vsel %vm661_vm8, %v660_v32, %v621_v33  ;;  %1446 = vmatpush1.bf16.msra.mxu0 %v16284_v41  ;;  %v648_v29 = vsel %vm644_vm10, %v643_v5, %v561_v37  ;;  %1810 = vmatprep.subr.bf16.mxu1 %v15686_v0  ;;  %v14551_v32 = vld [vmem:[%s15782_s26 + $0x15c] sm:$0xfc]  }
  0xc3   : > { %1978 = vrot.lane.b32.xlu1 %v1974_v15, %s15690_s19  ;;  %12758 = vmatprep.mubr.msk.bf16.mxu0 %vm21093_vm12, %v665_v36  ;;  %v654_v44 = vsel %vm649_vm11, %v648_v29, %v575_v21  ;;  %v2078_v15 = vor.u32 %v2076_v34, %v16085_v50  ;;  %v2627_v50 = vshrl.u32 %v14546_v42, 16  ;;  %v2738_v36 = vshll.u32 %v14559_v9, 16 }
  0xc4   : > { %1961 = vrot.lane.b32.xlu0 %v1958_v26, %s15691_s20  ;;  %1447 = vmatprep.subr.bf16.mxu0 %v15686_v0 }
  0xc5   : > { %791 = vmatmul.mubr.bf16.gmra.mrb[4].mxu0 %v654_v44  ;;  %v16298_v51 = vpop.permute.xlu1 %1233  ;;  %v16301_v4 = vpop.permute.xlu0 %1231  ;;  %1811 = vmatpush1.bf16.msra.mxu1 %v16165_v28  ;;  %v2629_v1 = vor.u32 %v2627_v50, %v2625_v45  ;;  %v2740_v45 = vrot.slane %v2738_v36, 1 }
  0xc6   : > { %1448 = vmatpush1.bf16.msra.mxu0 %v15993_v59  ;;  %1812 = vmatprep.subr.bf16.mxu1 %v15686_v0  ;;  %v1377_v37 = vsel %vm622_vm5, %v14542_v57, %v16298_v51  ;;  %v1374_v29 = vsel %vm622_vm5, %v14543_v11, %v16301_v4  ;;  %v16360_v4 = vld [vmem:[%s15782_s26 + $0x1e0] sm:$0xff]  }
  0xc7   : > { %2021 = vrot.lane.b32.xlu1 %v2018_v20, %s15693_s22  ;;  %2140 = vmatprep.subr.bf16.mxu0 %v15686_v0 }
  0xc8   : > { %1992 = vrot.lane.b32.xlu0 %v14544_v38, %s15688_s30  ;;  %v2743_v38 = vshll.u32 %v14558_v39, 16 }
  0xc9   : > { %v1251_v35 = vpop.permute.xlu1 %1250  ;;  %v1249_v55 = vpop.permute.xlu0 %1248  ;;  %1813 = vmatpush1.bf16.msra.mxu1 %v16178_v63 }
  0xca   : > { %1814 = vmatprep.subr.bf16.mxu1 %v15686_v0  ;;  %v1381_v20 = vsel %vm629_vm4, %v1377_v37, %v1251_v35  ;;  %v1379_v44 = vsel %vm629_vm4, %v1374_v29, %v1249_v55  ;;  %v2736_v55 = vshrl.u32 %v14559_v9, 16  ;;  %v2961_v37 = vshrl.u32 %v16363_v31, 16 }
  0xcb   : > { %2081 = vrot.lane.b32.xlu1 %v2078_v15, %s15694_s23  ;;  %v2705_v15 = vrot.slane %v16339_v22, 1 }
  0xcc   : > { %2052 = vrot.lane.b32.xlu0 %v14545_v52, %s15687_s29  ;;  %v2741_v17 = vor.u32 %v2740_v45, %v2736_v55  ;;  %v14571_v55 = vld [vmem:[%s15782_s26 + $0x180] sm:$0xf8]  }
  0xcd   : > { %v1265_v60 = vpop.permute.xlu1 %1264  ;;  %v1263_v62 = vpop.permute.xlu0 %1262  ;;  %1815 = vmatpush1.bf16.msra.mxu1 %v16201_v23  ;;  %v3026_v22 = vshll.u32 %v14571_v55, 16 }
  0xce   : > { %1816 = vmatprep.subr.bf16.mxu1 %v15686_v0  ;;  %v1385_v46 = vsel %vm634_vm6, %v1381_v20, %v1265_v60  ;;  %v1383_v52 = vsel %vm634_vm6, %v1379_v44, %v1263_v62  ;;  %v2745_v60 = vrot.slane %v2743_v38, 1  ;;  %v14555_v62 = vld [vmem:[%s15782_s26 + $0x1c0] sm:$0xfc]  }
  0xcf   : > { %2098 = vrot.lane.b32.xlu1 %v2094_v2, %s15689_s16  ;;  %v2683_v2 = vshll.u32 %v14552_v6, 16 }
  0xd0   : > { %2038 = vrot.lane.b32.xlu0 %v2034_v54, %s15692_s21  ;;  %v2676_v54 = vshrl.u32 %v14553_v47, 16  ;;  %v2749_v11 = vor.u32 %v2747_v61, %v2745_v60 }
  0xd1   : > { %v1294_v8 = vpop.permute.xlu1 %1293  ;;  %v1292_v48 = vpop.permute.xlu0 %1291  ;;  %1817 = vmatpush1.bf16.msra.mxu1 %v16221_v53  ;;  %v2685_v26 = vrot.slane %v2683_v2, 1  ;;  %v14565_v2 = vld [vmem:[%s15782_s26 + $0x11c] sm:$0xf8]  }
  0xd2   : > { %1818 = vmatprep.subr.bf16.mxu1 %v15686_v0  ;;  %v2681_v33 = vor.u32 %v2680_v3, %v2676_v54  ;;  %v1389_v35 = vsel %vm639_vm9, %v1385_v46, %v1294_v8  ;;  %v1387_v50 = vsel %vm639_vm9, %v1383_v52, %v1292_v48  ;;  %v14563_v8 = vld [vmem:[%s15782_s26 + $0x1d8] sm:$0xf8]   ;;  %v2957_v48 = vshll.u32 %v16363_v31, 16 }
  0xd3   : > { %2632 = vrot.lane.b32.xlu1 %v2629_v1, %s15691_s20  ;;  %v2689_v42 = vor.u32 %v2687_v30, %v2685_v26  ;;  %v2704_v30 = vrot.slane %v14561_v13, 1  ;;  %v2764_v20 = vrot.slane %v14563_v8, 1 }
  0xd4   : > { %2630 = vrot.lane.b32.xlu0 %v2626_v10, %s15691_s20  ;;  %v2686_v51 = vsel %vm464_vm1, %v2681_v33, %v2685_v26  ;;  %v2959_v36 = vrot.slane %v2957_v48, 1  ;;  %v3028_v48 = vrot.slane %v3026_v22, 1 }
  0xd5   : > { %v1325_v14 = vpop.permute.xlu1 %1324  ;;  %v1323_v21 = vpop.permute.xlu0 %1322  ;;  %1819 = vmatpush1.bf16.msra.mxu1 %v16235_v43  ;;  %v2706_v52 = vsel %vm21112_vm0, %v2704_v30, %v2705_v15 }
  0xd6   : > { %1820 = vmatprep.subr.bf16.mxu1 %v15686_v0 }
  0xd7   : > { %2649 = vrot.lane.b32.xlu1 %v2645_v24, %s15690_s19 }
  0xd8   : > { %2647 = vrot.lane.b32.xlu0 %v2646_v18, %s15690_s19  ;;  %v2765_v18 = vrot.slane %v16360_v4, 1 }
  0xd9   : > { %v1354_v34 = vpop.permute.xlu1 %1353  ;;  %v1352_v5 = vpop.permute.xlu0 %1351  ;;  %1821 = vmatpush1.bf16.msra.mxu1 %v16249_v27 }
  0xda   : > { %1822 = vmatprep.subr.bf16.mxu1 %v15686_v0  ;;  %v1401_v10 = vsel %vm656_vm7, %v1325_v14, %v1354_v34  ;;  %v1399_v57 = vsel %vm656_vm7, %v1323_v21, %v1352_v5  ;;  %v2746_v34 = vsel %vm464_vm1, %v2741_v17, %v2745_v60  ;;  %v2952_v5 = vshll.u32 %v14565_v2, 16 }
  0xdb   : > { %2663 = vrot.lane.b32.xlu1 %v14550_v19, %s15688_s30  ;;  %v14566_v19 = vld [vmem:[%s15782_s26 + $0xc8] sm:$0xff]   ;;  %v2766_v60 = vsel %vm21112_vm0, %v2764_v20, %v2765_v18 }
  0xdc   : > { %2661 = vrot.lane.b32.xlu0 %v14551_v32, %s15688_s30  ;;  %v14567_v32 = vld [vmem:[%s15782_s26 + $0xd0] sm:$0x1f]   ;;  %v2982_v46 = vshll.u32 %v14566_v19, 16 }
  0xdd   : > { %v1311_v49 = vpop.permute.xlu1 %1310  ;;  %v1309_v47 = vpop.permute.xlu0 %1308  ;;  %1823 = vmatpush1.bf16.msra.mxu1 %v16264_v16  ;;  %v2990_v4 = vshll.u32 %v14567_v32, 16 }
  0xde   : > { %v1393_v12 = vsel %vm644_vm10, %v1389_v35, %v1311_v49  ;;  %v1391_v56 = vsel %vm644_vm10, %v1387_v50, %v1309_v47  ;;  %1824 = vmatprep.subr.bf16.mxu1 %v15686_v0  ;;  %v2950_v35 = vshrl.u32 %v14565_v2, 16  ;;  %v2954_v49 = vrot.slane %v2952_v5, 1 }
  0xdf   : > { %2692 = vrot.lane.b32.xlu1 %v2689_v42, %s15693_s22  ;;  %v16376_v1 = vsel %vm649_vm11, %v1393_v12, %v1325_v14  ;;  %v1395_v6 = vsel %vm649_vm11, %v1391_v56, %v1323_v21  ;;  %v2979_v42 = vshrl.u32 %v14566_v19, 16  ;;  %v2984_v45 = vrot.slane %v2982_v46, 6  ;;  %v14570_v56 = vld [vmem:[%s15782_s26 + $0x188] sm:$0xff]   ;;  %v14568_v19 = vld [vmem:[%s15782_s26 + $0x17c] sm:$0xff]  }
  0xe0   : > { %2690 = vrot.lane.b32.xlu0 %v2686_v51, %s15693_s22  ;;  %v1412_v9 = vrot.slane %v16376_v1, 2  ;;  %v1411_v14 = vrot.slane %v1395_v6, 2  ;;  %v2987_v51 = vshrl.u32 %v14567_v32, 16  ;;  %v2992_v12 = vrot.slane %v2990_v4, 6  ;;  %v14578_v32 = vld [vmem:[%s15782_s26 + $0x134] sm:$0x1f]  }
  0xe1   : > { %v1371_v24 = vpop.permute.xlu1 %1370  ;;  %v1369_v3 = vpop.permute.xlu0 %1368  ;;  %1825 = vmatpush1.bf16.msra.mxu1 %v16284_v41  ;;  %v2955_v61 = vor.u32 %v2954_v49, %v2950_v35  ;;  %v2963_v1 = vor.u32 %v2961_v37, %v2959_v36 }
  0xe2   : > { %v1405_v54 = vsel %vm661_vm8, %v1401_v10, %v1371_v24  ;;  %v1403_v26 = vsel %vm661_vm8, %v1399_v57, %v1369_v3  ;;  %1826 = vmatprep.subr.bf16.mxu1 %v15686_v0  ;;  %v1413_v44 = vsel %vm21089_vm13, %v1411_v14, %v1412_v9  ;;  %v2989_v50 = vrot.slane %v2987_v51, 5  ;;  %v16443_v57 = vld [vmem:[%s15782_s26 + $0x1e4] sm:$0xf8]   ;;  %v14577_v3 = vld [vmem:[%s15782_s26 + $0x12c] sm:$0xff]  }
  0xe3   : > { %v1415_v39 = vrot.slane %v1405_v54, 2  ;;  %2723 = vrot.lane.b32.xlu1 %v14554_v58, %s15687_s29  ;;  %v1414_v21 = vrot.slane %v1403_v26, 2  ;;  %v2960_v8 = vsel %vm464_vm1, %v2955_v61, %v2959_v36  ;;  %v3031_v10 = vshll.u32 %v14570_v56, 16  ;;  %v14556_v54 = vld [vmem:[%s15782_s26 + $0x50] sm:$0xff]  }
  0xe4   : > { %2721 = vrot.lane.b32.xlu0 %v14555_v62, %s15687_s29  ;;  %v2993_v6 = vor.u32 %v2992_v12, %v2989_v50  ;;  %v3024_v24 = vshrl.u32 %v14571_v55, 16  ;;  %v3035_v14 = vshrl.u32 %v14570_v56, 16  ;;  %v3098_v37 = vshrl.u32 %v16443_v57, 16 }
  0xe5   : > { %v16396_v33 = vpop.permute.xlu1 %1569  ;;  %v16400_v38 = vpop.permute.xlu0 %1567  ;;  %v1416_v29 = vsel %vm21089_vm13, %v1414_v21, %v1415_v39  ;;  %1827 = vmatpush1.bf16.msra.mxu1 %v15993_v59  ;;  %v14569_v21 = vld [vmem:[%s15782_s26 + $0x174] sm:$0xf8]   ;;  %v3053_v5 = vshrl.u32 %v14577_v3, 16  ;;  %v3056_v4 = vshll.u32 %v14577_v3, 16  ;;  %v3064_v55 = vshll.u32 %v14578_v32, 16 }
  0xe6   : > { %12797 = vmatprep.mubr.msk.bf16.mxu0 %vm21093_vm12, %v1416_v29  ;;  %2475 = vmatprep.subr.bf16.mxu1 %v15686_v0  ;;  %v3029_v30 = vor.u32 %v3028_v48, %v3024_v24 }
  0xe7   : > { %2752 = vrot.lane.b32.xlu1 %v2749_v11, %s15694_s23  ;;  %1458 = vmatmul.mubr.bf16.vlgmr.msra.gmra.mrb[8].mxu0 %v1413_v44  ;;  %v14557_v11 = vld [vmem:[%s15782_s26 + $0x48] sm:$0xf8]   ;;  %v1756_v44 = vsel %vm622_vm5, %v14556_v54, %v16396_v33 }
  0xe8   : > { %2750 = vrot.lane.b32.xlu0 %v2746_v34, %s15694_s23  ;;  %2141 = vmatpush1.bf16.msra.mxu0 %v16122_v7  ;;  %v2981_v7 = vrot.slane %v2979_v42, 5  ;;  %v14579_v34 = vld [vmem:[%s15782_s26 + $0x190] sm:$0xff]   ;;  %v14580_v42 = vld [vmem:[%s15782_s26 + $0x198] sm:$0x1f]   ;;  %v1753_v35 = vsel %vm622_vm5, %v14557_v11, %v16400_v38  ;;  %v16504_v11 = vld [vmem:[%s15782_s26 + $0x1a8] sm:$0xfe]  }
  0xe9   : > { %12798 = vmatprep.mubr.msk.bf16.mxu0 %vm21093_vm12, %v1415_v39  ;;  %v16410_v31 = vpop.permute.xlu1 %1601  ;;  %v16415_v58 = vpop.permute.xlu0 %1599  ;;  %2142 = vmatprep.subr.bf16.mxu0 %v15686_v0  ;;  %v3130_v50 = vshll.u32 %v14579_v34, 16  ;;  %v3135_v61 = vshrl.u32 %v14580_v42, 16 }
  0xea   : > { %v1758_v33 = vsel %vm629_vm4, %v1753_v35, %v16415_v58  ;;  %v3138_v58 = vshll.u32 %v14580_v42, 16 }
  0xeb   : > { %2709 = vrot.lane.b32.xlu1 %v2705_v15, %s15692_s21  ;;  %v16433_v15 = vld [vmem:[%s15782_s26 + $0x1ec] sm:$0xff]   ;;  %v3132_v48 = vrot.slane %v3130_v50, 6 }
  0xec   : > { %2707 = vrot.lane.b32.xlu0 %v2706_v52, %s15692_s21  ;;  %2143 = vmatpush1.bf16.msra.mxu0 %v16141_v25  ;;  %v2985_v25 = vor.u32 %v2984_v45, %v2981_v7  ;;  %v3105_v2 = vshll.u32 %v16433_v15, 16  ;;  %v3109_v39 = vshrl.u32 %v16433_v15, 16  ;;  %v3061_v52 = vshrl.u32 %v14578_v32, 16  ;;  %v14587_v15 = vld [vmem:[%s15782_s26 + $0x200] sm:$0xff]  }
  0xed   : > { %v16425_v47 = vpop.permute.xlu1 %1615  ;;  %v16429_v62 = vpop.permute.xlu0 %1613  ;;  %2144 = vmatprep.subr.bf16.mxu0 %v15686_v0  ;;  %v3127_v45 = vshrl.u32 %v14579_v34, 16  ;;  %v3140_v3 = vrot.slane %v3138_v58, 6 }
  0xee   : > { %v16460_v36 = vrot.slane %v3105_v2, 1  ;;  %v1762_v38 = vsel %vm634_vm6, %v1758_v33, %v16429_v62  ;;  %v16545_v33 = vld [vmem:[%s15782_s26 + $0x264] sm:$0xff]  }
  0xef   : > { %2769 = vrot.lane.b32.xlu1 %v2765_v18, %s15689_s16  ;;  %1466 = vmatmul.mubr.bf16.gmra.mrb[12].mxu0 %v1412_v9  ;;  %v3033_v9 = vrot.slane %v3031_v10, 1 }
  0xf0   : > { %2767 = vrot.lane.b32.xlu0 %v2766_v60, %s15689_s16  ;;  %2145 = vmatpush1.bf16.msra.mxu0 %v16151_v40  ;;  %v2994_v40 = vsel %vm21088_vm3, %v2985_v25, %v2993_v6  ;;  %v14572_v60 = vld [vmem:[%s15782_s26 + $0x1e0] sm:$0xff]   ;;  %v3058_v6 = vrot.slane %v3056_v4, 6  ;;  %v14574_v4 = vld [vmem:[%s15782_s26 + $0xc8] sm:$0xff]  }
  0xf1   : > { %v1645_v13 = vpop.permute.xlu1 %1644  ;;  %v1643_v17 = vpop.permute.xlu0 %1642  ;;  %2146 = vmatprep.subr.bf16.mxu0 %v15686_v0  ;;  %v3037_v20 = vor.u32 %v3035_v14, %v3033_v9  ;;  %v3034_v51 = vsel %vm464_vm1, %v3029_v30, %v3033_v9 }
  0xf2   : > { %v1766_v56 = vsel %vm639_vm9, %v1762_v38, %v1643_v17  ;;  %v3129_v17 = vrot.slane %v3127_v45, 5  ;;  %v16553_v38 = vld [vmem:[%s21076_s1] sm:$0xff]  }
  0xf3   : > { %2966 = vrot.lane.b32.xlu1 %v2963_v1, %s15691_s20  ;;  %v14573_v1 = vld [vmem:[%s15782_s26 + $0x1d8] sm:$0xf8]  }
  0xf4   : > { %2964 = vrot.lane.b32.xlu0 %v2960_v8, %s15691_s20  ;;  %2147 = vmatpush1.bf16.msra.mxu0 %v16165_v28  ;;  %v3100_v28 = vshll.u32 %v16443_v57, 16  ;;  %v16493_v8 = vld [vmem:[%s15782_s26 + $0x19c] sm:$0xff]  }
  0xf5   : > { %v1690_v18 = vpop.permute.xlu1 %1689  ;;  %v16453_v26 = vpop.permute.xlu0 %1687  ;;  %2148 = vmatprep.subr.bf16.mxu0 %v15686_v0 }
  0xf6   : > { %v3102_v49 = vrot.slane %v3100_v28, 1 }
  0xf7   : > { %2997 = vrot.lane.b32.xlu1 %v2994_v40, %s15690_s19  ;;  %v3137_v40 = vrot.slane %v3135_v61, 5 }
  0xf8   : > { %2995 = vrot.lane.b32.xlu0 %v2985_v25, %s15690_s19  ;;  %2149 = vmatpush1.bf16.msra.mxu0 %v16178_v63  ;;  %v1760_v63 = vsel %vm629_vm4, %v1756_v44, %v16410_v31  ;;  %v3055_v25 = vrot.slane %v3053_v5, 5  ;;  %v3103_v54 = vor.u32 %v3102_v49, %v3098_v37 }
  0xf9   : > { %v1719_v29 = vpop.permute.xlu1 %1718  ;;  %v1717_v46 = vpop.permute.xlu0 %1716  ;;  %2150 = vmatprep.subr.bf16.mxu0 %v15686_v0  ;;  %v1764_v7 = vsel %vm634_vm6, %v1760_v63, %v16425_v47  ;;  %v16540_v63 = vld [vmem:[%s15782_s26 + $0x208] sm:$0x1f]  }
  0xfa   : > { %v1768_v31 = vsel %vm639_vm9, %v1764_v7, %v1645_v13  ;;  %v3066_v13 = vrot.slane %v3064_v55, 6  ;;  %v1780_v2 = vsel %vm656_vm7, %v1690_v18, %v1719_v29  ;;  %v3059_v28 = vor.u32 %v3058_v6, %v3055_v25  ;;  %v16525_v29 = vld [vmem:[%s15782_s26 + $0x1b0] sm:$0x3f]   ;;  %v16573_v6 = vld [vmem:[%s21076_s1 + $0x8] sm:$0xff]  }
  0xfb   : > { %3011 = vrot.lane.b32.xlu1 %v14568_v19, %s15688_s30  ;;  %v1778_v19 = vsel %vm656_vm7, %v16453_v26, %v1717_v46  ;;  %v3108_v5 = vsel %vm464_vm1, %v3103_v54, %v16460_v36  ;;  %v3133_v46 = vor.u32 %v3132_v48, %v3129_v17  ;;  %v3400_v55 = vshll.u32 %v14587_v15, 16 }
  0xfc   : > { %3009 = vrot.lane.b32.xlu0 %v14569_v21, %s15688_s30  ;;  %2151 = vmatpush1.bf16.msra.mxu0 %v16201_v23  ;;  %v3063_v23 = vrot.slane %v3061_v52, 5  ;;  %v3366_v52 = vrot.slane %v16504_v11, 1  ;;  %v3367_v45 = vrot.slane %v16525_v29, 1  ;;  %v3405_v61 = vshll.u32 %v16540_v63, 16  ;;  %v14598_v11 = vld [vmem:[%s15782_s26 + $0x1b4] sm:$0xfe]  }
  0xfd   : > { %v1676_v12 = vpop.permute.xlu1 %1675  ;;  %v1674_v22 = vpop.permute.xlu0 %1673  ;;  %2152 = vmatprep.subr.bf16.mxu0 %v15686_v0  ;;  %v3458_v48 = vshrl.u32 %v16545_v33, 16 }
  0xfe   : > { %v1772_v47 = vsel %vm644_vm10, %v1768_v31, %v1676_v12  ;;  %v1770_v62 = vsel %vm644_vm10, %v1766_v56, %v1674_v22  ;;  %v3067_v37 = vor.u32 %v3066_v13, %v3063_v23  ;;  %v16558_v12 = vld [vmem:[%s15782_s26 + $0x26c] sm:$0x1f]   ;;  %v3460_v22 = vshll.u32 %v16545_v33, 16  ;;  %v16651_v33 = vld [vmem:[%s21076_s1 + $0x20] sm:$0xff]  }
  0xff   : > { %3040 = vrot.lane.b32.xlu1 %v3037_v20, %s15693_s22  ;;  %v16496_v10 = vsel %vm649_vm11, %v1772_v47, %v1690_v18  ;;  %v1774_v24 = vsel %vm649_vm11, %v1770_v62, %v16453_v26  ;;  %v3111_v18 = vor.u32 %v3109_v39, %v16460_v36  ;;  %v3340_v20 = vshll.u32 %v16493_v8, 16 }
 0x100   : > { %3038 = vrot.lane.b32.xlu0 %v3034_v51, %s15693_s22  ;;  %2153 = vmatpush1.bf16.msra.mxu0 %v16221_v53  ;;  %v16514_v53 = vld [vmem:[%s15782_s26 + $0x1a4] sm:$0x1f]   ;;  %v1791_v21 = vrot.slane %v16496_v10, 3  ;;  %v1790_v30 = vrot.slane %v1774_v24, 3  ;;  %v3338_v51 = vshrl.u32 %v16493_v8, 16  ;;  %v3141_v36 = vor.u32 %v3140_v3, %v3137_v40  ;;  %v16600_v10 = vld [vmem:[%s21076_s1 + $0x10] sm:$0xff]  }
 0x101   : > { %v1750_v57 = vpop.permute.xlu1 %1749  ;;  %v1748_v14 = vpop.permute.xlu0 %1747  ;;  %2154 = vmatprep.subr.bf16.mxu0 %v15686_v0  ;;  %v3345_v35 = vshll.u32 %v16514_v53, 16  ;;  %v3068_v49 = vsel %vm21088_vm3, %v3059_v28, %v3067_v37  ;;  %v3342_v50 = vrot.slane %v3340_v20, 1  ;;  %v3402_v47 = vrot.slane %v3400_v55, 1  ;;  %v14593_v3 = vld [vmem:[%s15782_s26 + $0x270] sm:$0xfe]  }
 0x102   : > { %v1784_v9 = vsel %vm661_vm8, %v1780_v2, %v1750_v57  ;;  %v1782_v34 = vsel %vm661_vm8, %v1778_v19, %v1748_v14  ;;  %v3465_v23 = vshll.u32 %v16558_v12, 16  ;;  %v16584_v8 = vrot.slane %v3405_v61, 1  ;;  %v16622_v37 = vld [vmem:[%s15782_s26 + $0x214] sm:$0x3f]  }
 0x103   : > { %v1794_v32 = vrot.slane %v1784_v9, 3  ;;  %3085 = vrot.lane.b32.xlu1 %v14572_v60, %s15687_s29  ;;  %v1793_v26 = vrot.slane %v1782_v34, 3  ;;  %v3398_v60 = vshrl.u32 %v14587_v15, 16  ;;  %v16566_v56 = vrot.slane %v3345_v35, 1 }
 0x104   : > { %3083 = vrot.lane.b32.xlu0 %v14573_v1, %s15687_s29  ;;  %2155 = vmatpush1.bf16.msra.mxu0 %v16235_v43  ;;  %v1792_v43 = vsel %vm21092_vm14, %v1790_v30, %v1791_v21  ;;  %v3343_v25 = vor.u32 %v3342_v50, %v3338_v51  ;;  %v3462_v2 = vrot.slane %v3460_v22, 1  ;;  %v16606_v14 = vrot.slane %v3465_v23, 1  ;;  %v14597_v30 = vld [vmem:[%s15782_s26 + $0x1bc] sm:$0x3f]   ;;  %v14599_v22 = vld [vmem:[%s15782_s26 + $0x1c8] sm:$0x7f]  }
 0x105   : > { %v1977_v39 = vpop.permute.xlu1 %1976  ;;  %v1960_v42 = vpop.permute.xlu0 %1959  ;;  %v1795_v44 = vsel %vm21092_vm14, %v1793_v26, %v1794_v32  ;;  %2156 = vmatprep.subr.bf16.mxu0 %v15686_v0  ;;  %v3403_v17 = vor.u32 %v3402_v47, %v3398_v60  ;;  %v14604_v60 = vld [vmem:[%s15782_s26 + $0x218] sm:$0xfe]  }
 0x106   : > { %12817 = vmatprep.mubr.msk.bf16.mxu1 %vm21093_vm12, %v1795_v44  ;;  %v2102_v58 = vsel %vm622_vm5, %v14574_v4, %v1960_v42  ;;  %v3348_v40 = vsel %vm464_vm1, %v3343_v25, %v16566_v56  ;;  %v3463_v26 = vor.u32 %v3462_v2, %v3458_v48  ;;  %v3486_v44 = vrot.slane %v14593_v3, 1  ;;  %v14592_v4 = vld [vmem:[%s15782_s26 + $0x258] sm:$0xff]   ;;  %v16675_v25 = vld [vmem:[%s21076_s1 + $0x28] sm:$0xff]  }
 0x107   : > { %3114 = vrot.lane.b32.xlu1 %v3111_v18, %s15694_s23  ;;  %1837 = vmatmul.mubr.bf16.vlgmr.msra.gmra.mrb[8].mxu1 %v1792_v43  ;;  %v2107_v13 = vsel %vm629_vm4, %v2102_v58, %v1977_v39  ;;  %v3408_v34 = vsel %vm464_vm1, %v3403_v17, %v16584_v8  ;;  %v3665_v39 = vshll.u32 %v14598_v11, 16  ;;  %v3692_v48 = vrot.slane %v14599_v22, 1  ;;  %v14585_v3 = vld [vmem:[%s15782_s26 + $0xe8] sm:$0x3f]  }
 0x108   : > { %3112 = vrot.lane.b32.xlu0 %v3108_v5, %s15694_s23  ;;  %2157 = vmatpush1.bf16.msra.mxu0 %v16249_v27  ;;  %v3142_v27 = vsel %vm21088_vm3, %v3133_v46, %v3141_v36  ;;  %v16630_v5 = vld [vmem:[%s21076_s1 + $0x18] sm:$0xff]   ;;  %v3468_v51 = vsel %vm464_vm1, %v3463_v26, %v16606_v14 }
 0x109   : > { %12818 = vmatprep.mubr.msk.bf16.mxu1 %vm21093_vm12, %v1794_v32  ;;  %v2020_v7 = vpop.permute.xlu1 %2019  ;;  %2476 = vmatpush1.bf16.msra.mxu1 %v16553_v38  ;;  %v1991_v31 = vpop.permute.xlu0 %1990  ;;  %v3667_v55 = vrot.slane %v3665_v39, 1 }
 0x10a   : > { %2158 = vmatprep.subr.bf16.mxu0 %v15686_v0  ;;  %2477 = vmatprep.subr.bf16.mxu1 %v15686_v0  ;;  %v2111_v24 = vsel %vm634_vm6, %v2107_v13, %v1991_v31  ;;  %v3674_v31 = vshrl.u32 %v14597_v30, 16  ;;  %v14603_v13 = vld [vmem:[%s15782_s26 + $0x220] sm:$0x3f]  }
 0x10b   : > { %3071 = vrot.lane.b32.xlu1 %v3068_v49, %s15692_s21  ;;  %v2115_v18 = vsel %vm639_vm9, %v2111_v24, %v2020_v7  ;;  %v3663_v49 = vshrl.u32 %v14598_v11, 16  ;;  %v3723_v11 = vshrl.u32 %v14604_v60, 16  ;;  %v3734_v39 = vshrl.u32 %v14603_v13, 16 }
 0x10c   : > { %3069 = vrot.lane.b32.xlu0 %v3059_v28, %s15692_s21  ;;  %2159 = vmatpush1.bf16.msra.mxu0 %v16264_v16  ;;  %v3368_v16 = vsel %vm21112_vm0, %v3366_v52, %v3367_v45  ;;  %v14595_v28 = vld [vmem:[%s15782_s26 + $0x20c] sm:$0xfe]   ;;  %v3427_v52 = vrot.slane %v16622_v37, 1  ;;  %v14614_v37 = vld [vmem:[%s15782_s26 + $0x100] sm:$0x7f]  }
 0x10d   : > { %v2080_v1 = vpop.permute.xlu1 %2079  ;;  %2478 = vmatpush1.bf16.msra.mxu1 %v16573_v6  ;;  %2160 = vmatprep.subr.bf16.mxu0 %v15686_v0  ;;  %v3426_v36 = vrot.slane %v14595_v28, 1  ;;  %v3668_v47 = vor.u32 %v3667_v55, %v3663_v49  ;;  %v16719_v49 = vld [vmem:[%s21076_s1 + $0x40] sm:$0xff]  }
 0x10e   : > { %v2051_v62 = vpop.permute.xlu0 %2050  ;;  %2479 = vmatprep.subr.bf16.mxu1 %v15686_v0 }
 0x10f   : > { %3145 = vrot.lane.b32.xlu1 %v3142_v27, %s15689_s16  ;;  %1845 = vmatmul.mubr.bf16.gmra.mrb[12].mxu1 %v1791_v21  ;;  %v2129_v57 = vsel %vm656_vm7, %v2051_v62, %v2080_v1  ;;  %v16612_v21 = vld [vmem:[%s15782_s26 + $0x278] sm:$0x3f]   ;;  %v3428_v58 = vsel %vm21112_vm0, %v3426_v36, %v3427_v52  ;;  %v14600_v1 = vld [vmem:[%s15782_s26 + $0x1c0] sm:$0xfc]  }
 0x110   : > { %3143 = vrot.lane.b32.xlu0 %v3133_v46, %s15689_s16  ;;  %2161 = vmatpush1.bf16.msra.mxu0 %v16284_v41  ;;  %v14589_v41 = vld [vmem:[%s15782_s26 + $0x1f4] sm:$0xff]   ;;  %v3670_v46 = vshll.u32 %v14597_v30, 16  ;;  %v3487_v43 = vrot.slane %v16612_v21, 1  ;;  %v3691_v2 = vrot.slane %v14600_v1, 1 }
 0x111   : > { %v2097_v54 = vpop.permute.xlu1 %2096  ;;  %2480 = vmatpush1.bf16.msra.mxu1 %v16600_v10  ;;  %2162 = vmatprep.subr.bf16.mxu0 %v15686_v0  ;;  %v14601_v30 = vld [vmem:[%s15782_s26 + $0x214] sm:$0x3f]  }
 0x112   : > { %v2133_v19 = vsel %vm661_vm8, %v2129_v57, %v2097_v54  ;;  %v2037_v9 = vpop.permute.xlu0 %2036  ;;  %2481 = vmatprep.subr.bf16.mxu1 %v15686_v0  ;;  %v3672_v50 = vrot.slane %v3670_v46, 1  ;;  %v3488_v27 = vsel %vm21112_vm0, %v3486_v44, %v3487_v43  ;;  %v16688_v57 = vld [vmem:[%s21076_s1 + $0x30] sm:$0xff]   ;;  %v14605_v1 = vld [vmem:[%s15782_s26 + $0x278] sm:$0x3f]  }
 0x113   : > { %3369 = vrot.lane.b32.xlu1 %v3368_v16, %s15690_s19  ;;  %12837 = vmatprep.mubr.msk.bf16.mxu0 %vm21093_vm12, %v2133_v19  ;;  %v2119_v32 = vsel %vm644_vm10, %v2115_v18, %v2037_v9  ;;  %v3725_v16 = vshll.u32 %v14604_v60, 16  ;;  %v14586_v9 = vld [vmem:[%s15782_s26 + $0xe0] sm:$0xfe]   ;;  %v3693_v18 = vsel %vm21112_vm0, %v3691_v2, %v3692_v48  ;;  %v14602_v44 = vld [vmem:[%s15782_s26 + $0x20c] sm:$0xfe]  }
 0x114   : > { %3352 = vrot.lane.b32.xlu0 %v3348_v40, %s15691_s20  ;;  %2163 = vmatpush1.bf16.msra.mxu0 %v15993_v59  ;;  %v2123_v42 = vsel %vm649_vm11, %v2119_v32, %v2051_v62  ;;  %v3676_v23 = vor.u32 %v3674_v31, %v3672_v50  ;;  %v3673_v17 = vsel %vm464_vm1, %v3668_v47, %v3672_v50  ;;  %v3730_v40 = vshll.u32 %v14603_v13, 16  ;;  %v14609_v32 = vld [vmem:[%s15782_s26 + $0x27c] sm:$0xfe]  }
 0x115   : > { %v16625_v15 = vpop.permute.xlu1 %2284  ;;  %2482 = vmatpush1.bf16.msra.mxu1 %v16630_v5  ;;  %2823 = vmatprep.subr.bf16.mxu0 %v15686_v0  ;;  %v3727_v19 = vrot.slane %v3725_v16, 1 }
 0x116   : > { %v16633_v20 = vpop.permute.xlu0 %2282  ;;  %2483 = vmatprep.subr.bf16.mxu1 %v15686_v0  ;;  %v3732_v28 = vrot.slane %v3730_v40, 1  ;;  %v2428_v36 = vsel %vm622_vm5, %v14585_v3, %v16625_v15  ;;  %v14611_v40 = vld [vmem:[%s15782_s26 + $0x224] sm:$0xfc]  }
 0x117   : > { %3412 = vrot.lane.b32.xlu1 %v3408_v34, %s15693_s22  ;;  %2173 = vmatmul.mubr.bf16.vlgmr.msra.gmra.mrb[16].mxu0 %v2123_v42  ;;  %v16704_v34 = vld [vmem:[%s21076_s1 + $0x38] sm:$0xff]   ;;  %v14608_v42 = vld [vmem:[%s15782_s26 + $0x284] sm:$0x3f]   ;;  %v3728_v46 = vor.u32 %v3727_v19, %v3723_v11  ;;  %v2425_v50 = vsel %vm622_vm5, %v14586_v9, %v16633_v20 }
 0x118   : > { %3383 = vrot.lane.b32.xlu0 %v14589_v41, %s15688_s30  ;;  %2824 = vmatpush1.bf16.msra.mxu0 %v16553_v38  ;;  %v3736_v15 = vor.u32 %v3734_v39, %v3732_v28 }
 0x119   : > { %v16645_v35 = vpop.permute.xlu1 %2301  ;;  %2484 = vmatpush1.bf16.msra.mxu1 %v16651_v33  ;;  %2825 = vmatprep.subr.bf16.mxu0 %v15686_v0  ;;  %v3733_v20 = vsel %vm464_vm1, %v3728_v46, %v3732_v28 }
 0x11a   : > { %v16654_v7 = vpop.permute.xlu0 %2299  ;;  %2485 = vmatprep.subr.bf16.mxu1 %v15686_v0  ;;  %v2432_v31 = vsel %vm629_vm4, %v2428_v36, %v16645_v35  ;;  %v3751_v36 = vrot.slane %v14611_v40, 1 }
 0x11b   : > { %3472 = vrot.lane.b32.xlu1 %v3468_v51, %s15694_s23  ;;  %v2430_v60 = vsel %vm629_vm4, %v2425_v50, %v16654_v7 }
 0x11c   : > { %3443 = vrot.lane.b32.xlu0 %v14592_v4, %s15687_s29  ;;  %2826 = vmatpush1.bf16.msra.mxu0 %v16573_v6  ;;  %v3785_v4 = vshll.u32 %v14609_v32, 16 }
 0x11d   : > { %v16664_v61 = vpop.permute.xlu1 %2315  ;;  %2486 = vmatpush1.bf16.msra.mxu1 %v16675_v25  ;;  %2827 = vmatprep.subr.bf16.mxu0 %v15686_v0 }
 0x11e   : > { %v2314_v62 = vpop.permute.xlu0 %2313  ;;  %2487 = vmatprep.subr.bf16.mxu1 %v15686_v0  ;;  %v3787_v13 = vrot.slane %v3785_v4, 1 }
 0x11f   : > { %3489 = vrot.lane.b32.xlu1 %v3488_v27, %s15689_s16  ;;  %v3790_v27 = vshll.u32 %v14608_v42, 16  ;;  %v2434_v35 = vsel %vm634_vm6, %v2430_v60, %v2314_v62 }
 0x120   : > { %3429 = vrot.lane.b32.xlu0 %v3428_v58, %s15692_s21  ;;  %2828 = vmatpush1.bf16.msra.mxu0 %v16600_v10  ;;  %v2436_v58 = vsel %vm634_vm6, %v2432_v31, %v16664_v61  ;;  %v16743_v61 = vld [vmem:[%s21076_s1 + $0x48] sm:$0xff]  }
 0x121   : > { %v2345_v24 = vpop.permute.xlu1 %2344  ;;  %2488 = vmatpush1.bf16.msra.mxu1 %v16688_v57  ;;  %2829 = vmatprep.subr.bf16.mxu0 %v15686_v0 }
 0x122   : > { %v2343_v54 = vpop.permute.xlu0 %2342  ;;  %2489 = vmatprep.subr.bf16.mxu1 %v15686_v0  ;;  %v2440_v47 = vsel %vm639_vm9, %v2436_v58, %v2345_v24  ;;  %v14606_v24 = vld [vmem:[%s15782_s26 + $0x270] sm:$0xfe]  }
 0x123   : > { %3679 = vrot.lane.b32.xlu1 %v3676_v23, %s15691_s20  ;;  %v3783_v23 = vshrl.u32 %v14609_v32, 16  ;;  %v2438_v7 = vsel %vm639_vm9, %v2434_v35, %v2343_v54  ;;  %v3792_v54 = vrot.slane %v3790_v27, 1  ;;  %v16765_v32 = vld [vmem:[%s21076_s1 + $0x50] sm:$0xff]  }
 0x124   : > { %3677 = vrot.lane.b32.xlu0 %v3673_v17, %s15691_s20  ;;  %2830 = vmatpush1.bf16.msra.mxu0 %v16630_v5  ;;  %v3794_v17 = vshrl.u32 %v14608_v42, 16  ;;  %v14607_v58 = vld [vmem:[%s15782_s26 + $0xd0] sm:$0x1f]  }
 0x125   : > { %v2376_v41 = vpop.permute.xlu1 %2375  ;;  %2490 = vmatpush1.bf16.msra.mxu1 %v16704_v34  ;;  %2831 = vmatprep.subr.bf16.mxu0 %v15686_v0 }
 0x126   : > { %v2374_v26 = vpop.permute.xlu0 %2373  ;;  %2491 = vmatprep.subr.bf16.mxu1 %v15686_v0 }
 0x127   : > { %3696 = vrot.lane.b32.xlu1 %v3692_v48, %s15690_s19  ;;  %v14610_v48 = vld [vmem:[%s15782_s26 + $0x22c] sm:$0x7f]  }
 0x128   : > { %3694 = vrot.lane.b32.xlu0 %v3693_v18, %s15690_s19  ;;  %2832 = vmatpush1.bf16.msra.mxu0 %v16651_v33  ;;  %v3788_v18 = vor.u32 %v3787_v13, %v3783_v23  ;;  %v3752_v39 = vrot.slane %v14610_v48, 1  ;;  %v16803_v48 = vld [vmem:[%s15782_s26 + $0x1d4] sm:$0x7f]  }
 0x129   : > { %v2405_v51 = vpop.permute.xlu1 %2404  ;;  %2492 = vmatpush1.bf16.msra.mxu1 %v16719_v49  ;;  %2833 = vmatprep.subr.bf16.mxu0 %v15686_v0 }
 0x12a   : > { %v2403_v55 = vpop.permute.xlu0 %2402  ;;  %2493 = vmatprep.subr.bf16.mxu1 %v15686_v0  ;;  %v2452_v3 = vsel %vm656_vm7, %v2376_v41, %v2405_v51  ;;  %v3793_v31 = vsel %vm464_vm1, %v3788_v18, %v3792_v54 }
 0x12b   : > { %3710 = vrot.lane.b32.xlu1 %v14601_v30, %s15688_s30  ;;  %v2450_v30 = vsel %vm656_vm7, %v2374_v26, %v2403_v55  ;;  %v14612_v55 = vld [vmem:[%s15782_s26 + $0x290] sm:$0x7f]  }
 0x12c   : > { %3708 = vrot.lane.b32.xlu0 %v14602_v44, %s15688_s30  ;;  %2834 = vmatpush1.bf16.msra.mxu0 %v16675_v25 }
 0x12d   : > { %v2362_v22 = vpop.permute.xlu1 %2361  ;;  %2494 = vmatpush1.bf16.msra.mxu1 %v16743_v61  ;;  %2835 = vmatprep.subr.bf16.mxu0 %v15686_v0 }
 0x12e   : > { %v2444_v62 = vsel %vm644_vm10, %v2440_v47, %v2362_v22  ;;  %v2360_v16 = vpop.permute.xlu0 %2359  ;;  %2495 = vmatprep.subr.bf16.mxu1 %v15686_v0  ;;  %v3753_v47 = vsel %vm21112_vm0, %v3751_v36, %v3752_v39  ;;  %v3812_v22 = vrot.slane %v14612_v55, 1 }
 0x12f   : > { %v2442_v2 = vsel %vm644_vm10, %v2438_v7, %v2360_v16  ;;  %3739 = vrot.lane.b32.xlu1 %v3736_v15, %s15693_s22  ;;  %v16757_v11 = vsel %vm649_vm11, %v2444_v62, %v2376_v41  ;;  %v14613_v15 = vld [vmem:[%s15782_s26 + $0x288] sm:$0xfc]   ;;  %v3349_v7 = vshrl.u32 %v16514_v53, 16 }
 0x130   : > { %3737 = vrot.lane.b32.xlu0 %v3733_v20, %s15693_s22  ;;  %v2446_v19 = vsel %vm649_vm11, %v2442_v2, %v2374_v26  ;;  %2836 = vmatpush1.bf16.msra.mxu0 %v16688_v57  ;;  %v3796_v26 = vor.u32 %v3794_v17, %v3792_v54  ;;  %v2462_v46 = vrot.slane %v16757_v11, 1  ;;  %v16806_v2 = vld [vmem:[%s15782_s26 + $0x1cc] sm:$0xfc]   ;;  %v16816_v54 = vld [vmem:[%s15782_s26 + $0x1e0] sm:$0xff]  }
 0x131   : > { %v2422_v9 = vpop.permute.xlu1 %2421  ;;  %2496 = vmatpush1.bf16.msra.mxu1 %v16765_v32  ;;  %2837 = vmatprep.subr.bf16.mxu0 %v15686_v0  ;;  %v2461_v51 = vrot.slane %v2446_v19, 1  ;;  %v4035_v29 = vrot.slane %v16816_v54, 1  ;;  %v4006_v36 = vshrl.u32 %v16806_v2, 16 }
 0x132   : > { %v2456_v28 = vsel %vm661_vm8, %v2452_v3, %v2422_v9  ;;  %v2420_v41 = vpop.permute.xlu0 %2419  ;;  %2497 = vmatprep.subr.bf16.mxu1 %v15686_v0  ;;  %v3469_v9 = vshrl.u32 %v16558_v12, 16  ;;  %v4013_v12 = vshll.u32 %v16803_v48, 16 }
 0x133   : > { %v2465_v42 = vrot.slane %v2456_v28, 1  ;;  %v2454_v44 = vsel %vm661_vm8, %v2450_v30, %v2420_v41  ;;  %3770 = vrot.lane.b32.xlu1 %v14605_v1, %s15687_s29  ;;  %v2463_v20 = vsel %vm21112_vm0, %v2461_v51, %v2462_v46  ;;  %v3811_v1 = vrot.slane %v14613_v15, 1  ;;  %v14616_v30 = vld [vmem:[%s15782_s26 + $0x1fc] sm:$0x1f]  }
 0x134   : > { %v2464_v4 = vrot.slane %v2454_v44, 1  ;;  %3768 = vrot.lane.b32.xlu0 %v14606_v24, %s15687_s29  ;;  %2838 = vmatpush1.bf16.msra.mxu0 %v16704_v34  ;;  %v3409_v24 = vshrl.u32 %v16540_v63, 16  ;;  %v3351_v63 = vor.u32 %v3349_v7, %v16566_v56  ;;  %v16835_v28 = vld [vmem:[%s15782_s26 + $0x1d8] sm:$0xf8]   ;;  %v14617_v44 = vld [vmem:[%s15782_s26 + $0x260] sm:$0x1f]  }
 0x135   : > { %v1979_v50 = vpop.permute.xlu1 %1978  ;;  %2498 = vmatpush1.bf16.msra.mxu1 %v15993_v59  ;;  %2839 = vmatprep.subr.bf16.mxu0 %v15686_v0  ;;  %v3813_v16 = vsel %vm21112_vm0, %v3811_v1, %v3812_v22  ;;  %v4015_v51 = vrot.slane %v4013_v12, 1  ;;  %v16935_v12 = vld [vmem:[%s15782_s26 + $0x198] sm:$0x1f]  }
 0x136   : > { %v1962_v27 = vpop.permute.xlu0 %1961  ;;  %v2466_v60 = vsel %vm21112_vm0, %v2464_v4, %v2465_v42  ;;  %3199 = vmatprep.subr.bf16.mxu1 %v15686_v0  ;;  %v3411_v18 = vor.u32 %v3409_v24, %v16584_v8  ;;  %v16844_v8 = vld [vmem:[%s15782_s26 + $0x238] sm:$0x7f]   ;;  %v4017_v4 = vshrl.u32 %v16803_v48, 16 }
 0x137   : > { %12857 = vmatprep.mubr.msk.bf16.mxu1 %vm21093_vm12, %v2466_v60  ;;  %3799 = vrot.lane.b32.xlu1 %v3796_v26, %s15694_s23  ;;  %v2105_v13 = vsel %vm622_vm5, %v14607_v58, %v1962_v27  ;;  %v16851_v26 = vld [vmem:[%s15782_s26 + $0x230] sm:$0xfc]   ;;  %v4073_v15 = vshll.u32 %v16844_v8, 16  ;;  %v4077_v60 = vshrl.u32 %v16844_v8, 16 }
 0x138   : > { %3797 = vrot.lane.b32.xlu0 %v3793_v31, %s15694_s23  ;;  %2508 = vmatmul.mubr.bf16.vlgmr.msra.gmra.mrb[16].mxu1 %v2463_v20  ;;  %v4034_v31 = vrot.slane %v16835_v28, 1  ;;  %v4066_v58 = vshrl.u32 %v16851_v26, 16  ;;  %v4068_v20 = vshll.u32 %v16851_v26, 16 }
 0x139   : > { %v2022_v35 = vpop.permute.xlu1 %2021  ;;  %2840 = vmatpush1.bf16.msra.mxu0 %v16719_v49  ;;  %12858 = vmatprep.mubr.msk.bf16.mxu1 %vm21093_vm12, %v2465_v42  ;;  %v3471_v42 = vor.u32 %v3469_v9, %v16606_v14  ;;  %v16864_v14 = vld [vmem:[%s15782_s26 + $0x294] sm:$0xfc]  }
 0x13a   : > { %v1993_v23 = vpop.permute.xlu0 %1992  ;;  %3200 = vmatpush1.bf16.msra.mxu1 %v16553_v38  ;;  %2841 = vmatprep.subr.bf16.mxu0 %v15686_v0  ;;  %v2109_v38 = vsel %vm629_vm4, %v2105_v13, %v1979_v50  ;;  %v16889_v13 = vld [vmem:[%s15782_s26 + $0x23c] sm:$0xf8]   ;;  %v4126_v48 = vshrl.u32 %v16864_v14, 16 }
 0x13b   : > { %3756 = vrot.lane.b32.xlu1 %v3752_v39, %s15692_s21  ;;  %3201 = vmatprep.subr.bf16.mxu1 %v15686_v0  ;;  %v2113_v53 = vsel %vm634_vm6, %v2109_v38, %v1993_v23  ;;  %v4019_v38 = vor.u32 %v4017_v4, %v4015_v51 }
 0x13c   : > { %3754 = vrot.lane.b32.xlu0 %v3753_v47, %s15692_s21  ;;  %v2117_v11 = vsel %vm639_vm9, %v2113_v53, %v2022_v35  ;;  %v4128_v47 = vshll.u32 %v16864_v14, 16 }
 0x13d   : > { %v2082_v62 = vpop.permute.xlu1 %2081  ;;  %2842 = vmatpush1.bf16.msra.mxu0 %v16743_v61 }
 0x13e   : > { %v2053_v17 = vpop.permute.xlu0 %2052  ;;  %3202 = vmatpush1.bf16.msra.mxu1 %v16573_v6  ;;  %2843 = vmatprep.subr.bf16.mxu0 %v15686_v0  ;;  %v16911_v53 = vrot.slane %v4128_v47, 1 }
 0x13f   : > { %3816 = vrot.lane.b32.xlu1 %v3812_v22, %s15689_s16  ;;  %3203 = vmatprep.subr.bf16.mxu1 %v15686_v0  ;;  %v2131_v40 = vsel %vm656_vm7, %v2053_v17, %v2082_v62  ;;  %v16886_v22 = vld [vmem:[%s15782_s26 + $0x2a8] sm:$0xff]   ;;  %v16891_v62 = vrot.slane %v4073_v15, 1 }
 0x140   : > { %3814 = vrot.lane.b32.xlu0 %v3813_v16, %s15689_s16  ;;  %2516 = vmatmul.mubr.bf16.gmra.mrb[20].mxu1 %v2462_v46  ;;  %v16856_v46 = vld [vmem:[%s15782_s26 + $0x29c] sm:$0x7f]   ;;  %v4070_v16 = vrot.slane %v4068_v20, 1  ;;  %v14626_v20 = vld [vmem:[%s15782_s26 + $0x290] sm:$0x7f]  }
 0x141   : > { %v2099_v6 = vpop.permute.xlu1 %2098  ;;  %2844 = vmatpush1.bf16.msra.mxu0 %v16765_v32  ;;  %v4133_v35 = vshll.u32 %v16856_v46, 16  ;;  %v4079_v54 = vor.u32 %v4077_v60, %v16891_v62 }
 0x142   : > { %v2135_v3 = vsel %vm661_vm8, %v2131_v40, %v2099_v6  ;;  %v2039_v19 = vpop.permute.xlu0 %2038  ;;  %3204 = vmatpush1.bf16.msra.mxu1 %v16600_v10  ;;  %2845 = vmatprep.subr.bf16.mxu0 %v15686_v0  ;;  %v4008_v10 = vshll.u32 %v16806_v2, 16  ;;  %v16908_v2 = vld [vmem:[%s15782_s26 + $0x1ec] sm:$0xff]   ;;  %v16915_v6 = vld [vmem:[%s15782_s26 + $0x2a0] sm:$0xf8]   ;;  %v4071_v8 = vor.u32 %v4070_v16, %v4066_v58 }
 0x143   : > { %v2121_v56 = vsel %vm644_vm10, %v2117_v11, %v2039_v19  ;;  %3371 = vrot.lane.b32.xlu1 %v3367_v45, %s15690_s19  ;;  %12838 = vmatprep.mubr.msk.bf16.mxu0 %vm21093_vm12, %v2135_v3  ;;  %v16924_v3 = vld [vmem:[%s15782_s26 + $0x1e4] sm:$0xf8]   ;;  %v14638_v11 = vld [vmem:[%s15782_s26 + $0x190] sm:$0xff]   ;;  %v14615_v19 = vld [vmem:[%s15782_s26 + $0xf8] sm:$0xfc]   ;;  %v4353_v28 = vshrl.u32 %v16908_v2, 16 }
 0x144   : > { %3354 = vrot.lane.b32.xlu0 %v3351_v63, %s15691_s20  ;;  %v2126_v41 = vsel %vm649_vm11, %v2121_v56, %v2053_v17  ;;  %3205 = vmatprep.subr.bf16.mxu1 %v15686_v0  ;;  %v4010_v55 = vrot.slane %v4008_v10, 1  ;;  %v16899_v17 = vrot.slane %v4133_v35, 1  ;;  %v4094_v63 = vrot.slane %v16889_v13, 1  ;;  %v14627_v16 = vld [vmem:[%s15782_s26 + $0x288] sm:$0xfc]  }
 0x145   : > { %2181 = vmatmul.mubr.bf16.gmra.mrb[20].mxu0 %v2126_v41  ;;  %v16841_v45 = vpop.permute.xlu1 %2632  ;;  %v4036_v56 = vsel %vm21112_vm0, %v4034_v31, %v4035_v29  ;;  %v4154_v10 = vrot.slane %v16915_v6, 1  ;;  %v4076_v58 = vsel %vm464_vm1, %v4071_v8, %v16891_v62  ;;  %v17013_v8 = vld [vmem:[%s15782_s26 + $0x2b4] sm:$0xff]   ;;  %v17061_v13 = vld [vmem:[%s21077_s2] ss:$0 sm:$0xff] }
 0x146   : > { %v16846_v39 = vpop.permute.xlu0 %2630  ;;  %2846 = vmatpush1.bf16.msra.mxu0 %v15993_v59  ;;  %3206 = vmatpush1.bf16.msra.mxu1 %v16630_v5  ;;  %v16868_v5 = vld [vmem:[%s15782_s26 + $0x244] sm:$0xff]   ;;  %v4011_v23 = vor.u32 %v4010_v55, %v4006_v36 }
 0x147   : > { %3414 = vrot.lane.b32.xlu1 %v3411_v18, %s15693_s22  ;;  %3533 = vmatprep.subr.bf16.mxu0 %v15686_v0  ;;  %v4095_v24 = vrot.slane %v16868_v5, 1  ;;  %v14622_v18 = vld [vmem:[%s15782_s26 + $0x22c] sm:$0x7f]  }
 0x148   : > { %3385 = vrot.lane.b32.xlu0 %v14616_v30, %s15688_s30  ;;  %3207 = vmatprep.subr.bf16.mxu1 %v15686_v0  ;;  %v14623_v30 = vld [vmem:[%s15782_s26 + $0x224] sm:$0xfc]  }
 0x149   : > { %v16870_v50 = vpop.permute.xlu1 %2649  ;;  %v17090_v5 = vld [vmem:[%s21076_s1 + $0x8] sm:$0xff]  }
 0x14a   : > { %v16874_v27 = vpop.permute.xlu0 %2647  ;;  %3208 = vmatpush1.bf16.msra.mxu1 %v16651_v33  ;;  %v4137_v33 = vshrl.u32 %v16856_v46, 16 }
 0x14b   : > { %3474 = vrot.lane.b32.xlu1 %v3471_v42, %s15694_s23  ;;  %3209 = vmatprep.subr.bf16.mxu1 %v15686_v0  ;;  %v4344_v42 = vshll.u32 %v16924_v3, 16 }
 0x14c   : > { %3445 = vrot.lane.b32.xlu0 %v14617_v44, %s15687_s29  ;;  %v4371_v44 = vshrl.u32 %v14638_v11, 16 }
 0x14d   : > { %v2664_v1 = vpop.permute.xlu1 %2663  ;;  %v16969_v35 = vrot.slane %v4344_v42, 1  ;;  %v14649_v42 = vld [vmem:[%s15782_s26 + $0x1f4] sm:$0xff]  }
 0x14e   : > { %v2662_v7 = vpop.permute.xlu0 %2661  ;;  %3210 = vmatpush1.bf16.msra.mxu1 %v16675_v25  ;;  %v4155_v25 = vrot.slane %v16886_v22, 1 }
 0x14f   : > { %3491 = vrot.lane.b32.xlu1 %v3487_v43, %s15689_s16  ;;  %3211 = vmatprep.subr.bf16.mxu1 %v15686_v0  ;;  %v4016_v43 = vsel %vm464_vm1, %v4011_v23, %v4015_v51  ;;  %v2773_v51 = vsel %vm622_vm5, %v14615_v19, %v16846_v39  ;;  %v4342_v39 = vshrl.u32 %v16924_v3, 16 }
 0x150   : > { %3431 = vrot.lane.b32.xlu0 %v3427_v52, %s15692_s21  ;;  %v4349_v52 = vshll.u32 %v16908_v2, 16 }
 0x151   : > { %v2693_v21 = vpop.permute.xlu1 %2692  ;;  %v4347_v6 = vor.u32 %v16969_v35, %v4342_v39 }
 0x152   : > { %v2691_v40 = vpop.permute.xlu0 %2690  ;;  %3212 = vmatpush1.bf16.msra.mxu1 %v16688_v57  ;;  %v16954_v36 = vrot.slane %v4349_v52, 1 }
 0x153   : > { %4022 = vrot.lane.b32.xlu1 %v4019_v38, %s15691_s20  ;;  %3213 = vmatprep.subr.bf16.mxu1 %v15686_v0  ;;  %v16977_v38 = vrot.slane %v4371_v44, 5 }
 0x154   : > { %4020 = vrot.lane.b32.xlu0 %v4016_v43, %s15691_s20 }
 0x155   : > { %v2724_v9 = vpop.permute.xlu1 %2723 }
 0x156   : > { %v2722_v57 = vpop.permute.xlu0 %2721  ;;  %3214 = vmatpush1.bf16.msra.mxu1 %v16704_v34  ;;  %v2776_v34 = vsel %vm622_vm5, %v14614_v37, %v16841_v45  ;;  %v4379_v45 = vshrl.u32 %v16935_v12, 16  ;;  %v4131_v37 = vor.u32 %v16911_v53, %v4126_v48 }
 0x157   : > { %4039 = vrot.lane.b32.xlu1 %v4035_v29, %s15690_s19  ;;  %3215 = vmatprep.subr.bf16.mxu1 %v15686_v0  ;;  %v4374_v29 = vshll.u32 %v14638_v11, 16  ;;  %v2780_v4 = vsel %vm629_vm4, %v2776_v34, %v16870_v50  ;;  %v4382_v50 = vshll.u32 %v16935_v12, 16 }
 0x158   : > { %4037 = vrot.lane.b32.xlu0 %v4036_v56, %s15690_s19  ;;  %v2784_v55 = vsel %vm634_vm6, %v2780_v4, %v2664_v1  ;;  %v16987_v43 = vrot.slane %v4379_v45, 5  ;;  %v4136_v34 = vsel %vm464_vm1, %v4131_v37, %v16899_v17  ;;  %v4096_v4 = vsel %vm21112_vm0, %v4094_v63, %v4095_v24 }
 0x159   : > { %v2753_v41 = vpop.permute.xlu1 %2752  ;;  %v2788_v15 = vsel %vm639_vm9, %v2784_v55, %v2693_v21  ;;  %v4497_v55 = vshll.u32 %v17013_v8, 16  ;;  %v4156_v37 = vsel %vm21112_vm0, %v4154_v10, %v4155_v25 }
 0x15a   : > { %v2751_v26 = vpop.permute.xlu0 %2750  ;;  %3216 = vmatpush1.bf16.msra.mxu1 %v16719_v49  ;;  %v2778_v49 = vsel %vm629_vm4, %v2773_v51, %v16874_v27  ;;  %v16972_v27 = vld [vmem:[%s15782_s26 + $0x250] sm:$0xff]   ;;  %v2800_v52 = vsel %vm656_vm7, %v2724_v9, %v2753_v41 }
 0x15b   : > { %4053 = vrot.lane.b32.xlu1 %v14622_v18, %s15688_s30  ;;  %3217 = vmatprep.subr.bf16.mxu1 %v15686_v0  ;;  %v2782_v31 = vsel %vm634_vm6, %v2778_v49, %v2662_v7  ;;  %v16979_v7 = vrot.slane %v4374_v29, 6  ;;  %v4423_v18 = vshll.u32 %v16972_v27, 16  ;;  %v17031_v29 = vld [vmem:[%s15782_s26 + $0x258] sm:$0xff]  }
 0x15c   : > { %4051 = vrot.lane.b32.xlu0 %v14623_v30, %s15688_s30  ;;  %v2786_v47 = vsel %vm639_vm9, %v2782_v31, %v2691_v40  ;;  %v2798_v30 = vsel %vm656_vm7, %v2722_v57, %v2751_v26  ;;  %v17026_v26 = vrot.slane %v4382_v50, 6  ;;  %v17052_v50 = vld [vmem:[%s21076_s1] sm:$0xff]   ;;  %v4522_v3 = vshll.u32 %v17031_v29, 16 }
 0x15d   : > { %v2710_v60 = vpop.permute.xlu1 %2709  ;;  %v17045_v45 = vrot.slane %v4423_v18, 1  ;;  %v4377_v22 = vor.u32 %v16979_v7, %v16977_v38  ;;  %v4352_v38 = vsel %vm464_vm1, %v4347_v6, %v16954_v36  ;;  %v17143_v7 = vld [vmem:[%s15782_s26 + $0x270] sm:$0xfe]  }
 0x15e   : > { %v2792_v1 = vsel %vm644_vm10, %v2788_v15, %v2710_v60  ;;  %v2708_v23 = vpop.permute.xlu0 %2707  ;;  %3218 = vmatpush1.bf16.msra.mxu1 %v16743_v61  ;;  %v16996_v61 = vld [vmem:[%s15782_s26 + $0x248] sm:$0xf8]   ;;  %v4445_v60 = vshrl.u32 %v14649_v42, 16 }
 0x15f   : > { %v16983_v62 = vsel %vm649_vm11, %v2792_v1, %v2724_v9  ;;  %v2790_v21 = vsel %vm644_vm10, %v2786_v47, %v2708_v23  ;;  %4082 = vrot.lane.b32.xlu1 %v4079_v54, %s15693_s22  ;;  %3219 = vmatprep.subr.bf16.mxu1 %v15686_v0  ;;  %v4139_v9 = vor.u32 %v4137_v33, %v16899_v17  ;;  %v14650_v54 = vld [vmem:[%s15782_s26 + $0x1fc] sm:$0x1f]   ;;  %v4427_v17 = vshrl.u32 %v16972_v27, 16 }
 0x160   : > { %v2794_v40 = vsel %vm649_vm11, %v2790_v21, %v2722_v57  ;;  %4080 = vrot.lane.b32.xlu0 %v4076_v58, %s15693_s22  ;;  %v2810_v11 = vrot.slane %v16983_v62, 2  ;;  %v4418_v57 = vshll.u32 %v16996_v61, 16  ;;  %v4416_v49 = vshrl.u32 %v16996_v61, 16  ;;  %v17071_v23 = vld [vmem:[%s15782_s26 + $0x260] sm:$0x1f]  }
 0x161   : > { %v2809_v19 = vrot.slane %v2794_v40, 2  ;;  %v2770_v56 = vpop.permute.xlu1 %2769  ;;  %v4448_v58 = vshll.u32 %v14649_v42, 16  ;;  %v4453_v47 = vshrl.u32 %v14650_v54, 16  ;;  %v4456_v1 = vshll.u32 %v14650_v54, 16  ;;  %v17137_v54 = vld [vmem:[%s21076_s1 + $0x10] sm:$0xff]  }
 0x162   : > { %v2804_v12 = vsel %vm661_vm8, %v2800_v52, %v2770_v56  ;;  %v2768_v14 = vpop.permute.xlu0 %2767  ;;  %3220 = vmatpush1.bf16.msra.mxu1 %v16765_v32  ;;  %v17016_v32 = vld [vmem:[%s15782_s26 + $0x2ac] sm:$0xf8]   ;;  %v17063_v63 = vrot.slane %v4418_v57, 1  ;;  %v4519_v21 = vshrl.u32 %v17031_v29, 16  ;;  %v17084_v52 = vrot.slane %v4497_v55, 1 }
 0x163   : > { %v2813_v48 = vrot.slane %v2804_v12, 2  ;;  %v2802_v53 = vsel %vm661_vm8, %v2798_v30, %v2768_v14  ;;  %4113 = vrot.lane.b32.xlu1 %v14626_v20, %s15687_s29  ;;  %3221 = vmatprep.subr.bf16.mxu1 %v15686_v0  ;;  %v2811_v51 = vsel %vm21089_vm13, %v2809_v19, %v2810_v11  ;;  %v4492_v15 = vshll.u32 %v17016_v32, 16  ;;  %v17104_v12 = vld [vmem:[%s15782_s26 + $0x264] sm:$0xff]  }
 0x164   : > { %v2812_v41 = vrot.slane %v2802_v53, 2  ;;  %4111 = vrot.lane.b32.xlu0 %v14627_v16, %s15687_s29  ;;  %v4501_v16 = vshrl.u32 %v17013_v8, 16  ;;  %v4490_v19 = vshrl.u32 %v17016_v32, 16  ;;  %v17101_v30 = vrot.slane %v4445_v60, 5 }
 0x165   : > { %v17019_v44 = vpop.permute.xlu1 %2966  ;;  %v17099_v10 = vrot.slane %v4492_v15, 1  ;;  %v17109_v53 = vrot.slane %v4448_v58, 6  ;;  %v4355_v57 = vor.u32 %v4353_v28, %v16954_v36  ;;  %v17123_v42 = vrot.slane %v4519_v21, 5  ;;  %v14628_v36 = vld [vmem:[%s15782_s26 + $0x118] sm:$0xff]   ;;  %v14660_v58 = vld [vmem:[%s15782_s26 + $0x2d0] sm:$0x1f]  }
 0x166   : > { %v17023_v46 = vpop.permute.xlu0 %2964  ;;  %v2814_v33 = vsel %vm21089_vm13, %v2812_v41, %v2813_v48  ;;  %3222 = vmatpush1.bf16.msra.mxu1 %v15993_v59  ;;  %v17113_v41 = vrot.slane %v4456_v1, 6  ;;  %v4530_v2 = vshll.u32 %v17071_v23, 16  ;;  %v17160_v15 = vrot.slane %v4522_v3, 6  ;;  %v17170_v1 = vld [vmem:[%s21076_s1 + $0x18] sm:$0xff]   ;;  %v14640_v21 = vld [vmem:[%s15782_s26 + $0x244] sm:$0xff]  }
 0x167   : > { %12877 = vmatprep.mubr.msk.bf16.mxu0 %vm21093_vm12, %v2814_v33  ;;  %4142 = vrot.lane.b32.xlu1 %v4139_v9, %s15694_s23  ;;  %v17111_v9 = vrot.slane %v4453_v47, 5  ;;  %v14629_v47 = vld [vmem:[%s15782_s26 + $0x110] sm:$0xf8]   ;;  %vm21097_vm13 = vcmask 253952  }
 0x168   : > { %4140 = vrot.lane.b32.xlu0 %v4136_v34, %s15694_s23  ;;  %2856 = vmatmul.mubr.bf16.vlgmr.msra.gmra.mrb[24].mxu0 %v2811_v51  ;;  %v4527_v34 = vshrl.u32 %v17071_v23, 16  ;;  %v4732_v51 = vshll.u32 %v17104_v12, 16 }
 0x169   : > { %3534 = vmatpush1.bf16.msra.mxu0 %v17052_v50  ;;  %12878 = vmatprep.mubr.msk.bf16.mxu0 %vm21093_vm12, %v2813_v48  ;;  %v17056_v31 = vpop.permute.xlu1 %2997  ;;  %v4459_v8 = vor.u32 %v17113_v41, %v17111_v9  ;;  %v17316_v9 = vld [vmem:[%s15782_s26 + $0x2d4] sm:$0xfe]   ;;  %v17319_v41 = vld [vmem:[%s15782_s26 + $0x2dc] sm:$0x3f]  }
 0x16a   : > { %v17066_v20 = vpop.permute.xlu0 %2995  ;;  %3535 = vmatprep.subr.bf16.mxu0 %v15686_v0  ;;  %3870 = vmatprep.subr.bf16.mxu1 %v15686_v0  ;;  %v17162_v60 = vrot.slane %v4527_v34, 5  ;;  %v4421_v34 = vor.u32 %v17063_v63, %v4416_v49  ;;  %v4429_v49 = vor.u32 %v4427_v17, %v17045_v45  ;;  %v17213_v63 = vld [vmem:[%s15782_s26] sm:$0xfc]   ;;  %v17231_v17 = vld [vmem:[%s15782_s26 + $0x8] sm:$0x7f]  }
 0x16b   : > { %4099 = vrot.lane.b32.xlu1 %v4095_v24, %s15692_s21 }
 0x16c   : > { %4097 = vrot.lane.b32.xlu0 %v4096_v4, %s15692_s21  ;;  %v784_v40 = vpop.f32.mrb[0].mxu0  ;;  %v17155_v4 = vld [vmem:[%s15782_s26 + $0x2c8] sm:$0xff]  }
 0x16d   : > { %3536 = vmatpush1.bf16.msra.mxu0 %v17090_v5  ;;  %v785_v24 = vadd.f32 %v17061_v13, %v784_v40  ;;  %v17094_v56 = vpop.permute.xlu1 %3011  ;;  %v786_v18 = vpop.f32.mrb[1].mxu0  ;;  %v17176_v40 = vrot.slane %v4530_v2, 6  ;;  %v17202_v2 = vld [vmem:[%s21076_s1 + $0x20] sm:$0xff]  }
 0x16e   : > { %v17106_v14 = vpop.permute.xlu0 %3009  ;;  %v787_v48 = vpop.f32.mrb[2].mxu0  ;;  %3537 = vmatprep.subr.bf16.mxu0 %v15686_v0  ;;  %v4758_v18 = vrot.slane %v17143_v7, 1 }
 0x16f   : > { %v788_v39 = vadd.f32 %v17061_v13, %v787_v48  ;;  %4159 = vrot.lane.b32.xlu1 %v4155_v25, %s15689_s16  ;;  %v789_v35 = vpop.f32.mrb[3].mxu0  ;;  %v4385_v25 = vor.u32 %v17026_v26, %v16987_v43  ;;  %v799_v28 = vmax.f32 %v785_v24, 0.0  ;;  %v17146_v43 = vld [vmem:[%s15782_s26 + $0x278] sm:$0x3f]   ;;  %v14656_v26 = vld [vmem:[%s15782_s26 + $0x26c] sm:$0x1f]  }
 0x170   : > { %4157 = vrot.lane.b32.xlu0 %v4156_v37, %s15689_s16  ;;  %2864 = vmatmul.mubr.bf16.gmra.mrb[28].mxu0 %v2810_v11  ;;  %v14641_v24 = vld [vmem:[%s15782_s26 + $0x23c] sm:$0xf8]   ;;  %v21091_v6 = vrot.slane %v17146_v43, 1  ;;  %v4730_v48 = vshrl.u32 %v17104_v12, 16  ;;  %v4737_v3 = vshll.u32 %v14656_v26, 16  ;;  %v17189_v35 = vrot.slane %v4732_v51, 1 }
 0x171   : > { %v800_v33 = vmax.f32 %v788_v39, 0.0  ;;  %3538 = vmatpush1.bf16.msra.mxu0 %v17137_v54  ;;  %v3041_v62 = vpop.permute.xlu1 %3040  ;;  %v4386_v55 = vsel %vm21088_vm3, %v4377_v22, %v4385_v25  ;;  %v17186_v39 = vld [vmem:[%s15782_s26 + $0x14] sm:$0xff]   ;;  %v17197_v25 = vld [vmem:[%s15782_s26 + $0x20] sm:$0xff]   ;;  %v3149_v26 = vsel %vm622_vm5, %v14629_v47, %v17023_v46  ;;  %v4426_v46 = vsel %vm464_vm1, %v4421_v34, %v17045_v45  ;;  %v17254_v34 = vld [vmem:[%s15782_s26 + $0xc] sm:$0xf8]  }
 0x172   : > { %v17148_v11 = vpop.permute.xlu0 %3038  ;;  %3539 = vmatprep.subr.bf16.mxu0 %v15686_v0  ;;  %v17220_v51 = vrot.slane %v4737_v3, 1  ;;  %v14666_v45 = vld [vmem:[%s15782_s26 + $0x18] sm:$0xf8]   ;;  %v14645_v3 = vld [vmem:[%s15782_s26 + $0x2a0] sm:$0xf8]  }
 0x173   : > { %v803_v29 = vpack.c.bf16 %v800_v33, %v799_v28  ;;  %4358 = vrot.lane.b32.xlu1 %v4355_v57, %s15691_s20  ;;  %v4790_v57 = vshrl.u32 %v17155_v4, 16  ;;  %v4792_v33 = vshll.u32 %v17155_v4, 16  ;;  %v4887_v32 = vshll.u32 %v14666_v45, 16 }
 0x174   : > { %4356 = vrot.lane.b32.xlu0 %v4352_v38, %s15691_s20  ;;  %v4797_v38 = vshll.u32 %v14660_v58, 16  ;;  %v4760_v4 = vsel %vm21112_vm0, %v4758_v18, %v21091_v6  ;;  %v17424_v18 = vld [vmem:[%s15782_s26 + $0x18] sm:$0xf8]  }
 0x175   : > { %805 = vst.msk [vmem:[#allocation2] sm:$0xff] %vm661_vm8, %v803_v29  ;;  %3540 = vmatpush1.bf16.msra.mxu0 %v17170_v1  ;;  %v17173_v23 = vpop.permute.xlu1 %3085  ;;  %v17242_v58 = vrot.slane %v4792_v33, 1  ;;  %v4892_v33 = vshrl.u32 %v17197_v25, 16 }
 0x176   : > { %v17178_v37 = vpop.permute.xlu0 %3083  ;;  %3541 = vmatprep.subr.bf16.mxu0 %v15686_v0  ;;  %v17244_v47 = vrot.slane %v4797_v38, 1 }
 0x177   : > { %4389 = vrot.lane.b32.xlu1 %v4386_v55, %s15690_s19 }
 0x178   : > { %4387 = vrot.lane.b32.xlu0 %v4377_v22, %s15690_s19  ;;  %v3152_v22 = vsel %vm622_vm5, %v14628_v36, %v17019_v44  ;;  %v21090_v44 = vrot.slane %v17186_v39, 3  ;;  %v3154_v36 = vsel %vm629_vm4, %v3149_v26, %v17066_v20  ;;  %v17239_v20 = vld [vmem:[%s21076_s1 + $0x28] sm:$0xff]  }
 0x179   : > { %3542 = vmatpush1.bf16.msra.mxu0 %v17202_v2  ;;  %v3115_v28 = vpop.permute.xlu1 %3114  ;;  %v3156_v29 = vsel %vm629_vm4, %v3152_v22, %v17056_v31  ;;  %v3158_v31 = vsel %vm634_vm6, %v3154_v36, %v17106_v14  ;;  %v4836_v22 = vshrl.u32 %v17213_v63, 16  ;;  %v4495_v36 = vor.u32 %v17099_v10, %v4490_v19 }
 0x17a   : > { %v3113_v61 = vpop.permute.xlu0 %3112  ;;  %3543 = vmatprep.subr.bf16.mxu0 %v15686_v0  ;;  %v3160_v27 = vsel %vm634_vm6, %v3156_v29, %v17094_v56  ;;  %v4895_v19 = vshll.u32 %v17197_v25, 16 }
 0x17b   : > { %4403 = vrot.lane.b32.xlu1 %v14640_v21, %s15688_s30  ;;  %v3164_v55 = vsel %vm639_vm9, %v3160_v27, %v3041_v62  ;;  %v3162_v21 = vsel %vm639_vm9, %v3158_v31, %v17148_v11  ;;  %v14644_v62 = vld [vmem:[%s15782_s26 + $0x2a8] sm:$0xff]   ;;  %v4839_v11 = vshll.u32 %v17213_v63, 16  ;;  %v4844_v27 = vshrl.u32 %v17231_v17, 16 }
 0x17c   : > { %4401 = vrot.lane.b32.xlu0 %v14641_v24, %s15688_s30  ;;  %v4847_v31 = vshll.u32 %v17231_v17, 16  ;;  %v3174_v10 = vsel %vm656_vm7, %v17178_v37, %v3113_v61 }
 0x17d   : > { %3544 = vmatpush1.bf16.msra.mxu0 %v17239_v20  ;;  %v3072_v56 = vpop.permute.xlu1 %3071 }
 0x17e   : > { %v3168_v14 = vsel %vm644_vm10, %v3164_v55, %v3072_v56  ;;  %v3070_v24 = vpop.permute.xlu0 %3069  ;;  %3545 = vmatprep.subr.bf16.mxu0 %v15686_v0  ;;  %v3176_v55 = vsel %vm656_vm7, %v17173_v23, %v3115_v28  ;;  %v4503_v28 = vor.u32 %v4501_v16, %v17084_v52  ;;  %v4866_v16 = vrot.slane %v17254_v34, 3 }
 0x17f   : > { %v17260_v38 = vsel %vm649_vm11, %v3168_v14, %v17173_v23  ;;  %v3166_v26 = vsel %vm644_vm10, %v3162_v21, %v3070_v24  ;;  %4432 = vrot.lane.b32.xlu1 %v4429_v49, %s15693_s22  ;;  %v17278_v49 = vld [vmem:[%s21076_s1 + $0x30] sm:$0xff]   ;;  %v17291_v21 = vld [vmem:[%s15782_s26 + $0x284] sm:$0x3f]   ;;  %v17301_v24 = vrot.slane %v4892_v33, 3 }
 0x180   : > { %v3170_v29 = vsel %vm649_vm11, %v3166_v26, %v17178_v37  ;;  %4430 = vrot.lane.b32.xlu0 %v4426_v46, %s15693_s22  ;;  %v4884_v46 = vshrl.u32 %v14666_v45, 16  ;;  %v3186_v17 = vrot.slane %v17260_v38, 3  ;;  %v4451_v37 = vor.u32 %v17109_v53, %v17101_v30  ;;  %v17306_v26 = vld [vmem:[%s21076_s1 + $0x38] sm:$0xff]   ;;  %v14646_v33 = vld [vmem:[%s15782_s26 + $0x190] sm:$0xff]  }
 0x181   : > { %3546 = vmatpush1.bf16.msra.mxu0 %v17278_v49  ;;  %v3146_v63 = vpop.permute.xlu1 %3145  ;;  %v3185_v14 = vrot.slane %v3170_v29, 3  ;;  %v4500_v30 = vsel %vm464_vm1, %v4495_v36, %v17084_v52  ;;  %v17311_v53 = vrot.slane %v4836_v22, 2  ;;  %v5079_v52 = vshll.u32 %v17291_v21, 16  ;;  %v17418_v38 = vld [vmem:[%s21076_s1 + $0x50] sm:$0xff]  }
 0x182   : > { %v3180_v56 = vsel %vm661_vm8, %v3176_v55, %v3146_v63  ;;  %v3144_v23 = vpop.permute.xlu0 %3143  ;;  %3547 = vmatprep.subr.bf16.mxu0 %v15686_v0  ;;  %v17324_v63 = vrot.slane %v4844_v27, 2  ;;  %v17336_v36 = vrot.slane %v4887_v32, 4  ;;  %v4460_v27 = vsel %vm21088_vm3, %v4451_v37, %v4459_v8 }
 0x183   : > { %v3189_v45 = vrot.slane %v3180_v56, 3  ;;  %v3178_v25 = vsel %vm661_vm8, %v3174_v10, %v3144_v23  ;;  %4477 = vrot.lane.b32.xlu1 %v14644_v62, %s15687_s29  ;;  %v17326_v10 = vrot.slane %v4847_v31, 3  ;;  %v3187_v22 = vsel %vm21092_vm14, %v3185_v14, %v3186_v17 }
 0x184   : > { %v3188_v61 = vrot.slane %v3178_v25, 3  ;;  %4475 = vrot.lane.b32.xlu0 %v14645_v3, %s15687_s29  ;;  %v17313_v3 = vrot.slane %v4839_v11, 3  ;;  %v17334_v11 = vrot.slane %v4884_v46, 3  ;;  %v17338_v56 = vrot.slane %v4895_v19, 4  ;;  %v17352_v46 = vld [vmem:[%s21076_s1 + $0x40] sm:$0xff]  }
 0x185   : > { %3548 = vmatpush1.bf16.msra.mxu0 %v17306_v26  ;;  %v3370_v62 = vpop.permute.xlu1 %3369  ;;  %v4525_v31 = vor.u32 %v17160_v15, %v17123_v42  ;;  %v4533_v23 = vor.u32 %v17176_v40, %v17162_v60  ;;  %v4818_v19 = vrot.slane %v17316_v9, 1  ;;  %v4819_v14 = vrot.slane %v17319_v41, 1  ;;  %v17364_v40 = vld [vmem:[%s15782_s26 + $0x290] sm:$0x7f]  }
 0x186   : > { %v3353_v29 = vpop.permute.xlu0 %3352  ;;  %v3190_v55 = vsel %vm21092_vm14, %v3188_v61, %v3189_v45  ;;  %3549 = vmatprep.subr.bf16.mxu0 %v15686_v0  ;;  %v17361_v60 = vrot.slane %v5079_v52, 1  ;;  %v5101_v12 = vrot.slane %v17364_v40, 1 }
 0x187   : > { %12897 = vmatprep.mubr.msk.bf16.mxu1 %vm21093_vm12, %v3190_v55  ;;  %4506 = vrot.lane.b32.xlu1 %v4503_v28, %s15694_s23  ;;  %v17347_v28 = vld [vmem:[%s15782_s26 + $0x27c] sm:$0xfe]   ;;  %v3495_v61 = vsel %vm622_vm5, %v14646_v33, %v3353_v29  ;;  %v4534_v55 = vsel %vm21088_vm3, %v4525_v31, %v4533_v23  ;;  %v4735_v33 = vor.u32 %v17189_v35, %v4730_v48  ;;  %vm21096_vm3 = vcmask 258048  }
 0x188   : > { %4504 = vrot.lane.b32.xlu0 %v4500_v30, %s15694_s23  ;;  %3232 = vmatmul.mubr.bf16.vlgmr.msra.gmra.mrb[24].mxu1 %v3187_v22  ;;  %v5074_v52 = vshll.u32 %v17347_v28, 16  ;;  %v17377_v22 = vld [vmem:[%s21076_s1 + $0x48] sm:$0xff]   ;;  %v3500_v48 = vsel %vm629_vm4, %v3495_v61, %v3370_v62  ;;  %v17412_v62 = vld [vmem:[%s15782_s26 + $0x2e0] sm:$0xfe]  }
 0x189   : > { %3550 = vmatpush1.bf16.msra.mxu0 %v17352_v46  ;;  %12898 = vmatprep.mubr.msk.bf16.mxu1 %vm21093_vm12, %v3189_v45  ;;  %v3413_v32 = vpop.permute.xlu1 %3412  ;;  %v5072_v45 = vshrl.u32 %v17347_v28, 16  ;;  %v4740_v7 = vsel %vm464_vm1, %v4735_v33, %v17220_v51  ;;  %v4842_v33 = vor.u32 %v17313_v3, %v17311_v53 }
 0x18a   : > { %3871 = vmatpush1.bf16.msra.mxu1 %v17052_v50  ;;  %v3384_v15 = vpop.permute.xlu0 %3383  ;;  %3551 = vmatprep.subr.bf16.mxu0 %v15686_v0  ;;  %v1110_v25 = vpop.f32.mrb[0].mxu1 }
 0x18b   : > { %4463 = vrot.lane.b32.xlu1 %v4460_v27, %s15692_s21  ;;  %3872 = vmatprep.subr.bf16.mxu1 %v15686_v0  ;;  %v1111_v8 = vadd.f32 %v17061_v13, %v1110_v25  ;;  %v1112_v30 = vpop.f32.mrb[1].mxu1  ;;  %v4795_v25 = vor.u32 %v17242_v58, %v4790_v57  ;;  %v3504_v35 = vsel %vm634_vm6, %v3500_v48, %v3384_v15  ;;  %v17406_v57 = vld [vmem:[%s15782_s26 + $0x288] sm:$0xfc]  }
 0x18c   : > { %4461 = vrot.lane.b32.xlu0 %v4451_v37, %s15692_s21  ;;  %v1113_v27 = vpop.f32.mrb[2].mxu1  ;;  %v17391_v30 = vld [vmem:[%s15782_s26 + $0x20] sm:$0xff]   ;;  %v17409_v58 = vld [vmem:[%s15782_s26 + $0x2e8] sm:$0x3f]  }
 0x18d   : > { %3552 = vmatpush1.bf16.msra.mxu0 %v17377_v22  ;;  %v3473_v42 = vpop.permute.xlu1 %3472  ;;  %v1114_v37 = vadd.f32 %v17061_v13, %v1113_v27  ;;  %v1115_v29 = vpop.f32.mrb[3].mxu1  ;;  %v1125_v27 = vmax.f32 %v1111_v8, 0.0  ;;  %v4800_v8 = vsel %vm464_vm1, %v4795_v25, %v17244_v47 }
 0x18e   : > { %3873 = vmatpush1.bf16.msra.mxu1 %v17090_v5  ;;  %v3444_v23 = vpop.permute.xlu0 %3443  ;;  %3553 = vmatprep.subr.bf16.mxu0 %v15686_v0 }
 0x18f   : > { %4537 = vrot.lane.b32.xlu1 %v4534_v55, %s15689_s16  ;;  %3874 = vmatprep.subr.bf16.mxu1 %v15686_v0  ;;  %v1126_v29 = vmax.f32 %v1114_v37, 0.0  ;;  %v3522_v15 = vsel %vm656_vm7, %v3444_v23, %v3473_v42  ;;  %v14661_v55 = vld [vmem:[%s15782_s26 + $0x2bc] sm:$0xff]   ;;  %v3508_v37 = vsel %vm639_vm9, %v3504_v35, %v3413_v32  ;;  %v5076_v32 = vrot.slane %v5074_v52, 1 }
 0x190   : > { %4535 = vrot.lane.b32.xlu0 %v4525_v31, %s15689_s16  ;;  %3240 = vmatmul.mubr.bf16.gmra.mrb[28].mxu1 %v3186_v17  ;;  %v5186_v35 = vshrl.u32 %v17391_v30, 16 }
 0x191   : > { %3554 = vmatpush1.bf16.msra.mxu0 %v17418_v38  ;;  %v3490_v17 = vpop.permute.xlu1 %3489  ;;  %v1129_v31 = vpack.c.bf16 %v1126_v29, %v1125_v27  ;;  %v17439_v27 = vor.u32 %v17326_v10, %v17324_v63  ;;  %v4868_v63 = vsel %vm21092_vm14, %v4866_v16, %v21090_v44  ;;  %v5189_v16 = vshll.u32 %v17391_v30, 16 }
 0x192   : > { %3875 = vmatpush1.bf16.msra.mxu1 %v17137_v54  ;;  %v3526_v61 = vsel %vm661_vm8, %v3522_v15, %v3490_v17  ;;  %v3430_v42 = vpop.permute.xlu0 %3429  ;;  %3555 = vmatprep.subr.bf16.mxu0 %v15686_v0  ;;  %vm21098_vm14 = vcmask 261124  }
 0x193   : > { %v1118_v48 = vpop.f32.mrb[4].mxu1  ;;  %4761 = vrot.lane.b32.xlu1 %v4760_v4, %s15690_s19  ;;  %12917 = vmatprep.mubr.msk.bf16.mxu0 %vm21093_vm12, %v3526_v61  ;;  %v3512_v29 = vsel %vm644_vm10, %v3508_v37, %v3430_v42  ;;  %v1132_v4 = vshrl.u32 %v1129_v31, 16  ;;  %v1135_v17 = vshll.u32 %v1129_v31, 16  ;;  %v5100_v31 = vrot.slane %v17406_v57, 1 }
 0x194   : > { %v1119_v25 = vadd.f32 %v17061_v13, %v1118_v48  ;;  %v1120_v15 = vpop.f32.mrb[5].mxu1  ;;  %4744 = vrot.lane.b32.xlu0 %v4740_v7, %s15691_s20  ;;  %3876 = vmatprep.subr.bf16.mxu1 %v15686_v0  ;;  %v5139_v61 = vshll.u32 %v17409_v58, 16  ;;  %v5134_v42 = vshll.u32 %v17412_v62, 16  ;;  %v3516_v37 = vsel %vm649_vm11, %v3512_v29, %v3444_v23 }
 0x195   : > { %3556 = vmatpush1.bf16.msra.mxu0 %v15993_v59  ;;  %v1121_v53 = vpop.f32.mrb[6].mxu1  ;;  %v17447_v3 = vpop.permute.xlu1 %3679  ;;  %v5178_v48 = vshrl.u32 %v17424_v18, 16  ;;  %v4890_v23 = vor.u32 %v17336_v36, %v17334_v11  ;;  %v1134_v29 = vrot.slane %v1132_v4, 3  ;;  %vm1152_vm12 = vsmask.f32 7954 }
 0x196   : > { %v1122_v10 = vadd.f32 %v17061_v13, %v1121_v53  ;;  %3877 = vmatpush1.bf16.msra.mxu1 %v17170_v1  ;;  %v1123_v52 = vpop.f32.mrb[7].mxu1  ;;  %v17456_v7 = vpop.permute.xlu0 %3677  ;;  %4213 = vmatprep.subr.bf16.mxu0 %v15686_v0  ;;  %v1127_v34 = vmax.f32 %v1119_v25, 0.0  ;;  %v1137_v25 = vrot.slane %v1135_v17, 4  ;;  %v809_v4 = vld [vmem:[#allocation2 + $0x8] sm:$0x1f] }
 0x197   : > { %4804 = vrot.lane.b32.xlu1 %v4800_v8, %s15693_s22  ;;  %3878 = vmatprep.subr.bf16.mxu1 %v15686_v0  ;;  %v4851_v52 = vsel %vm21094_vm15, %v4842_v33, %v17439_v27  ;;  %v17474_v8 = vor.u32 %v17338_v56, %v17301_v24  ;;  %vm17503_vm15 = vmand %vm21096_vm3, %vm21095_vm2  ;;  %vm21122_vm3 = vcmask 424960  }
 0x198   : > { %v1128_v15 = vmax.f32 %v1122_v10, 0.0  ;;  %3566 = vmatmul.mubr.bf16.vlgmr.msra.gmra.mrb[32].mxu0 %v3516_v37  ;;  %4775 = vrot.lane.b32.xlu0 %v14661_v55, %s15688_s30  ;;  %v792_v53 = vpop.f32.mrb[4].mxu0  ;;  %v5181_v55 = vshll.u32 %v17424_v18, 16 }
 0x199   : > { %v793_v44 = vadd.f32 %v17061_v13, %v792_v53  ;;  %v794_v6 = vpop.f32.mrb[5].mxu0  ;;  %v17477_v10 = vpop.permute.xlu1 %3696  ;;  %4214 = vmatpush1.bf16.msra.mxu0 %v17052_v50  ;;  %v4899_v17 = vsel %vm21095_vm2, %v4890_v23, %v17474_v8 }
 0x19a   : > { %v1130_v37 = vpack.c.bf16 %v1128_v15, %v1127_v34  ;;  %3879 = vmatpush1.bf16.msra.mxu1 %v17202_v2  ;;  %v17482_v33 = vpop.permute.xlu0 %3694  ;;  %v795_v11 = vpop.f32.mrb[6].mxu0  ;;  %4215 = vmatprep.subr.bf16.mxu0 %v15686_v0  ;;  %v5183_v30 = vrot.slane %v5181_v55, 3 }
 0x19b   : > { %v801_v24 = vmax.f32 %v793_v44, 0.0  ;;  %v796_v36 = vadd.f32 %v17061_v13, %v795_v11  ;;  %v797_v6 = vpop.f32.mrb[7].mxu0  ;;  %4869 = vrot.lane.b32.xlu1 %v4868_v63, %s15694_s23  ;;  %3880 = vmatprep.subr.bf16.mxu1 %v15686_v0  ;;  %v4820_v13 = vsel %vm21112_vm0, %v4818_v19, %v4819_v14  ;;  %v5077_v44 = vor.u32 %v5076_v32, %v5072_v45 }
 0x19c   : > { %v1140_v56 = vshrl.u32 %v1130_v37, 16  ;;  %v1143_v50 = vshll.u32 %v1130_v37, 16  ;;  %4852 = vrot.lane.b32.xlu0 %v4851_v52, %s15687_s29  ;;  %v1138_v19 = vor.u32 %v1137_v25, %v1134_v29  ;;  %v5132_v25 = vshrl.u32 %v17412_v62, 16  ;;  %v14658_v6 = vld [vmem:[%s15782_s26 + $0x1a8] sm:$0xfe]  }
 0x19d   : > { %v802_v34 = vmax.f32 %v796_v36, 0.0  ;;  %v17491_v15 = vpop.permute.xlu1 %3710  ;;  %4216 = vmatpush1.bf16.msra.mxu0 %v17090_v5  ;;  %v21116_v5 = vshrl.u32 %v17291_v21, 16  ;;  %v5082_v11 = vsel %vm464_vm1, %v5077_v44, %v17361_v60  ;;  %v5188_v36 = vrot.slane %v5186_v35, 2  ;;  %v17549_v62 = vld [vmem:[%s15782_s26 + $0x28] sm:$0xff]  }
 0x19e   : > { %v1142_v63 = vrot.slane %v1140_v56, 3  ;;  %v1145_v53 = vrot.slane %v1143_v50, 4  ;;  %3881 = vmatpush1.bf16.msra.mxu1 %v17239_v20  ;;  %v17508_v23 = vpop.permute.xlu0 %3708  ;;  %4217 = vmatprep.subr.bf16.mxu0 %v15686_v0  ;;  %v5102_v50 = vsel %vm21112_vm0, %v5100_v31, %v5101_v12  ;;  %v14675_v31 = vld [vmem:[%s15782_s26 + $0x2d4] sm:$0xfe]  }
 0x19f   : > { %v804_v9 = vpack.c.bf16 %v802_v34, %v801_v24  ;;  %4900 = vrot.lane.b32.xlu1 %v4899_v17, %s15689_s16  ;;  %3882 = vmatprep.subr.bf16.mxu1 %v15686_v0  ;;  %v5085_v28 = vor.u32 %v21116_v5, %v17361_v60  ;;  %v14657_v60 = vld [vmem:[%s15782_s26 + $0x1b0] sm:$0x3f]   ;;  %v5136_v24 = vrot.slane %v5134_v42, 1  ;;  %v5141_v17 = vrot.slane %v5139_v61, 1 }
 0x1a0   : > { %v1146_v45 = vor.u32 %v1145_v53, %v1142_v63  ;;  %4821 = vrot.lane.b32.xlu0 %v4820_v13, %s15692_s21  ;;  %v5191_v34 = vrot.slane %v5189_v16, 3  ;;  %v14682_v16 = vld [vmem:[%s15782_s26 + $0x30] sm:$0x1f]   ;;  %v3823_v18 = vsel %vm622_vm5, %v14657_v60, %v17447_v3  ;;  %v5208_v3 = vrot.slane %v17549_v62, 7  ;;  %v14686_v63 = vld [vmem:[%s15782_s26 + $0x3c] sm:$0x1f]  }
 0x1a1   : > { %v810_v32 = vsel %vm17503_vm15, %v804_v9, %v809_v4  ;;  %v3740_v37 = vpop.permute.xlu1 %3739  ;;  %4218 = vmatpush1.bf16.msra.mxu0 %v17137_v54  ;;  %v5143_v54 = vshrl.u32 %v17409_v58, 16  ;;  %v14674_v4 = vld [vmem:[%s15782_s26 + $0x2dc] sm:$0x3f]   ;;  %vm17554_vm15 = vmand %vm21098_vm14, %vm1152_vm12  ;;  %v5180_v58 = vrot.slane %v5178_v48, 2  ;;  %vm21101_vm12 = vcmask 1040384  }
 0x1a2   : > { %1159 = vst.msk [vmem:[#allocation2 + $0x18] sm:$0x1] %vm21097_vm13, %v1146_v45  ;;  %811 = vst [vmem:[#allocation2 + $0x8] sm:$0x1f] %v810_v32  ;;  %v1147_v21 = vsel %vm21095_vm2, %v1138_v19, %v1146_v45  ;;  %3883 = vmatpush1.bf16.msra.mxu1 %v17278_v49  ;;  %v3738_v29 = vpop.permute.xlu0 %3737  ;;  %4219 = vmatprep.subr.bf16.mxu0 %v15686_v0  ;;  %v3827_v55 = vsel %vm629_vm4, %v3823_v18, %v17477_v10  ;;  %v14683_v32 = vld [vmem:[%s15782_s26 + $0x2f4] sm:$0x7f]  }
 0x1a3   : > { %1157 = vst.msk [vmem:[#allocation2 + $0x10] sm:$0xff] %vm661_vm8, %v1147_v21  ;;  %5088 = vrot.lane.b32.xlu1 %v5085_v28, %s15691_s20  ;;  %3884 = vmatprep.subr.bf16.mxu1 %v15686_v0  ;;  %v3831_v44 = vsel %vm634_vm6, %v3827_v55, %v17491_v15  ;;  %v5192_v10 = vor.u32 %v5191_v34, %v5188_v36  ;;  %v5209_v28 = vrot.slane %v14682_v16, 7  ;;  %vm3601_vm2 = vsmask.f32 256  ;;  %v15630_v55 = vld [vmem:[%s15782_s26 + $0x26c] sm:$0x1f]  }
 0x1a4   : > { %5086 = vrot.lane.b32.xlu0 %v5082_v11, %s15691_s20  ;;  %v3835_v52 = vsel %vm639_vm9, %v3831_v44, %v3740_v37  ;;  %v5184_v5 = vor.u32 %v5183_v30, %v5180_v58  ;;  %v14684_v37 = vld [vmem:[%s15782_s26 + $0x2ec] sm:$0xfc]   ;;  %v14680_v30 = vld [vmem:[%s15782_s26 + $0x198] sm:$0x1f]   ;;  %vm21099_vm13 = vcmask 259072  }
 0x1a5   : > { %v3771_v56 = vpop.permute.xlu1 %3770  ;;  %4220 = vmatpush1.bf16.msra.mxu0 %v17170_v1  ;;  %v5137_v1 = vor.u32 %v5136_v24, %v5132_v25  ;;  %v5160_v58 = vrot.slane %v14684_v37, 1 }
 0x1a6   : > { %3885 = vmatpush1.bf16.msra.mxu1 %v17306_v26  ;;  %v3769_v57 = vpop.permute.xlu0 %3768  ;;  %4221 = vmatprep.subr.bf16.mxu0 %v15686_v0 }
 0x1a7   : > { %5105 = vrot.lane.b32.xlu1 %v5101_v12, %s15690_s19  ;;  %3886 = vmatprep.subr.bf16.mxu1 %v15686_v0  ;;  %v3820_v12 = vsel %vm622_vm5, %v14658_v6, %v17456_v7  ;;  %v5142_v7 = vsel %vm464_vm1, %v5137_v1, %v5141_v17 }
 0x1a8   : > { %5103 = vrot.lane.b32.xlu0 %v5102_v50, %s15690_s19  ;;  %v3825_v13 = vsel %vm629_vm4, %v3820_v12, %v17482_v33  ;;  %v17596_v33 = vld [vmem:[%s15782_s26 + $0x34] sm:$0xff]  }
 0x1a9   : > { %v1154_v61 = vld [vmem:[#allocation2 + $0x8] sm:$0xf0]  ;;  %v3800_v42 = vpop.permute.xlu1 %3799  ;;  %4222 = vmatpush1.bf16.msra.mxu0 %v17202_v2  ;;  %v5145_v2 = vor.u32 %v5143_v54, %v5141_v17  ;;  %v3829_v53 = vsel %vm634_vm6, %v3825_v13, %v17508_v23  ;;  %v5226_v6 = vshrl.u32 %v17596_v33, 16  ;;  %v5229_v18 = vshll.u32 %v17596_v33, 16 }
 0x1aa   : > { %v1155_v48 = vsel %vm17554_vm15, %v1138_v19, %v1154_v61  ;;  %3887 = vmatpush1.bf16.msra.mxu1 %v17352_v46  ;;  %v3798_v40 = vpop.permute.xlu0 %3797  ;;  %4223 = vmatprep.subr.bf16.mxu0 %v15686_v0  ;;  %v3833_v15 = vsel %vm639_vm9, %v3829_v53, %v3738_v29  ;;  %v3847_v11 = vsel %vm656_vm7, %v3771_v56, %v3800_v42  ;;  %vm21119_vm15 = vsmask.f32 5376 }
 0x1ab   : > { %1156 = vst [vmem:[#allocation2 + $0x8] sm:$0xf0] %v1155_v48  ;;  %5119 = vrot.lane.b32.xlu1 %v14674_v4, %s15688_s30  ;;  %3888 = vmatprep.subr.bf16.mxu1 %v15686_v0  ;;  %v5193_v60 = vsel %vm21119_vm15, %v5184_v5, %v5192_v10  ;;  %v3845_v25 = vsel %vm656_vm7, %v3769_v57, %v3798_v40  ;;  %v5236_v4 = vshll.u32 %v14686_v63, 16  ;;  %vm21120_vm15 = vcmask 424960  }
 0x1ac   : > { %5117 = vrot.lane.b32.xlu0 %v14675_v31, %s15688_s30  ;;  %v5161_v31 = vrot.slane %v14683_v32, 1  ;;  %v5228_v42 = vrot.slane %v5226_v6, 7  ;;  %v17676_v32 = vld [vmem:[%s15782_s26 + $0x294] sm:$0xfc]  }
 0x1ad   : > { %v3757_v9 = vpop.permute.xlu1 %3756  ;;  %4224 = vmatpush1.bf16.msra.mxu0 %v17239_v20  ;;  %v5233_v20 = vshrl.u32 %v14686_v63, 16 }
 0x1ae   : > { %3889 = vmatpush1.bf16.msra.mxu1 %v17377_v22  ;;  %v3839_v19 = vsel %vm644_vm10, %v3835_v52, %v3757_v9  ;;  %v3755_v45 = vpop.permute.xlu0 %3754  ;;  %4225 = vmatprep.subr.bf16.mxu0 %v15686_v0  ;;  %v5162_v40 = vsel %vm21112_vm0, %v5160_v58, %v5161_v31  ;;  %v5231_v53 = vor.u32 %v5229_v18, %v5228_v42 }
 0x1af   : > { %v3837_v23 = vsel %vm644_vm10, %v3833_v15, %v3755_v45  ;;  %5148 = vrot.lane.b32.xlu1 %v5145_v2, %s15693_s22  ;;  %3890 = vmatprep.subr.bf16.mxu1 %v15686_v0  ;;  %v17611_v21 = vsel %vm649_vm11, %v3839_v19, %v3771_v56  ;;  %v5235_v35 = vrot.slane %v5233_v20, 7  ;;  %v4741_v2 = vshrl.u32 %v15630_v55, 16  ;;  %v17668_v19 = vld [vmem:[%s21076_s1 + $0x8] sm:$0xff]   ;;  %v1493_v55 = vld [vmem:[#allocation2 + $0x20] sm:$0x3f] }
 0x1b0   : > { %5146 = vrot.lane.b32.xlu0 %v5142_v7, %s15693_s22  ;;  %v3841_v29 = vsel %vm649_vm11, %v3837_v23, %v3769_v57  ;;  %v3857_v17 = vrot.slane %v17611_v21, 1 }
 0x1b1   : > { %v3817_v54 = vpop.permute.xlu1 %3816  ;;  %4226 = vmatpush1.bf16.msra.mxu0 %v17278_v49  ;;  %v5210_v49 = vsel %vm21101_vm12, %v5208_v3, %v5209_v28  ;;  %v3856_v34 = vrot.slane %v3841_v29, 1  ;;  %v5238_v16 = vor.u32 %v5236_v4, %v5235_v35 }
 0x1b2   : > { %3891 = vmatpush1.bf16.msra.mxu1 %v17418_v38  ;;  %v3851_v24 = vsel %vm661_vm8, %v3847_v11, %v3817_v54  ;;  %v3815_v36 = vpop.permute.xlu0 %3814  ;;  %4227 = vmatprep.subr.bf16.mxu0 %v15686_v0  ;;  %v4743_v11 = vor.u32 %v4741_v2, %v17220_v51  ;;  %v17696_v51 = vld [vmem:[%s21076_s1 + $0x10] sm:$0xff]  }
 0x1b3   : > { %v3860_v56 = vrot.slane %v3851_v24, 1  ;;  %v3849_v50 = vsel %vm661_vm8, %v3845_v25, %v3815_v36  ;;  %5196 = vrot.lane.b32.xlu1 %v5192_v10, %s15687_s29  ;;  %3892 = vmatprep.subr.bf16.mxu1 %v15686_v0  ;;  %v5239_v63 = vsel %vm3601_vm2, %v5228_v42, %v5238_v16  ;;  %v17736_v16 = vld [vmem:[%s15782_s26 + $0x2f8] sm:$0xfc]  }
 0x1b4   : > { %v3859_v62 = vrot.slane %v3849_v50, 1  ;;  %5194 = vrot.lane.b32.xlu0 %v5193_v60, %s15687_s29  ;;  %v17685_v60 = vld [vmem:[%s15782_s26 + $0x29c] sm:$0x7f]   ;;  %v21121_v50 = vrot.slane %v17146_v43, 1 }
 0x1b5   : > { %v3372_v57 = vpop.permute.xlu1 %3371  ;;  %4228 = vmatpush1.bf16.msra.mxu0 %v17306_v26  ;;  %v3858_v26 = vsel %vm21112_vm0, %v3856_v34, %v3857_v17 }
 0x1b6   : > { %3893 = vmatpush1.bf16.msra.mxu1 %v15993_v59  ;;  %v3355_v1 = vpop.permute.xlu0 %3354  ;;  %v3861_v61 = vsel %vm21112_vm0, %v3859_v62, %v3860_v56  ;;  %4229 = vmatprep.subr.bf16.mxu0 %v15686_v0 }
 0x1b7   : > { %12937 = vmatprep.mubr.msk.bf16.mxu1 %vm21120_vm15, %v3861_v61  ;;  %5213 = vrot.lane.b32.xlu1 %v5210_v49, %s15694_s23  ;;  %v3498_v13 = vsel %vm622_vm5, %v14680_v30, %v3355_v1  ;;  %v17722_v30 = vld [vmem:[%s21076_s1 + $0x18] sm:$0xff]   ;;  %v5442_v61 = vshll.u32 %v17685_v60, 16  ;;  %v17810_v1 = vld [vmem:[%s15782_s26 + $0x4c] sm:$0xfe]  }
 0x1b8   : > { %5211 = vrot.lane.b32.xlu0 %v5208_v3, %s15694_s23  ;;  %4591 = vmatprep.subr.bf16.mxu1 %v15686_v0  ;;  %v17647_v3 = vld [vmem:[%s21076_s1] sm:$0xff]   ;;  %v3502_v5 = vsel %vm629_vm4, %v3498_v13, %v3372_v57  ;;  %v5437_v57 = vshll.u32 %v17676_v32, 16 }
 0x1b9   : > { %3903 = vmatmul.mubr.bf16.vlgmr.msra.gmra.mrb[32].mxu1 %v3858_v26  ;;  %v3415_v48 = vpop.permute.xlu1 %3414  ;;  %4230 = vmatpush1.bf16.msra.mxu0 %v17352_v46  ;;  %v17656_v46 = vld [vmem:[%s21077_s2] ss:$0 sm:$0xff] }
 0x1ba   : > { %12938 = vmatprep.mubr.msk.bf16.mxu1 %vm21120_vm15, %v3860_v56  ;;  %v3386_v12 = vpop.permute.xlu0 %3385  ;;  %4592 = vmatpush1.bf16.msra.mxu1 %v17647_v3  ;;  %v1459_v44 = vpop.f32.mrb[8].mxu0  ;;  %v14689_v56 = vld [vmem:[%s15782_s26 + $0x2c4] sm:$0x1f]   ;;  %vm21100_vm15 = vcmask 261121  }
 0x1bb   : > { %5165 = vrot.lane.b32.xlu1 %v5161_v31, %s15692_s21  ;;  %4231 = vmatprep.subr.bf16.mxu0 %v15686_v0  ;;  %v1460_v7 = vadd.f32 %v17656_v46, %v1459_v44  ;;  %v1461_v10 = vpop.f32.mrb[9].mxu0  ;;  %v3506_v45 = vsel %vm634_vm6, %v3502_v5, %v3386_v12  ;;  %v17747_v13 = vld [vmem:[%s21076_s1 + $0x20] sm:$0xff]   ;;  %v21126_v44 = vrot.slane %v17186_v39, 3 }
 0x1bc   : > { %5163 = vrot.lane.b32.xlu0 %v5162_v40, %s15692_s21  ;;  %4593 = vmatprep.subr.bf16.mxu1 %v15686_v0  ;;  %v1462_v52 = vpop.f32.mrb[10].mxu0  ;;  %v3510_v36 = vsel %vm639_vm9, %v3506_v45, %v3415_v48  ;;  %v5435_v48 = vshrl.u32 %v17676_v32, 16  ;;  %v5439_v40 = vrot.slane %v5437_v57, 1  ;;  %v5446_v10 = vshrl.u32 %v17685_v60, 16  ;;  %v14694_v57 = vld [vmem:[%s15782_s26 + $0x2f4] sm:$0x7f]  }
 0x1bd   : > { %v3475_v9 = vpop.permute.xlu1 %3474  ;;  %4232 = vmatpush1.bf16.msra.mxu0 %v17377_v22  ;;  %v1463_v28 = vadd.f32 %v17656_v46, %v1462_v52  ;;  %v1464_v15 = vpop.f32.mrb[11].mxu0  ;;  %v15634_v22 = vld [vmem:[%s15782_s26 + $0x2d0] sm:$0x1f]   ;;  %v1474_v37 = vmax.f32 %v1460_v7, 0.0  ;;  %v5444_v7 = vrot.slane %v5442_v61, 1 }
 0x1be   : > { %v3446_v33 = vpop.permute.xlu0 %3445  ;;  %4594 = vmatpush1.bf16.msra.mxu1 %v17668_v19  ;;  %4233 = vmatprep.subr.bf16.mxu0 %v15686_v0  ;;  %v4801_v23 = vshrl.u32 %v15634_v22, 16  ;;  %v5440_v5 = vor.u32 %v5439_v40, %v5435_v48  ;;  %v14696_v15 = vld [vmem:[%s15782_s26 + $0x300] sm:$0x7f]   ;;  %v5497_v22 = vshll.u32 %v17736_v16, 16  ;;  %v17823_v48 = vld [vmem:[%s15782_s26 + $0x30c] sm:$0xff]  }
 0x1bf   : > { %5242 = vrot.lane.b32.xlu1 %v5239_v63, %s15689_s16  ;;  %4595 = vmatprep.subr.bf16.mxu1 %v15686_v0  ;;  %v1475_v20 = vmax.f32 %v1463_v28, 0.0  ;;  %v3524_v29 = vsel %vm656_vm7, %v3446_v33, %v3475_v9  ;;  %v14698_v63 = vld [vmem:[%s15782_s26 + $0x34] sm:$0xff]   ;;  %v14692_v28 = vld [vmem:[%s15782_s26 + $0x2a8] sm:$0xff]   ;;  %v5448_v32 = vor.u32 %v5446_v10, %v5444_v7 }
 0x1c0   : > { %5240 = vrot.lane.b32.xlu0 %v5231_v53, %s15689_s16  ;;  %v4803_v49 = vor.u32 %v4801_v23, %v17244_v47  ;;  %v14699_v53 = vld [vmem:[%s15782_s26 + $0x3c] sm:$0x1f]   ;;  %v17771_v23 = vld [vmem:[%s21076_s1 + $0x28] sm:$0xff]   ;;  %v5445_v60 = vsel %vm464_vm1, %v5440_v5, %v5444_v7  ;;  %v5499_v41 = vrot.slane %v5497_v22, 1  ;;  %v5589_v22 = vshrl.u32 %v17810_v1, 16 }
 0x1c1   : > { %3911 = vmatmul.mubr.bf16.gmra.mrb[36].mxu1 %v3857_v17  ;;  %v3492_v54 = vpop.permute.xlu1 %3491  ;;  %4234 = vmatpush1.bf16.msra.mxu0 %v17418_v38  ;;  %v17688_v25 = vpack.c.bf16 %v1475_v20, %v1474_v37  ;;  %v5541_v37 = vshrl.u32 %v14698_v63, 16  ;;  %v5544_v20 = vshll.u32 %v14698_v63, 16  ;;  %v17826_v40 = vld [vmem:[%s15782_s26 + $0x304] sm:$0xf8]  }
 0x1c2   : > { %v3528_v24 = vsel %vm661_vm8, %v3524_v29, %v3492_v54  ;;  %v3432_v6 = vpop.permute.xlu0 %3431  ;;  %4596 = vmatpush1.bf16.msra.mxu1 %v17696_v51  ;;  %4235 = vmatprep.subr.bf16.mxu0 %v15686_v0  ;;  %v1467_v21 = vpop.f32.mrb[12].mxu0  ;;  %v5552_v29 = vshll.u32 %v14699_v53, 16 }
 0x1c3   : > { %v3514_v38 = vsel %vm644_vm10, %v3510_v36, %v3432_v6  ;;  %4763 = vrot.lane.b32.xlu1 %v21121_v50, %s15690_s19  ;;  %12918 = vmatprep.mubr.msk.bf16.mxu0 %vm21122_vm3, %v3528_v24  ;;  %v1483_v4 = vrot.slane %v17688_v25, 7  ;;  %v1468_v17 = vadd.f32 %v17656_v46, %v1467_v21  ;;  %v1469_v34 = vpop.f32.mrb[13].mxu0  ;;  %vm21123_vm3 = vsmask.f32 5376 }
 0x1c4   : > { %4746 = vrot.lane.b32.xlu0 %v4743_v11, %s15691_s20  ;;  %v3519_v62 = vsel %vm649_vm11, %v3514_v38, %v3446_v33  ;;  %4597 = vmatprep.subr.bf16.mxu1 %v15686_v0  ;;  %v1470_v35 = vpop.f32.mrb[14].mxu0  ;;  %vm17727_vm14 = vmand %vm21099_vm13, %vm21123_vm3  ;;  %v14693_v33 = vld [vmem:[%s15782_s26 + $0x2a0] sm:$0xf8]   ;;  %v5549_v11 = vshrl.u32 %v14699_v53, 16  ;;  %v5464_v25 = vrot.slane %v14692_v28, 1  ;;  %v5502_v24 = vshll.u32 %v14696_v15, 16 }
 0x1c5   : > { %3574 = vmatmul.mubr.bf16.gmra.mrb[36].mxu0 %v3519_v62  ;;  %v17711_v43 = vpop.permute.xlu1 %4022  ;;  %1489 = vst.msk [vmem:[#allocation2 + $0x18] sm:$0xfe] %vm21100_vm15, %v1483_v4  ;;  %v1471_v47 = vadd.f32 %v17656_v46, %v1470_v35  ;;  %v1472_v58 = vpop.f32.mrb[15].mxu0  ;;  %v1476_v42 = vmax.f32 %v1468_v17, 0.0  ;;  %v5495_v6 = vshrl.u32 %v17736_v16, 16  ;;  %v5546_v21 = vrot.slane %v5544_v20, 7 }
 0x1c6   : > { %v17716_v31 = vpop.permute.xlu0 %4020  ;;  %4236 = vmatpush1.bf16.msra.mxu0 %v15993_v59  ;;  %4598 = vmatpush1.bf16.msra.mxu1 %v17722_v30  ;;  %v14687_v38 = vld [vmem:[%s15782_s26 + $0x1c8] sm:$0x7f]   ;;  %v5551_v50 = vrot.slane %v5549_v11, 6  ;;  %v14688_v34 = vld [vmem:[%s15782_s26 + $0x1c0] sm:$0xfc]   ;;  %v5506_v58 = vshrl.u32 %v14696_v15, 16 }
 0x1c7   : > { %4806 = vrot.lane.b32.xlu1 %v4803_v49, %s15693_s22  ;;  %4944 = vmatprep.subr.bf16.mxu0 %v15686_v0  ;;  %v1477_v26 = vmax.f32 %v1471_v47, 0.0  ;;  %v5554_v49 = vrot.slane %v5552_v29, 7  ;;  %v17802_v17 = vld [vmem:[%s15782_s26 + $0x48] sm:$0x3f]   ;;  %v5504_v47 = vrot.slane %v5502_v24, 1  ;;  %v17818_v16 = vld [vmem:[%s21076_s1 + $0x38] sm:$0xff]   ;;  %v4166_v63 = vsel %vm622_vm5, %v14687_v38, %v17711_v43 }
 0x1c8   : > { %4777 = vrot.lane.b32.xlu0 %v14689_v56, %s15688_s30  ;;  %4599 = vmatprep.subr.bf16.mxu1 %v15686_v0  ;;  %v5543_v56 = vrot.slane %v5541_v37, 6  ;;  %v5572_v28 = vrot.slane %v17802_v17, 7  ;;  %v4163_v15 = vsel %vm622_vm5, %v14688_v34, %v17716_v31  ;;  %vm21105_vm3 = vcmask 261125   ;;  %v17857_v37 = vld [vmem:[%s15782_s26 + $0x2ac] sm:$0xf8]  }
 0x1c9   : > { %v17739_v18 = vpop.permute.xlu1 %4039  ;;  %v1479_v12 = vpack.c.bf16 %v1477_v26, %v1476_v42  ;;  %v14695_v42 = vld [vmem:[%s15782_s26 + $0x2ec] sm:$0xfc]   ;;  %v5500_v26 = vor.u32 %v5499_v41, %v5495_v6  ;;  %v5508_v10 = vor.u32 %v5506_v58, %v5504_v47  ;;  %vm1880_vm13 = vsmask.f32 7958 }
 0x1ca   : > { %v17742_v2 = vpop.permute.xlu0 %4037  ;;  %4600 = vmatpush1.bf16.msra.mxu1 %v17747_v13  ;;  %v4170_v43 = vsel %vm629_vm4, %v4166_v63, %v17739_v18  ;;  %v5788_v63 = vshrl.u32 %v17857_v37, 16  ;;  %vm17936_vm15 = vmand %vm21105_vm3, %vm1880_vm13  ;;  %vm21130_vm13 = vcmask 424960  }
 0x1cb   : > { %4871 = vrot.lane.b32.xlu1 %v21126_v44, %s15694_s23  ;;  %4601 = vmatprep.subr.bf16.mxu1 %v15686_v0  ;;  %v1484_v52 = vrot.slane %v1479_v12, 7  ;;  %v17829_v12 = vld [vmem:[%s15782_s26 + $0x54] sm:$0x3f]   ;;  %v5555_v44 = vor.u32 %v5554_v49, %v5551_v50  ;;  %v4168_v31 = vsel %vm629_vm4, %v4163_v15, %v17742_v2  ;;  %v5524_v2 = vrot.slane %v17823_v48, 1 }
 0x1cc   : > { %4854 = vrot.lane.b32.xlu0 %v17439_v27, %s15687_s29  ;;  %v17891_v49 = vrot.slane %v5589_v22, 7  ;;  %v5790_v15 = vshll.u32 %v17857_v37, 16 }
 0x1cd   : > { %v17759_v9 = vpop.permute.xlu1 %4053  ;;  %v1485_v39 = vsel %vm21101_vm12, %v1483_v4, %v1484_v52  ;;  %v17799_v4 = vld [vmem:[%s15782_s26 + $0x40] sm:$0xfe]   ;;  %v5505_v52 = vsel %vm464_vm1, %v5500_v26, %v5504_v47 }
 0x1ce   : > { %v17765_v45 = vpop.permute.xlu0 %4051  ;;  %4602 = vmatpush1.bf16.msra.mxu1 %v17771_v23  ;;  %v1494_v27 = vsel %vm17727_vm14, %v1485_v39, %v1493_v55  ;;  %v17833_v55 = vor.u32 %v5546_v21, %v5543_v56  ;;  %vm21104_vm14 = vsmask.f32 1280  ;;  %v5571_v5 = vrot.slane %v17799_v4, 7  ;;  %v17902_v26 = vld [vmem:[%s15782_s26 + $0x260] sm:$0x1f]  }
 0x1cf   : > { %4902 = vrot.lane.b32.xlu1 %v17474_v8, %s15689_s16  ;;  %4603 = vmatprep.subr.bf16.mxu1 %v15686_v0  ;;  %1495 = vst [vmem:[#allocation2 + $0x20] sm:$0x3f] %v1494_v27  ;;  %v5463_v8 = vrot.slane %v14693_v33, 1  ;;  %v17843_v33 = vld [vmem:[%s21076_s1 + $0x40] sm:$0xff]   ;;  %v5596_v27 = vshrl.u32 %v17829_v12, 16  ;;  %v4174_v18 = vsel %vm634_vm6, %v4170_v43, %v17759_v9  ;;  %v5523_v9 = vrot.slane %v17826_v40, 1 }
 0x1d0   : > { %4823 = vrot.lane.b32.xlu0 %v4819_v14, %s15692_s21  ;;  %v17791_v14 = vld [vmem:[%s21076_s1 + $0x30] sm:$0xff]   ;;  %v5556_v29 = vsel %vm21104_vm14, %v17833_v55, %v5555_v44 }
 0x1d1   : > { %v17782_v54 = vpop.permute.xlu1 %4082  ;;  %v5465_v35 = vsel %vm21112_vm0, %v5463_v8, %v5464_v25  ;;  %v5598_v34 = vrot.slane %v5596_v27, 7 }
 0x1d2   : > { %v17785_v36 = vpop.permute.xlu0 %4080  ;;  %4604 = vmatpush1.bf16.msra.mxu1 %v17791_v14 }
 0x1d3   : > { %5451 = vrot.lane.b32.xlu1 %v5448_v32, %s15691_s20  ;;  %4605 = vmatprep.subr.bf16.mxu1 %v15686_v0  ;;  %v17854_v32 = vld [vmem:[%s15782_s26 + $0x2b4] sm:$0xff]  }
 0x1d4   : > { %5449 = vrot.lane.b32.xlu0 %v5445_v60, %s15691_s20  ;;  %v4172_v60 = vsel %vm634_vm6, %v4168_v31, %v17765_v45  ;;  %v5599_v45 = vshll.u32 %v17829_v12, 16 }
 0x1d5   : > { %v17805_v62 = vpop.permute.xlu1 %4113  ;;  %v4176_v6 = vsel %vm639_vm9, %v4172_v60, %v17785_v36 }
 0x1d6   : > { %v17812_v61 = vpop.permute.xlu0 %4111  ;;  %4606 = vmatpush1.bf16.msra.mxu1 %v17818_v16 }
 0x1d7   : > { %5468 = vrot.lane.b32.xlu1 %v5464_v25, %s15690_s19  ;;  %4607 = vmatprep.subr.bf16.mxu1 %v15686_v0  ;;  %v4178_v25 = vsel %vm639_vm9, %v4174_v18, %v17782_v54  ;;  %v17882_v54 = vld [vmem:[%s21076_s1 + $0x48] sm:$0xff]  }
 0x1d8   : > { %5466 = vrot.lane.b32.xlu0 %v5465_v35, %s15690_s19  ;;  %v17894_v35 = vld [vmem:[%s15782_s26 + $0x258] sm:$0xff]  }
 0x1d9   : > { %v4143_v7 = vpop.permute.xlu1 %4142  ;;  %v5817_v17 = vshrl.u32 %v17894_v35, 16 }
 0x1da   : > { %v4141_v53 = vpop.permute.xlu0 %4140  ;;  %4608 = vmatpush1.bf16.msra.mxu1 %v17843_v33  ;;  %v1838_v39 = vpop.f32.mrb[8].mxu1  ;;  %v4190_v12 = vsel %vm656_vm7, %v17805_v62, %v4143_v7 }
 0x1db   : > { %5482 = vrot.lane.b32.xlu1 %v14694_v57, %s15688_s30  ;;  %4609 = vmatprep.subr.bf16.mxu1 %v15686_v0  ;;  %v1839_v20 = vadd.f32 %v17656_v46, %v1838_v39  ;;  %v1840_v11 = vpop.f32.mrb[9].mxu1  ;;  %v4188_v43 = vsel %vm656_vm7, %v17812_v61, %v4141_v53  ;;  %v5819_v4 = vrot.slane %v5817_v17, 5 }
 0x1dc   : > { %5480 = vrot.lane.b32.xlu0 %v14695_v42, %s15688_s30  ;;  %v1841_v8 = vpop.f32.mrb[10].mxu1  ;;  %v5592_v42 = vshll.u32 %v17810_v1, 16 }
 0x1dd   : > { %v4100_v24 = vpop.permute.xlu1 %4099  ;;  %v1842_v41 = vadd.f32 %v17656_v46, %v1841_v8  ;;  %v1843_v38 = vpop.f32.mrb[11].mxu1  ;;  %v1853_v57 = vmax.f32 %v1839_v20, 0.0 }
 0x1de   : > { %v4182_v56 = vsel %vm644_vm10, %v4178_v25, %v4100_v24  ;;  %v4098_v21 = vpop.permute.xlu0 %4097  ;;  %4610 = vmatpush1.bf16.msra.mxu1 %v17882_v54 }
 0x1df   : > { %v17887_v50 = vsel %vm649_vm11, %v4182_v56, %v17805_v62  ;;  %v4180_v36 = vsel %vm644_vm10, %v4176_v6, %v4098_v21  ;;  %5511 = vrot.lane.b32.xlu1 %v5508_v10, %s15693_s22  ;;  %4611 = vmatprep.subr.bf16.mxu1 %v15686_v0  ;;  %v1854_v47 = vmax.f32 %v1842_v41, 0.0  ;;  %v5795_v10 = vshll.u32 %v17854_v32, 16  ;;  %v17916_v62 = vld [vmem:[%s21076_s1 + $0x50] sm:$0xff]  }
 0x1e0   : > { %v4184_v58 = vsel %vm649_vm11, %v4180_v36, %v17812_v61  ;;  %5509 = vrot.lane.b32.xlu0 %v5505_v52, %s15693_s22  ;;  %v4200_v52 = vrot.slane %v17887_v50, 2  ;;  %v5573_v61 = vsel %vm21101_vm12, %v5571_v5, %v5572_v28  ;;  %v5820_v41 = vshll.u32 %v17894_v35, 16 }
 0x1e1   : > { %v4160_v44 = vpop.permute.xlu1 %4159  ;;  %v1857_v39 = vpack.c.bf16 %v1854_v47, %v1853_v57  ;;  %v4199_v7 = vrot.slane %v4184_v58, 2  ;;  %v5825_v57 = vshrl.u32 %v17902_v26, 16  ;;  %vm21129_vm12 = vcmask 1045504  }
 0x1e2   : > { %v4194_v22 = vsel %vm661_vm8, %v4190_v12, %v4160_v44  ;;  %v4158_v27 = vpop.permute.xlu0 %4157  ;;  %4612 = vmatpush1.bf16.msra.mxu1 %v17916_v62  ;;  %v1846_v20 = vpop.f32.mrb[12].mxu1  ;;  %v5792_v35 = vrot.slane %v5790_v15, 1  ;;  %v5828_v47 = vshll.u32 %v17902_v26, 16  ;;  %v5525_v26 = vsel %vm21112_vm0, %v5523_v9, %v5524_v2 }
 0x1e3   : > { %v4203_v31 = vrot.slane %v4194_v22, 2  ;;  %v4192_v18 = vsel %vm661_vm8, %v4188_v43, %v4158_v27  ;;  %5559 = vrot.lane.b32.xlu1 %v5556_v29, %s15687_s29  ;;  %4613 = vmatprep.subr.bf16.mxu1 %v15686_v0  ;;  %v1860_v53 = vshrl.u32 %v1857_v39, 16  ;;  %v1863_v11 = vshll.u32 %v1857_v39, 16  ;;  %v1848_v8 = vpop.f32.mrb[13].mxu1  ;;  %v1882_v39 = vld [vmem:[#allocation2 + $0x20] sm:$0xe0] }
 0x1e4   : > { %v4202_v60 = vrot.slane %v4192_v18, 2  ;;  %v1847_v25 = vadd.f32 %v17656_v46, %v1846_v20  ;;  %5557 = vrot.lane.b32.xlu0 %v17833_v55, %s15687_s29  ;;  %v1849_v24 = vpop.f32.mrb[14].mxu1  ;;  %v5601_v29 = vor.u32 %v5599_v45, %v5598_v34  ;;  %v5797_v34 = vrot.slane %v5795_v10, 1  ;;  %v17981_v18 = vld [vmem:[%s15782_s26 + $0x310] sm:$0xf8]  }
 0x1e5   : > { %v17930_v6 = vpop.permute.xlu1 %4358  ;;  %v1862_v28 = vrot.slane %v1860_v53, 2  ;;  %v1865_v56 = vrot.slane %v1863_v11, 3  ;;  %v1850_v21 = vadd.f32 %v17656_v46, %v1849_v24  ;;  %v1851_v36 = vpop.f32.mrb[15].mxu1  ;;  %v4201_v43 = vsel %vm21129_vm12, %v4199_v7, %v4200_v52 }
 0x1e6   : > { %v17941_v55 = vpop.permute.xlu0 %4356  ;;  %4614 = vmatpush1.bf16.msra.mxu1 %v15993_v59  ;;  %v4204_v45 = vsel %vm21129_vm12, %v4202_v60, %v4203_v31  ;;  %v1855_v12 = vmax.f32 %v1847_v25, 0.0  ;;  %v5799_v15 = vshrl.u32 %v17854_v32, 16  ;;  %v5822_v7 = vrot.slane %v5820_v41, 6 }
 0x1e7   : > { %5576 = vrot.lane.b32.xlu1 %v5573_v61, %s15694_s23  ;;  %5296 = vmatprep.subr.bf16.mxu1 %v15686_v0  ;;  %v1866_v58 = vor.u32 %v1865_v56, %v1862_v28  ;;  %v1856_v44 = vmax.f32 %v1850_v21, 0.0  ;;  %v5827_v40 = vrot.slane %v5825_v57, 5  ;;  %v5830_v32 = vrot.slane %v5828_v47, 6 }
 0x1e8   : > { %12957 = vmatprep.mubr.msk.bf16.mxu0 %vm21130_vm13, %v4204_v45  ;;  %5574 = vrot.lane.b32.xlu0 %v5571_v5, %s15694_s23  ;;  %v5602_v48 = vsel %vm3601_vm2, %v17891_v49, %v5601_v29  ;;  %v5793_v1 = vor.u32 %v5792_v35, %v5788_v63  ;;  %v5823_v29 = vor.u32 %v5822_v7, %v5819_v4  ;;  %v5864_v36 = vshll.u32 %v17981_v18, 16 }
 0x1e9   : > { %4246 = vmatmul.mubr.bf16.vlgmr.msra.gmra.mrb[40].mxu0 %v4201_v43  ;;  %v17956_v10 = vpop.permute.xlu1 %4389  ;;  %v1883_v5 = vsel %vm17936_vm15, %v1866_v58, %v1882_v39  ;;  %v1858_v22 = vpack.c.bf16 %v1856_v44, %v1855_v12  ;;  %vm21103_vm15 = vcmask 254976   ;;  %v5831_v38 = vor.u32 %v5830_v32, %v5827_v40  ;;  %v14701_v43 = vld [vmem:[%s15782_s26 + $0x1d8] sm:$0xf8]   ;;  %v14713_v40 = vld [vmem:[%s15782_s26 + $0x304] sm:$0xf8]  }
 0x1ea   : > { %4945 = vmatpush1.bf16.msra.mxu0 %v17647_v3  ;;  %12958 = vmatprep.mubr.msk.bf16.mxu0 %vm21130_vm13, %v4203_v31  ;;  %v17968_v27 = vpop.permute.xlu0 %4387  ;;  %1884 = vst [vmem:[#allocation2 + $0x20] sm:$0xe0] %v1883_v5  ;;  %v2174_v9 = vpop.f32.mrb[16].mxu0  ;;  %v5594_v3 = vor.u32 %v5592_v42, %v17891_v49  ;;  %v17978_v31 = vld [vmem:[%s15782_s26 + $0x318] sm:$0xff]   ;;  %v5801_v49 = vor.u32 %v5799_v15, %v5797_v34  ;;  %vm21131_vm12 = vsmask.f32 5376 }
 0x1eb   : > { %4946 = vmatprep.subr.bf16.mxu0 %v15686_v0  ;;  %5528 = vrot.lane.b32.xlu1 %v5524_v2, %s15692_s21  ;;  %v1868_v20 = vshrl.u32 %v1858_v22, 16  ;;  %v1871_v61 = vshll.u32 %v1858_v22, 16  ;;  %v2175_v53 = vadd.f32 %v17656_v46, %v2174_v9  ;;  %v2176_v11 = vpop.f32.mrb[17].mxu0  ;;  %v14716_v2 = vld [vmem:[%s15782_s26 + $0x4c] sm:$0xfe]   ;;  %v5869_v21 = vshll.u32 %v17978_v31, 16 }
 0x1ec   : > { %5526 = vrot.lane.b32.xlu0 %v5525_v26, %s15692_s21  ;;  %v2177_v60 = vpop.f32.mrb[18].mxu0  ;;  %v14717_v42 = vld [vmem:[%s15782_s26 + $0x54] sm:$0x3f]   ;;  %v5925_v35 = vshll.u32 %v14716_v2, 16  ;;  %vm21102_vm13 = vcmask 261122   ;;  %v5862_v44 = vshrl.u32 %v17981_v18, 16 }
 0x1ed   : > { %v17988_v25 = vpop.permute.xlu1 %4403  ;;  %v1870_v8 = vrot.slane %v1868_v20, 2  ;;  %v1873_v24 = vrot.slane %v1871_v61, 3  ;;  %v2178_v17 = vadd.f32 %v17656_v46, %v2177_v60  ;;  %v2179_v41 = vpop.f32.mrb[19].mxu0  ;;  %v2189_v37 = vmax.f32 %v2175_v53, 0.0  ;;  %v14712_v26 = vld [vmem:[%s15782_s26 + $0x30c] sm:$0xff]   ;;  %v14721_v22 = vld [vmem:[%s15782_s26 + $0x2bc] sm:$0xff]  }
 0x1ee   : > { %4947 = vmatpush1.bf16.msra.mxu0 %v17668_v19  ;;  %v17995_v28 = vpop.permute.xlu0 %4401  ;;  %v5798_v19 = vsel %vm464_vm1, %v5793_v1, %v5797_v34  ;;  %v5930_v34 = vshrl.u32 %v14717_v42, 16  ;;  %v5933_v47 = vshll.u32 %v14717_v42, 16  ;;  %v5871_v15 = vrot.slane %v5869_v21, 1  ;;  %v14722_v32 = vld [vmem:[%s15782_s26 + $0x2c4] sm:$0x1f]  }
 0x1ef   : > { %4948 = vmatprep.subr.bf16.mxu0 %v15686_v0  ;;  %5605 = vrot.lane.b32.xlu1 %v5602_v48, %s15689_s16  ;;  %v1874_v56 = vor.u32 %v1873_v24, %v1870_v8  ;;  %v2190_v63 = vmax.f32 %v2178_v17, 0.0  ;;  %v5873_v4 = vshrl.u32 %v17978_v31, 16  ;;  %v5866_v5 = vrot.slane %v5864_v36, 1  ;;  %v14720_v60 = vld [vmem:[%s15782_s26 + $0x60] sm:$0x7f]  }
 0x1f0   : > { %5603 = vrot.lane.b32.xlu0 %v5594_v3, %s15689_s16  ;;  %v5927_v3 = vrot.slane %v5925_v35, 7  ;;  %v5932_v31 = vrot.slane %v5930_v34, 6  ;;  %v5935_v18 = vrot.slane %v5933_v47, 7  ;;  %v4541_v1 = vsel %vm622_vm5, %v14701_v43, %v17941_v55 }
 0x1f1   : > { %4254 = vmatmul.mubr.bf16.gmra.mrb[44].mxu0 %v4200_v52  ;;  %v18002_v46 = vpop.permute.xlu1 %4432  ;;  %v1875_v57 = vsel %vm21131_vm12, %v1866_v58, %v1874_v56  ;;  %1887 = vst.msk [vmem:[#allocation2 + $0x30] sm:$0x3] %vm21103_vm15, %v1874_v56  ;;  %v18009_v45 = vpack.c.bf16 %v2190_v63, %v2189_v37  ;;  %v5922_v52 = vshrl.u32 %v14716_v2, 16  ;;  %v14700_v58 = vld [vmem:[%s15782_s26 + $0x1e0] sm:$0xff]   ;;  %vm21132_vm12 = vsmask.f32 2304 }
 0x1f2   : > { %4949 = vmatpush1.bf16.msra.mxu0 %v17696_v51  ;;  %v4431_v50 = vpop.permute.xlu0 %4430  ;;  %1885 = vst.msk [vmem:[#allocation2 + $0x28] sm:$0xff] %vm661_vm8, %v1875_v57  ;;  %v5832_v51 = vsel %vm21132_vm12, %v5823_v29, %v5831_v38  ;;  %v5867_v61 = vor.u32 %v5866_v5, %v5862_v44  ;;  %v5875_v11 = vor.u32 %v5873_v4, %v5871_v15  ;;  %v14719_v2 = vld [vmem:[%s15782_s26 + $0x58] sm:$0xfc]   ;;  %v5891_v24 = vshrl.u32 %v14721_v22, 16 }
 0x1f3   : > { %4950 = vmatprep.subr.bf16.mxu0 %v15686_v0  ;;  %5804 = vrot.lane.b32.xlu1 %v5801_v49, %s15691_s20  ;;  %v2198_v12 = vrot.slane %v18009_v45, 6  ;;  %v5924_v9 = vrot.slane %v5922_v52, 6  ;;  %v5936_v8 = vor.u32 %v5935_v18, %v5932_v31  ;;  %v5894_v17 = vshll.u32 %v14721_v22, 16  ;;  %v14723_v31 = vld [vmem:[%s15782_s26 + $0x8] sm:$0xff]   ;;  %v14724_v18 = vld [vmem:[%s15782_s26] sm:$0xf8]  }
 0x1f4   : > { %5802 = vrot.lane.b32.xlu0 %v5798_v19, %s15691_s20  ;;  %v5899_v41 = vshrl.u32 %v14722_v32, 16  ;;  %v5902_v56 = vshll.u32 %v14722_v32, 16  ;;  %v5953_v38 = vrot.slane %v14720_v60, 7  ;;  %v5893_v19 = vrot.slane %v5891_v24, 5  ;;  %v14726_v45 = vld [vmem:[%s15782_s26 + $0x270] sm:$0xfe]  }
 0x1f5   : > { %v4478_v39 = vpop.permute.xlu1 %4477  ;;  %2204 = vst.msk [vmem:[#allocation2 + $0x30] sm:$0xfc] %vm21102_vm13, %v2198_v12  ;;  %v5928_v48 = vor.u32 %v5927_v3, %v5924_v9  ;;  %v5896_v21 = vrot.slane %v5894_v17, 6  ;;  %vm21133_vm12 = vcmask 1040384   ;;  %vm21134_vm13 = vcmask 1044480  }
 0x1f6   : > { %4951 = vmatpush1.bf16.msra.mxu0 %v17722_v30  ;;  %v4476_v7 = vpop.permute.xlu0 %4475  ;;  %v4544_v30 = vsel %vm622_vm5, %v14700_v58, %v17930_v6  ;;  %v5901_v36 = vrot.slane %v5899_v41, 5  ;;  %v5904_v35 = vrot.slane %v5902_v56, 6  ;;  %vm21135_vm15 = vcmask 424960  }
 0x1f7   : > { %4952 = vmatprep.subr.bf16.mxu0 %v15686_v0  ;;  %5835 = vrot.lane.b32.xlu1 %v5832_v51, %s15690_s19  ;;  %v4548_v42 = vsel %vm629_vm4, %v4544_v30, %v17956_v10  ;;  %v5897_v4 = vor.u32 %v5896_v21, %v5893_v19  ;;  %vm21138_vm3 = vmmov %vm21135_vm15  ;;  %v18102_v30 = vld [vmem:[%s21077_s2] ss:$0 sm:$0xff]  ;;  %v18144_v19 = vld [vmem:[%s21076_s1 + $0x18] sm:$0xff]  }
 0x1f8   : > { %5833 = vrot.lane.b32.xlu0 %v5823_v29, %s15690_s19  ;;  %v4552_v6 = vsel %vm634_vm6, %v4548_v42, %v17988_v25  ;;  %v5872_v29 = vsel %vm464_vm1, %v5867_v61, %v5871_v15  ;;  %v5905_v5 = vor.u32 %v5904_v35, %v5901_v36  ;;  %v18111_v42 = vld [vmem:[%s21076_s1 + $0x8] sm:$0xff]  }
 0x1f9   : > { %v4507_v20 = vpop.permute.xlu1 %4506  ;;  %v4556_v10 = vsel %vm639_vm9, %v4552_v6, %v18002_v46  ;;  %v5937_v46 = vsel %vm21104_vm14, %v5928_v48, %v5936_v8  ;;  %vm21136_vm14 = vmmov %vm21134_vm13 }
 0x1fa   : > { %4953 = vmatpush1.bf16.msra.mxu0 %v17747_v13  ;;  %v4505_v53 = vpop.permute.xlu0 %4504  ;;  %v4546_v13 = vsel %vm629_vm4, %v4541_v1, %v17968_v27 }
 0x1fb   : > { %4954 = vmatprep.subr.bf16.mxu0 %v15686_v0  ;;  %5849 = vrot.lane.b32.xlu1 %v14712_v26, %s15688_s30  ;;  %v4550_v55 = vsel %vm634_vm6, %v4546_v13, %v17995_v28  ;;  %v5952_v28 = vrot.slane %v14719_v2, 7  ;;  %v4566_v34 = vsel %vm656_vm7, %v4476_v7, %v4505_v53 }
 0x1fc   : > { %5847 = vrot.lane.b32.xlu0 %v14713_v40, %s15688_s30  ;;  %v4554_v37 = vsel %vm639_vm9, %v4550_v55, %v4431_v50  ;;  %v14718_v40 = vld [vmem:[%s15782_s26 + $0x258] sm:$0xff]  }
 0x1fd   : > { %v4464_v49 = vpop.permute.xlu1 %4463 }
 0x1fe   : > { %4955 = vmatpush1.bf16.msra.mxu0 %v17771_v23  ;;  %v4560_v27 = vsel %vm644_vm10, %v4556_v10, %v4464_v49  ;;  %v4462_v25 = vpop.permute.xlu0 %4461  ;;  %v4568_v23 = vsel %vm656_vm7, %v4478_v39, %v4507_v20  ;;  %v18092_v20 = vld [vmem:[%s21076_s1] sm:$0xff]  }
 0x1ff   : > { %v4558_v63 = vsel %vm644_vm10, %v4554_v37, %v4462_v25  ;;  %4956 = vmatprep.subr.bf16.mxu0 %v15686_v0  ;;  %5878 = vrot.lane.b32.xlu1 %v5875_v11, %s15693_s22  ;;  %v18064_v57 = vsel %vm649_vm11, %v4560_v27, %v4478_v39 }
 0x200   : > { %5876 = vrot.lane.b32.xlu0 %v5872_v29, %s15693_s22  ;;  %v4562_v50 = vsel %vm649_vm11, %v4558_v63, %v4476_v7  ;;  %v4578_v43 = vrot.slane %v18064_v57, 3  ;;  %v18126_v29 = vld [vmem:[%s21076_s1 + $0x10] sm:$0xff]  }
 0x201   : > { %v4538_v52 = vpop.permute.xlu1 %4537  ;;  %v4577_v39 = vrot.slane %v4562_v50, 3 }
 0x202   : > { %4957 = vmatpush1.bf16.msra.mxu0 %v17791_v14  ;;  %v4572_v47 = vsel %vm661_vm8, %v4568_v23, %v4538_v52  ;;  %v4536_v58 = vpop.permute.xlu0 %4535  ;;  %v5954_v14 = vsel %vm21133_vm12, %v5952_v28, %v5953_v38  ;;  %vm21137_vm12 = vsmask.f32 2304 }
 0x203   : > { %v4581_v51 = vrot.slane %v4572_v47, 3  ;;  %v4570_v44 = vsel %vm661_vm8, %v4566_v34, %v4536_v58  ;;  %4958 = vmatprep.subr.bf16.mxu0 %v15686_v0  ;;  %5940 = vrot.lane.b32.xlu1 %v5937_v46, %s15687_s29  ;;  %v4579_v9 = vsel %vm21136_vm14, %v4577_v39, %v4578_v43  ;;  %v5906_v32 = vsel %vm21137_vm12, %v5897_v4, %v5905_v5  ;;  %vm21139_vm14 = vmmov %vm21138_vm3 }
 0x204   : > { %v4580_v26 = vrot.slane %v4570_v44, 3  ;;  %5938 = vrot.lane.b32.xlu0 %v5928_v48, %s15687_s29  ;;  %vm21108_vm12 = vcmask 256000  }
 0x205   : > { %v4762_v15 = vpop.permute.xlu1 %4761 }
 0x206   : > { %4959 = vmatpush1.bf16.msra.mxu0 %v17818_v16  ;;  %v4745_v22 = vpop.permute.xlu0 %4744  ;;  %v4582_v7 = vsel %vm21134_vm13, %v4580_v26, %v4581_v51  ;;  %v18165_v26 = vld [vmem:[%s21076_s1 + $0x20] sm:$0xff]  }
 0x207   : > { %12977 = vmatprep.mubr.msk.bf16.mxu1 %vm21135_vm15, %v4582_v7  ;;  %4960 = vmatprep.subr.bf16.mxu0 %v15686_v0  ;;  %vm21106_vm15 = vcmask 260096  }
 0x208   : > { %5957 = vrot.lane.b32.xlu1 %v5954_v14, %s15694_s23  ;;  %5955 = vrot.lane.b32.xlu0 %v5952_v28, %s15694_s23 }
 0x209   : > { %4624 = vmatmul.mubr.bf16.vlgmr.msra.gmra.mrb[40].mxu1 %v4579_v9  ;;  %v4805_v3 = vpop.permute.xlu1 %4804 }
 0x20a   : > { %4961 = vmatpush1.bf16.msra.mxu0 %v17843_v33  ;;  %12978 = vmatprep.mubr.msk.bf16.mxu1 %vm21138_vm3, %v4581_v51  ;;  %v4776_v16 = vpop.permute.xlu0 %4775  ;;  %v4906_v33 = vsel %vm622_vm5, %v14718_v40, %v4745_v22  ;;  %vm21107_vm3 = vsmask.f32 6400 }
 0x20b   : > { %5297 = vmatpush1.bf16.msra.mxu1 %v18092_v20  ;;  %4962 = vmatprep.subr.bf16.mxu0 %v15686_v0  ;;  %v2509_v61 = vpop.f32.mrb[16].mxu1  ;;  %v4911_v24 = vsel %vm629_vm4, %v4906_v33, %v4762_v15  ;;  %vm18155_vm13 = vmand %vm21106_vm15, %vm21107_vm3  ;;  %v18175_v33 = vld [vmem:[%s21076_s1 + $0x28] sm:$0xff]   ;;  %vm2551_vm15 = vsmask.f32 7962 }
 0x20c   : > { %5909 = vrot.lane.b32.xlu1 %v5906_v32, %s15692_s21  ;;  %5907 = vrot.lane.b32.xlu0 %v5897_v4, %s15692_s21  ;;  %v2510_v53 = vadd.f32 %v18102_v30, %v2509_v61  ;;  %v2511_v11 = vpop.f32.mrb[17].mxu1  ;;  %v2208_v61 = vld [vmem:[#allocation2 + $0x38] sm:$0x7f] }
 0x20d   : > { %5298 = vmatprep.subr.bf16.mxu1 %v15686_v0  ;;  %v4870_v48 = vpop.permute.xlu1 %4869  ;;  %v2512_v2 = vpop.f32.mrb[18].mxu1 }
 0x20e   : > { %4963 = vmatpush1.bf16.msra.mxu0 %v17882_v54  ;;  %v4853_v60 = vpop.permute.xlu0 %4852  ;;  %v2513_v1 = vadd.f32 %v18102_v30, %v2512_v2  ;;  %v2514_v8 = vpop.f32.mrb[19].mxu1  ;;  %v4915_v54 = vsel %vm634_vm6, %v4911_v24, %v4776_v16  ;;  %v2524_v13 = vmax.f32 %v2510_v53, 0.0  ;;  %v18189_v24 = vld [vmem:[%s21076_s1 + $0x30] sm:$0xff]  }
 0x20f   : > { %5299 = vmatpush1.bf16.msra.mxu1 %v18111_v42  ;;  %4964 = vmatprep.subr.bf16.mxu0 %v15686_v0  ;;  %v4933_v17 = vsel %vm656_vm7, %v4853_v60, %v4870_v48  ;;  %v4919_v56 = vsel %vm639_vm9, %v4915_v54, %v4805_v3 }
 0x210   : > { %5971 = vrot.lane.b32.xlu1 %v14723_v31, %s15689_s16  ;;  %5969 = vrot.lane.b32.xlu0 %v14724_v18, %s15689_s16  ;;  %v2525_v6 = vmax.f32 %v2513_v1, 0.0 }
 0x211   : > { %4632 = vmatmul.mubr.bf16.gmra.mrb[44].mxu1 %v4578_v43  ;;  %5300 = vmatprep.subr.bf16.mxu1 %v15686_v0  ;;  %v4901_v41 = vpop.permute.xlu1 %4900 }
 0x212   : > { %4965 = vmatpush1.bf16.msra.mxu0 %v17916_v62  ;;  %v4937_v55 = vsel %vm661_vm8, %v4933_v17, %v4901_v41  ;;  %v4822_v10 = vpop.permute.xlu0 %4821  ;;  %v2528_v49 = vpack.c.bf16 %v2525_v6, %v2524_v13  ;;  %v14725_v13 = vld [vmem:[%s15782_s26 + $0x278] sm:$0x3f]  }
 0x213   : > { %5301 = vmatpush1.bf16.msra.mxu1 %v18126_v29  ;;  %4966 = vmatprep.subr.bf16.mxu0 %v15686_v0  ;;  %v2517_v37 = vpop.f32.mrb[20].mxu1  ;;  %v4923_v62 = vsel %vm644_vm10, %v4919_v56, %v4822_v10  ;;  %v18203_v17 = vld [vmem:[%s21076_s1 + $0x38] sm:$0xff]  }
 0x214   : > { %12997 = vmatprep.mubr.msk.bf16.mxu0 %vm21139_vm14, %v4937_v55  ;;  %5302 = vmatprep.subr.bf16.mxu1 %v15686_v0  ;;  %v2518_v27 = vadd.f32 %v18102_v30, %v2517_v37  ;;  %v2519_v25 = vpop.f32.mrb[21].mxu1  ;;  %v2531_v36 = vshrl.u32 %v2528_v49, 16  ;;  %v2534_v23 = vshll.u32 %v2528_v49, 16  ;;  %v4927_v57 = vsel %vm649_vm11, %v4923_v62, %v4853_v60  ;;  %v18221_v37 = vld [vmem:[%s21076_s1 + $0x40] sm:$0xff]   ;;  %v18224_v62 = vld [vmem:[#allocation2 + $0x30] sm:$0x3] }
 0x215   : > { %v18135_v63 = vpop.permute.xlu1 %5088  ;;  %v2520_v28 = vpop.f32.mrb[22].mxu1  ;;  %vm21142_vm14 = vcmask 1041408   ;;  %v18228_v25 = vld [vmem:[#allocation2 + $0x8] sm:$0x1f] }
 0x216   : > { %4967 = vmatpush1.bf16.msra.mxu0 %v15993_v59  ;;  %v18138_v38 = vpop.permute.xlu0 %5086  ;;  %v2521_v46 = vadd.f32 %v18102_v30, %v2520_v28  ;;  %v2522_v21 = vpop.f32.mrb[23].mxu1  ;;  %v2526_v52 = vmax.f32 %v2518_v27, 0.0  ;;  %v2533_v4 = vrot.slane %v2531_v36, 1  ;;  %v2536_v5 = vrot.slane %v2534_v23, 2  ;;  %v18226_v27 = vld [vmem:[#allocation2] sm:$0xff] }
 0x217   : > { %5303 = vmatpush1.bf16.msra.mxu1 %v18144_v19  ;;  %5659 = vmatprep.subr.bf16.mxu0 %v15686_v0  ;;  %v5249_v49 = vsel %vm622_vm5, %v14725_v13, %v18135_v63  ;;  %v5246_v56 = vsel %vm622_vm5, %v14726_v45, %v18138_v38  ;;  %v14727_v45 = vld [vmem:[%s15782_s26 + $0x260] sm:$0x1f]  }
 0x218   : > { %v2182_v50 = vpop.f32.mrb[20].mxu0  ;;  %5304 = vmatprep.subr.bf16.mxu1 %v15686_v0  ;;  %v2527_v35 = vmax.f32 %v2521_v46, 0.0  ;;  %v2537_v53 = vor.u32 %v2536_v5, %v2533_v4 }
 0x219   : > { %4977 = vmatmul.mubr.bf16.vlgmr.msra.gmra.mrb[48].mxu0 %v4927_v57  ;;  %v2183_v34 = vadd.f32 %v18102_v30, %v2182_v50  ;;  %v2184_v47 = vpop.f32.mrb[21].mxu0  ;;  %v18151_v58 = vpop.permute.xlu1 %5105 }
 0x21a   : > { %v18159_v44 = vpop.permute.xlu0 %5103  ;;  %v2185_v43 = vpop.f32.mrb[22].mxu0  ;;  %5660 = vmatpush1.bf16.msra.mxu0 %v18092_v20  ;;  %v2529_v39 = vpack.c.bf16 %v2527_v35, %v2526_v52  ;;  %v5253_v63 = vsel %vm629_vm4, %v5249_v49, %v18151_v58  ;;  %v6580_v35 = vld [vmem:[#allocation2 + $0x30] sm:$0xfc]  ;;  %v18246_v47 = vld [vmem:[%s21076_s1 + $0x48] sm:$0xff]  }
 0x21b   : > { %5305 = vmatpush1.bf16.msra.mxu1 %v18165_v26  ;;  %v2186_v15 = vadd.f32 %v18102_v30, %v2185_v43  ;;  %v2187_v14 = vpop.f32.mrb[23].mxu0  ;;  %5661 = vmatprep.subr.bf16.mxu0 %v15686_v0  ;;  %v2191_v22 = vmax.f32 %v2183_v34, 0.0  ;;  %v5251_v28 = vsel %vm629_vm4, %v5246_v56, %v18159_v44  ;;  %v6571_v34 = vld [vmem:[#allocation2 + $0x28] sm:$0xff]  ;;  %v18251_v44 = vld [vmem:[#allocation2 + $0x20] sm:$0xe0]  ;;  %v6608_v43 = vshrl.u32 %v18224_v62, 16 }
 0x21c   : > { %5306 = vmatprep.subr.bf16.mxu1 %v15686_v0  ;;  %v2539_v7 = vshrl.u32 %v2529_v39, 16  ;;  %v2542_v40 = vshll.u32 %v2529_v39, 16  ;;  %v6621_v39 = vshrl.u32 %v18226_v27, 16  ;;  %v6671_v5 = vshrl.u32 %v6580_v35, 16 }
 0x21d   : > { %v2192_v9 = vmax.f32 %v2186_v15, 0.0  ;;  %v5120_v3 = vpop.permute.xlu1 %5119  ;;  %v6628_v15 = vshrl.u32 %v18228_v25, 16 }
 0x21e   : > { %v5118_v32 = vpop.permute.xlu0 %5117  ;;  %5662 = vmatpush1.bf16.msra.mxu0 %v18111_v42  ;;  %v2541_v16 = vrot.slane %v2539_v7, 1  ;;  %v2544_v31 = vrot.slane %v2542_v40, 2  ;;  %v5257_v21 = vsel %vm634_vm6, %v5253_v63, %v5120_v3  ;;  %v6611_v7 = vshll.u32 %v18224_v62, 16 }
 0x21f   : > { %v2194_v18 = vpack.c.bf16 %v2192_v9, %v2191_v22  ;;  %5307 = vmatpush1.bf16.msra.mxu1 %v18175_v33  ;;  %5663 = vmatprep.subr.bf16.mxu0 %v15686_v0  ;;  %v5255_v36 = vsel %vm634_vm6, %v5251_v28, %v5118_v32  ;;  %v6674_v22 = vshll.u32 %v6580_v35, 16 }
 0x220   : > { %5308 = vmatprep.subr.bf16.mxu1 %v15686_v0  ;;  %v2545_v11 = vor.u32 %v2544_v31, %v2541_v16  ;;  %v18270_v31 = vld [vmem:[%s21076_s1 + $0x50] sm:$0xff]  }
 0x221   : > { %v2199_v48 = vrot.slane %v2194_v18, 6  ;;  %v5149_v2 = vpop.permute.xlu1 %5148  ;;  %v6676_v62 = vrot.slane %v6674_v22, 2  ;;  %v6630_v22 = vrot.slane %v6628_v15, 7  ;;  %v6631_v15 = vshll.u32 %v18228_v25, 16 }
 0x222   : > { %v5147_v60 = vpop.permute.xlu0 %5146  ;;  %5664 = vmatpush1.bf16.msra.mxu0 %v18126_v29  ;;  %v2546_v1 = vsel %vm21107_vm3, %v2537_v53, %v2545_v11  ;;  %2558 = vst.msk [vmem:[#allocation2 + $0x48] sm:$0x7] %vm21108_vm12, %v2545_v11  ;;  %v5261_v57 = vsel %vm639_vm9, %v5257_v21, %v5149_v2  ;;  %v6602_v11 = vshll.u32 %v6571_v34, 16  ;;  %v6591_v2 = vshrl.u32 %v18251_v44, 16  ;;  %vm18338_vm12 = vmand %vm661_vm8, %vm464_vm1 }
 0x223   : > { %v2200_v8 = vsel %vm21142_vm14, %v2198_v12, %v2199_v48  ;;  %5309 = vmatpush1.bf16.msra.mxu1 %v18189_v24  ;;  %5665 = vmatprep.subr.bf16.mxu0 %v15686_v0  ;;  %2556 = vst.msk [vmem:[#allocation2 + $0x40] sm:$0xff] %vm661_vm8, %v2546_v1  ;;  %vm21110_vm14 = vcmask 261126   ;;  %v5259_v50 = vsel %vm639_vm9, %v5255_v36, %v5147_v60  ;;  %v6594_v60 = vshll.u32 %v18251_v44, 16  ;;  %v18278_v1 = vld [vmem:[#allocation2 + $0x8] sm:$0xf0] }
 0x224   : > { %v2209_v54 = vsel %vm18155_vm13, %v2200_v8, %v2208_v61  ;;  %5310 = vmatprep.subr.bf16.mxu1 %v15686_v0  ;;  %vm18209_vm13 = vmand %vm21110_vm14, %vm2551_vm15  ;;  %vm5726_vm15 = vsmask.f32 3328  ;;  %v6604_v28 = vrot.slane %v6602_v11, 5  ;;  %v6169_v35 = vshll.u32 %v18278_v1, 16 }
 0x225   : > { %2210 = vst [vmem:[#allocation2 + $0x38] sm:$0x7f] %v2209_v54  ;;  %v5197_v12 = vpop.permute.xlu1 %5196  ;;  %v6593_v44 = vrot.slane %v6591_v2, 4 }
 0x226   : > { %v5195_v6 = vpop.permute.xlu0 %5194  ;;  %5666 = vmatpush1.bf16.msra.mxu0 %v18144_v19 }
 0x227   : > { %5311 = vmatpush1.bf16.msra.mxu1 %v18203_v17  ;;  %5667 = vmatprep.subr.bf16.mxu0 %v15686_v0 }
 0x228   : > { %5312 = vmatprep.subr.bf16.mxu1 %v15686_v0 }
 0x229   : > { %v5214_v41 = vpop.permute.xlu1 %5213 }
 0x22a   : > { %v5212_v10 = vpop.permute.xlu0 %5211  ;;  %5668 = vmatpush1.bf16.msra.mxu0 %v18165_v26  ;;  %v5273_v14 = vsel %vm656_vm7, %v5197_v12, %v5214_v41  ;;  %v6610_v41 = vrot.slane %v6608_v43, 4  ;;  %v6596_v43 = vrot.slane %v6594_v60, 5 }
 0x22b   : > { %5313 = vmatpush1.bf16.msra.mxu1 %v18221_v37  ;;  %5669 = vmatprep.subr.bf16.mxu0 %v15686_v0  ;;  %v5271_v40 = vsel %vm656_vm7, %v5195_v6, %v5212_v10 }
 0x22c   : > { %v2553_v38 = vld [vmem:[#allocation2 + $0x38] sm:$0xc0]  ;;  %5314 = vmatprep.subr.bf16.mxu1 %v15686_v0  ;;  %v6597_v60 = vor.u32 %v6596_v43, %v6593_v44 }
 0x22d   : > { %v2554_v46 = vsel %vm18209_vm13, %v2537_v53, %v2553_v38  ;;  %v5166_v23 = vpop.permute.xlu1 %5165  ;;  %v6599_v53 = vshrl.u32 %v6571_v34, 16  ;;  %vm21145_vm13 = vcmask 424960   ;;  %v6613_v38 = vrot.slane %v6611_v7, 5 }
 0x22e   : > { %2555 = vst [vmem:[#allocation2 + $0x38] sm:$0xc0] %v2554_v46  ;;  %v5164_v52 = vpop.permute.xlu0 %5163  ;;  %5670 = vmatpush1.bf16.msra.mxu0 %v18175_v33  ;;  %v5265_v58 = vsel %vm644_vm10, %v5261_v57, %v5166_v23  ;;  %v6146_v46 = vld [vmem:[#allocation2 + $0x10] sm:$0xff] }
 0x22f   : > { %5315 = vmatpush1.bf16.msra.mxu1 %v18246_v47  ;;  %v5263_v51 = vsel %vm644_vm10, %v5259_v50, %v5164_v52  ;;  %5671 = vmatprep.subr.bf16.mxu0 %v15686_v0  ;;  %v18262_v9 = vsel %vm649_vm11, %v5265_v58, %v5197_v12  ;;  %v6601_v63 = vrot.slane %v6599_v53, 4  ;;  %v18291_v50 = vrot.slane %v6621_v39, 7 }
 0x230   : > { %5316 = vmatprep.subr.bf16.mxu1 %v15686_v0  ;;  %v5267_v3 = vsel %vm649_vm11, %v5263_v51, %v5195_v6  ;;  %v5283_v8 = vrot.slane %v18262_v9, 1  ;;  %v6673_v6 = vrot.slane %v6671_v5, 1  ;;  %v6166_v52 = vshrl.u32 %v18278_v1, 16 }
 0x231   : > { %v5243_v4 = vpop.permute.xlu1 %5242  ;;  %v5282_v54 = vrot.slane %v5267_v3, 1  ;;  %v6605_v5 = vor.u32 %v6604_v28, %v6601_v63  ;;  %v6614_v39 = vor.u32 %v6613_v38, %v6610_v41  ;;  %v6177_v53 = vshll.u32 %v6146_v46, 16  ;;  %v18326_v38 = vld [vmem:[#allocation2 + $0x20] sm:$0x3f] }
 0x232   : > { %v5277_v32 = vsel %vm661_vm8, %v5273_v14, %v5243_v4  ;;  %v5241_v16 = vpop.permute.xlu0 %5240  ;;  %5672 = vmatpush1.bf16.msra.mxu0 %v18189_v24  ;;  %v6677_v51 = vor.u32 %v6676_v62, %v6673_v6 }
 0x233   : > { %5317 = vmatpush1.bf16.msra.mxu1 %v18270_v31  ;;  %v5286_v18 = vrot.slane %v5277_v32, 1  ;;  %v5275_v61 = vsel %vm661_vm8, %v5271_v40, %v5241_v16  ;;  %5673 = vmatprep.subr.bf16.mxu0 %v15686_v0  ;;  %v5284_v23 = vsel %vm21112_vm0, %v5282_v54, %v5283_v8  ;;  %v6624_v32 = vshll.u32 %v18226_v27, 16 }
 0x234   : > { %v5285_v48 = vrot.slane %v5275_v61, 1  ;;  %5318 = vmatprep.subr.bf16.mxu1 %v15686_v0  ;;  %v6174_v16 = vshrl.u32 %v6146_v46, 16  ;;  %v6168_v27 = vrot.slane %v6166_v52, 4  ;;  %v6615_v54 = vsel %vm5726_vm15, %v6605_v5, %v6614_v39 }
 0x235   : > { %v4764_v13 = vpop.permute.xlu1 %4763  ;;  %v6581_v12 = vld [vmem:[#allocation2 + $0x38] sm:$0x7f]  ;;  %v6606_v6 = vsel %vm5726_vm15, %v6597_v60, %v6605_v5 }
 0x236   : > { %v4747_v55 = vpop.permute.xlu0 %4746  ;;  %v5287_v10 = vsel %vm21112_vm0, %v5285_v48, %v5286_v18  ;;  %v6679_v49 = vshrl.u32 %v6581_v12, 16  ;;  %v6682_v56 = vshll.u32 %v6581_v12, 16  ;;  %5674 = vmatpush1.bf16.msra.mxu0 %v18203_v17  ;;  %v6171_v12 = vrot.slane %v6169_v35, 5 }
 0x237   : > { %5319 = vmatpush1.bf16.msra.mxu1 %v15993_v59  ;;  %13017 = vmatprep.mubr.msk.bf16.mxu1 %vm21145_vm13, %v5287_v10  ;;  %v4909_v14 = vsel %vm622_vm5, %v14727_v45, %v4747_v55  ;;  %v6633_v45 = vor.u32 %v6631_v15, %v6630_v22  ;;  %v6626_v10 = vor.u32 %v6624_v32, %v18291_v50 }
 0x238   : > { %v6681_v21 = vrot.slane %v6679_v49, 1  ;;  %v6684_v36 = vrot.slane %v6682_v56, 2  ;;  %5675 = vmatprep.subr.bf16.mxu0 %v15686_v0  ;;  %6025 = vmatprep.subr.bf16.mxu1 %v15686_v0  ;;  %v6176_v49 = vrot.slane %v6174_v16, 4  ;;  %v6179_v56 = vrot.slane %v6177_v53, 5 }
 0x239   : > { %v4807_v57 = vpop.permute.xlu1 %4806  ;;  %v6172_v9 = vor.u32 %v6171_v12, %v6168_v27  ;;  %v18374_v27 = vld [vmem:[#allocation2 + $0x18] sm:$0x1] }
 0x23a   : > { %5329 = vmatmul.mubr.bf16.vlgmr.msra.gmra.mrb[48].mxu1 %v5284_v23  ;;  %v4778_v34 = vpop.permute.xlu0 %4777  ;;  %v6685_v58 = vor.u32 %v6684_v36, %v6681_v21  ;;  %5676 = vmatpush1.bf16.msra.mxu0 %v18221_v37  ;;  %v6634_v36 = vsel %vm3601_vm2, %v18291_v50, %v6633_v45 }
 0x23b   : > { %13018 = vmatprep.mubr.msk.bf16.mxu1 %vm21145_vm13, %v5286_v18  ;;  %v2857_v4 = vpop.f32.mrb[24].mxu0  ;;  %6026 = vmatpush1.bf16.msra.mxu1 %v18092_v20  ;;  %v4913_v20 = vsel %vm629_vm4, %v4909_v14, %v4764_v13  ;;  %vm21109_vm13 = vcmask 261123  }
 0x23c   : > { %v2858_v7 = vadd.f32 %v18102_v30, %v2857_v4  ;;  %v2859_v40 = vpop.f32.mrb[25].mxu0  ;;  %6689 = vrot.lane.b32.xlu1 %v6685_v58, %s15689_s16  ;;  %v6686_v3 = vsel %vm21107_vm3, %v6677_v51, %v6685_v58  ;;  %5677 = vmatprep.subr.bf16.mxu0 %v15686_v0  ;;  %v4917_v1 = vsel %vm634_vm6, %v4913_v20, %v4778_v34  ;;  %vm21146_vm3 = vcmask 424960   ;;  %v6148_v34 = vld [vmem:[#allocation2 + $0x18] sm:$0xfe]  ;;  %v14728_v20 = vld [vmem:[%s15782_s26 + $0x290] sm:$0x7f]  }
 0x23d   : > { %v2860_v18 = vpop.f32.mrb[26].mxu0  ;;  %6687 = vrot.lane.b32.xlu0 %v6686_v3, %s15689_s16  ;;  %v4872_v61 = vpop.permute.xlu1 %4871  ;;  %6027 = vmatprep.subr.bf16.mxu1 %v15686_v0  ;;  %v4921_v63 = vsel %vm639_vm9, %v4917_v1, %v4807_v57  ;;  %v18345_v58 = vor.u32 %v6179_v56, %v6176_v49  ;;  %v6198_v4 = vrot.slane %v18326_v38, 1  ;;  %v6197_v22 = vrot.slane %v6148_v34, 1  ;;  %v2890_v40 = vld [vmem:[#allocation2 + $0x50] sm:$0xff] }
 0x23e   : > { %v2861_v11 = vadd.f32 %v18102_v30, %v2860_v18  ;;  %v4855_v48 = vpop.permute.xlu0 %4854  ;;  %v2862_v2 = vpop.f32.mrb[27].mxu0  ;;  %5678 = vmatpush1.bf16.msra.mxu0 %v18246_v47  ;;  %v2872_v25 = vmax.f32 %v2858_v7, 0.0 }
 0x23f   : > { %6028 = vmatpush1.bf16.msra.mxu1 %v18111_v42  ;;  %5679 = vmatprep.subr.bf16.mxu0 %v15686_v0  ;;  %v4935_v41 = vsel %vm656_vm7, %v4855_v48, %v4872_v61  ;;  %v6181_v14 = vsel %vm5726_vm15, %v6172_v9, %v18345_v58  ;;  %v6199_v32 = vsel %vm21112_vm0, %v6197_v22, %v6198_v4  ;;  %v14729_v2 = vld [vmem:[%s15782_s26 + $0x288] sm:$0xfc]  }
 0x240   : > { %v2873_v13 = vmax.f32 %v2861_v11, 0.0  ;;  %6618 = vrot.lane.b32.xlu1 %v6615_v54, %s15689_s16  ;;  %6029 = vmatprep.subr.bf16.mxu1 %v15686_v0 }
 0x241   : > { %6616 = vrot.lane.b32.xlu0 %v6606_v6, %s15689_s16  ;;  %v4903_v55 = vpop.permute.xlu1 %4902 }
 0x242   : > { %v2876_v42 = vpack.c.bf16 %v2873_v13, %v2872_v25  ;;  %5337 = vmatmul.mubr.bf16.gmra.mrb[52].mxu1 %v5283_v8  ;;  %v4939_v62 = vsel %vm661_vm8, %v4935_v41, %v4903_v55  ;;  %v4824_v28 = vpop.permute.xlu0 %4823  ;;  %5680 = vmatpush1.bf16.msra.mxu0 %v18270_v31 }
 0x243   : > { %v4925_v46 = vsel %vm644_vm10, %v4921_v63, %v4824_v28  ;;  %v2865_v21 = vpop.f32.mrb[28].mxu0  ;;  %12998 = vmatprep.mubr.msk.bf16.mxu0 %vm21146_vm3, %v4939_v62  ;;  %6030 = vmatpush1.bf16.msra.mxu1 %v18126_v29  ;;  %vm21113_vm3 = vcmask 1042432   ;;  %v6183_v28 = vshrl.u32 %v18374_v27, 16 }
 0x244   : > { %v2881_v8 = vrot.slane %v2876_v42, 5  ;;  %v2866_v23 = vadd.f32 %v18102_v30, %v2865_v21  ;;  %v2867_v57 = vpop.f32.mrb[29].mxu0  ;;  %6637 = vrot.lane.b32.xlu1 %v6634_v36, %s15695_s12  ;;  %v4930_v35 = vsel %vm649_vm11, %v4925_v46, %v4855_v48  ;;  %5681 = vmatprep.subr.bf16.mxu0 %v15686_v0 }
 0x245   : > { %v2868_v50 = vpop.f32.mrb[30].mxu0  ;;  %4985 = vmatmul.mubr.bf16.gmra.mrb[52].mxu0 %v4930_v35  ;;  %6635 = vrot.lane.b32.xlu0 %v6626_v10, %s15695_s12  ;;  %v5452_v29 = vpop.permute.xlu1 %5451 }
 0x246   : > { %2887 = vst.msk [vmem:[#allocation2 + $0x48] sm:$0xf8] %vm21109_vm13, %v2881_v8  ;;  %v2869_v51 = vadd.f32 %v18102_v30, %v2868_v50  ;;  %v5450_v44 = vpop.permute.xlu0 %5449  ;;  %v2870_v43 = vpop.f32.mrb[31].mxu0  ;;  %6031 = vmatprep.subr.bf16.mxu1 %v15686_v0  ;;  %5682 = vmatpush1.bf16.msra.mxu0 %v15993_v59  ;;  %v2874_v5 = vmax.f32 %v2866_v23, 0.0  ;;  %vm3273_vm13 = vsmask.f32 7966 }
 0x247   : > { %6032 = vmatpush1.bf16.msra.mxu1 %v18144_v19  ;;  %v5609_v54 = vsel %vm622_vm5, %v14729_v2, %v5450_v44 }
 0x248   : > { %v2875_v39 = vmax.f32 %v2869_v51, 0.0  ;;  %6191 = vrot.lane.b32.xlu1 %v6181_v14, %s15689_s16  ;;  %6033 = vmatprep.subr.bf16.mxu1 %v15686_v0 }
 0x249   : > { %v5469_v30 = vpop.permute.xlu1 %5468 }
 0x24a   : > { %v2877_v7 = vpack.c.bf16 %v2875_v39, %v2874_v5  ;;  %v5467_v3 = vpop.permute.xlu0 %5466 }
 0x24b   : > { %6034 = vmatpush1.bf16.msra.mxu1 %v18165_v26  ;;  %v5614_v12 = vsel %vm629_vm4, %v5609_v54, %v5467_v3 }
 0x24c   : > { %v2882_v16 = vrot.slane %v2877_v7, 5  ;;  %6200 = vrot.lane.b32.xlu1 %v6199_v32, %s15695_s12  ;;  %6035 = vmatprep.subr.bf16.mxu1 %v15686_v0 }
 0x24d   : > { %v5483_v19 = vpop.permute.xlu1 %5482 }
 0x24e   : > { %v2883_v18 = vsel %vm21113_vm3, %v2881_v8, %v2882_v16  ;;  %v5481_v61 = vpop.permute.xlu0 %5480  ;;  %v6186_v8 = vshll.u32 %v18374_v27, 16 }
 0x24f   : > { %v2891_v15 = vsel %vm18338_vm12, %v2883_v18, %v2890_v40  ;;  %6036 = vmatpush1.bf16.msra.mxu1 %v18175_v33  ;;  %v5612_v33 = vsel %vm622_vm5, %v14728_v20, %v5452_v29  ;;  %v5618_v41 = vsel %vm634_vm6, %v5614_v12, %v5481_v61  ;;  %vm21111_vm12 = vcmask 261127  }
 0x250   : > { %2892 = vst [vmem:[#allocation2 + $0x50] sm:$0xff] %v2891_v15  ;;  %6037 = vmatprep.subr.bf16.mxu1 %v15686_v0  ;;  %v18406_v29 = vrot.slane %v6183_v28, 4  ;;  %vm18412_vm14 = vmand %vm21111_vm12, %vm3273_vm13  ;;  %vm21151_vm13 = vcmask 1045504   ;;  %vm21152_vm12 = vcmask 424960  }
 0x251   : > { %v5512_v26 = vpop.permute.xlu1 %5511  ;;  %vm21153_vm0 = vmmov %vm21151_vm13 }
 0x252   : > { %v5510_v53 = vpop.permute.xlu0 %5509  ;;  %vm21154_vm3 = vmmov %vm21152_vm12 }
 0x253   : > { %6038 = vmatpush1.bf16.msra.mxu1 %v18189_v24  ;;  %v5616_v24 = vsel %vm629_vm4, %v5612_v33, %v5469_v30  ;;  %v5622_v49 = vsel %vm639_vm9, %v5618_v41, %v5510_v53 }
 0x254   : > { %6039 = vmatprep.subr.bf16.mxu1 %v15686_v0  ;;  %v5620_v25 = vsel %vm634_vm6, %v5616_v24, %v5483_v19 }
 0x255   : > { %v5560_v11 = vpop.permute.xlu1 %5559  ;;  %v5624_v55 = vsel %vm639_vm9, %v5620_v25, %v5512_v26  ;;  %v18433_v25 = vld [vmem:[#allocation2 + $0x38] sm:$0x7f] }
 0x256   : > { %v5558_v48 = vpop.permute.xlu0 %5557 }
 0x257   : > { %6040 = vmatpush1.bf16.msra.mxu1 %v18203_v17  ;;  %v18385_v17 = vld [vmem:[%s21077_s2] ss:$0 sm:$0xff]  ;;  %v3275_v19 = vld [vmem:[#allocation2 + $0x50] sm:$0x80] }
 0x258   : > { %6041 = vmatprep.subr.bf16.mxu1 %v15686_v0 }
 0x259   : > { %v5577_v60 = vpop.permute.xlu1 %5576 }
 0x25a   : > { %v5575_v1 = vpop.permute.xlu0 %5574  ;;  %v5636_v23 = vsel %vm656_vm7, %v5560_v11, %v5577_v60 }
 0x25b   : > { %v3233_v45 = vpop.f32.mrb[24].mxu1  ;;  %6042 = vmatpush1.bf16.msra.mxu1 %v18221_v37  ;;  %v5634_v35 = vsel %vm656_vm7, %v5558_v48, %v5575_v1 }
 0x25c   : > { %v3234_v13 = vadd.f32 %v18385_v17, %v3233_v45  ;;  %v3235_v6 = vpop.f32.mrb[25].mxu1  ;;  %6043 = vmatprep.subr.bf16.mxu1 %v15686_v0 }
 0x25d   : > { %v3236_v10 = vpop.f32.mrb[26].mxu1  ;;  %v5529_v37 = vpop.permute.xlu1 %5528 }
 0x25e   : > { %v3237_v56 = vadd.f32 %v18385_v17, %v3236_v10  ;;  %v5628_v42 = vsel %vm644_vm10, %v5624_v55, %v5529_v37  ;;  %v3238_v62 = vpop.f32.mrb[27].mxu1  ;;  %v5527_v63 = vpop.permute.xlu0 %5526  ;;  %v3248_v21 = vmax.f32 %v3234_v13, 0.0 }
 0x25f   : > { %v5626_v46 = vsel %vm644_vm10, %v5622_v49, %v5527_v63  ;;  %6044 = vmatpush1.bf16.msra.mxu1 %v18246_v47  ;;  %v18398_v9 = vsel %vm649_vm11, %v5628_v42, %v5560_v11  ;;  %v6150_v11 = vld [vmem:[#allocation2 + $0x30] sm:$0xfc] }
 0x260   : > { %v3249_v36 = vmax.f32 %v3237_v56, 0.0  ;;  %6045 = vmatprep.subr.bf16.mxu1 %v15686_v0  ;;  %v5630_v57 = vsel %vm649_vm11, %v5626_v46, %v5558_v48  ;;  %v5646_v51 = vrot.slane %v18398_v9, 2  ;;  %v6206_v13 = vrot.slane %v6150_v11, 2  ;;  %v6575_v9 = vld [vmem:[#allocation2 + $0x48] sm:$0xf8] }
 0x261   : > { %v5606_v52 = vpop.permute.xlu1 %5605  ;;  %v5645_v30 = vrot.slane %v5630_v57, 2  ;;  %v6207_v57 = vrot.slane %v18433_v25, 2 }
 0x262   : > { %v3252_v34 = vpack.c.bf16 %v3249_v36, %v3248_v21  ;;  %v5640_v47 = vsel %vm661_vm8, %v5636_v23, %v5606_v52  ;;  %v5604_v50 = vpop.permute.xlu0 %5603  ;;  %v18445_v52 = vld [vmem:[%s21078_s3 + $0x80] sm:$0xff]  }
 0x263   : > { %v5649_v44 = vrot.slane %v5640_v47, 2  ;;  %v5638_v43 = vsel %vm661_vm8, %v5634_v35, %v5604_v50  ;;  %v3241_v14 = vpop.f32.mrb[28].mxu1  ;;  %6046 = vmatpush1.bf16.msra.mxu1 %v18270_v31  ;;  %v6155_v35 = vld [vmem:[#allocation2 + $0x48] sm:$0xf8]  ;;  %v6641_v47 = vrot.slane %v6575_v9, 2 }
 0x264   : > { %v3255_v5 = vshll.u32 %v3252_v34, 16  ;;  %v5648_v22 = vrot.slane %v5638_v43, 2  ;;  %v3242_v7 = vadd.f32 %v18385_v17, %v3241_v14  ;;  %v3243_v40 = vpop.f32.mrb[29].mxu1  ;;  %6047 = vmatprep.subr.bf16.mxu1 %v15686_v0  ;;  %v5647_v0 = vsel %vm21153_vm0, %v5645_v30, %v5646_v51  ;;  %v14730_v50 = vld [vmem:[%s15782_s26 + $0x2a8] sm:$0xff]  }
 0x265   : > { %v3244_v3 = vpop.f32.mrb[30].mxu1  ;;  %v18418_v32 = vpop.permute.xlu1 %5804  ;;  %v3258_v33 = vshrl.u32 %v3252_v34, 16  ;;  %vm21155_vm0 = vcmask 261124   ;;  %v6241_v30 = vrot.slane %v6155_v35, 3 }
 0x266   : > { %v3257_v16 = vrot.slane %v3255_v5, 1  ;;  %v3245_v31 = vadd.f32 %v18385_v17, %v3244_v3  ;;  %v3246_v18 = vpop.f32.mrb[31].mxu1  ;;  %v18421_v61 = vpop.permute.xlu0 %5802  ;;  %v5650_v15 = vsel %vm21151_vm13, %v5648_v22, %v5649_v44  ;;  %v3250_v53 = vmax.f32 %v3242_v7, 0.0 }
 0x267   : > { %6048 = vmatpush1.bf16.msra.mxu1 %v15993_v59  ;;  %13037 = vmatprep.mubr.msk.bf16.mxu0 %vm21152_vm12, %v5650_v15  ;;  %v6188_v59 = vrot.slane %v6186_v8, 5 }
 0x268   : > { %v3276_v26 = vsel %vm18412_vm14, %v3257_v16, %v3275_v19  ;;  %v3251_v20 = vmax.f32 %v3245_v31, 0.0  ;;  %5692 = vmatmul.mubr.bf16.vlgmr.msra.gmra.mrb[56].mxu0 %v5647_v0  ;;  %vm3279_vm14 = vcmask 257024   ;;  %v3260_v6 = vor.u32 %v3258_v33, %v3257_v16  ;;  %14335 = vmatprep.subr.bf16.mxu1 %v18445_v52 }
 0x269   : > { %3277 = vst [vmem:[#allocation2 + $0x50] sm:$0x80] %v3276_v26  ;;  %v18429_v48 = vpop.permute.xlu1 %5835  ;;  %13038 = vmatprep.mubr.msk.bf16.mxu0 %vm21154_vm3, %v5649_v44  ;;  %v14731_v44 = vld [vmem:[%s15782_s26 + $0x2a0] sm:$0xf8]   ;;  %vm21156_vm3 = vmmov %vm21151_vm13  ;;  %v6189_v39 = vor.u32 %v6188_v59, %v18406_v29  ;;  %vm21158_vm13 = vcmask 1044480   ;;  %v5978_v16 = vsel %vm622_vm5, %v14730_v50, %v18418_v32 }
 0x26a   : > { %v3253_v2 = vpack.c.bf16 %v3251_v20, %v3250_v53  ;;  %v5834_v60 = vpop.permute.xlu0 %5833  ;;  %v6208_v14 = vsel %vm21156_vm3, %v6206_v13, %v6207_v57  ;;  %vm21157_vm12 = vmmov %vm21156_vm3  ;;  %v5975_v19 = vsel %vm622_vm5, %v14731_v44, %v18421_v61  ;;  %v5982_v29 = vsel %vm629_vm4, %v5978_v16, %v18429_v48 }
 0x26b   : > { %v3567_v27 = vpop.f32.mrb[32].mxu0  ;;  %v6190_v40 = vsel %vm5726_vm15, %v18345_v58, %v6189_v39  ;;  %v5980_v31 = vsel %vm629_vm4, %v5975_v19, %v5834_v60  ;;  %vm21159_vm4 = vmmov %vm21158_vm13  ;;  %vm21160_vm5 = vcmask 424960   ;;  %vm3942_vm3 = vsmask.f32 7938 }
 0x26c   : > { %v3262_v1 = vshll.u32 %v3253_v2, 16  ;;  %v3568_v54 = vadd.f32 %v18385_v17, %v3567_v27  ;;  %v3569_v24 = vpop.f32.mrb[33].mxu0  ;;  %v3266_v55 = vshrl.u32 %v3253_v2, 16 }
 0x26d   : > { %v3570_v45 = vpop.f32.mrb[34].mxu0  ;;  %v5850_v12 = vpop.permute.xlu1 %5849 }
 0x26e   : > { %v3264_v41 = vrot.slane %v3262_v1, 1  ;;  %v3571_v10 = vadd.f32 %v18385_v17, %v3570_v45  ;;  %v3572_v37 = vpop.f32.mrb[35].mxu0  ;;  %v5848_v49 = vpop.permute.xlu0 %5847  ;;  %v3582_v62 = vmax.f32 %v3568_v54, 0.0  ;;  %v5986_v18 = vsel %vm634_vm6, %v5982_v29, %v5850_v12  ;;  %v14733_v45 = vld [vmem:[%s21078_s3 + $0x88] sm:$0xff]  }
 0x26f   : > { %v5984_v58 = vsel %vm634_vm6, %v5980_v31, %v5848_v49  ;;  %vm21161_vm6 = vmmov %vm21159_vm4 }
 0x270   : > { %v3265_v56 = vsel %vm464_vm1, %v3260_v6, %v3264_v41  ;;  %v3268_v42 = vor.u32 %v3266_v55, %v3264_v41  ;;  %v3583_v63 = vmax.f32 %v3571_v10, 0.0  ;;  %v6576_v28 = vld [vmem:[#allocation2 + $0x50] sm:$0xff]  ;;  %5700 = vmatmul.mubr.bf16.gmra.mrb[60].mxu0 %v5646_v51 }
 0x271   : > { %3278 = vst.msk [vmem:[#allocation2 + $0x58] sm:$0xff] %vm661_vm8, %v3265_v56  ;;  %v5879_v46 = vpop.permute.xlu1 %5878  ;;  %v6642_v21 = vrot.slane %v6576_v28, 2  ;;  %v6242_v36 = vrot.slane %v6576_v28, 3 }
 0x272   : > { %3280 = vst.msk [vmem:[#allocation2 + $0x60] sm:$0xf] %vm3279_vm14, %v3268_v42  ;;  %v18439_v8 = vpack.c.bf16 %v3583_v63, %v3582_v62  ;;  %v5877_v23 = vpop.permute.xlu0 %5876  ;;  %v5990_v15 = vsel %vm639_vm9, %v5986_v18, %v5879_v46 }
 0x273   : > { %6646 = vrot.lane.b32.xlu1 %v6642_v21, %s15696_s25  ;;  %6246 = vrot.lane.b32.xlu0 %v6242_v36, %s15689_s16  ;;  %v6643_v5 = vsel %vm21157_vm12, %v6641_v47, %v6642_v21  ;;  %v6243_v3 = vsel %vm21158_vm13, %v6241_v30, %v6242_v36  ;;  %v5988_v32 = vsel %vm639_vm9, %v5984_v58, %v5877_v23  ;;  %vm21163_vm9 = vcmask 253952   ;;  %v18512_v58 = vld [vmem:[%s21078_s3 + $0x40] sm:$0xff]   ;;  %vm3943_vm12 = vmand %vm661_vm8, %vm3942_vm3 }
 0x274   : > { %v3591_v34 = vrot.slane %v18439_v8, 4  ;;  %14101 = vmatprep.subr.bf16.mxu0 %v18512_v58  ;;  %v18527_v8 = vld [vmem:[%s21078_s3 + $0x48] sm:$0xff]   ;;  %vm6293_vm13 = vcmask 523264  }
 0x275   : > { %v5941_v51 = vpop.permute.xlu1 %5940 }
 0x276   : > { %3598 = vst.msk [vmem:[#allocation2 + $0x60] sm:$0xf0] %vm21155_vm0, %v3591_v34  ;;  %v5939_v43 = vpop.permute.xlu0 %5938  ;;  %vm21164_vm0 = vcmask 258048  }
 0x277   : > { %6209 = vrot.lane.b32.xlu1 %v6208_v14, %s15696_s25  ;;  %6644 = vrot.lane.b32.xlu0 %v6643_v5, %s15696_s25 }
 0x27a   : > { %v5958_v22 = vpop.permute.xlu1 %5957  ;;  %v5956_v7 = vpop.permute.xlu0 %5955 }
 0x27b   : > { %6193 = vrot.lane.b32.xlu1 %v6190_v40, %s15689_s16  ;;  %6244 = vrot.lane.b32.xlu0 %v6243_v3, %s15689_s16  ;;  %v6002_v48 = vsel %vm656_vm7, %v5941_v51, %v5958_v22  ;;  %v6000_v2 = vsel %vm656_vm7, %v5939_v43, %v5956_v7  ;;  %vm21162_vm7 = vmmov %vm21160_vm5  ;;  %v3603_v40 = vld [vmem:[#allocation2 + $0x70] sm:$0x1] }
 0x27e   : > { %v5910_v26 = vpop.permute.xlu1 %5909  ;;  %v5908_v53 = vpop.permute.xlu0 %5907 }
 0x27f   : > { %v5994_v61 = vsel %vm644_vm10, %v5990_v15, %v5910_v26  ;;  %v5992_v20 = vsel %vm644_vm10, %v5988_v32, %v5908_v53  ;;  %6202 = vrot.lane.b32.xlu1 %v6198_v4, %s15695_s12  ;;  %vm3602_vm10 = vmand %vm21163_vm9, %vm3601_vm2  ;;  %v18519_v15 = vld [vmem:[%s21078_s3] sm:$0xff]   ;;  %v18532_v26 = vld [vmem:[%s21078_s3 + $0x8] sm:$0xff]   ;;  %vm21168_vm9 = vcmask 1044480  }
 0x280   : > { %v5998_v0 = vsel %vm649_vm11, %v5994_v61, %v5941_v51  ;;  %v5996_v11 = vsel %vm649_vm11, %v5992_v20, %v5939_v43  ;;  %vm3590_vm11 = vcmask 1043456   ;;  %14102 = vmatpush3.bf16.msra.mxu0 %v18519_v15  ;;  %v6157_v32 = vld [vmem:[#allocation2 + $0x60] sm:$0xf0] }
 0x281   : > { %v6012_v59 = vrot.slane %v5998_v0, 3  ;;  %v6011_v33 = vrot.slane %v5996_v11, 3  ;;  %14103 = vmatprep.subr.bf16.mxu0 %v18527_v8  ;;  %v6251_v0 = vrot.slane %v6157_v32, 4 }
 0x282   : > { %v5972_v60 = vpop.permute.xlu1 %5971  ;;  %v5970_v27 = vpop.permute.xlu0 %5969 }
 0x283   : > { %v6006_v1 = vsel %vm661_vm8, %v6002_v48, %v5972_v60  ;;  %v6004_v54 = vsel %vm661_vm8, %v6000_v2, %v5970_v27  ;;  %6211 = vrot.lane.b32.xlu1 %v6207_v57, %s15696_s25  ;;  %v6013_v12 = vsel %vm21161_vm6, %v6011_v33, %v6012_v59  ;;  %vm21167_vm6 = vcmask 254976  }
 0x284   : > { %v6015_v38 = vrot.slane %v6006_v1, 3  ;;  %v6014_v4 = vrot.slane %v6004_v54, 3  ;;  %14104 = vmatpush3.bf16.msra.mxu0 %v18532_v26  ;;  %v18551_v54 = vld [vmem:[%s21078_s3 + $0x10] sm:$0xff]  }
 0x286   : > { %v6016_v24 = vsel %vm21159_vm4, %v6014_v4, %v6015_v38  ;;  %vm21165_vm4 = vcmask 261125  }
 0x287   : > { %13057 = vmatprep.mubr.msk.bf16.mxu1 %vm21160_vm5, %v6016_v24  ;;  %vm21166_vm5 = vsmask.f32 1280 }
 0x288   : > { %6058 = vmatmul.mubr.bf16.vlgmr.msra.gmra.mrb[56].mxu1 %v6013_v12 }
 0x289   : > { %13058 = vmatprep.mubr.msk.bf16.mxu1 %vm21162_vm7, %v6015_v38  ;;  %14336 = vmatpush3.bf16.msra.mxu1 %v18445_v52  ;;  %v18556_v38 = vld [vmem:[%s21078_s3 + $0x58] sm:$0xff]   ;;  %vm4281_vm7 = vmand %vm21167_vm6, %vm21166_vm5  ;;  %vm21171_vm6 = vcmask 1046528  }
 0x28a   : > { %14337 = vmatprep.subr.bf16.mxu1 %v14733_v45 }
 0x28c   : > { %v3904_v25 = vpop.f32.mrb[32].mxu1 }
 0x28d   : > { %v3905_v13 = vadd.f32 %v18385_v17, %v3904_v25  ;;  %v3906_v6 = vpop.f32.mrb[33].mxu1  ;;  %14338 = vmatpush3.bf16.msra.mxu1 %v14733_v45 }
 0x28e   : > { %v3907_v41 = vpop.f32.mrb[34].mxu1  ;;  %14133 = vmatprep.subr.bf16.mxu1 %v18512_v58 }
 0x28f   : > { %v3908_v55 = vadd.f32 %v18385_v17, %v3907_v41  ;;  %v3909_v10 = vpop.f32.mrb[35].mxu1  ;;  %v3919_v37 = vmax.f32 %v3905_v13, 0.0 }
 0x290   : > { %6066 = vmatmul.mubr.bf16.gmra.mrb[60].mxu1 %v6012_v59  ;;  %v18543_v59 = vld [vmem:[%s21078_s3 + $0x50] sm:$0xff]   ;;  %v18577_v10 = vld [vmem:[%s21078_s3 + $0x60] sm:$0xff]  }
 0x291   : > { %v3920_v49 = vmax.f32 %v3908_v55, 0.0  ;;  %14105 = vmatprep.subr.bf16.mxu0 %v18543_v59  ;;  %v18571_v55 = vld [vmem:[%s21078_s3 + $0x18] sm:$0xff]  }
 0x292   : > { %14106 = vmatpush3.bf16.msra.mxu0 %v18551_v54 }
 0x293   : > { %v3923_v56 = vpack.c.bf16 %v3920_v49, %v3919_v37  ;;  %14107 = vmatprep.subr.bf16.mxu0 %v18556_v38 }
 0x294   : > { %v3912_v42 = vpop.f32.mrb[36].mxu1 }
 0x295   : > { %v3913_v62 = vadd.f32 %v18385_v17, %v3912_v42  ;;  %v3914_v63 = vpop.f32.mrb[37].mxu1  ;;  %v3926_v43 = vshrl.u32 %v3923_v56, 16 }
 0x296   : > { %v3915_v28 = vpop.f32.mrb[38].mxu1  ;;  %14108 = vmatpush3.bf16.msra.mxu0 %v18571_v55 }
 0x297   : > { %v3916_v46 = vadd.f32 %v18385_v17, %v3915_v28  ;;  %v3917_v21 = vpop.f32.mrb[39].mxu1  ;;  %v3921_v9 = vmax.f32 %v3913_v62, 0.0  ;;  %v3928_v3 = vrot.slane %v3926_v43, 7  ;;  %v18585_v28 = vld [vmem:[%s21078_s3 + $0x20] sm:$0xff]   ;;  %14109 = vmatprep.subr.bf16.mxu0 %v18577_v10 }
 0x298   : > { %v3575_v36 = vpop.f32.mrb[36].mxu0  ;;  %v18592_v21 = vld [vmem:[%s21078_s3 + $0x68] sm:$0xff]  }
 0x299   : > { %v3922_v23 = vmax.f32 %v3916_v46, 0.0  ;;  %v3576_v57 = vadd.f32 %v18385_v17, %v3575_v36  ;;  %v3577_v35 = vpop.f32.mrb[37].mxu0  ;;  %v6569_v36 = vld [vmem:[#allocation2 + $0x20] sm:$0x3f] }
 0x29a   : > { %v3578_v47 = vpop.f32.mrb[38].mxu0  ;;  %14110 = vmatpush3.bf16.msra.mxu0 %v18585_v28 }
 0x29b   : > { %v3924_v50 = vpack.c.bf16 %v3922_v23, %v3921_v9  ;;  %v3579_v51 = vadd.f32 %v18385_v17, %v3578_v47  ;;  %v3580_v44 = vpop.f32.mrb[39].mxu0  ;;  %v3584_v5 = vmax.f32 %v3576_v57, 0.0  ;;  %v6568_v57 = vld [vmem:[#allocation2 + $0x18] sm:$0xfe]  ;;  %14111 = vmatprep.subr.bf16.mxu0 %v18592_v21 }
 0x29d   : > { %v3933_v14 = vshrl.u32 %v3924_v50, 16  ;;  %v3585_v39 = vmax.f32 %v3579_v51, 0.0  ;;  %v3936_v22 = vshll.u32 %v3924_v50, 16 }
 0x29f   : > { %v3935_v30 = vrot.slane %v3933_v14, 7  ;;  %v3587_v7 = vpack.c.bf16 %v3585_v39, %v3584_v5  ;;  %v18604_v14 = vld [vmem:[%s21078_s3 + $0x28] sm:$0xff]  }
 0x2a0   : > { %14112 = vmatpush3.bf16.msra.mxu0 %v18604_v14 }
 0x2a1   : > { %v3938_v16 = vor.u32 %v3936_v22, %v3935_v30  ;;  %v3592_v19 = vrot.slane %v3587_v7, 4  ;;  %v18614_v30 = vld [vmem:[%s21078_s3 + $0x70] sm:$0xff]  }
 0x2a2   : > { %14113 = vmatprep.subr.bf16.mxu0 %v18614_v30 }
 0x2a3   : > { %v3939_v29 = vsel %vm3601_vm2, %v3928_v3, %v3938_v16  ;;  %v3593_v31 = vsel %vm3590_vm11, %v3591_v34, %v3592_v19  ;;  %v3604_v18 = vsel %vm3602_vm10, %v3592_v19, %v3603_v40  ;;  %v3929_v34 = vshll.u32 %v3923_v56, 16  ;;  %v18620_v40 = vld [vmem:[%s21078_s3 + $0x30] sm:$0xff]   ;;  %v18627_v16 = vld [vmem:[%s21078_s3 + $0x78] sm:$0xff]  }
 0x2a4   : > { %3948 = vst.msk [vmem:[#allocation2 + $0x78] sm:$0x1f] %vm21164_vm0, %v3939_v29  ;;  %3605 = vst [vmem:[#allocation2 + $0x70] sm:$0x1] %v3604_v18  ;;  %14114 = vmatpush3.bf16.msra.mxu0 %v18620_v40  ;;  %vm21169_vm10 = vcmask 1042432   ;;  %vm6298_vm0 = vcmask 785408  }
 0x2a5   : > { %3599 = vst.msk [vmem:[#allocation2 + $0x68] sm:$0xff] %vm661_vm8, %v3593_v31  ;;  %v3931_v53 = vor.u32 %v3929_v34, %v3928_v3  ;;  %14115 = vmatprep.subr.bf16.mxu0 %v18627_v16 }
 0x2ab   : > { %v3944_v61 = vld [vmem:[#allocation2 + $0x70] sm:$0xff]  ;;  %v6962_v11 = vld [vmem:[#allocation2 + $0x78] sm:$0x1f] }
 0x2ac   : > { %v6158_v20 = vld [vmem:[#allocation2 + $0x68] sm:$0xff]  ;;  %v18538_v48 = vsel %vm3943_vm12, %v3931_v53, %v3944_v61  ;;  %v6990_v60 = vshrl.u32 %v6962_v11, 16  ;;  %v6993_v27 = vshll.u32 %v6962_v11, 16  ;;  %v6161_v41 = vld [vmem:[#allocation2 + $0x78] sm:$0x1f] }
 0x2ad   : > { %v6252_v2 = vrot.slane %v6158_v20, 4  ;;  %3946 = vst [vmem:[#allocation2 + $0x70] sm:$0xff] %v18538_v48  ;;  %v6982_v33 = vshrl.u32 %v18538_v48, 16  ;;  %v6985_v1 = vshll.u32 %v18538_v48, 16  ;;  %v6268_v42 = vshll.u32 %v6161_v41, 16  ;;  %v18635_v53 = vld [vmem:[%s21078_s3 + $0x38] sm:$0xff]  }
 0x2ae   : > { %v18558_v4 = vpop.permute.xlu1 %6689  ;;  %v18561_v45 = vrot.slane %v6990_v60, 4  ;;  %v6995_v12 = vrot.slane %v6993_v27, 5  ;;  %v6272_v39 = vshrl.u32 %v6161_v41, 16  ;;  %14116 = vmatpush3.bf16.msra.mxu0 %v18635_v53  ;;  %v4282_v41 = vld [vmem:[#allocation2 + $0x88] sm:$0x3] }
 0x2af   : > { %v6253_v24 = vsel %vm3590_vm11, %v6251_v0, %v6252_v2  ;;  %v18564_v25 = vpop.permute.xlu0 %6687  ;;  %v6984_v13 = vrot.slane %v6982_v33, 4  ;;  %v6987_v6 = vrot.slane %v6985_v1, 5  ;;  %v6270_v47 = vrot.slane %v6268_v42, 1  ;;  %14165 = vmatprep.subr.bf16.mxu0 %v18512_v58 }
 0x2b0   : > { %6256 = vrot.lane.b32.xlu0 %v6253_v24, %s15695_s12  ;;  %v6996_v49 = vor.u32 %v6995_v12, %v18561_v45  ;;  %v6265_v7 = vrot.slane %v6985_v1, 1  ;;  %vm4666_vm12 = vsmask.f32 7942 }
 0x2b1   : > { %v6988_v37 = vor.u32 %v6987_v6, %v6984_v13  ;;  %v6274_v22 = vor.u32 %v6272_v39, %v6270_v47 }
 0x2b2   : > { %v6619_v56 = vpop.permute.xlu1 %6618  ;;  %v6266_v32 = vor.u32 %v6982_v33, %v6265_v7 }
 0x2b3   : > { %v6617_v62 = vpop.permute.xlu0 %6616  ;;  %v6997_v63 = vsel %vm5726_vm15, %v6988_v37, %v6996_v49  ;;  %v6753_v23 = vsel %vm661_vm8, %v6569_v36, %v6619_v56 }
 0x2b4   : > { %v6159_v46 = vld [vmem:[#allocation2 + $0x70] sm:$0x1]  ;;  %7000 = vrot.lane.b32.xlu1 %v6997_v63, %s15689_s16  ;;  %v6750_v50 = vsel %vm661_vm8, %v6568_v57, %v6617_v62  ;;  %v6271_v11 = vsel %vm464_vm1, %v6266_v32, %v6270_v47 }
 0x2b5   : > { %v6254_v9 = vrot.slane %v6159_v46, 4 }
 0x2b6   : > { %v6638_v35 = vpop.permute.xlu1 %6637 }
 0x2b7   : > { %v18597_v51 = vsel %vm6293_vm13, %v6753_v23, %v6638_v35  ;;  %v6636_v44 = vpop.permute.xlu0 %6635  ;;  %v6255_v43 = vsel %vm3590_vm11, %v6252_v2, %v6254_v9 }
 0x2b8   : > { %v18607_v5 = vsel %vm6293_vm13, %v6750_v50, %v6636_v44  ;;  %6258 = vrot.lane.b32.xlu0 %v6255_v43, %s15695_s12 }
 0x2ba   : > { %v18660_v35 = vpop.permute.xlu1 %6191 }
 0x2bc   : > { %v4247_v3 = vpop.f32.mrb[40].mxu0  ;;  %6277 = vrot.lane.b32.xlu0 %v6274_v22, %s15696_s25 }
 0x2bd   : > { %v4248_v19 = vadd.f32 %v18385_v17, %v4247_v3  ;;  %v4249_v29 = vpop.f32.mrb[41].mxu0 }
 0x2be   : > { %v4250_v31 = vpop.f32.mrb[42].mxu0  ;;  %v18666_v7 = vpop.permute.xlu1 %6200 }
 0x2bf   : > { %v4251_v18 = vadd.f32 %v18385_v17, %v4250_v31  ;;  %v4252_v34 = vpop.f32.mrb[43].mxu0  ;;  %v4262_v61 = vmax.f32 %v4248_v19, 0.0 }
 0x2c0   : > { %6998 = vrot.lane.b32.xlu0 %v6988_v37, %s15689_s16 }
 0x2c1   : > { %v4263_v20 = vmax.f32 %v4251_v18, 0.0 }
 0x2c3   : > { %v4266_v0 = vpack.c.bf16 %v4263_v20, %v4262_v61 }
 0x2c4   : > { %v4255_v48 = vpop.f32.mrb[44].mxu0  ;;  %6275 = vrot.lane.b32.xlu0 %v6271_v11, %s15696_s25 }
 0x2c5   : > { %v4270_v2 = vrot.slane %v4266_v0, 3  ;;  %v4256_v60 = vadd.f32 %v18385_v17, %v4255_v48  ;;  %v4257_v27 = vpop.f32.mrb[45].mxu0 }
 0x2c6   : > { %v4258_v33 = vpop.f32.mrb[46].mxu0 }
 0x2c7   : > { %4277 = vst.msk [vmem:[#allocation2 + $0x78] sm:$0xe0] %vm21165_vm4, %v4270_v2  ;;  %v4259_v1 = vadd.f32 %v18385_v17, %v4258_v33  ;;  %v4260_v24 = vpop.f32.mrb[47].mxu0  ;;  %v4264_v12 = vmax.f32 %v4256_v60, 0.0  ;;  %vm21170_vm4 = vcmask 261121  }
 0x2c8   : > { %vm4667_vm5 = vmand %vm21170_vm4, %vm4666_vm12  ;;  %vm21174_vm4 = vcmask 261126  }
 0x2c9   : > { %v4265_v13 = vmax.f32 %v4259_v1, 0.0 }
 0x2cb   : > { %v4267_v6 = vpack.c.bf16 %v4265_v13, %v4264_v12 }
 0x2cd   : > { %v4271_v37 = vrot.slane %v4267_v6, 3 }
 0x2ce   : > { %v6162_v56 = vld [vmem:[#allocation2 + $0x78] sm:$0xe0] }
 0x2cf   : > { %v4272_v58 = vsel %vm21168_vm9, %v4270_v2, %v4271_v37  ;;  %v4283_v49 = vsel %vm4281_vm7, %v4271_v37, %v4282_v41  ;;  %v6582_v42 = vld [vmem:[#allocation2 + $0x78] sm:$0xe0]  ;;  %v6282_v63 = vrot.slane %v6162_v56, 5  ;;  %vm21172_vm7 = vsmask.f32 1280 }
 0x2d0   : > { %4278 = vst.msk [vmem:[#allocation2 + $0x80] sm:$0xff] %vm661_vm8, %v4272_v58  ;;  %4284 = vst [vmem:[#allocation2 + $0x88] sm:$0x3] %v4283_v49  ;;  %v6694_v36 = vrot.slane %v6582_v42, 4  ;;  %vm21173_vm9 = vcmask 259072  }
 0x2d7   : > { %v18650_v62 = vld [vmem:[#allocation2 + $0x80] sm:$0xff]  ;;  %v4668_v13 = vld [vmem:[#allocation2 + $0x88] sm:$0xfe] }
 0x2d8   : > { %v6283_v46 = vrot.slane %v18650_v62, 5  ;;  %v6695_v9 = vrot.slane %v18650_v62, 4 }
 0x2da   : > { %v6284_v23 = vsel %vm21169_vm10, %v6282_v63, %v6283_v46  ;;  %v6696_v57 = vsel %vm3590_vm11, %v6694_v36, %v6695_v9 }
 0x2db   : > { %14339 = vmatprep.mubr.msk.bf16.mxu1 %vm661_vm8, %v6284_v23  ;;  %6699 = vrot.lane.b32.xlu0 %v6696_v57, %s15695_s12 }
 0x2dc   : > { %v4625_v47 = vpop.f32.mrb[40].mxu1 }
 0x2dd   : > { %v4626_v50 = vadd.f32 %v18385_v17, %v4625_v47  ;;  %v4627_v44 = vpop.f32.mrb[41].mxu1 }
 0x2de   : > { %v4628_v43 = vpop.f32.mrb[42].mxu1 }
 0x2df   : > { %v4629_v39 = vadd.f32 %v18385_v17, %v4628_v43  ;;  %v4630_v22 = vpop.f32.mrb[43].mxu1  ;;  %v4640_v3 = vmax.f32 %v4626_v50, 0.0 }
 0x2e1   : > { %v4641_v19 = vmax.f32 %v4629_v39, 0.0 }
 0x2e3   : > { %v4644_v29 = vpack.c.bf16 %v4641_v19, %v4640_v3 }
 0x2e4   : > { %v4633_v31 = vpop.f32.mrb[44].mxu1 }
 0x2e5   : > { %v4647_v18 = vshrl.u32 %v4644_v29, 16  ;;  %v4650_v34 = vshll.u32 %v4644_v29, 16  ;;  %v4634_v32 = vadd.f32 %v18385_v17, %v4633_v31  ;;  %v4635_v61 = vpop.f32.mrb[45].mxu1  ;;  %v6647_v20 = vpop.permute.xlu1 %6646 }
 0x2e6   : > { %v4636_v0 = vpop.f32.mrb[46].mxu1  ;;  %v18671_v11 = vsel %vm6298_vm0, %v18597_v51, %v6647_v20  ;;  %v18673_v48 = vpop.permute.xlu0 %6246 }
 0x2e7   : > { %v4649_v2 = vrot.slane %v4647_v18, 6  ;;  %v4652_v60 = vrot.slane %v4650_v34, 7  ;;  %v4637_v27 = vadd.f32 %v18385_v17, %v4636_v0  ;;  %v4638_v33 = vpop.f32.mrb[47].mxu1  ;;  %v4642_v24 = vmax.f32 %v4634_v32, 0.0 }
 0x2e8   : > { %v6781_v58 = vrot.slane %v18671_v11, 1 }
 0x2e9   : > { %v4653_v1 = vor.u32 %v4652_v60, %v4649_v2  ;;  %v4643_v12 = vmax.f32 %v4637_v27, 0.0  ;;  %v6975_v60 = vld [vmem:[#allocation2 + $0x8] sm:$0x7f]  ;;  %v6974_v27 = vld [vmem:[#allocation2] sm:$0xfc] }
 0x2ea   : > { %v6645_v6 = vpop.permute.xlu0 %6644  ;;  %v7072_v33 = vshrl.u32 %v6975_v60, 16 }
 0x2eb   : > { %v4669_v41 = vsel %vm4667_vm5, %v4653_v1, %v4668_v13  ;;  %v4645_v37 = vpack.c.bf16 %v4643_v12, %v4642_v24  ;;  %v6759_v51 = vsel %vm6298_vm0, %v18607_v5, %v6645_v6  ;;  %v7067_v12 = vshll.u32 %v6974_v27, 16  ;;  %vm21175_vm5 = vmmov %vm21172_vm7 }
 0x2ec   : > { %4670 = vst [vmem:[#allocation2 + $0x88] sm:$0xfe] %v4669_v41  ;;  %v6780_v49 = vrot.slane %v6759_v51, 1  ;;  %v4978_v56 = vpop.f32.mrb[48].mxu0  ;;  %v7074_v41 = vrot.slane %v7072_v33, 6 }
 0x2ed   : > { %v4655_v42 = vshrl.u32 %v4645_v37, 16  ;;  %v4658_v63 = vshll.u32 %v4645_v37, 16  ;;  %v4979_v36 = vadd.f32 %v18385_v17, %v4978_v56  ;;  %v4980_v23 = vpop.f32.mrb[49].mxu0  ;;  %v18733_v33 = vld [vmem:[%s21077_s2] ss:$0 sm:$0xff] }
 0x2ee   : > { %v4981_v57 = vpop.f32.mrb[50].mxu0  ;;  %v18685_v47 = vsel %vm21171_vm6, %v6780_v49, %v6781_v58 }
 0x2ef   : > { %v4657_v50 = vrot.slane %v4655_v42, 6  ;;  %v4660_v44 = vrot.slane %v4658_v63, 7  ;;  %v4982_v5 = vadd.f32 %v18385_v17, %v4981_v57  ;;  %v4983_v43 = vpop.f32.mrb[51].mxu0  ;;  %v4993_v22 = vmax.f32 %v4979_v36, 0.0 }
 0x2f0   : > { %v7069_v63 = vrot.slane %v7067_v12, 7  ;;  %v7008_v43 = vrot.slane %v18650_v62, 1 }
 0x2f1   : > { %v4661_v39 = vor.u32 %v4660_v44, %v4657_v50  ;;  %v4994_v3 = vmax.f32 %v4982_v5, 0.0  ;;  %v6963_v5 = vld [vmem:[#allocation2 + $0x78] sm:$0xe0] }
 0x2f3   : > { %v4662_v19 = vsel %vm21172_vm7, %v4653_v1, %v4661_v39  ;;  %v18689_v29 = vpack.c.bf16 %v4994_v3, %v4993_v22  ;;  %v6164_v31 = vld [vmem:[#allocation2 + $0x88] sm:$0x3]  ;;  %v7075_v1 = vshll.u32 %v6975_v60, 16  ;;  %v6976_v3 = vld [vmem:[#allocation2 + $0x8] sm:$0x80]  ;;  %vm21176_vm7 = vmmov %vm21171_vm6 }
 0x2f4   : > { %v6584_v18 = vld [vmem:[#allocation2 + $0x88] sm:$0x3]  ;;  %4672 = vst.msk [vmem:[#allocation2 + $0x90] sm:$0x3f] %vm21173_vm9, %v4662_v19  ;;  %v6285_v32 = vrot.slane %v6164_v31, 5  ;;  %v7007_v19 = vrot.slane %v6963_v5, 1 }
 0x2f5   : > { %v6585_v34 = vld [vmem:[#allocation2 + $0x88] sm:$0xfe]  ;;  %v6697_v61 = vrot.slane %v6584_v18, 4  ;;  %v5001_v20 = vrot.slane %v18689_v29, 2  ;;  %v7077_v37 = vrot.slane %v7075_v1, 7  ;;  %v6977_v18 = vld [vmem:[#allocation2 + $0x10] sm:$0xff] }
 0x2f6   : > { %v6286_v17 = vsel %vm21169_vm10, %v6283_v46, %v6285_v32  ;;  %v6706_v2 = vshll.u32 %v6585_v34, 16  ;;  %v6704_v13 = vshrl.u32 %v6585_v34, 16  ;;  %v6965_v50 = vld [vmem:[#allocation2 + $0x88] sm:$0x3]  ;;  %v6978_v31 = vld [vmem:[#allocation2 + $0x18] sm:$0xf]  ;;  %v7009_v34 = vsel %vm21171_vm6, %v7007_v19, %v7008_v43 }
 0x2f7   : > { %v6698_v0 = vsel %vm3590_vm11, %v6695_v9, %v6697_v61  ;;  %5008 = vst.msk [vmem:[#allocation2 + $0x90] sm:$0xc0] %vm21174_vm4, %v5001_v20  ;;  %14340 = vmatmul.mubr.msk.bf16.vlgmr.msra.gmra.mrb[64].mxu1 %vm661_vm8, %v6286_v17  ;;  %v7064_v9 = vshrl.u32 %v6974_v27, 16  ;;  %v7078_v57 = vor.u32 %v7077_v37, %v7074_v41  ;;  %v7010_v22 = vrot.slane %v6965_v50, 1 }
 0x2f8   : > { %6701 = vrot.lane.b32.xlu1 %v6698_v0, %s15695_s12  ;;  %14134 = vmatpush3.bf16.msra.mxu1 %v18519_v15  ;;  %v6708_v46 = vrot.slane %v6706_v2, 1  ;;  %v7089_v32 = vrot.slane %v6976_v3, 3  ;;  %v7092_v61 = vrot.slane %v6978_v31, 3  ;;  %v7090_v17 = vrot.slane %v6977_v18, 3  ;;  %v7330_v2 = vld [vmem:[#allocation2 + $0x88] sm:$0xfe] }
 0x2f9   : > { %14135 = vmatprep.subr.bf16.mxu1 %v18527_v8  ;;  %v7066_v42 = vrot.slane %v7064_v9, 6  ;;  %v7011_v62 = vsel %vm21176_vm7, %v7008_v43, %v7010_v22  ;;  %vm21177_vm9 = vcmask 1044480   ;;  %v7350_v9 = vshrl.u32 %v7330_v2, 16 }
 0x2fa   : > { %v6709_v51 = vor.u32 %v6708_v46, %v6704_v13  ;;  %v7091_v0 = vsel %vm21177_vm9, %v7089_v32, %v7090_v17  ;;  %vm21178_vm10 = vmmov %vm21177_vm9  ;;  %v7353_v12 = vshll.u32 %v7330_v2, 16  ;;  %vm21179_vm4 = vsmask.f32 2304 }
 0x2fb   : > { %v6586_v24 = vld [vmem:[#allocation2 + $0x90] sm:$0x3f]  ;;  %v7070_v44 = vor.u32 %v7069_v63, %v7066_v42  ;;  %v7093_v27 = vsel %vm21178_vm10, %v7090_v17, %v7092_v61  ;;  %vm21181_vm7 = vcmask 1045504   ;;  %vm21182_vm9 = vmmov %vm21179_vm4  ;;  %vm5371_vm10 = vsmask.f32 7946 }
 0x2fc   : > { %v6711_v6 = vshll.u32 %v6586_v24, 16  ;;  %14136 = vmatpush3.bf16.msra.mxu1 %v18532_v26  ;;  %v6715_v56 = vshrl.u32 %v6586_v24, 16 }
 0x2fd   : > { %14137 = vmatprep.subr.bf16.mxu1 %v18543_v59  ;;  %v7079_v39 = vsel %vm21175_vm5, %v7070_v44, %v7078_v57  ;;  %vm21180_vm5 = vcmask 256000  }
 0x2fe   : > { %v6713_v49 = vrot.slane %v6711_v6, 1  ;;  %vm5011_vm6 = vmand %vm21180_vm5, %vm21179_vm4  ;;  %vm21183_vm4 = vcmask 260096   ;;  %v6966_v29 = vld [vmem:[#allocation2 + $0x90] sm:$0xc0]  ;;  %vm21184_vm5 = vcmask 261122  }
 0x300   : > { %v6714_v36 = vsel %vm464_vm1, %v6709_v51, %v6713_v49  ;;  %v6717_v23 = vor.u32 %v6715_v56, %v6713_v49  ;;  %14138 = vmatpush3.bf16.msra.mxu1 %v18551_v54  ;;  %v7352_v49 = vrot.slane %v7350_v9, 4  ;;  %v7355_v56 = vrot.slane %v7353_v12, 5  ;;  %v18757_v9 = vpop.permute.xlu0 %6244 }
 0x301   : > { %6718 = vrot.lane.b32.xlu0 %v6714_v36, %s15696_s25  ;;  %14139 = vmatprep.subr.bf16.mxu1 %v18556_v38 }
 0x302   : > { %6720 = vrot.lane.b32.xlu1 %v6717_v23, %s15696_s25  ;;  %v18748_v57 = vor.u32 %v7355_v56, %v7352_v49  ;;  %v7340_v56 = vld [vmem:[#allocation2 + $0x90] sm:$0xc0] }
 0x304   : > { %14140 = vmatpush3.bf16.msra.mxu1 %v18571_v55 }
 0x305   : > { %7080 = vrot.lane.b32.xlu0 %v7070_v44, %s15695_s12  ;;  %14141 = vmatprep.subr.bf16.mxu1 %v18577_v10 }
 0x306   : > { %7082 = vrot.lane.b32.xlu1 %v7079_v39, %s15695_s12 }
 0x308   : > { %14142 = vmatpush3.bf16.msra.mxu1 %v18585_v28 }
 0x309   : > { %7012 = vrot.lane.b32.xlu0 %v7009_v34, %s15695_s12  ;;  %14143 = vmatprep.subr.bf16.mxu1 %v18592_v21 }
 0x30a   : > { %7014 = vrot.lane.b32.xlu1 %v7011_v62, %s15695_s12 }
 0x30c   : > { %14144 = vmatpush3.bf16.msra.mxu1 %v18604_v14 }
 0x30d   : > { %v5330_v60 = vpop.f32.mrb[48].mxu1  ;;  %7094 = vrot.lane.b32.xlu0 %v7091_v0, %s15696_s25  ;;  %14145 = vmatprep.subr.bf16.mxu1 %v18614_v30 }
 0x30e   : > { %v5331_v1 = vadd.f32 %v18733_v33, %v5330_v60  ;;  %v5332_v46 = vpop.f32.mrb[49].mxu1  ;;  %7096 = vrot.lane.b32.xlu1 %v7093_v27, %s15696_s25 }
 0x30f   : > { %v5333_v24 = vpop.f32.mrb[50].mxu1  ;;  %v5012_v46 = vld [vmem:[#allocation2 + $0xa0] sm:$0x7] }
 0x310   : > { %v5334_v13 = vadd.f32 %v18733_v33, %v5333_v24  ;;  %v5335_v6 = vpop.f32.mrb[51].mxu1  ;;  %14146 = vmatpush3.bf16.msra.mxu1 %v18620_v40  ;;  %v5345_v37 = vmax.f32 %v5331_v1, 0.0 }
 0x311   : > { %7084 = vrot.lane.b32.xlu0 %v7074_v41, %s15695_s12  ;;  %14147 = vmatprep.subr.bf16.mxu1 %v18627_v16  ;;  %v6152_v6 = vld [vmem:[#allocation2 + $0x38] sm:$0xc0] }
 0x312   : > { %v5346_v51 = vmax.f32 %v5334_v13, 0.0  ;;  %7002 = vrot.lane.b32.xlu1 %v18561_v45, %s15689_s16 }
 0x314   : > { %v5349_v42 = vpack.c.bf16 %v5346_v51, %v5345_v37  ;;  %14148 = vmatpush3.bf16.msra.mxu1 %v18635_v53 }
 0x315   : > { %v5338_v63 = vpop.f32.mrb[52].mxu1  ;;  %7098 = vrot.lane.b32.xlu0 %v7092_v61, %s15696_s25  ;;  %14343 = vmatprep.subr.bf16.mxu1 %v18445_v52 }
 0x316   : > { %v5339_v36 = vadd.f32 %v18733_v33, %v5338_v63  ;;  %v5340_v41 = vpop.f32.mrb[53].mxu1  ;;  %7016 = vrot.lane.b32.xlu1 %v7010_v22, %s15695_s12  ;;  %v5352_v39 = vshrl.u32 %v5349_v42, 16  ;;  %v5355_v52 = vshll.u32 %v5349_v42, 16  ;;  %v6153_v42 = vld [vmem:[#allocation2 + $0x40] sm:$0xff]  ;;  %v6154_v63 = vld [vmem:[#allocation2 + $0x48] sm:$0x7] }
 0x317   : > { %v5341_v23 = vpop.f32.mrb[54].mxu1  ;;  %v6217_v41 = vshll.u32 %v6152_v6, 16 }
 0x318   : > { %v5342_v45 = vadd.f32 %v18733_v33, %v5341_v23  ;;  %v5343_v50 = vpop.f32.mrb[55].mxu1  ;;  %v4986_v44 = vpop.f32.mrb[52].mxu0  ;;  %v5347_v3 = vmax.f32 %v5339_v36, 0.0  ;;  %v5354_v61 = vrot.slane %v5352_v39, 5  ;;  %v5357_v17 = vrot.slane %v5355_v52, 6 }
 0x319   : > { %v4987_v5 = vadd.f32 %v18733_v33, %v4986_v44  ;;  %7366 = vrot.lane.b32.xlu0 %v18748_v57, %s15689_s16  ;;  %v4988_v43 = vpop.f32.mrb[53].mxu0  ;;  %v6214_v36 = vshrl.u32 %v6152_v6, 16  ;;  %v7436_v50 = vshll.u32 %v7340_v56, 16  ;;  %v6222_v44 = vshrl.u32 %v6153_v42, 16 }
 0x31a   : > { %v5348_v19 = vmax.f32 %v5342_v45, 0.0  ;;  %v4989_v31 = vpop.f32.mrb[54].mxu0  ;;  %v5358_v12 = vor.u32 %v5357_v17, %v5354_v61  ;;  %v7433_v45 = vshrl.u32 %v7340_v56, 16  ;;  %v6234_v43 = vshll.u32 %v6154_v63, 16 }
 0x31b   : > { %v4990_v22 = vadd.f32 %v18733_v33, %v4989_v31  ;;  %v4991_v18 = vpop.f32.mrb[55].mxu0  ;;  %v4995_v32 = vmax.f32 %v4987_v5, 0.0  ;;  %v6231_v5 = vshrl.u32 %v6154_v63, 16  ;;  %v6225_v39 = vshll.u32 %v6153_v42, 16  ;;  %v6210_v31 = vpop.permute.xlu1 %6209 }
 0x31c   : > { %v5350_v34 = vpack.c.bf16 %v5348_v19, %v5347_v3  ;;  %v6216_v52 = vrot.slane %v6214_v36, 6  ;;  %v6219_v3 = vrot.slane %v6217_v41, 7 }
 0x31d   : > { %v4996_v62 = vmax.f32 %v4990_v22, 0.0 }
 0x31e   : > { %v5360_v0 = vshrl.u32 %v5350_v34, 16  ;;  %v5363_v2 = vshll.u32 %v5350_v34, 16  ;;  %v7021_v34 = vrot.slane %v6966_v29, 2 }
 0x31f   : > { %v4998_v60 = vpack.c.bf16 %v4996_v62, %v4995_v32  ;;  %v7435_v32 = vrot.slane %v7433_v45, 1  ;;  %v7438_v62 = vrot.slane %v7436_v50, 2  ;;  %v6194_v42 = vpop.permute.xlu1 %6193  ;;  %v15658_v45 = vld [vmem:[#allocation2] sm:$0xff] }
 0x320   : > { %v5362_v27 = vrot.slane %v5360_v0, 5  ;;  %v5365_v1 = vrot.slane %v5363_v2, 6  ;;  %v6289_v50 = vsel %vm661_vm8, %v15658_v45, %v18660_v35 }
 0x321   : > { %v5002_v24 = vrot.slane %v4998_v60, 2  ;;  %v6224_v60 = vrot.slane %v6222_v44, 6 }
 0x322   : > { %v5366_v13 = vor.u32 %v5365_v1, %v5362_v27  ;;  %v6257_v23 = vpop.permute.xlu0 %6256  ;;  %v6233_v27 = vrot.slane %v6231_v5, 6  ;;  %v6236_v1 = vrot.slane %v6234_v43, 7 }
 0x323   : > { %v5003_v37 = vsel %vm21181_vm7, %v5001_v20, %v5002_v24  ;;  %v5013_v51 = vsel %vm5011_vm6, %v5002_v24, %v5012_v46  ;;  %vm18766_vm7 = vmand %vm21184_vm5, %vm5371_vm10  ;;  %v6227_v46 = vrot.slane %v6225_v39, 7  ;;  %vm21187_vm6 = vcmask 1045504  }
 0x324   : > { %v5367_v49 = vsel %vm21182_vm9, %v5358_v12, %v5366_v13  ;;  %5009 = vst.msk [vmem:[#allocation2 + $0x98] sm:$0xff] %vm661_vm8, %v5003_v37  ;;  %5014 = vst [vmem:[#allocation2 + $0xa0] sm:$0x7] %v5013_v51  ;;  %v6220_v51 = vor.u32 %v6219_v3, %v6216_v52  ;;  %v6237_v63 = vor.u32 %v6236_v1, %v6233_v27  ;;  %vm21188_vm9 = vsmask.f32 6400 }
 0x325   : > { %5377 = vst.msk [vmem:[#allocation2 + $0xa8] sm:$0x7f] %vm21183_vm4, %v5367_v49  ;;  %v7439_v49 = vor.u32 %v7438_v62, %v7435_v32  ;;  %vm21189_vm10 = vsmask.f32 1280  ;;  %v6295_v3 = vsel %vm6293_vm13, %v6289_v50, %v18666_v7  ;;  %v6203_v32 = vpop.permute.xlu1 %6202  ;;  %vm21191_vm5 = vmmov %vm21187_vm6  ;;  %v6144_v27 = vld [vmem:[#allocation2 + $0x8] sm:$0x1f] }
 0x326   : > { %vm21190_vm4 = vmmov %vm21189_vm10  ;;  %v5728_v50 = vld [vmem:[#allocation2 + $0xb8] sm:$0xf] }
 0x32a   : > { %v6259_v19 = vpop.permute.xlu0 %6258 }
 0x32b   : > { %v5373_v22 = vld [vmem:[#allocation2 + $0xa0] sm:$0xfc]  ;;  %v6967_v18 = vld [vmem:[#allocation2 + $0x98] sm:$0xff] }
 0x32c   : > { %v5374_v61 = vsel %vm18766_vm7, %v5358_v12, %v5373_v22  ;;  %v7022_v17 = vrot.slane %v6967_v18, 2  ;;  %v7441_v0 = vshrl.u32 %v6967_v18, 16  ;;  %v7444_v2 = vshll.u32 %v6967_v18, 16  ;;  %vm21192_vm7 = vmmov %vm21188_vm9 }
 0x32d   : > { %5375 = vst [vmem:[#allocation2 + $0xa0] sm:$0xfc] %v5374_v61  ;;  %v6228_v12 = vor.u32 %v6227_v46, %v6224_v60  ;;  %v6292_v46 = vsel %vm661_vm8, %v6144_v27, %v6194_v42 }
 0x32e   : > { %v6278_v24 = vpop.permute.xlu0 %6277  ;;  %v7023_v13 = vsel %vm21187_vm6, %v7021_v34, %v7022_v17  ;;  %v7443_v6 = vrot.slane %v7441_v0, 1  ;;  %v7446_v37 = vrot.slane %v7444_v2, 2  ;;  %v6300_v0 = vsel %vm6298_vm0, %v6295_v3, %v6210_v31  ;;  %v6212_v31 = vpop.permute.xlu1 %6211 }
 0x32f   : > { %7026 = vrot.lane.b32.xlu0 %v7023_v13, %s15696_s25  ;;  %v6229_v29 = vsel %vm21189_vm10, %v6220_v51, %v6228_v12  ;;  %v6238_v22 = vsel %vm21190_vm4, %v6228_v12, %v6237_v63  ;;  %vm21193_vm6 = vcmask 261127   ;;  %vm21194_vm10 = vcmask 1046528  }
 0x330   : > { %v7447_v56 = vor.u32 %v7446_v37, %v7443_v6  ;;  %v6307_v5 = vsel %vm661_vm8, %v6229_v29, %v18757_v9  ;;  %v6310_v35 = vsel %vm661_vm8, %v6238_v22, %v18673_v48  ;;  %vm6100_vm4 = vsmask.f32 7950 }
 0x331   : > { %v6312_v18 = vsel %vm6293_vm13, %v6307_v5, %v6257_v23  ;;  %v6314_v2 = vsel %vm6293_vm13, %v6310_v35, %v6259_v19 }
 0x332   : > { %v18774_v36 = vpop.permute.xlu0 %6998  ;;  %v7448_v41 = vsel %vm21188_vm9, %v7439_v49, %v7447_v56  ;;  %v6319_v7 = vsel %vm6298_vm0, %v6314_v2, %v6278_v24  ;;  %vm5727_vm9 = vmand %vm3279_vm14, %vm5726_vm15  ;;  %vm21195_vm14 = vcmask 1044480  }
 0x333   : > { %7458 = vrot.lane.b32.xlu0 %v7448_v41, %s15689_s16 }
 0x334   : > { %v6968_v20 = vld [vmem:[#allocation2 + $0xa0] sm:$0x7] }
 0x335   : > { %v7342_v44 = vld [vmem:[#allocation2 + $0xa0] sm:$0x7]  ;;  %v7024_v43 = vrot.slane %v6968_v20, 2 }
 0x336   : > { %v7450_v39 = vshrl.u32 %v7342_v44, 16  ;;  %v7453_v52 = vshll.u32 %v7342_v44, 16  ;;  %v6276_v34 = vpop.permute.xlu0 %6275 }
 0x337   : > { %7030 = vrot.lane.b32.xlu1 %v7024_v43, %s15696_s25  ;;  %v6316_v62 = vsel %vm6298_vm0, %v6312_v18, %v6276_v34  ;;  %v7025_v23 = vsel %vm21191_vm5, %v7022_v17, %v7024_v43  ;;  %v6579_v18 = vld [vmem:[#allocation2 + $0x60] sm:$0xf]  ;;  %vm21196_vm5 = vcmask 261123  }
 0x338   : > { %v7452_v9 = vrot.slane %v7450_v39, 1  ;;  %v7455_v61 = vrot.slane %v7453_v52, 2  ;;  %6473 = vmatprep.mubr.bf16.mxu0 %v6316_v62  ;;  %v6578_v52 = vld [vmem:[#allocation2 + $0x58] sm:$0xff] }
 0x339   : > { %6474 = vmatmul.mubr.bf16.vlgmr.msra.gmra.mrb[64].mxu0 %v6300_v0  ;;  %v6653_v35 = vshrl.u32 %v6578_v52, 16  ;;  %v6656_v62 = vshll.u32 %v6578_v52, 16 }
 0x33a   : > { %6481 = vmatprep.mubr.bf16.mxu0 %v6319_v7  ;;  %v18795_v60 = vor.u32 %v7455_v61, %v7452_v9  ;;  %14166 = vmatpush3.bf16.msra.mxu0 %v18519_v15  ;;  %v6297_v15 = vsel %vm6293_vm13, %v6292_v46, %v6203_v32  ;;  %v7343_v7 = vld [vmem:[#allocation2 + $0x18] sm:$0xf8] }
 0x33b   : > { %7028 = vrot.lane.b32.xlu1 %v7025_v23, %s15696_s25  ;;  %14167 = vmatprep.subr.bf16.mxu0 %v18527_v8  ;;  %v5693_v48 = vpop.f32.mrb[56].mxu0  ;;  %v6303_v8 = vsel %vm6298_vm0, %v6297_v15, %v6212_v31  ;;  %v6662_v23 = vshrl.u32 %v6579_v18, 16  ;;  %v6577_v15 = vld [vmem:[#allocation2 + $0x50] sm:$0x80] }
 0x33c   : > { %v5694_v19 = vadd.f32 %v18733_v33, %v5693_v48  ;;  %v5695_v1 = vpop.f32.mrb[57].mxu0  ;;  %v7457_v17 = vsel %vm21192_vm7, %v7447_v56, %v18795_v60  ;;  %v6665_v48 = vshll.u32 %v6579_v18, 16  ;;  %vm18847_vm7 = vmand %vm21196_vm5, %vm6100_vm4  ;;  %vm21203_vm4 = vsmask.f32 4352 }
 0x33d   : > { %v5696_v24 = vpop.f32.mrb[58].mxu0  ;;  %vm21205_vm5 = vmmov %vm21203_vm4 }
 0x33e   : > { %14168 = vmatpush3.bf16.msra.mxu0 %v18532_v26  ;;  %v5697_v13 = vadd.f32 %v18733_v33, %v5696_v24  ;;  %v5698_v6 = vpop.f32.mrb[59].mxu0  ;;  %v5708_v37 = vmax.f32 %v5694_v19, 0.0 }
 0x33f   : > { %7460 = vrot.lane.b32.xlu1 %v7457_v17, %s15689_s16  ;;  %14169 = vmatprep.subr.bf16.mxu0 %v18543_v59  ;;  %v6655_v17 = vrot.slane %v6653_v35, 6  ;;  %v18851_v6 = vld [vmem:[#allocation2 + $0x20] sm:$0xff] }
 0x340   : > { %v5709_v51 = vmax.f32 %v5697_v13, 0.0  ;;  %v7465_v13 = vshrl.u32 %v7343_v7, 16 }
 0x341   : > { %6482 = vmatmul.mubr.bf16.gmra.mrb[68].mxu0 %v6303_v8  ;;  %v6658_v8 = vrot.slane %v6656_v62, 7 }
 0x342   : > { %14170 = vmatpush3.bf16.msra.mxu0 %v18551_v54  ;;  %v5712_v49 = vpack.c.bf16 %v5709_v51, %v5708_v37 }
 0x343   : > { %14171 = vmatprep.subr.bf16.mxu0 %v18556_v38  ;;  %v5701_v26 = vpop.f32.mrb[60].mxu0 }
 0x344   : > { %v5716_v56 = vrot.slane %v5712_v49, 1  ;;  %v5702_v42 = vadd.f32 %v18733_v33, %v5701_v26  ;;  %v5703_v12 = vpop.f32.mrb[61].mxu0  ;;  %v6664_v26 = vrot.slane %v6662_v23, 6 }
 0x345   : > { %v5704_v63 = vpop.f32.mrb[62].mxu0  ;;  %v6649_v12 = vshrl.u32 %v6577_v15, 16 }
 0x346   : > { %14172 = vmatpush3.bf16.msra.mxu0 %v18571_v55  ;;  %5723 = vst.msk [vmem:[#allocation2 + $0xa8] sm:$0x80] %vm21193_vm6, %v5716_v56  ;;  %v5705_v59 = vadd.f32 %v18733_v33, %v5704_v63  ;;  %v5706_v41 = vpop.f32.mrb[63].mxu0  ;;  %v5710_v45 = vmax.f32 %v5702_v42, 0.0  ;;  %vm21199_vm6 = vsmask.f32 1280 }
 0x347   : > { %14173 = vmatprep.subr.bf16.mxu0 %v18577_v10  ;;  %v7331_v41 = vld [vmem:[#allocation2 + $0x90] sm:$0x3f] }
 0x348   : > { %v5711_v54 = vmax.f32 %v5705_v59, 0.0 }
 0x34a   : > { %14174 = vmatpush3.bf16.msra.mxu0 %v18585_v28  ;;  %v5713_v38 = vpack.c.bf16 %v5711_v54, %v5710_v45  ;;  %v7473_v45 = vshrl.u32 %v18851_v6, 16  ;;  %v7467_v54 = vrot.slane %v7465_v13, 6 }
 0x34b   : > { %14175 = vmatprep.subr.bf16.mxu0 %v18592_v21  ;;  %v18833_v21 = vld [vmem:[%s21078_s3 + $0x80] sm:$0xff]  }
 0x34c   : > { %v5717_v29 = vrot.slane %v5713_v38, 1  ;;  %v7476_v38 = vshll.u32 %v18851_v6, 16 }
 0x34d   : > { %v6971_v10 = vld [vmem:[#allocation2 + $0xa8] sm:$0x80]  ;;  %v6700_v18 = vpop.permute.xlu0 %6699 }
 0x34e   : > { %14176 = vmatpush3.bf16.msra.mxu0 %v18604_v14  ;;  %v5718_v55 = vsel %vm21194_vm10, %v5716_v56, %v5717_v29  ;;  %v5729_v20 = vsel %vm5727_vm9, %v5717_v29, %v5728_v50  ;;  %v7052_v14 = vrot.slane %v6971_v10, 3  ;;  %v6667_v56 = vrot.slane %v6665_v48, 7  ;;  %v18857_v29 = vpop.permute.xlu1 %7000  ;;  %v18859_v10 = vld [vmem:[#allocation2 + $0x60] sm:$0xf0]  ;;  %vm21200_vm9 = vmmov %vm21199_vm6 }
 0x34f   : > { %14177 = vmatprep.subr.bf16.mxu0 %v18614_v30  ;;  %5724 = vst.msk [vmem:[#allocation2 + $0xb0] sm:$0xff] %vm661_vm8, %v5718_v55  ;;  %5730 = vst [vmem:[#allocation2 + $0xb8] sm:$0xf] %v5729_v20  ;;  %v6659_v50 = vor.u32 %v6658_v8, %v6655_v17  ;;  %v7478_v35 = vrot.slane %v7476_v38, 7 }
 0x350   : > { %vm21201_vm10 = vmmov %vm21195_vm14 }
 0x352   : > { %14178 = vmatpush3.bf16.msra.mxu0 %v18620_v40 }
 0x353   : > { %14179 = vmatprep.subr.bf16.mxu0 %v18627_v16 }
 0x356   : > { %14180 = vmatpush3.bf16.msra.mxu0 %v18635_v53  ;;  %v18828_v28 = vld [vmem:[#allocation2 + $0xb0] sm:$0xff]  ;;  %v6102_v42 = vld [vmem:[#allocation2 + $0xb8] sm:$0xf8] }
 0x357   : > { %14359 = vmatprep.subr.bf16.mxu0 %v18833_v21  ;;  %v7053_v30 = vrot.slane %v18828_v28, 3 }
 0x359   : > { %v7054_v40 = vsel %vm21195_vm14, %v7052_v14, %v7053_v30  ;;  %v6589_v14 = vld [vmem:[#allocation2 + $0x70] sm:$0x1]  ;;  %vm21202_vm14 = vcmask 1046528  }
 0x35a   : > { %7057 = vrot.lane.b32.xlu0 %v7054_v40, %s15689_s16  ;;  %v6668_v40 = vor.u32 %v6667_v56, %v6664_v26  ;;  %v6743_v62 = vshll.u32 %v6589_v14, 16 }
 0x35b   : > { %v6059_v16 = vpop.f32.mrb[56].mxu1 }
 0x35c   : > { %v6060_v53 = vadd.f32 %v18733_v33, %v6059_v16  ;;  %v6061_v44 = vpop.f32.mrb[57].mxu1  ;;  %v6669_v23 = vsel %vm21200_vm9, %v6659_v50, %v6668_v40  ;;  %vm21208_vm9 = vmmov %vm21201_vm10 }
 0x35d   : > { %v6062_v5 = vpop.f32.mrb[58].mxu1  ;;  %v7361_v44 = vshll.u32 %v7331_v41, 16 }
 0x35e   : > { %v6063_v43 = vadd.f32 %v18733_v33, %v6062_v5  ;;  %v6064_v39 = vpop.f32.mrb[59].mxu1  ;;  %v6074_v3 = vmax.f32 %v6060_v53, 0.0  ;;  %v7358_v53 = vshrl.u32 %v7331_v41, 16  ;;  %v18861_v5 = vld [vmem:[#allocation2 + $0x68] sm:$0xff] }
 0x360   : > { %v6075_v22 = vmax.f32 %v6063_v43, 0.0  ;;  %v6651_v43 = vrot.slane %v6649_v12, 6  ;;  %v7360_v48 = vrot.slane %v7358_v53, 4 }
 0x362   : > { %v6078_v34 = vpack.c.bf16 %v6075_v22, %v6074_v3  ;;  %v7475_v3 = vrot.slane %v7473_v45, 6  ;;  %v6587_v22 = vld [vmem:[#allocation2 + $0x60] sm:$0xf0] }
 0x363   : > { %v6067_v32 = vpop.f32.mrb[60].mxu1  ;;  %v6726_v17 = vshll.u32 %v6587_v22, 16 }
 0x364   : > { %v6081_v9 = vshrl.u32 %v6078_v34, 16  ;;  %v6084_v61 = vshll.u32 %v6078_v34, 16  ;;  %v6068_v0 = vadd.f32 %v18733_v33, %v6067_v32  ;;  %v6069_v2 = vpop.f32.mrb[61].mxu1  ;;  %v7373_v34 = vshrl.u32 %v18859_v10, 16 }
 0x365   : > { %v6070_v27 = vpop.f32.mrb[62].mxu1  ;;  %v6740_v32 = vshrl.u32 %v6589_v14, 16  ;;  %v7380_v2 = vshrl.u32 %v18861_v5, 16  ;;  %v18890_v53 = vor.u32 %v7478_v35, %v7475_v3  ;;  %v7345_v3 = vld [vmem:[#allocation2 + $0x28] sm:$0xff]  ;;  %v7346_v35 = vld [vmem:[#allocation2 + $0x30] sm:$0x1f] }
 0x366   : > { %v6083_v31 = vrot.slane %v6081_v9, 4  ;;  %v6086_v19 = vrot.slane %v6084_v61, 5  ;;  %v6071_v1 = vadd.f32 %v18733_v33, %v6070_v27  ;;  %v6072_v46 = vpop.f32.mrb[63].mxu1  ;;  %v6076_v51 = vmax.f32 %v6068_v0, 0.0 }
 0x367   : > { %v7468_v33 = vshll.u32 %v7343_v7, 16  ;;  %v6660_v9 = vsel %vm21199_vm6, %v6651_v43, %v6659_v50  ;;  %v7383_v7 = vshll.u32 %v18861_v5, 16  ;;  %v7363_v27 = vrot.slane %v7361_v44, 5 }
 0x368   : > { %v6087_v37 = vor.u32 %v6086_v19, %v6083_v31  ;;  %v6077_v49 = vmax.f32 %v6071_v1, 0.0  ;;  %v6723_v31 = vshrl.u32 %v6587_v22, 16  ;;  %v6767_v19 = vsel %vm661_vm8, %v6669_v23, %v18558_v4 }
 0x369   : > { %v7470_v16 = vrot.slane %v7468_v33, 7  ;;  %v6764_v1 = vsel %vm661_vm8, %v6660_v9, %v18564_v25  ;;  %v6736_v33 = vrot.slane %v7383_v7, 4  ;;  %v7375_v50 = vrot.slane %v7373_v34, 7 }
 0x36a   : > { %v6103_v63 = vsel %vm18847_vm7, %v6087_v37, %v6102_v42  ;;  %v6079_v59 = vpack.c.bf16 %v6077_v49, %v6076_v51  ;;  %v6702_v0 = vpop.permute.xlu1 %6701  ;;  %v6769_v15 = vsel %vm6293_vm13, %v6764_v1, %v6700_v18  ;;  %v6742_v51 = vrot.slane %v6740_v32, 3  ;;  %vm21206_vm7 = vmmov %vm21202_vm14 }
 0x36b   : > { %6104 = vst [vmem:[#allocation2 + $0xb8] sm:$0xf8] %v6103_v63  ;;  %v6745_v49 = vrot.slane %v6743_v62, 4  ;;  %v6771_v26 = vsel %vm6293_vm13, %v6767_v19, %v6702_v0  ;;  %v6733_v42 = vrot.slane %v7380_v2, 3  ;;  %v18886_v63 = vor.u32 %v7363_v27, %v7360_v48  ;;  %v7335_v62 = vld [vmem:[#allocation2 + $0xa8] sm:$0x80] }
 0x36c   : > { %v6089_v55 = vshrl.u32 %v6079_v59, 16  ;;  %v6092_v20 = vshll.u32 %v6079_v59, 16  ;;  %v7471_v41 = vor.u32 %v7470_v16, %v7467_v54  ;;  %v7376_v44 = vshll.u32 %v18859_v10, 16  ;;  %v6979_v16 = vld [vmem:[#allocation2 + $0x18] sm:$0xf8]  ;;  %v18908_v10 = vld [vmem:[%s21078_s3 + $0x88] sm:$0xff]  }
 0x36d   : > { %v6746_v14 = vor.u32 %v6745_v49, %v6742_v51  ;;  %v18897_v5 = vrot.slane %v7380_v2, 7  ;;  %v6737_v54 = vor.u32 %v6736_v33, %v6733_v42  ;;  %v7489_v32 = vrot.slane %v7345_v3, 3  ;;  %v15662_v42 = vld [vmem:[%s21078_s3] sm:$0xff]   ;;  %v15663_v33 = vld [vmem:[%s21078_s3 + $0x48] sm:$0xff]  }
 0x36e   : > { %v6091_v39 = vrot.slane %v6089_v55, 4  ;;  %v6094_v52 = vrot.slane %v6092_v20, 5  ;;  %v6725_v55 = vrot.slane %v6723_v31, 3  ;;  %v6728_v20 = vrot.slane %v6726_v17, 4  ;;  %v7334_v31 = vld [vmem:[#allocation2 + $0x70] sm:$0x1] }
 0x36f   : > { %v7378_v43 = vor.u32 %v7376_v44, %v7375_v50  ;;  %v7385_v18 = vor.u32 %v7383_v7, %v18897_v5  ;;  %v7405_v0 = vrot.slane %v18828_v28, 2  ;;  %v7490_v23 = vrot.slane %v7346_v35, 3 }
 0x370   : > { %v6095_v61 = vor.u32 %v6094_v52, %v6091_v39  ;;  %v6729_v39 = vor.u32 %v6728_v20, %v6725_v55  ;;  %v6747_v52 = vsel %vm21203_vm4, %v6737_v54, %v6746_v14  ;;  %v7404_v6 = vrot.slane %v7335_v62, 2  ;;  %v15671_v55 = vld [vmem:[%s21078_s3 + $0x68] sm:$0xff]   ;;  %v15673_v14 = vld [vmem:[%s21078_s3 + $0x70] sm:$0xff]   ;;  %v6969_v62 = vld [vmem:[#allocation2 + $0xa0] sm:$0xfc] }
 0x371   : > { %v7386_v7 = vsel %vm3601_vm2, %v7375_v50, %v7385_v18  ;;  %v7104_v27 = vshll.u32 %v6979_v16, 16  ;;  %v7491_v11 = vsel %vm21208_vm9, %v7489_v32, %v7490_v23  ;;  %v7391_v51 = vshll.u32 %v7334_v31, 16  ;;  %v15670_v50 = vld [vmem:[%s21078_s3 + $0x20] sm:$0xff]   ;;  %v15672_v20 = vld [vmem:[%s21078_s3 + $0x28] sm:$0xff]  }
 0x372   : > { %v6096_v46 = vsel %vm5726_vm15, %v6087_v37, %v6095_v61  ;;  %v6973_v24 = vld [vmem:[#allocation2 + $0xb8] sm:$0xf]  ;;  %v6738_v34 = vsel %vm21205_vm5, %v6729_v39, %v6737_v54  ;;  %vm21211_vm4 = vcmask 1041408   ;;  %vm21213_vm5 = vcmask 1042432  }
 0x373   : > { %6105 = vst.msk [vmem:[#allocation2 + $0xc0] sm:$0xff] %vm661_vm8, %v6096_v46  ;;  %v6719_v13 = vpop.permute.xlu0 %6718  ;;  %v7055_v8 = vrot.slane %v6973_v24, 3  ;;  %v6786_v61 = vrot.slane %v6738_v34, 1  ;;  %v7388_v46 = vshrl.u32 %v7334_v31, 16  ;;  %vm21217_vm9 = vmmov %vm21213_vm5 }
 0x374   : > { %v6773_v56 = vsel %vm6298_vm0, %v6769_v15, %v6719_v13  ;;  %v6721_v4 = vpop.permute.xlu1 %6720 }
 0x375   : > { %v6783_v25 = vrot.slane %v6773_v56, 1  ;;  %v6775_v37 = vsel %vm6298_vm0, %v6771_v26, %v6721_v4  ;;  %7061 = vrot.lane.b32.xlu0 %v7055_v8, %s15689_s16  ;;  %v7056_v12 = vsel %vm21201_vm10, %v7053_v30, %v7055_v8  ;;  %v7365_v30 = vsel %vm5726_vm15, %v18748_v57, %v18886_v63  ;;  %vm21204_vm15 = vmmov %vm21199_vm6  ;;  %v15661_v26 = vld [vmem:[%s21078_s3 + $0x40] sm:$0xff]  }
 0x376   : > { %v6784_v59 = vrot.slane %v6775_v37, 1  ;;  %7059 = vrot.lane.b32.xlu1 %v7056_v12, %s15689_s16  ;;  %v7110_v57 = vrot.slane %v7473_v45, 7  ;;  %v7480_v22 = vsel %vm21204_vm15, %v7471_v41, %v18890_v53  ;;  %v6787_v45 = vrot.slane %v6747_v52, 1  ;;  %v15665_v37 = vld [vmem:[%s21078_s3 + $0x50] sm:$0xff]  }
 0x377   : > { %vm21207_vm6 = vcmask 1045504   ;;  %v7390_v13 = vrot.slane %v7388_v46, 7  ;;  %v15666_v12 = vld [vmem:[%s21078_s3 + $0x10] sm:$0xff]   ;;  %v7081_v44 = vpop.permute.xlu0 %7080 }
 0x378   : > { %v6785_v40 = vsel %vm21202_vm14, %v6783_v25, %v6784_v59  ;;  %v7113_v9 = vor.u32 %v7476_v38, %v7110_v57  ;;  %v6788_v48 = vsel %vm21206_vm7, %v6786_v61, %v6787_v45  ;;  %v7337_v38 = vld [vmem:[#allocation2 + $0xb8] sm:$0xf]  ;;  %v7406_v19 = vsel %vm21207_vm6, %v7404_v6, %v7405_v0  ;;  %vm21209_vm10 = vmmov %vm21207_vm6  ;;  %v15664_v25 = vld [vmem:[%s21078_s3 + $0x8] sm:$0xff]   ;;  %v7083_v54 = vpop.permute.xlu1 %7082 }
 0x379   : > { %6831 = vmatprep.mubr.bf16.mxu1 %v6785_v40  ;;  %7481 = vrot.lane.b32.xlu0 %v7471_v41, %s15695_s12  ;;  %v7176_v49 = vrot.slane %v7110_v57, 4  ;;  %v15669_v41 = vld [vmem:[%s21078_s3 + $0x60] sm:$0xff]   ;;  %v15674_v40 = vld [vmem:[%s21078_s3 + $0x30] sm:$0xff]   ;;  %v7033_v61 = vshrl.u32 %v6969_v62, 16  ;;  %vm21210_vm14 = vmmov %vm21204_vm15 }
 0x37a   : > { %6832 = vmatmul.mubr.bf16.vlgmr.msra.gmra.mrb[68].mxu1 %v18685_v47  ;;  %7368 = vrot.lane.b32.xlu1 %v7365_v30, %s15689_s16  ;;  %v7101_v47 = vshrl.u32 %v6979_v16, 16  ;;  %v15676_v30 = vld [vmem:[%s21078_s3 + $0x38] sm:$0xff]   ;;  %v7339_v46 = vld [vmem:[#allocation2 + $0xc0] sm:$0xff]  ;;  %vm21212_vm15 = vmmov %vm21210_vm14 }
 0x37b   : > { %6839 = vmatprep.mubr.bf16.mxu1 %v6784_v59  ;;  %14344 = vmatpush3.bf16.msra.mxu1 %v18833_v21  ;;  %v15668_v59 = vld [vmem:[%s21078_s3 + $0x18] sm:$0xff]   ;;  %vm21215_vm7 = vmmov %vm21213_vm5 }
 0x37c   : > { %14345 = vmatprep.subr.bf16.mxu1 %v18908_v10  ;;  %v7103_v2 = vrot.slane %v7101_v47, 7  ;;  %vm21216_vm6 = vmmov %vm21213_vm5 }
 0x37d   : > { %7395 = vrot.lane.b32.xlu0 %v7378_v43, %s15695_s12  ;;  %v7015_v43 = vpop.permute.xlu1 %7014 }
 0x37e   : > { %7483 = vrot.lane.b32.xlu1 %v7480_v22, %s15695_s12  ;;  %v7114_v28 = vsel %vm3601_vm2, %v7103_v2, %v7113_v9  ;;  %v7106_v1 = vor.u32 %v7104_v27, %v7103_v2  ;;  %v6970_v2 = vld [vmem:[#allocation2 + $0xa8] sm:$0x7f] }
 0x37f   : > { %14346 = vmatpush3.bf16.msra.mxu1 %v18908_v10  ;;  %v7170_v24 = vrot.slane %v7114_v28, 4  ;;  %v7044_v27 = vshll.u32 %v6970_v2, 16 }
 0x380   : > { %14351 = vmatprep.subr.bf16.mxu1 %v18833_v21  ;;  %v7169_v17 = vrot.slane %v7106_v1, 4 }
 0x381   : > { %7492 = vrot.lane.b32.xlu0 %v7489_v32, %s15696_s25  ;;  %v7177_v56 = vsel %vm3590_vm11, %v7170_v24, %v7176_v49  ;;  %v7097_v52 = vpop.permute.xlu1 %7096  ;;  %v7046_v1 = vrot.slane %v7044_v27, 7 }
 0x382   : > { %6840 = vmatmul.mubr.bf16.gmra.mrb[72].mxu1 %v6781_v58  ;;  %7397 = vrot.lane.b32.xlu1 %v7386_v7, %s15695_s12  ;;  %v7407_v58 = vrot.slane %v7337_v38, 2  ;;  %v7171_v8 = vsel %vm3590_vm11, %v7169_v17, %v7170_v24  ;;  %v7041_v38 = vshrl.u32 %v6970_v2, 16  ;;  %v15677_v24 = vld [vmem:[#allocation2 + $0x68] sm:$0xff] }
 0x383   : > { %14347 = vmatprep.mubr.msk.bf16.mxu1 %vm661_vm8, %v6788_v48  ;;  %v7120_v17 = vsel %vm661_vm8, %v15677_v24, %v18857_v29 }
 0x384   : > { %v7408_v15 = vsel %vm21209_vm10, %v7405_v0, %v7407_v58  ;;  %v7036_v0 = vshll.u32 %v6969_v62, 16  ;;  %vm21218_vm10 = vmmov %vm21213_vm5 }
 0x385   : > { %7409 = vrot.lane.b32.xlu0 %v7406_v19, %s15696_s25  ;;  %v19011_v34 = vpop.permute.xlu1 %7002  ;;  %v7043_v19 = vrot.slane %v7041_v38, 6 }
 0x386   : > { %7494 = vrot.lane.b32.xlu1 %v7491_v11, %s15696_s25  ;;  %v7038_v48 = vrot.slane %v7036_v0, 7  ;;  %v6960_v0 = vld [vmem:[#allocation2 + $0x70] sm:$0x1] }
 0x387   : > { %v7123_v38 = vsel %vm661_vm8, %v6960_v0, %v19011_v34 }
 0x389   : > { %7462 = vrot.lane.b32.xlu0 %v18795_v60, %s15689_s16  ;;  %v7393_v60 = vor.u32 %v7391_v51, %v7390_v13  ;;  %v19015_v35 = vpop.permute.xlu1 %7016 }
 0x38a   : > { %14348 = vmatmul.mubr.msk.bf16.vlgmr.msra.gmra.mrb[76].mxu1 %vm661_vm8, %v6787_v45  ;;  %7411 = vrot.lane.b32.xlu1 %v7408_v15, %s15696_s25  ;;  %v6958_v15 = vld [vmem:[#allocation2 + $0x60] sm:$0xf0] }
 0x38b   : > { %14352 = vmatpush3.bf16.msra.mxu1 %v18833_v21  ;;  %14355 = vmatprep.mubr.msk.bf16.mxu1 %vm661_vm8, %v7171_v8  ;;  %v7394_v4 = vsel %vm3601_vm2, %v18897_v5, %v7393_v60  ;;  %v7013_v5 = vpop.permute.xlu0 %7012  ;;  %v7047_v8 = vor.u32 %v7046_v1, %v7043_v19  ;;  %v7117_v51 = vsel %vm661_vm8, %v6958_v15, %v18774_v36 }
 0x38c   : > { %14353 = vmatprep.subr.bf16.mxu1 %v18908_v10  ;;  %v7127_v60 = vsel %vm6293_vm13, %v7120_v17, %v7015_v43  ;;  %v7125_v29 = vsel %vm6293_vm13, %v7117_v51, %v7013_v5 }
 0x38d   : > { %7485 = vrot.lane.b32.xlu0 %v18890_v53, %s15695_s12  ;;  %v15675_v53 = vld [vmem:[%s21078_s3 + $0x78] sm:$0xff]  }
 0x38e   : > { %7370 = vrot.lane.b32.xlu1 %v18886_v63, %s15689_s16  ;;  %v15667_v63 = vld [vmem:[%s21078_s3 + $0x58] sm:$0xff]  }
 0x38f   : > { %14354 = vmatpush3.bf16.msra.mxu1 %v18908_v10  ;;  %v7095_v16 = vpop.permute.xlu0 %7094 }
 0x390   : > { %14197 = vmatprep.subr.bf16.mxu1 %v15661_v26  ;;  %v7338_v26 = vld [vmem:[#allocation2 + $0xb8] sm:$0xf8] }
 0x391   : > { %7496 = vrot.lane.b32.xlu0 %v7490_v23, %s15696_s25  ;;  %v7035_v23 = vrot.slane %v7033_v61, 6 }
 0x392   : > { %14356 = vmatmul.mubr.msk.bf16.vlgmr.msra.gmra.mrb[80].mxu1 %vm661_vm8, %v7177_v56  ;;  %7399 = vrot.lane.b32.xlu1 %v7394_v4, %s15695_s12  ;;  %v7424_v4 = vshrl.u32 %v7339_v46, 16 }
 0x393   : > { %14198 = vmatpush3.bf16.msra.mxu1 %v15662_v42  ;;  %v7085_v39 = vpop.permute.xlu0 %7084  ;;  %v7039_v28 = vor.u32 %v7038_v48, %v7035_v23 }
 0x394   : > { %14199 = vmatprep.subr.bf16.mxu1 %v15663_v33  ;;  %v7426_v61 = vrot.slane %v7424_v4, 6 }
 0x395   : > { %v7048_v33 = vsel %vm21210_vm14, %v7039_v28, %v7047_v8 }
 0x396   : > { %7413 = vrot.lane.b32.xlu1 %v7407_v58, %s15696_s25 }
 0x397   : > { %14200 = vmatpush3.bf16.msra.mxu1 %v15664_v25  ;;  %v7099_v47 = vpop.permute.xlu0 %7098 }
 0x398   : > { %14201 = vmatprep.subr.bf16.mxu1 %v15665_v37 }
 0x39b   : > { %14202 = vmatpush3.bf16.msra.mxu1 %v15666_v12  ;;  %v19013_v45 = vpop.permute.xlu0 %7366 }
 0x39c   : > { %14203 = vmatprep.subr.bf16.mxu1 %v15667_v63 }
 0x39f   : > { %14204 = vmatpush3.bf16.msra.mxu1 %v15668_v59  ;;  %v7427_v59 = vshll.u32 %v7339_v46, 16 }
 0x3a0   : > { %14205 = vmatprep.subr.bf16.mxu1 %v15669_v41 }
 0x3a1   : > { %v7027_v32 = vpop.permute.xlu0 %7026 }
 0x3a2   : > { %v7131_v63 = vsel %vm6298_vm0, %v7125_v29, %v7027_v32 }
 0x3a3   : > { %14206 = vmatpush3.bf16.msra.mxu1 %v15670_v50  ;;  %v7163_v62 = vrot.slane %v7131_v63, 4 }
 0x3a4   : > { %14207 = vmatprep.subr.bf16.mxu1 %v15671_v55  ;;  %v19040_v55 = vld [vmem:[#allocation2 + $0x8] sm:$0xff] }
 0x3a5   : > { %v19019_v7 = vpop.permute.xlu0 %7458  ;;  %v7501_v32 = vrot.slane %v19040_v55, 6 }
 0x3a7   : > { %14208 = vmatpush3.bf16.msra.mxu1 %v15672_v20  ;;  %v7416_v20 = vshrl.u32 %v7338_v26, 16  ;;  %v7564_v63 = vrot.slane %v7501_v32, 5 }
 0x3a8   : > { %14209 = vmatprep.subr.bf16.mxu1 %v15673_v14  ;;  %v7419_v14 = vshll.u32 %v7338_v26, 16  ;;  %v7327_v26 = vld [vmem:[#allocation2 + $0x78] sm:$0xe0] }
 0x3a9   : > { %v19017_v9 = vpop.permute.xlu1 %7030  ;;  %v7418_v2 = vrot.slane %v7416_v20, 6  ;;  %v7505_v4 = vsel %vm661_vm8, %v7327_v26, %v19013_v45 }
 0x3aa   : > { %v7421_v23 = vrot.slane %v7419_v14, 7 }
 0x3ab   : > { %14210 = vmatpush3.bf16.msra.mxu1 %v15674_v40 }
 0x3ac   : > { %14211 = vmatprep.subr.bf16.mxu1 %v15675_v53  ;;  %v7422_v46 = vor.u32 %v7421_v23, %v7418_v2 }
 0x3ad   : > { %v7029_v6 = vpop.permute.xlu1 %7028 }
 0x3ae   : > { %v7133_v56 = vsel %vm6298_vm0, %v7127_v60, %v7029_v6  ;;  %v7526_v15 = vsel %vm661_vm8, %v7422_v46, %v19019_v7 }
 0x3af   : > { %14212 = vmatpush3.bf16.msra.mxu1 %v15676_v30  ;;  %v7164_v40 = vrot.slane %v7133_v56, 4 }
 0x3b1   : > { %v19022_v58 = vpop.permute.xlu1 %7460 }
 0x3ca   : > { %v19003_v57 = vpop.f32.mrb[64].mxu1 }
 0x3cb   : > { %v19005_v3 = vpop.f32.mrb[65].mxu1 }
 0x3cc   : > { %v19007_v22 = vpop.f32.mrb[66].mxu1  ;;  %v7058_v31 = vpop.permute.xlu0 %7057 }
 0x3cd   : > { %v19009_v18 = vpop.f32.mrb[67].mxu1  ;;  %v7138_v11 = vsel %vm661_vm8, %v7039_v28, %v7058_v31  ;;  %v7129_v28 = vsel %vm6293_vm13, %v7123_v38, %v19015_v35 }
 0x3ce   : > { %v7146_v13 = vsel %vm6293_vm13, %v7138_v11, %v7081_v44  ;;  %v7135_v1 = vsel %vm6298_vm0, %v7129_v28, %v19017_v9 }
 0x3cf   : > { %v7152_v37 = vsel %vm6298_vm0, %v7146_v13, %v7095_v16  ;;  %v7172_v13 = vrot.slane %v7135_v1, 4 }
 0x3d0   : > { %v7166_v5 = vrot.slane %v7152_v37, 4 }
 0x3e7   : > { %v7062_v49 = vpop.permute.xlu0 %7061 }
 0x3e8   : > { %v7144_v42 = vsel %vm661_vm8, %v7043_v19, %v7062_v49  ;;  %v7060_v25 = vpop.permute.xlu1 %7059  ;;  %v7173_v49 = vsel %vm3590_vm11, %v7164_v40, %v7172_v13 }
 0x3e9   : > { %v7150_v12 = vsel %vm6293_vm13, %v7144_v42, %v7085_v39  ;;  %v7141_v36 = vsel %vm661_vm8, %v7048_v33, %v7060_v25  ;;  %v7347_v39 = vld [vmem:[#allocation2] sm:$0xf8] }
 0x3ea   : > { %v7156_v41 = vsel %vm6298_vm0, %v7150_v12, %v7099_v47  ;;  %v7148_v50 = vsel %vm6293_vm13, %v7141_v36, %v7083_v54  ;;  %v7429_v47 = vrot.slane %v7427_v59, 7  ;;  %v7500_v6 = vrot.slane %v7347_v39, 6 }
 0x3eb   : > { %v7154_v53 = vsel %vm6298_vm0, %v7148_v50, %v7097_v52  ;;  %v7482_v30 = vpop.permute.xlu0 %7481  ;;  %v7174_v43 = vrot.slane %v7156_v41, 4  ;;  %v7165_v52 = vsel %vm3590_vm11, %v7163_v62, %v7164_v40 }
 0x3ec   : > { %v7369_v44 = vpop.permute.xlu1 %7368  ;;  %v7167_v16 = vrot.slane %v7154_v53, 4  ;;  %v7502_v19 = vsel %vm21211_vm4, %v7500_v6, %v7501_v32  ;;  %v7430_v11 = vor.u32 %v7429_v47, %v7426_v61  ;;  %v7534_v35 = vsel %vm6293_vm13, %v7526_v15, %v7482_v30  ;;  %v7329_v32 = vld [vmem:[#allocation2 + $0x88] sm:$0x3] }
 0x3ed   : > { %v7558_v17 = vrot.slane %v7502_v19, 5  ;;  %v7557_v8 = vrot.slane %v7500_v6, 5  ;;  %v19091_v6 = vld [vmem:[%s21079_s4] ss:$0 sm:$0xff]  ;;  %vm6913_vm4 = vsmask.f32 4368 }
 0x3ee   : > { %v7168_v54 = vsel %vm3590_vm11, %v7166_v5, %v7167_v16  ;;  %v7175_v31 = vsel %vm3590_vm11, %v7167_v16, %v7174_v43  ;;  %vm21214_vm11 = vmmov %vm21213_vm5 }
 0x3ef   : > { %v7396_v48 = vpop.permute.xlu0 %7395  ;;  %7220 = vmatprep.mubr.bf16.mxu0 %v7168_v54  ;;  %v7565_v40 = vsel %vm21215_vm7, %v7558_v17, %v7564_v63  ;;  %vm21223_vm7 = vcmask 1040384  }
 0x3f0   : > { %v7484_v27 = vpop.permute.xlu1 %7483  ;;  %7221 = vmatmul.mubr.bf16.vlgmr.msra.gmra.mrb[72].mxu0 %v7165_v52  ;;  %v7513_v33 = vsel %vm6293_vm13, %v7505_v4, %v7396_v48  ;;  %v6565_v4 = vld [vmem:[#allocation3 + $0xc] sm:$0x1] }
 0x3f1   : > { %7228 = vmatprep.mubr.bf16.mxu0 %v7175_v31  ;;  %14360 = vmatpush3.bf16.msra.mxu0 %v18833_v21  ;;  %v7431_v21 = vsel %vm21212_vm15, %v7422_v46, %v7430_v11  ;;  %vm19115_vm15 = vmor %vm3601_vm2, %vm6913_vm4 }
 0x3f2   : > { %14361 = vmatprep.subr.bf16.mxu0 %v18908_v10  ;;  %v7529_v9 = vsel %vm661_vm8, %v7431_v21, %v19022_v58  ;;  %v7328_v58 = vld [vmem:[#allocation2 + $0x80] sm:$0xff] }
 0x3f3   : > { %v7493_v34 = vpop.permute.xlu0 %7492  ;;  %v7536_v56 = vsel %vm6293_vm13, %v7529_v9, %v7484_v27  ;;  %v7508_v37 = vsel %vm661_vm8, %v7328_v58, %v7369_v44 }
 0x3f4   : > { %v7398_v24 = vpop.permute.xlu1 %7397  ;;  %v7540_v51 = vsel %vm6298_vm0, %v7534_v35, %v7493_v34 }
 0x3f5   : > { %14362 = vmatpush3.bf16.msra.mxu0 %v18908_v10  ;;  %v7559_v10 = vsel %vm21213_vm5, %v7557_v8, %v7558_v17  ;;  %v7554_v25 = vrot.slane %v7540_v51, 5  ;;  %v7515_v59 = vsel %vm6293_vm13, %v7508_v37, %v7398_v24 }
 0x3f7   : > { %v7410_v60 = vpop.permute.xlu0 %7409 }
 0x3f8   : > { %v7495_v7 = vpop.permute.xlu1 %7494  ;;  %7229 = vmatmul.mubr.bf16.gmra.mrb[76].mxu0 %v7173_v49  ;;  %v7519_v12 = vsel %vm6298_vm0, %v7513_v33, %v7410_v60 }
 0x3f9   : > { %v7542_v42 = vsel %vm6298_vm0, %v7536_v56, %v7495_v7  ;;  %14363 = vmatprep.mubr.msk.bf16.mxu0 %vm661_vm8, %v7559_v10  ;;  %v7551_v55 = vrot.slane %v7519_v12, 5 }
 0x3fa   : > { %v7555_v29 = vrot.slane %v7542_v42, 5 }
 0x3fb   : > { %v7463_v36 = vpop.permute.xlu0 %7462 }
 0x3fc   : > { %v7412_v41 = vpop.permute.xlu1 %7411  ;;  %v7556_v45 = vsel %vm21214_vm11, %v7554_v25, %v7555_v29  ;;  %v7532_v44 = vsel %vm661_vm8, %v7430_v11, %v7463_v36  ;;  %vm7318_vm11 = vcmask 519169  }
 0x3fd   : > { %v7521_v50 = vsel %vm6298_vm0, %v7515_v59, %v7412_v41  ;;  %7608 = vmatprep.mubr.bf16.mxu1 %v7556_v45  ;;  %vm7731_vm4 = vmand %vm7318_vm11, %vm4666_vm12  ;;  %vm21230_vm12 = vcmask 1046528  }
 0x3fe   : > { %v7552_v20 = vrot.slane %v7521_v50, 5 }
 0x3ff   : > { %v7486_v14 = vpop.permute.xlu0 %7485 }
 0x400   : > { %v7371_v53 = vpop.permute.xlu1 %7370  ;;  %14364 = vmatmul.mubr.msk.bf16.vlgmr.msra.gmra.mrb[80].mxu0 %vm661_vm8, %v7565_v40  ;;  %v7553_v30 = vsel %vm21216_vm6, %v7551_v55, %v7552_v20  ;;  %v7538_v5 = vsel %vm6293_vm13, %v7532_v44, %v7486_v14 }
 0x401   : > { %7609 = vmatmul.mubr.bf16.vlgmr.msra.gmra.mrb[84].mxu1 %v7553_v30  ;;  %v7511_v61 = vsel %vm661_vm8, %v7329_v32, %v7371_v53  ;;  %vm6559_vm8 = vcmask 519168  }
 0x402   : > { %vm19123_vm5 = vmand %vm6559_vm8, %vm3942_vm3  ;;  %vm7302_vm3 = vcmask 1044484  }
 0x403   : > { %v7497_v16 = vpop.permute.xlu0 %7496  ;;  %vm19242_vm6 = vmor %vm21223_vm7, %vm7302_vm3  ;;  %vm21231_vm3 = vsmask.f32 6400 }
 0x404   : > { %v7544_v43 = vsel %vm6298_vm0, %v7538_v5, %v7497_v16  ;;  %v7400_v39 = vpop.permute.xlu1 %7399 }
 0x405   : > { %v7562_v62 = vrot.slane %v7544_v43, 5  ;;  %v7517_v54 = vsel %vm6293_vm13, %v7511_v61, %v7400_v39 }
 0x407   : > { %v7563_v47 = vsel %vm21217_vm9, %v7555_v29, %v7562_v62  ;;  %vm7322_vm9 = vcmask 517120  }
 0x408   : > { %v7414_v0 = vpop.permute.xlu1 %7413  ;;  %7616 = vmatprep.mubr.bf16.mxu1 %v7563_v47 }
 0x409   : > { %v7523_v2 = vsel %vm6298_vm0, %v7517_v54, %v7414_v0  ;;  %vm6563_vm0 = vcmask 516096  }
 0x40a   : > { %v7560_v23 = vrot.slane %v7523_v2, 5  ;;  %vm6564_vm14 = vmand %vm6563_vm0, %vm3601_vm2 }
 0x40c   : > { %v14117_v48 = vpop.f32.mrb[64].mxu0  ;;  %v7561_v52 = vsel %vm21218_vm10, %v7552_v20, %v7560_v23  ;;  %vm21226_vm10 = vsmask.f32 1280 }
 0x40d   : > { %v14118_v38 = vpop.f32.mrb[65].mxu0  ;;  %7617 = vmatmul.mubr.bf16.gmra.mrb[88].mxu1 %v7561_v52 }
 0x40e   : > { %v14119_v27 = vadd.f32 %v14118_v38, %v14117_v48  ;;  %v14120_v31 = vpop.f32.mrb[66].mxu0 }
 0x40f   : > { %v14121_v28 = vpop.f32.mrb[67].mxu0 }
 0x410   : > { %v6476_v19 = vadd.f32 %v14119_v27, %v19091_v6  ;;  %v14122_v1 = vadd.f32 %v14121_v28, %v14120_v31 }
 0x412   : > { %v6525_v11 = vadd.f32 %v19005_v3, %v6476_v19  ;;  %v6479_v46 = vadd.f32 %v14122_v1, %v19091_v6  ;;  %v14780_v1 = vld [vmem:[%s21080_s5 + $0x78] sm:$0xff]  }
 0x414   : > { %v6539_v34 = vmax.f32 %v6525_v11, 0.0  ;;  %v6528_v24 = vadd.f32 %v19009_v18, %v6479_v46  ;;  %v14123_v17 = vpop.f32.mrb[68].mxu0 }
 0x415   : > { %v14124_v15 = vpop.f32.mrb[69].mxu0 }
 0x416   : > { %v14085_v13 = vpack.c.bf16 %v6539_v34, %v6539_v34  ;;  %v6540_v21 = vmax.f32 %v6528_v24, 0.0  ;;  %v14125_v35 = vadd.f32 %v14124_v15, %v14123_v17  ;;  %v14126_v8 = vpop.f32.mrb[70].mxu0 }
 0x417   : > { %v14127_v9 = vpop.f32.mrb[71].mxu0 }
 0x418   : > { %6560 = vst.msk [vmem:[#allocation3] sm:$0xf] %vm6559_vm8, %v14085_v13  ;;  %v14086_v51 = vpack.c.bf16 %v6540_v21, %v6540_v21  ;;  %v6484_v60 = vadd.f32 %v14125_v35, %v19091_v6  ;;  %v14128_v49 = vadd.f32 %v14127_v9, %v14126_v8 }
 0x41a   : > { %6561 = vst.msk [vmem:[#allocation3 + $0x4] sm:$0xf] %vm6559_vm8, %v14086_v51  ;;  %v6533_v3 = vadd.f32 %v19003_v57, %v6484_v60  ;;  %v6487_v18 = vadd.f32 %v14128_v49, %v19091_v6 }
 0x41c   : > { %v6541_v26 = vmax.f32 %v6533_v3, 0.0  ;;  %v6536_v56 = vadd.f32 %v19007_v22, %v6487_v18 }
 0x41e   : > { %v14087_v7 = vpack.c.bf16 %v6541_v26, %v6541_v26  ;;  %v6542_v10 = vmax.f32 %v6536_v56, 0.0 }
 0x420   : > { %6562 = vst.msk [vmem:[#allocation3 + $0x8] sm:$0xf] %vm6559_vm8, %v14087_v7  ;;  %v14088_v42 = vpack.c.bf16 %v6542_v10, %v6542_v10 }
 0x422   : > { %v6566_v58 = vsel %vm6564_vm14, %v14088_v42, %v6565_v4  ;;  %vm7690_vm14 = vsmask.f32 5392 }
 0x423   : > { %6567 = vst [vmem:[#allocation3 + $0xc] sm:$0x1] %v6566_v58 }
 0x42a   : > { %v6951_v60 = vld [vmem:[#allocation3 + $0xc] sm:$0xf] }
 0x44d   : > { %v14149_v33 = vpop.f32.mrb[68].mxu1 }
 0x44e   : > { %v14150_v25 = vpop.f32.mrb[69].mxu1 }
 0x44f   : > { %v14151_v57 = vadd.f32 %v14150_v25, %v14149_v33  ;;  %v14152_v29 = vpop.f32.mrb[70].mxu1 }
 0x450   : > { %v14153_v37 = vpop.f32.mrb[71].mxu1 }
 0x451   : > { %v14154_v12 = vadd.f32 %v14153_v37, %v14152_v29  ;;  %v6834_v20 = vadd.f32 %v14151_v57, %v19091_v6 }
 0x453   : > { %v6837_v5 = vadd.f32 %v14154_v12, %v19091_v6 }
 0x455   : > { %v14155_v36 = vpop.f32.mrb[72].mxu1 }
 0x456   : > { %v14156_v22 = vpop.f32.mrb[73].mxu1 }
 0x457   : > { %v14157_v63 = vadd.f32 %v14156_v22, %v14155_v36  ;;  %v14158_v59 = vpop.f32.mrb[74].mxu1 }
 0x458   : > { %v14159_v41 = vpop.f32.mrb[75].mxu1 }
 0x459   : > { %v14160_v45 = vadd.f32 %v14159_v41, %v14158_v59  ;;  %v6842_v50 = vadd.f32 %v14157_v63, %v19091_v6  ;;  %v14756_v41 = vld [vmem:[%s21080_s5 + $0x40] sm:$0xff]  }
 0x45a   : > { %14229 = vmatprep.subr.bf16.mxu0 %v14756_v41 }
 0x45b   : > { %v6845_v53 = vadd.f32 %v14160_v45, %v19091_v6  ;;  %v14757_v45 = vld [vmem:[%s21080_s5] sm:$0xff]  }
 0x45c   : > { %14230 = vmatpush3.bf16.msra.mxu0 %v14757_v45 }
 0x45d   : > { %v14349_v55 = vpop.f32.mrb[76].mxu1 }
 0x45e   : > { %v6891_v14 = vadd.f32 %v14349_v55, %v6842_v50  ;;  %v6882_v40 = vpop.f32.mrb[77].mxu1  ;;  %v14758_v50 = vld [vmem:[%s21080_s5 + $0x48] sm:$0xff]  }
 0x45f   : > { %v6883_v30 = vadd.f32 %v6882_v40, %v6834_v20  ;;  %v14350_v44 = vpop.f32.mrb[78].mxu1  ;;  %v14762_v20 = vld [vmem:[%s21080_s5 + $0xc0] sm:$0xff]   ;;  %v14759_v40 = vld [vmem:[%s21080_s5 + $0x8] sm:$0xff]   ;;  %14231 = vmatprep.subr.bf16.mxu0 %v14758_v50 }
 0x460   : > { %v6899_v16 = vmax.f32 %v6891_v14, 0.0  ;;  %v6894_v43 = vadd.f32 %v14350_v44, %v6845_v53  ;;  %v6885_v39 = vpop.f32.mrb[79].mxu1  ;;  %v14763_v14 = vld [vmem:[%s21080_s5 + $0x80] sm:$0xff]   ;;  %v14766_v53 = vld [vmem:[%s21080_s5 + $0xc8] sm:$0xff]   ;;  %14257 = vmatprep.subr.bf16.mxu1 %v14762_v20  ;;  %14232 = vmatpush3.bf16.msra.mxu0 %v14759_v40 }
 0x461   : > { %v6897_v62 = vmax.f32 %v6883_v30, 0.0  ;;  %v6886_v32 = vadd.f32 %v6885_v39, %v6837_v5  ;;  %v14760_v30 = vld [vmem:[%s21080_s5 + $0x50] sm:$0xff]   ;;  %14258 = vmatpush3.bf16.msra.mxu1 %v14763_v14  ;;  %v14767_v44 = vld [vmem:[%s21080_s5 + $0x88] sm:$0xff]  }
 0x462   : > { %v14091_v61 = vpack.c.bf16 %v6899_v16, %v6899_v16  ;;  %v6900_v47 = vmax.f32 %v6894_v43, 0.0  ;;  %v14761_v5 = vld [vmem:[%s21080_s5 + $0x10] sm:$0xff]   ;;  %14259 = vmatprep.subr.bf16.mxu1 %v14766_v53  ;;  %14233 = vmatprep.subr.bf16.mxu0 %v14760_v30  ;;  %v14764_v43 = vld [vmem:[%s21080_s5 + $0x58] sm:$0xff]  }
 0x463   : > { %v14089_v54 = vpack.c.bf16 %v6897_v62, %v6897_v62  ;;  %v6898_v0 = vmax.f32 %v6886_v32, 0.0  ;;  %v14770_v16 = vld [vmem:[%s21080_s5 + $0xd0] sm:$0xff]   ;;  %v14765_v62 = vld [vmem:[%s21080_s5 + $0x18] sm:$0xff]  }
 0x464   : > { %v6933_v2 = vshrl.u32 %v14091_v61, 16  ;;  %v14092_v23 = vpack.c.bf16 %v6900_v47, %v6900_v47  ;;  %v6936_v24 = vshll.u32 %v14091_v61, 16  ;;  %v14771_v39 = vld [vmem:[%s21080_s5 + $0x90] sm:$0xff]   ;;  %14234 = vmatpush3.bf16.msra.mxu0 %v14761_v5  ;;  %v14774_v32 = vld [vmem:[%s21080_s5 + $0xd8] sm:$0xff]   ;;  %v14768_v61 = vld [vmem:[%s21080_s5 + $0x60] sm:$0xff]  }
 0x465   : > { %v6916_v48 = vshrl.u32 %v14089_v54, 16  ;;  %v14090_v52 = vpack.c.bf16 %v6898_v0, %v6898_v0  ;;  %v19110_v38 = vpop.f32.mrb[80].mxu1  ;;  %v6919_v19 = vshll.u32 %v14089_v54, 16  ;;  %14260 = vmatpush3.bf16.msra.mxu1 %v14767_v44  ;;  %14235 = vmatprep.subr.bf16.mxu0 %v14764_v43  ;;  %v14775_v47 = vld [vmem:[%s21080_s5 + $0x98] sm:$0xff]   ;;  %v14769_v54 = vld [vmem:[%s21080_s5 + $0x20] sm:$0xff]  }
 0x466   : > { %v6935_v27 = vrot.slane %v6933_v2, 7  ;;  %v19112_v31 = vpop.f32.mrb[81].mxu1  ;;  %v6942_v15 = vshll.u32 %v14092_v23, 16  ;;  %14261 = vmatprep.subr.bf16.mxu1 %v14770_v16  ;;  %v14778_v0 = vld [vmem:[%s21080_s5 + $0xe0] sm:$0xff]   ;;  %v14772_v2 = vld [vmem:[%s21080_s5 + $0x68] sm:$0xff]  }
 0x467   : > { %v6918_v28 = vrot.slane %v6916_v48, 7  ;;  %v6924_v11 = vshrl.u32 %v14090_v52, 16  ;;  %v19119_v46 = vpop.f32.mrb[82].mxu1  ;;  %v6927_v8 = vshll.u32 %v14090_v52, 16  ;;  %v14779_v23 = vld [vmem:[%s21080_s5 + $0xa0] sm:$0xff]   ;;  %v14773_v48 = vld [vmem:[%s21080_s5 + $0x28] sm:$0xff]  }
 0x468   : > { %v6940_v17 = vrot.slane %v6935_v27, 4  ;;  %v19127_v13 = vpop.f32.mrb[83].mxu1  ;;  %v6938_v9 = vor.u32 %v6936_v24, %v6935_v27  ;;  %14236 = vmatpush3.bf16.msra.mxu0 %v14765_v62  ;;  %v14782_v52 = vld [vmem:[%s21080_s5 + $0xe8] sm:$0xff]   ;;  %v14776_v27 = vld [vmem:[%s21080_s5 + $0x70] sm:$0xff]  }
 0x469   : > { %v6921_v21 = vor.u32 %v6919_v19, %v6918_v28  ;;  %v6926_v35 = vrot.slane %v6924_v11, 7  ;;  %v6922_v49 = vrot.slane %v6918_v28, 4  ;;  %14262 = vmatpush3.bf16.msra.mxu1 %v14771_v39  ;;  %14237 = vmatprep.subr.bf16.mxu0 %v14768_v61  ;;  %v14783_v28 = vld [vmem:[%s21080_s5 + $0xa8] sm:$0xff]   ;;  %v14777_v19 = vld [vmem:[%s21080_s5 + $0x30] sm:$0xff]   ;;  %v14781_v11 = vld [vmem:[%s21080_s5 + $0x38] sm:$0xff]  }
 0x46a   : > { %v6944_v51 = vsel %vm19115_vm15, %v6940_v17, %v6942_v15  ;;  %14263 = vmatprep.subr.bf16.mxu1 %v14774_v32 }
 0x46b   : > { %v6952_v3 = vsel %vm19123_vm5, %v6921_v21, %v6951_v60  ;;  %6957 = vst.msk [vmem:[#allocation3 + $0x18] sm:$0x1] %vm6563_vm0, %v6944_v51  ;;  %v6929_v18 = vor.u32 %v6927_v8, %v6926_v35  ;;  %v6931_v26 = vrot.slane %v6926_v35, 4  ;;  %vm7323_vm0 = vmand %vm7322_vm9, %vm21226_vm10 }
 0x46c   : > { %6953 = vst [vmem:[#allocation3 + $0xc] sm:$0xf] %v6952_v3  ;;  %14238 = vmatpush3.bf16.msra.mxu0 %v14769_v54  ;;  %v7324_v54 = vld [vmem:[#allocation3 + $0x24] sm:$0x3] }
 0x46d   : > { %v6930_v56 = vsel %vm19115_vm15, %v6922_v49, %v6929_v18  ;;  %v6939_v7 = vsel %vm19115_vm15, %v6931_v26, %v6938_v9  ;;  %14264 = vmatpush3.bf16.msra.mxu1 %v14775_v47  ;;  %14239 = vmatprep.subr.bf16.mxu0 %v14772_v2  ;;  %vm21227_vm15 = vmmov %vm21226_vm10 }
 0x46e   : > { %6954 = vst.msk [vmem:[#allocation3 + $0x10] sm:$0xf] %vm6559_vm8, %v6930_v56  ;;  %6955 = vst.msk [vmem:[#allocation3 + $0x14] sm:$0xf] %vm6559_vm8, %v6939_v7  ;;  %14265 = vmatprep.subr.bf16.mxu1 %v14778_v0 }
 0x46f   : > { %vm19267_vm5 = vmor %vm21227_vm15, %vm7690_vm14 }
 0x470   : > { %14240 = vmatpush3.bf16.msra.mxu0 %v14773_v48 }
 0x471   : > { %14266 = vmatpush3.bf16.msra.mxu1 %v14779_v23  ;;  %14241 = vmatprep.subr.bf16.mxu0 %v14776_v27 }
 0x472   : > { %v7819_v10 = vld [vmem:[#allocation3 + $0x18] sm:$0x1]  ;;  %14267 = vmatprep.subr.bf16.mxu1 %v14782_v52 }
 0x473   : > { %v19140_v4 = vld [vmem:[#allocation3 + $0xc] sm:$0xf] }
 0x474   : > { %14242 = vmatpush3.bf16.msra.mxu0 %v14777_v19 }
 0x475   : > { %v19142_v42 = vld [vmem:[#allocation3 + $0x10] sm:$0xf]  ;;  %v19144_v58 = vld [vmem:[#allocation3 + $0x14] sm:$0xf]  ;;  %14268 = vmatpush3.bf16.msra.mxu1 %v14783_v28  ;;  %14243 = vmatprep.subr.bf16.mxu0 %v14780_v1 }
 0x476   : > { %v13104_v33 = vcombine.low %v19140_v4, %v19142_v42  ;;  %v13105_v25 = vcombine.low %v19144_v58, %v7819_v10 }
 0x478   : > { %v7856_v57 = vshll.u32 %v13104_v33, 16  ;;  %v7861_v29 = vshll.u32 %v13105_v25, 16  ;;  %v7854_v37 = vshrl.u32 %v13104_v33, 16  ;;  %v7865_v59 = vshrl.u32 %v13105_v25, 16  ;;  %14244 = vmatpush3.bf16.msra.mxu0 %v14781_v11 }
 0x47a   : > { %v7858_v12 = vrot.slane %v7856_v57, 1  ;;  %v7863_v22 = vrot.slane %v7861_v29, 1 }
 0x47c   : > { %v7859_v36 = vor.u32 %v7858_v12, %v7854_v37  ;;  %v7867_v55 = vor.u32 %v7865_v59, %v7863_v22 }
 0x47e   : > { %v7864_v63 = vsel %vm464_vm1, %v7859_v36, %v7863_v22 }
 0x47f   : > { %7868 = vrot.lane.b32.xlu1 %v7864_v63, %s15695_s12 }
 0x483   : > { %7870 = vrot.lane.b32.xlu1 %v7867_v55, %s15695_s12 }
 0x4c3   : > { %v14181_v34 = vpop.f32.mrb[72].mxu0 }
 0x4c4   : > { %v14182_v24 = vpop.f32.mrb[73].mxu0 }
 0x4c5   : > { %v14183_v17 = vadd.f32 %v14182_v24, %v14181_v34  ;;  %v14184_v15 = vpop.f32.mrb[74].mxu0 }
 0x4c6   : > { %v14185_v21 = vpop.f32.mrb[75].mxu0 }
 0x4c7   : > { %v7223_v35 = vadd.f32 %v14183_v17, %v19091_v6  ;;  %v14186_v8 = vadd.f32 %v14185_v21, %v14184_v15 }
 0x4c9   : > { %v7272_v9 = vadd.f32 %v19112_v31, %v7223_v35  ;;  %v7226_v51 = vadd.f32 %v14186_v8, %v19091_v6 }
 0x4cb   : > { %v7286_v60 = vmax.f32 %v7272_v9, 0.0  ;;  %v7275_v49 = vadd.f32 %v19127_v13, %v7226_v51  ;;  %v14187_v3 = vpop.f32.mrb[76].mxu0 }
 0x4cc   : > { %v14188_v18 = vpop.f32.mrb[77].mxu0 }
 0x4cd   : > { %v14093_v26 = vpack.c.bf16 %v7286_v60, %v7286_v60  ;;  %v7287_v56 = vmax.f32 %v7275_v49, 0.0  ;;  %v14189_v7 = vadd.f32 %v14188_v18, %v14187_v3  ;;  %v14190_v10 = vpop.f32.mrb[78].mxu0 }
 0x4ce   : > { %v14191_v33 = vpop.f32.mrb[79].mxu0 }
 0x4cf   : > { %v7304_v25 = vrot.slane %v14093_v26, 7  ;;  %v14094_v57 = vpack.c.bf16 %v7287_v56, %v7287_v56  ;;  %v7231_v29 = vadd.f32 %v14189_v7, %v19091_v6  ;;  %v14192_v37 = vadd.f32 %v14191_v33, %v14190_v10 }
 0x4d1   : > { %v7305_v13 = vrot.slane %v7304_v25, 4  ;;  %7319 = vst.msk [vmem:[#allocation3 + $0x18] sm:$0xe] %vm7318_vm11, %v7304_v25  ;;  %v7306_v12 = vrot.slane %v14094_v57, 7  ;;  %v7280_v36 = vadd.f32 %v19110_v38, %v7231_v29  ;;  %v7234_v22 = vadd.f32 %v14192_v37, %v19091_v6  ;;  %vm21234_vm11 = vmmov %vm21231_vm3 }
 0x4d3   : > { %v7307_v63 = vsel %vm19242_vm6, %v7305_v13, %v7306_v12  ;;  %v7288_v59 = vmax.f32 %v7280_v36, 0.0  ;;  %v7283_v41 = vadd.f32 %v19119_v46, %v7234_v22  ;;  %v14365_v45 = vpop.f32.mrb[80].mxu0  ;;  %v7308_v5 = vrot.slane %v7306_v12, 4  ;;  %v19275_v13 = vld [vmem:[%s21080_s5 + $0x100] sm:$0xff]   ;;  %v14786_v22 = vld [vmem:[%s21080_s5 + $0xf0] sm:$0xff]  }
 0x4d4   : > { %7320 = vst.msk [vmem:[#allocation3 + $0x1c] sm:$0xf] %vm6559_vm8, %v7307_v63  ;;  %v14213_v50 = vpop.f32.mrb[84].mxu1  ;;  %v7659_v55 = vpop.f32.mrb[81].mxu0  ;;  %14367 = vmatprep.subr.bf16.mxu0 %v19275_v13  ;;  %14269 = vmatprep.subr.bf16.mxu1 %v14786_v22 }
 0x4d5   : > { %v14095_v20 = vpack.c.bf16 %v7288_v59, %v7288_v59  ;;  %v7289_v14 = vmax.f32 %v7283_v41, 0.0  ;;  %v14214_v40 = vpop.f32.mrb[85].mxu1  ;;  %v14366_v53 = vpop.f32.mrb[82].mxu0 }
 0x4d6   : > { %v14215_v30 = vadd.f32 %v14214_v40, %v14213_v50  ;;  %v14216_v38 = vpop.f32.mrb[86].mxu1  ;;  %v7662_v44 = vpop.f32.mrb[83].mxu0  ;;  %v14791_v50 = vld [vmem:[%s21080_s5 + $0xf8] sm:$0xff]  }
 0x4d7   : > { %v7309_v16 = vrot.slane %v14095_v20, 7  ;;  %v14096_v43 = vpack.c.bf16 %v7289_v14, %v7289_v14  ;;  %v14217_v39 = vpop.f32.mrb[87].mxu1 }
 0x4d8   : > { %v7611_v62 = vadd.f32 %v14215_v30, %v19091_v6  ;;  %v14218_v46 = vadd.f32 %v14217_v39, %v14216_v38  ;;  %v14792_v30 = vld [vmem:[%s21080_s5 + $0xb8] sm:$0xff]  }
 0x4d9   : > { %v7310_v32 = vsel %vm19242_vm6, %v7308_v5, %v7309_v16  ;;  %v7311_v61 = vrot.slane %v7309_v16, 4  ;;  %v7312_v47 = vrot.slane %v14096_v43, 7 }
 0x4da   : > { %7321 = vst.msk [vmem:[#allocation3 + $0x20] sm:$0xf] %vm6559_vm8, %v7310_v32  ;;  %v7660_v0 = vadd.f32 %v7659_v55, %v7611_v62  ;;  %v7614_v2 = vadd.f32 %v14218_v46, %v19091_v6 }
 0x4db   : > { %v7313_v23 = vsel %vm19242_vm6, %v7311_v61, %v7312_v47  ;;  %v14754_v31 = vld [vmem:[#allocation3 + $0x18] sm:$0xfe]  }
 0x4dc   : > { %v7325_v48 = vsel %vm7323_vm0, %v7313_v23, %v7324_v54  ;;  %v7674_v52 = vmax.f32 %v7660_v0, 0.0  ;;  %v7663_v27 = vadd.f32 %v7662_v44, %v7614_v2  ;;  %v7935_v20 = vshll.u32 %v14754_v31, 16 }
 0x4dd   : > { %7326 = vst [vmem:[#allocation3 + $0x24] sm:$0x3] %v7325_v48  ;;  %v7897_v44 = vrot.slane %v14754_v31, 1 }
 0x4de   : > { %v14097_v28 = vpack.c.bf16 %v7674_v52, %v7674_v52  ;;  %v7675_v19 = vmax.f32 %v7663_v27, 0.0  ;;  %v7937_v46 = vrot.slane %v7935_v20, 2 }
 0x4e0   : > { %v7693_v1 = vshrl.u32 %v14097_v28, 16  ;;  %v7696_v11 = vshll.u32 %v14097_v28, 16  ;;  %v14098_v34 = vpack.c.bf16 %v7675_v19, %v7675_v19  ;;  %v14219_v24 = vpop.f32.mrb[88].mxu1  ;;  %v7830_v19 = vld [vmem:[#allocation3 + $0xc] sm:$0x8] }
 0x4e1   : > { %v14220_v17 = vpop.f32.mrb[89].mxu1 }
 0x4e2   : > { %v7695_v15 = vrot.slane %v7693_v1, 6  ;;  %v7698_v21 = vrot.slane %v7696_v11, 7  ;;  %v7702_v35 = vshrl.u32 %v14098_v34, 16  ;;  %v7705_v8 = vshll.u32 %v14098_v34, 16  ;;  %v14222_v9 = vpop.f32.mrb[90].mxu1 }
 0x4e3   : > { %v14221_v51 = vadd.f32 %v14220_v17, %v14219_v24  ;;  %v14223_v60 = vpop.f32.mrb[91].mxu1  ;;  %v13112_v34 = vcombine.low %v7830_v19, %v19142_v42  ;;  %v19313_v42 = vld [vmem:[#allocation3 + $0x4] sm:$0xf] }
 0x4e4   : > { %v7699_v49 = vor.u32 %v7698_v21, %v7695_v15  ;;  %v7732_v3 = vld [vmem:[#allocation3 + $0x24] sm:$0xe]  ;;  %v7704_v18 = vrot.slane %v7702_v35, 6  ;;  %v7707_v26 = vrot.slane %v7705_v8, 7  ;;  %v14224_v56 = vadd.f32 %v14223_v60, %v14222_v9  ;;  %v14799_v21 = vld [vmem:[%s21082_s7 + $0x4] ss:$16 sps:$4 sm:$0xff]  }
 0x4e5   : > { %v7619_v7 = vadd.f32 %v14221_v51, %v19091_v6  ;;  %v7981_v15 = vrot.slane %v13112_v34, 3  ;;  %v7812_v8 = vld [vmem:[#allocation3] sm:$0xf]  ;;  %v7815_v9 = vld [vmem:[#allocation3 + $0xc] sm:$0x1] }
 0x4e6   : > { %v7700_v33 = vrot.slane %v7699_v49, 4  ;;  %v7733_v25 = vsel %vm7731_vm4, %v7699_v49, %v7732_v3  ;;  %v7708_v57 = vor.u32 %v7707_v26, %v7704_v18  ;;  %v7622_v29 = vadd.f32 %v14224_v56, %v19091_v6  ;;  %v14787_v6 = vld [vmem:[%s21080_s5 + $0xb0] sm:$0xff]  }
 0x4e7   : > { %7734 = vst [vmem:[#allocation3 + $0x24] sm:$0xe] %v7733_v25  ;;  %v7668_v37 = vadd.f32 %v14365_v45, %v7619_v7  ;;  %v7932_v45 = vshrl.u32 %v14754_v31, 16  ;;  %14270 = vmatpush3.bf16.msra.mxu1 %v14787_v6  ;;  %v13102_v51 = vcombine.low %v7812_v8, %v19313_v42  ;;  %v7814_v60 = vld [vmem:[#allocation3 + $0x8] sm:$0xf] }
 0x4e8   : > { %v7671_v12 = vadd.f32 %v14366_v53, %v7622_v29  ;;  %v7709_v36 = vsel %vm19267_vm5, %v7700_v33, %v7708_v57  ;;  %v7831_v53 = vld [vmem:[#allocation3 + $0x18] sm:$0xf]  ;;  %14271 = vmatprep.subr.bf16.mxu1 %v14791_v50  ;;  %v7710_v47 = vrot.slane %v7708_v57, 4  ;;  %v19316_v49 = vcombine.low %v7814_v60, %v7815_v9  ;;  %v7829_v3 = vld [vmem:[#allocation3 + $0xc] sm:$0x7] }
 0x4e9   : > { %v7676_v63 = vmax.f32 %v7668_v37, 0.0  ;;  %7735 = vst.msk [vmem:[#allocation3 + $0x28] sm:$0xf] %vm6559_vm8, %v7709_v36  ;;  %v7934_v39 = vrot.slane %v7932_v45, 1  ;;  %v13113_v48 = vcombine.low %v19144_v58, %v7831_v53  ;;  %v7875_v18 = vshll.u32 %v13102_v51, 16 }
 0x4ea   : > { %v7677_v59 = vmax.f32 %v7671_v12, 0.0  ;;  %v7880_v26 = vshll.u32 %v19316_v49, 16  ;;  %v13111_v56 = vcombine.low %v7814_v60, %v7829_v3  ;;  %v7828_v7 = vld [vmem:[#allocation3] sm:$0xc]  ;;  %v7873_v29 = vshrl.u32 %v13102_v51, 16 }
 0x4eb   : > { %v14099_v41 = vpack.c.bf16 %v7676_v63, %v7676_v63  ;;  %14272 = vmatpush3.bf16.msra.mxu1 %v14792_v30  ;;  %v7938_v1 = vor.u32 %v7937_v46, %v7934_v39  ;;  %v7982_v17 = vrot.slane %v13113_v48, 3  ;;  %v13110_v33 = vcombine.low %v7828_v7, %v19313_v42  ;;  %v14811_v3 = vld [vmem:[%s21082_s7 + $0x44] ss:$16 sps:$4 sm:$0xff]   ;;  %v14809_v7 = vld [vmem:[%s21082_s7 + $0x40] ss:$16 sps:$4 sm:$0xff]  }
 0x4ec   : > { %v14100_v55 = vpack.c.bf16 %v7677_v59, %v7677_v59  ;;  %9197 = vmatprep.subr.bf16.mxu1 %v14799_v21  ;;  %v7877_v25 = vrot.slane %v7875_v18, 1  ;;  %v7882_v37 = vrot.slane %v7880_v26, 1  ;;  %v7967_v31 = vshrl.u32 %v13111_v56, 16  ;;  %v14800_v26 = vld [vmem:[%s21082_s7 + $0x8] ss:$16 sps:$4 sm:$0xff]  }
 0x4ed   : > { %v7712_v14 = vshrl.u32 %v14099_v41, 16  ;;  %v7715_v40 = vshll.u32 %v14099_v41, 16  ;;  %v7970_v12 = vshll.u32 %v13111_v56, 16  ;;  %v7959_v59 = vshrl.u32 %v13110_v33, 16  ;;  %v14808_v56 = vld [vmem:[%s21082_s7 + $0x2c] ss:$16 sps:$4 sm:$0xff]  }
 0x4ee   : > { %v14755_v38 = vld [vmem:[#allocation3 + $0x20] sm:$0x3f]   ;;  %v7722_v43 = vshll.u32 %v14100_v55, 16  ;;  %v7878_v6 = vor.u32 %v7877_v25, %v7873_v29  ;;  %v7962_v41 = vshll.u32 %v13110_v33, 16  ;;  %v14817_v33 = vld [vmem:[%s21082_s7 + $0x64] ss:$16 sps:$4 sm:$0xff]  }
 0x4ef   : > { %v7714_v5 = vrot.slane %v7712_v14, 6  ;;  %v7717_v16 = vrot.slane %v7715_v40, 7  ;;  %v7898_v62 = vrot.slane %v14755_v38, 1  ;;  %v7940_v32 = vshrl.u32 %v14755_v38, 16  ;;  %v14806_v25 = vld [vmem:[%s21082_s7 + $0x28] ss:$16 sps:$4 sm:$0xff]  }
 0x4f0   : > { %v7943_v61 = vshll.u32 %v14755_v38, 16  ;;  %v7724_v28 = vrot.slane %v7722_v43, 7  ;;  %v14788_v57 = vld [vmem:[#allocation3 + $0x24] sm:$0xfe]   ;;  %v7883_v20 = vsel %vm464_vm1, %v7878_v6, %v7882_v37  ;;  %v7969_v14 = vrot.slane %v7967_v31, 2 }
 0x4f1   : > { %v7718_v54 = vor.u32 %v7717_v16, %v7714_v5  ;;  %v7899_v0 = vsel %vm21230_vm12, %v7897_v44, %v7898_v62  ;;  %v7942_v2 = vrot.slane %v7940_v32, 1  ;;  %v7869_v36 = vpop.permute.xlu1 %7868  ;;  %v7915_v45 = vshrl.u32 %v14788_v57, 16  ;;  %v14790_v5 = vld [vmem:[%s21080_s5 + $0x108] sm:$0xff]   ;;  %v14815_v29 = vld [vmem:[%s21082_s7 + $0x60] ss:$16 sps:$4 sm:$0xff]  }
 0x4f2   : > { %v7945_v23 = vrot.slane %v7943_v61, 2  ;;  %7900 = vrot.lane.b32.xlu0 %v7899_v0, %s15695_s12  ;;  %v7918_v50 = vshll.u32 %v14788_v57, 16  ;;  %v7972_v40 = vrot.slane %v7970_v12, 3  ;;  %v7884_v44 = vshrl.u32 %v19316_v49, 16  ;;  %v14814_v57 = vld [vmem:[%s21082_s7 + $0x4c] ss:$16 sps:$4 sm:$0xff]  }
 0x4f3   : > { %v7720_v52 = vrot.slane %v7718_v54, 4  ;;  %v7719_v27 = vsel %vm19267_vm5, %v7710_v47, %v7718_v54  ;;  %v7996_v16 = vsel %vm6293_vm13, %v13102_v51, %v7869_v36  ;;  %v7961_v43 = vrot.slane %v7959_v59, 2  ;;  %v14812_v31 = vld [vmem:[%s21082_s7 + $0x48] ss:$16 sps:$4 sm:$0xff]   ;;  %v14820_v12 = vld [vmem:[%s21082_s7 + $0x6c] ss:$16 sps:$4 sm:$0xff]  }
 0x4f4   : > { %7736 = vst.msk [vmem:[#allocation3 + $0x2c] sm:$0xf] %vm6559_vm8, %v7719_v27  ;;  %v7946_v11 = vor.u32 %v7945_v23, %v7942_v2  ;;  %vm21232_vm8 = vcmask 1044480   ;;  %v7964_v39 = vrot.slane %v7962_v41, 3  ;;  %v7917_v46 = vrot.slane %v7915_v45, 1 }
 0x4f5   : > { %v7725_v24 = vsel %vm19267_vm5, %v7720_v52, %v7724_v28  ;;  %v7983_v35 = vsel %vm21232_vm8, %v7981_v15, %v7982_v17  ;;  %v7920_v32 = vrot.slane %v7918_v50, 2  ;;  %v7886_v61 = vor.u32 %v7884_v44, %v7882_v37  ;;  %v7832_v2 = vld [vmem:[#allocation3] sm:$0x8]  ;;  %v14794_v52 = vld [vmem:[%s21080_s5 + $0x110] sm:$0xff]   ;;  %vm21235_vm7 = vmmov %vm21232_vm8 }
 0x4f6   : > { %7738 = vst.msk [vmem:[#allocation3 + $0x30] sm:$0x3] %vm7322_vm9, %v7725_v24  ;;  %v7947_v58 = vsel %vm21231_vm3, %v7938_v1, %v7946_v11  ;;  %7902 = vrot.lane.b32.xlu0 %v7898_v62, %s15695_s12  ;;  %v7871_v62 = vpop.permute.xlu1 %7870  ;;  %v13115_v47 = vcombine.low %v7814_v60, %v19140_v4  ;;  %v7973_v0 = vor.u32 %v7972_v40, %v7969_v14  ;;  %vm21233_vm1 = vsmask.f32 5376  ;;  %v14797_v15 = vld [vmem:[%s21082_s7] ss:$16 sps:$4 sm:$0xff]  }
 0x4f7   : > { %7948 = vrot.lane.b32.xlu1 %v7947_v58, %s15695_s12  ;;  %v13114_v27 = vcombine.low %v7832_v2, %v19313_v42  ;;  %v7965_v28 = vor.u32 %v7964_v39, %v7961_v43  ;;  %v7921_v19 = vor.u32 %v7920_v32, %v7917_v46  ;;  %v14805_v42 = vld [vmem:[%s21082_s7 + $0x24] ss:$16 sps:$4 sm:$0xff]   ;;  %v14802_v60 = vld [vmem:[%s21082_s7 + $0xc] ss:$16 sps:$4 sm:$0xff]   ;;  %v14821_v36 = vld [vmem:[%s21082_s7 + $0x80] ss:$16 sps:$4 sm:$0xff]  }
 0x4f8   : > { %v7993_v4 = vrot.slane %v13115_v47, 3  ;;  %v14823_v37 = vld [vmem:[%s21082_s7 + $0x84] ss:$16 sps:$4 sm:$0xff]   ;;  %v14826_v6 = vld [vmem:[%s21082_s7 + $0x8c] ss:$16 sps:$4 sm:$0xff]  }
 0x4f9   : > { %v7992_v58 = vrot.slane %v13114_v27, 3  ;;  %v14827_v59 = vld [vmem:[%s21082_s7 + $0xa0] ss:$16 sps:$4 sm:$0xff]   ;;  %v14835_v41 = vld [vmem:[%s21082_s7 + $0xc4] ss:$16 sps:$4 sm:$0xff]  }
 0x4fa   : > { %7984 = vrot.lane.b32.xlu0 %v7983_v35, %s15695_s12  ;;  %v7999_v35 = vsel %vm6293_vm13, %v19316_v49, %v7871_v62  ;;  %v14803_v49 = vld [vmem:[%s21082_s7 + $0x20] ss:$16 sps:$4 sm:$0xff]   ;;  %v14824_v45 = vld [vmem:[%s21082_s7 + $0x88] ss:$16 sps:$4 sm:$0xff]   ;;  %v14832_v50 = vld [vmem:[%s21082_s7 + $0xac] ss:$16 sps:$4 sm:$0xff]  }
 0x4fb   : > { %7950 = vrot.lane.b32.xlu1 %v7946_v11, %s15695_s12  ;;  %v7974_v11 = vsel %vm21233_vm1, %v7965_v28, %v7973_v0  ;;  %v7994_v8 = vsel %vm21235_vm7, %v7992_v58, %v7993_v4  ;;  %v14830_v14 = vld [vmem:[%s21082_s7 + $0xa8] ss:$16 sps:$4 sm:$0xff]   ;;  %v14838_v40 = vld [vmem:[%s21082_s7 + $0xcc] ss:$16 sps:$4 sm:$0xff]   ;;  %v14851_v62 = vld [vmem:[%s21082_s7 + $0x120] ss:$16 sps:$4 sm:$0xff]  }
 0x4fc   : > { %v14842_v44 = vld [vmem:[%s21082_s7 + $0xe8] ss:$16 sps:$4 sm:$0xff]   ;;  %v14850_v39 = vld [vmem:[%s21082_s7 + $0x10c] ss:$16 sps:$4 sm:$0xff]   ;;  %v14853_v46 = vld [vmem:[%s21082_s7 + $0x124] ss:$16 sps:$4 sm:$0xff]  }
 0x4fd   : > { %v14789_v10 = vld [vmem:[#allocation3 + $0x2c] sm:$0x3f]   ;;  %v14868_v27 = vld [vmem:[%s21082_s7 + $0x16c] ss:$16 sps:$4 sm:$0xff]  }
 0x4fe   : > { %7986 = vrot.lane.b32.xlu0 %v7982_v17, %s15695_s12  ;;  %v7923_v22 = vshrl.u32 %v14789_v10, 16  ;;  %v7926_v63 = vshll.u32 %v14789_v10, 16  ;;  %v14796_v17 = vld [vmem:[%s21080_s5 + $0x118] sm:$0xff]   ;;  %v14859_v47 = vld [vmem:[%s21082_s7 + $0x144] ss:$16 sps:$4 sm:$0xff]  }
 0x4ff   : > { %v14848_v43 = vld [vmem:[%s21082_s7 + $0x108] ss:$16 sps:$4 sm:$0xff]   ;;  %v14871_v28 = vld [vmem:[%s21082_s7 + $0x184] ss:$16 sps:$4 sm:$0xff]  }
 0x500   : > { %v7925_v30 = vrot.slane %v7923_v22, 1  ;;  %v7928_v38 = vrot.slane %v7926_v63, 2  ;;  %v14829_v22 = vld [vmem:[%s21082_s7 + $0xa4] ss:$16 sps:$4 sm:$0xff]   ;;  %v14818_v63 = vld [vmem:[%s21082_s7 + $0x68] ss:$16 sps:$4 sm:$0xff]  }
 0x501   : > { %v14854_v32 = vld [vmem:[%s21082_s7 + $0x128] ss:$16 sps:$4 sm:$0xff]   ;;  %v14883_v58 = vld [vmem:[%s21082_s7 + $0x1c4] ss:$16 sps:$4 sm:$0xff]  }
 0x502   : > { %v7929_v23 = vor.u32 %v7928_v38, %v7925_v30  ;;  %v14836_v30 = vld [vmem:[%s21082_s7 + $0xc8] ss:$16 sps:$4 sm:$0xff]   ;;  %v14844_v38 = vld [vmem:[%s21082_s7 + $0xec] ss:$16 sps:$4 sm:$0xff]  }
 0x503   : > { %v14860_v2 = vld [vmem:[%s21082_s7 + $0x148] ss:$16 sps:$4 sm:$0xff]  }
 0x504   : > { %v7930_v34 = vsel %vm21234_vm11, %v7921_v19, %v7929_v23  ;;  %v14869_v19 = vld [vmem:[%s21082_s7 + $0x180] ss:$16 sps:$4 sm:$0xff]  }
 0x564   : > { %v7901_v55 = vpop.permute.xlu0 %7900 }
 0x565   : > { %v8003_v53 = vsel %vm6293_vm13, %v7883_v20, %v7901_v55  ;;  %v14833_v55 = vld [vmem:[%s21082_s7 + $0xc0] ss:$16 sps:$4 sm:$0xff]   ;;  %v14841_v20 = vld [vmem:[%s21082_s7 + $0xe4] ss:$16 sps:$4 sm:$0xff]  }
 0x566   : > { %8285 = vmatprep.mubr.bf16.mxu0 %v8003_v53  ;;  %v14839_v53 = vld [vmem:[%s21082_s7 + $0xe0] ss:$16 sps:$4 sm:$0xff]  }
 0x567   : > { %8286 = vmatmul.mubr.bf16.vlgmr.msra.gmra.mrb[84].mxu0 %v7996_v16  ;;  %v14847_v16 = vld [vmem:[%s21082_s7 + $0x104] ss:$16 sps:$4 sm:$0xff]  }
 0x568   : > { %14368 = vmatpush3.bf16.msra.mxu0 %v19275_v13  ;;  %v7903_v54 = vpop.permute.xlu0 %7902 }
 0x569   : > { %v8007_v48 = vsel %vm6293_vm13, %v7886_v61, %v7903_v54  ;;  %14369 = vmatprep.subr.bf16.mxu0 %v14790_v5  ;;  %v7949_v1 = vpop.permute.xlu1 %7948  ;;  %v14856_v61 = vld [vmem:[%s21082_s7 + $0x12c] ss:$16 sps:$4 sm:$0xff]   ;;  %v14857_v54 = vld [vmem:[%s21082_s7 + $0x140] ss:$16 sps:$4 sm:$0xff]  }
 0x56a   : > { %8293 = vmatprep.mubr.bf16.mxu0 %v8007_v48  ;;  %v8011_v21 = vsel %vm6293_vm13, %v7930_v34, %v7949_v1  ;;  %v14865_v48 = vld [vmem:[%s21082_s7 + $0x164] ss:$16 sps:$4 sm:$0xff]   ;;  %v14874_v1 = vld [vmem:[%s21082_s7 + $0x18c] ss:$16 sps:$4 sm:$0xff]   ;;  %v14878_v34 = vld [vmem:[%s21082_s7 + $0x1a8] ss:$16 sps:$4 sm:$0xff]  }
 0x56c   : > { %14370 = vmatpush3.bf16.msra.mxu0 %v14790_v5  ;;  %v7985_v13 = vpop.permute.xlu0 %7984  ;;  %v14845_v5 = vld [vmem:[%s21082_s7 + $0x100] ss:$16 sps:$4 sm:$0xff]  }
 0x56d   : > { %v8019_v24 = vsel %vm6293_vm13, %v7974_v11, %v7985_v13  ;;  %14371 = vmatprep.subr.bf16.mxu0 %v14794_v52  ;;  %v7951_v18 = vpop.permute.xlu1 %7950  ;;  %v14875_v13 = vld [vmem:[%s21082_s7 + $0x1a0] ss:$16 sps:$4 sm:$0xff]   ;;  %v14877_v11 = vld [vmem:[%s21082_s7 + $0x1a4] ss:$16 sps:$4 sm:$0xff]  }
 0x56e   : > { %8334 = vmatprep.mubr.bf16.mxu1 %v8019_v24  ;;  %v8015_v10 = vsel %vm6293_vm13, %v7929_v23, %v7951_v18  ;;  %v14863_v23 = vld [vmem:[%s21082_s7 + $0x160] ss:$16 sps:$4 sm:$0xff]   ;;  %v14880_v24 = vld [vmem:[%s21082_s7 + $0x1ac] ss:$16 sps:$4 sm:$0xff]  }
 0x56f   : > { %8294 = vmatmul.mubr.bf16.gmra.mrb[88].mxu0 %v7999_v35  ;;  %8335 = vmatmul.mubr.bf16.vlgmr.msra.gmra.mrb[92].mxu1 %v8011_v21  ;;  %v14884_v21 = vld [vmem:[%s21082_s7 + $0x1c8] ss:$16 sps:$4 sm:$0xff]   ;;  %v14889_v35 = vld [vmem:[%s21082_s7 + $0x1e4] ss:$16 sps:$4 sm:$0xff]  }
 0x570   : > { %14372 = vmatpush3.bf16.msra.mxu0 %v14794_v52  ;;  %v7987_v9 = vpop.permute.xlu0 %7986  ;;  %14375 = vmatprep.mubr.msk.bf16.mxu0 %vm6293_vm13, %v7994_v8  ;;  %v14866_v52 = vld [vmem:[%s21082_s7 + $0x168] ss:$16 sps:$4 sm:$0xff]   ;;  %v14887_v8 = vld [vmem:[%s21082_s7 + $0x1e0] ss:$16 sps:$4 sm:$0xff]  }
 0x571   : > { %v8023_v51 = vsel %vm6293_vm13, %v7973_v0, %v7987_v9  ;;  %14373 = vmatprep.subr.bf16.mxu0 %v14796_v17  ;;  %9198 = vmatpush1.bf16.msra.mxu1 %v14797_v15  ;;  %v14862_v0 = vld [vmem:[%s21082_s7 + $0x14c] ss:$16 sps:$4 sm:$0xff]   ;;  %v14881_v15 = vld [vmem:[%s21082_s7 + $0x1c0] ss:$16 sps:$4 sm:$0xff]   ;;  %v14890_v9 = vld [vmem:[%s21082_s7 + $0x1e8] ss:$16 sps:$4 sm:$0xff]  }
 0x572   : > { %8342 = vmatprep.mubr.bf16.mxu1 %v8023_v51  ;;  %9199 = vmatprep.subr.bf16.mxu1 %v14805_v42  ;;  %v14892_v42 = vld [vmem:[%s21082_s7 + $0x1ec] ss:$16 sps:$4 sm:$0xff]   ;;  %v14895_v51 = vld [vmem:[%s21082_s7 + $0x204] ss:$16 sps:$4 sm:$0xff]  }
 0x574   : > { %14374 = vmatpush3.bf16.msra.mxu0 %v14796_v17  ;;  %v14886_v17 = vld [vmem:[%s21082_s7 + $0x1cc] ss:$16 sps:$4 sm:$0xff]  }
 0x575   : > { %9279 = vmatprep.subr.bf16.mxu0 %v14802_v60  ;;  %9200 = vmatpush1.bf16.msra.mxu1 %v14803_v49  ;;  %v14898_v60 = vld [vmem:[%s21082_s7 + $0x20c] ss:$16 sps:$4 sm:$0xff]  }
 0x576   : > { %9201 = vmatprep.subr.bf16.mxu1 %v14811_v3 }
 0x577   : > { %8343 = vmatmul.mubr.bf16.gmra.mrb[96].mxu1 %v8015_v10  ;;  %14376 = vmatmul.mubr.msk.bf16.vlgmr.msra.gmra.mrb[92].mxu0 %vm6293_vm13, %v7993_v4  ;;  %v14872_v4 = vld [vmem:[%s21082_s7 + $0x188] ss:$16 sps:$4 sm:$0xff]   ;;  %v13116_v10 = vld [vmem:[%s21081_s6] ss:$0 sm:$0xff] }
 0x578   : > { %9280 = vmatpush1.bf16.msra.mxu0 %v14800_v26 }
 0x579   : > { %9281 = vmatprep.subr.bf16.mxu0 %v14808_v56  ;;  %9202 = vmatpush1.bf16.msra.mxu1 %v14809_v7 }
 0x57a   : > { %9203 = vmatprep.subr.bf16.mxu1 %v14817_v33 }
 0x57c   : > { %9282 = vmatpush1.bf16.msra.mxu0 %v14806_v25 }
 0x57d   : > { %9283 = vmatprep.subr.bf16.mxu0 %v14814_v57  ;;  %9204 = vmatpush1.bf16.msra.mxu1 %v14815_v29 }
 0x57e   : > { %9205 = vmatprep.subr.bf16.mxu1 %v14823_v37 }
 0x580   : > { %9284 = vmatpush1.bf16.msra.mxu0 %v14812_v31 }
 0x581   : > { %9285 = vmatprep.subr.bf16.mxu0 %v14820_v12  ;;  %9206 = vmatpush1.bf16.msra.mxu1 %v14821_v36 }
 0x582   : > { %9207 = vmatprep.subr.bf16.mxu1 %v14829_v22 }
 0x584   : > { %9286 = vmatpush1.bf16.msra.mxu0 %v14818_v63 }
 0x585   : > { %9287 = vmatprep.subr.bf16.mxu0 %v14826_v6  ;;  %9208 = vmatpush1.bf16.msra.mxu1 %v14827_v59 }
 0x586   : > { %9209 = vmatprep.subr.bf16.mxu1 %v14835_v41 }
 0x588   : > { %9288 = vmatpush1.bf16.msra.mxu0 %v14824_v45 }
 0x589   : > { %9289 = vmatprep.subr.bf16.mxu0 %v14832_v50  ;;  %9210 = vmatpush1.bf16.msra.mxu1 %v14833_v55 }
 0x58a   : > { %9211 = vmatprep.subr.bf16.mxu1 %v14841_v20 }
 0x58c   : > { %9290 = vmatpush1.bf16.msra.mxu0 %v14830_v14 }
 0x58d   : > { %9291 = vmatprep.subr.bf16.mxu0 %v14838_v40  ;;  %9212 = vmatpush1.bf16.msra.mxu1 %v14839_v53 }
 0x58e   : > { %9213 = vmatprep.subr.bf16.mxu1 %v14847_v16 }
 0x590   : > { %9292 = vmatpush1.bf16.msra.mxu0 %v14836_v30 }
 0x591   : > { %9293 = vmatprep.subr.bf16.mxu0 %v14844_v38  ;;  %9214 = vmatpush1.bf16.msra.mxu1 %v14845_v5 }
 0x592   : > { %9215 = vmatprep.subr.bf16.mxu1 %v14853_v46 }
 0x594   : > { %9294 = vmatpush1.bf16.msra.mxu0 %v14842_v44 }
 0x595   : > { %9295 = vmatprep.subr.bf16.mxu0 %v14850_v39  ;;  %9216 = vmatpush1.bf16.msra.mxu1 %v14851_v62 }
 0x596   : > { %9217 = vmatprep.subr.bf16.mxu1 %v14859_v47 }
 0x598   : > { %9296 = vmatpush1.bf16.msra.mxu0 %v14848_v43 }
 0x599   : > { %9297 = vmatprep.subr.bf16.mxu0 %v14856_v61  ;;  %9218 = vmatpush1.bf16.msra.mxu1 %v14857_v54 }
 0x59a   : > { %9219 = vmatprep.subr.bf16.mxu1 %v14865_v48 }
 0x59c   : > { %9298 = vmatpush1.bf16.msra.mxu0 %v14854_v32 }
 0x59d   : > { %9299 = vmatprep.subr.bf16.mxu0 %v14862_v0  ;;  %9220 = vmatpush1.bf16.msra.mxu1 %v14863_v23 }
 0x59e   : > { %9221 = vmatprep.subr.bf16.mxu1 %v14871_v28 }
 0x5a0   : > { %9300 = vmatpush1.bf16.msra.mxu0 %v14860_v2 }
 0x5a1   : > { %9301 = vmatprep.subr.bf16.mxu0 %v14868_v27  ;;  %9222 = vmatpush1.bf16.msra.mxu1 %v14869_v19 }
 0x5a2   : > { %9223 = vmatprep.subr.bf16.mxu1 %v14877_v11 }
 0x5a4   : > { %9302 = vmatpush1.bf16.msra.mxu0 %v14866_v52 }
 0x5a5   : > { %9303 = vmatprep.subr.bf16.mxu0 %v14874_v1  ;;  %9224 = vmatpush1.bf16.msra.mxu1 %v14875_v13 }
 0x5a6   : > { %9225 = vmatprep.subr.bf16.mxu1 %v14883_v58  ;;  %v14896_v58 = vld [vmem:[%s21082_s7 + $0x208] ss:$16 sps:$4 sm:$0xff]  }
 0x5a8   : > { %9304 = vmatpush1.bf16.msra.mxu0 %v14872_v4 }
 0x5a9   : > { %9305 = vmatprep.subr.bf16.mxu0 %v14880_v24  ;;  %9226 = vmatpush1.bf16.msra.mxu1 %v14881_v15  ;;  %v14893_v24 = vld [vmem:[%s21082_s7 + $0x200] ss:$16 sps:$4 sm:$0xff]   ;;  %v14904_v15 = vld [vmem:[%s21082_s7 + $0x22c] ss:$16 sps:$4 sm:$0xff]  }
 0x5aa   : > { %9227 = vmatprep.subr.bf16.mxu1 %v14889_v35 }
 0x5ac   : > { %9306 = vmatpush1.bf16.msra.mxu0 %v14878_v34 }
 0x5ad   : > { %9307 = vmatprep.subr.bf16.mxu0 %v14886_v17  ;;  %9228 = vmatpush1.bf16.msra.mxu1 %v14887_v8  ;;  %v14901_v17 = vld [vmem:[%s21082_s7 + $0x224] ss:$16 sps:$4 sm:$0xff]   ;;  %v14902_v8 = vld [vmem:[%s21082_s7 + $0x228] ss:$16 sps:$4 sm:$0xff]  }
 0x5ae   : > { %9238 = vmatprep.subr.bf16.mxu1 %v14895_v51 }
 0x5b0   : > { %9308 = vmatpush1.bf16.msra.mxu0 %v14884_v21 }
 0x5b1   : > { %9309 = vmatprep.subr.bf16.mxu0 %v14892_v42  ;;  %v14899_v42 = vld [vmem:[%s21082_s7 + $0x220] ss:$16 sps:$4 sm:$0xff]  }
 0x5b4   : > { %9310 = vmatpush1.bf16.msra.mxu0 %v14890_v9 }
 0x5b5   : > { %9320 = vmatprep.subr.bf16.mxu0 %v14898_v60  ;;  %v14907_v60 = vld [vmem:[%s21082_s7 + $0x244] ss:$16 sps:$4 sm:$0xff]  }
 0x63a   : > { %v14245_v49 = vpop.f32.mrb[84].mxu0 }
 0x63b   : > { %v14246_v3 = vpop.f32.mrb[85].mxu0 }
 0x63c   : > { %v14247_v18 = vadd.f32 %v14246_v3, %v14245_v49  ;;  %v14248_v26 = vpop.f32.mrb[86].mxu0  ;;  %v14910_v49 = vld [vmem:[%s21082_s7 + $0x24c] ss:$16 sps:$4 sm:$0xff]  }
 0x63d   : > { %v14249_v56 = vpop.f32.mrb[87].mxu0 }
 0x63e   : > { %v14250_v7 = vadd.f32 %v14249_v56, %v14248_v26  ;;  %v8288_v37 = vadd.f32 %v14247_v18, %v13116_v10  ;;  %v14905_v18 = vld [vmem:[%s21082_s7 + $0x240] ss:$16 sps:$4 sm:$0xff]   ;;  %v14908_v26 = vld [vmem:[%s21082_s7 + $0x248] ss:$16 sps:$4 sm:$0xff]   ;;  %v14913_v56 = vld [vmem:[%s21082_s7 + $0x264] ss:$16 sps:$4 sm:$0xff]  }
 0x640   : > { %v8291_v59 = vadd.f32 %v14250_v7, %v13116_v10  ;;  %v14916_v7 = vld [vmem:[%s21082_s7 + $0x26c] ss:$16 sps:$4 sm:$0xff]  }
 0x642   : > { %v14251_v33 = vpop.f32.mrb[88].mxu0  ;;  %v14273_v25 = vpop.f32.mrb[92].mxu1 }
 0x643   : > { %v14252_v57 = vpop.f32.mrb[89].mxu0  ;;  %v14274_v29 = vpop.f32.mrb[93].mxu1 }
 0x644   : > { %v14253_v31 = vadd.f32 %v14252_v57, %v14251_v33  ;;  %v14275_v12 = vadd.f32 %v14274_v29, %v14273_v25  ;;  %v14254_v36 = vpop.f32.mrb[90].mxu0  ;;  %v14276_v22 = vpop.f32.mrb[94].mxu1  ;;  %v14914_v33 = vld [vmem:[%s21082_s7 + $0x268] ss:$16 sps:$4 sm:$0xff]   ;;  %v14919_v25 = vld [vmem:[%s21082_s7 + $0x284] ss:$16 sps:$4 sm:$0xff]  }
 0x645   : > { %v14255_v63 = vpop.f32.mrb[91].mxu0  ;;  %v14277_v6 = vpop.f32.mrb[95].mxu1  ;;  %v14922_v57 = vld [vmem:[%s21082_s7 + $0x28c] ss:$16 sps:$4 sm:$0xff]   ;;  %v14917_v29 = vld [vmem:[%s21082_s7 + $0x280] ss:$16 sps:$4 sm:$0xff]  }
 0x646   : > { %v14256_v41 = vadd.f32 %v14255_v63, %v14254_v36  ;;  %v14278_v45 = vadd.f32 %v14277_v6, %v14276_v22  ;;  %v8337_v50 = vadd.f32 %v14275_v12, %v8288_v37  ;;  %v8296_v30 = vadd.f32 %v14253_v31, %v13116_v10  ;;  %v14920_v37 = vld [vmem:[%s21082_s7 + $0x288] ss:$16 sps:$4 sm:$0xff]   ;;  %v14925_v31 = vld [vmem:[%s21082_s7 + $0x2a4] ss:$16 sps:$4 sm:$0xff]   ;;  %v14928_v12 = vld [vmem:[%s21082_s7 + $0x2ac] ss:$16 sps:$4 sm:$0xff]  }
 0x647   : > { %v14923_v36 = vld [vmem:[%s21082_s7 + $0x2a0] ss:$16 sps:$4 sm:$0xff]   ;;  %v14926_v22 = vld [vmem:[%s21082_s7 + $0x2a8] ss:$16 sps:$4 sm:$0xff]   ;;  %v14931_v63 = vld [vmem:[%s21082_s7 + $0x2c4] ss:$16 sps:$4 sm:$0xff]  }
 0x648   : > { %v8340_v55 = vadd.f32 %v14278_v45, %v8291_v59  ;;  %v8299_v62 = vadd.f32 %v14256_v41, %v13116_v10  ;;  %v14911_v10 = vld [vmem:[%s21082_s7 + $0x260] ss:$16 sps:$4 sm:$0xff]   ;;  %v14934_v6 = vld [vmem:[%s21082_s7 + $0x2cc] ss:$16 sps:$4 sm:$0xff]   ;;  %v14932_v41 = vld [vmem:[%s21082_s7 + $0x2c8] ss:$16 sps:$4 sm:$0xff]  }
 0x649   : > { %v14929_v59 = vld [vmem:[%s21082_s7 + $0x2c0] ss:$16 sps:$4 sm:$0xff]   ;;  %v14937_v45 = vld [vmem:[%s21082_s7 + $0x2e4] ss:$16 sps:$4 sm:$0xff]  }
 0x64a   : > { %v14279_v20 = vpop.f32.mrb[96].mxu1  ;;  %v14377_v14 = vpop.f32.mrb[92].mxu0 }
 0x64b   : > { %v14280_v40 = vpop.f32.mrb[97].mxu1  ;;  %v8385_v53 = vpop.f32.mrb[93].mxu0 }
 0x64c   : > { %v14281_v38 = vadd.f32 %v14280_v40, %v14279_v20  ;;  %v8386_v44 = vadd.f32 %v8385_v53, %v8337_v50  ;;  %v14282_v5 = vpop.f32.mrb[98].mxu1  ;;  %v14378_v16 = vpop.f32.mrb[94].mxu0  ;;  %v14940_v50 = vld [vmem:[%s21082_s7 + $0x2ec] ss:$16 sps:$4 sm:$0xff]   ;;  %v14938_v20 = vld [vmem:[%s21082_s7 + $0x2e8] ss:$16 sps:$4 sm:$0xff]  }
 0x64d   : > { %v14283_v43 = vpop.f32.mrb[99].mxu1  ;;  %v8388_v39 = vpop.f32.mrb[95].mxu0  ;;  %v14946_v40 = vld [vmem:[%s21082_s7 + $0x30c] ss:$16 sps:$4 sm:$0xff]   ;;  %v14941_v53 = vld [vmem:[%s21082_s7 + $0x300] ss:$16 sps:$4 sm:$0xff]  }
 0x64e   : > { %v8345_v46 = vadd.f32 %v14281_v38, %v8296_v30  ;;  %v14284_v32 = vadd.f32 %v14283_v43, %v14282_v5  ;;  %v8389_v61 = vadd.f32 %v8388_v39, %v8340_v55  ;;  %v8400_v54 = vmax.f32 %v8386_v44, 0.0  ;;  %v14935_v55 = vld [vmem:[%s21082_s7 + $0x2e0] ss:$16 sps:$4 sm:$0xff]   ;;  %v14944_v30 = vld [vmem:[%s21082_s7 + $0x308] ss:$16 sps:$4 sm:$0xff]  }
 0x64f   : > { %v14949_v38 = vld [vmem:[%s21082_s7 + $0x324] ss:$16 sps:$4 sm:$0xff]   ;;  %v14952_v44 = vld [vmem:[%s21082_s7 + $0x32c] ss:$16 sps:$4 sm:$0xff]   ;;  %v14947_v5 = vld [vmem:[%s21082_s7 + $0x320] ss:$16 sps:$4 sm:$0xff]  }
 0x650   : > { %v8394_v47 = vadd.f32 %v14377_v14, %v8345_v46  ;;  %v8348_v0 = vadd.f32 %v14284_v32, %v8299_v62  ;;  %v8401_v2 = vmax.f32 %v8389_v61, 0.0  ;;  %v14943_v14 = vld [vmem:[%s21082_s7 + $0x304] ss:$16 sps:$4 sm:$0xff]   ;;  %v14958_v39 = vld [vmem:[%s21082_s7 + $0x34c] ss:$16 sps:$4 sm:$0xff]  }
 0x651   : > { %v14955_v43 = vld [vmem:[%s21082_s7 + $0x344] ss:$16 sps:$4 sm:$0xff]   ;;  %v14953_v62 = vld [vmem:[%s21082_s7 + $0x340] ss:$16 sps:$4 sm:$0xff]   ;;  %v14956_v46 = vld [vmem:[%s21082_s7 + $0x348] ss:$16 sps:$4 sm:$0xff]  }
 0x652   : > { %v8397_v23 = vadd.f32 %v14378_v16, %v8348_v0  ;;  %v19546_v48 = vpack.c.bf16 %v8401_v2, %v8400_v54  ;;  %v8402_v52 = vmax.f32 %v8394_v47, 0.0  ;;  %v14950_v16 = vld [vmem:[%s21082_s7 + $0x328] ss:$16 sps:$4 sm:$0xff]   ;;  %v14961_v32 = vld [vmem:[%s21082_s7 + $0x364] ss:$16 sps:$4 sm:$0xff]  }
 0x653   : > { %v14964_v61 = vld [vmem:[%s21082_s7 + $0x36c] ss:$16 sps:$4 sm:$0xff]   ;;  %v14959_v47 = vld [vmem:[%s21082_s7 + $0x360] ss:$16 sps:$4 sm:$0xff]   ;;  %v14962_v54 = vld [vmem:[%s21082_s7 + $0x368] ss:$16 sps:$4 sm:$0xff]  }
 0x654   : > { %v8403_v27 = vmax.f32 %v8397_v23, 0.0  ;;  %v19549_v28 = vshrl.u32 %v19546_v48, 16  ;;  %v8410_v19 = vshll.u32 %v19546_v48, 16  ;;  %v14967_v0 = vld [vmem:[%s21082_s7 + $0x384] ss:$16 sps:$4 sm:$0xff]  }
 0x655   : > { %v14970_v2 = vld [vmem:[%s21082_s7 + $0x38c] ss:$16 sps:$4 sm:$0xff]   ;;  %v14965_v23 = vld [vmem:[%s21082_s7 + $0x380] ss:$16 sps:$4 sm:$0xff]  }
 0x656   : > { %v8405_v1 = vpack.c.bf16 %v8403_v27, %v8402_v52  ;;  %v8409_v4 = vrot.slane %v19549_v28, 2  ;;  %v8412_v13 = vrot.slane %v8410_v19, 3  ;;  %v8418_v9 = vrot.slane %v19549_v28, 7  ;;  %v14968_v52 = vld [vmem:[%s21082_s7 + $0x388] ss:$16 sps:$4 sm:$0xff]  }
 0x657   : > { %v14973_v27 = vld [vmem:[%s21082_s7 + $0x3a4] ss:$16 sps:$4 sm:$0xff]   ;;  %v14976_v19 = vld [vmem:[%s21082_s7 + $0x3ac] ss:$16 sps:$4 sm:$0xff]  }
 0x658   : > { %v8420_v11 = vshrl.u32 %v8405_v1, 16  ;;  %v19553_v34 = vor.u32 %v8412_v13, %v8409_v4  ;;  %v8423_v35 = vshll.u32 %v8405_v1, 16  ;;  %v14971_v1 = vld [vmem:[%s21082_s7 + $0x3a0] ss:$16 sps:$4 sm:$0xff]   ;;  %v14974_v4 = vld [vmem:[%s21082_s7 + $0x3a8] ss:$16 sps:$4 sm:$0xff]  }
 0x659   : > { %v14979_v13 = vld [vmem:[%s21082_s7 + $0x3c4] ss:$16 sps:$4 sm:$0xff]  }
 0x65a   : > { %v8422_v21 = vrot.slane %v8420_v11, 7  ;;  %9229 = vmatprep.mubr.bf16.mxu1 %v19553_v34  ;;  %9311 = vmatprep.mubr.bf16.mxu0 %v19553_v34  ;;  %v14982_v11 = vld [vmem:[%s21082_s7 + $0x3cc] ss:$16 sps:$4 sm:$0xff]  }
 0x65b   : > { %9230 = vmatmul.mubr.bf16.vlgmr.msra.gmra.mrb[100].mxu1 %v19546_v48  ;;  %9312 = vmatmul.mubr.bf16.vlgmr.msra.gmra.mrb[96].mxu0 %v19546_v48 }
 0x65c   : > { %9239 = vmatpush1.bf16.msra.mxu1 %v14893_v24  ;;  %9321 = vmatpush1.bf16.msra.mxu0 %v14896_v58  ;;  %v8425_v51 = vor.u32 %v8423_v35, %v8422_v21  ;;  %v14977_v24 = vld [vmem:[%s21082_s7 + $0x3c0] ss:$16 sps:$4 sm:$0xff]   ;;  %v14980_v58 = vld [vmem:[%s21082_s7 + $0x3c8] ss:$16 sps:$4 sm:$0xff]  }
 0x65d   : > { %9240 = vmatprep.subr.bf16.mxu1 %v14901_v17  ;;  %9322 = vmatprep.subr.bf16.mxu0 %v14904_v15  ;;  %v14985_v17 = vld [vmem:[%s21082_s7 + $0x3e4] ss:$16 sps:$4 sm:$0xff]   ;;  %v14988_v15 = vld [vmem:[%s21082_s7 + $0x3ec] ss:$16 sps:$4 sm:$0xff]   ;;  %v14983_v21 = vld [vmem:[%s21082_s7 + $0x3e0] ss:$16 sps:$4 sm:$0xff]  }
 0x65e   : > { %v19585_v3 = vsel %vm3601_vm2, %v8418_v9, %v8425_v51  ;;  %v14986_v35 = vld [vmem:[%s21082_s7 + $0x3e8] ss:$16 sps:$4 sm:$0xff]   ;;  %v14989_v9 = vld [vmem:[%s21082_s7 + $0x400] ss:$16 sps:$4 sm:$0xff]   ;;  %v19761_v51 = vrot.slane %v19546_v48, 5 }
 0x65f   : > { %9270 = vmatprep.mubr.bf16.mxu1 %v19585_v3  ;;  %9352 = vmatprep.mubr.bf16.mxu0 %v19585_v3 }
 0x660   : > { %9241 = vmatpush1.bf16.msra.mxu1 %v14899_v42  ;;  %9323 = vmatpush1.bf16.msra.mxu0 %v14902_v8  ;;  %v14991_v42 = vld [vmem:[%s21082_s7 + $0x404] ss:$16 sps:$4 sm:$0xff]   ;;  %v14994_v8 = vld [vmem:[%s21082_s7 + $0x40c] ss:$16 sps:$4 sm:$0xff]  }
 0x661   : > { %9242 = vmatprep.subr.bf16.mxu1 %v14907_v60  ;;  %9324 = vmatprep.subr.bf16.mxu0 %v14910_v49  ;;  %v14992_v60 = vld [vmem:[%s21082_s7 + $0x408] ss:$16 sps:$4 sm:$0xff]   ;;  %v19767_v49 = vshrl.u32 %v19553_v34, 16 }
 0x664   : > { %9243 = vmatpush1.bf16.msra.mxu1 %v14905_v18  ;;  %9325 = vmatpush1.bf16.msra.mxu0 %v14908_v26  ;;  %v14997_v18 = vld [vmem:[%s21082_s7 + $0x424] ss:$16 sps:$4 sm:$0xff]   ;;  %v15000_v26 = vld [vmem:[%s21082_s7 + $0x42c] ss:$16 sps:$4 sm:$0xff]  }
 0x665   : > { %9244 = vmatprep.subr.bf16.mxu1 %v14913_v56  ;;  %9326 = vmatprep.subr.bf16.mxu0 %v14916_v7  ;;  %v14995_v56 = vld [vmem:[%s21082_s7 + $0x420] ss:$16 sps:$4 sm:$0xff]   ;;  %v14998_v7 = vld [vmem:[%s21082_s7 + $0x428] ss:$16 sps:$4 sm:$0xff]  }
 0x668   : > { %9245 = vmatpush1.bf16.msra.mxu1 %v14911_v10  ;;  %9327 = vmatpush1.bf16.msra.mxu0 %v14914_v33  ;;  %v15003_v10 = vld [vmem:[%s21082_s7 + $0x444] ss:$16 sps:$4 sm:$0xff]   ;;  %v15006_v33 = vld [vmem:[%s21082_s7 + $0x44c] ss:$16 sps:$4 sm:$0xff]  }
 0x669   : > { %9246 = vmatprep.subr.bf16.mxu1 %v14919_v25  ;;  %9328 = vmatprep.subr.bf16.mxu0 %v14922_v57  ;;  %v15001_v25 = vld [vmem:[%s21082_s7 + $0x440] ss:$16 sps:$4 sm:$0xff]   ;;  %v15004_v57 = vld [vmem:[%s21082_s7 + $0x448] ss:$16 sps:$4 sm:$0xff]  }
 0x66c   : > { %9247 = vmatpush1.bf16.msra.mxu1 %v14917_v29  ;;  %9329 = vmatpush1.bf16.msra.mxu0 %v14920_v37  ;;  %v15009_v29 = vld [vmem:[%s21082_s7 + $0x464] ss:$16 sps:$4 sm:$0xff]   ;;  %v15012_v37 = vld [vmem:[%s21082_s7 + $0x46c] ss:$16 sps:$4 sm:$0xff]  }
 0x66d   : > { %9248 = vmatprep.subr.bf16.mxu1 %v14925_v31  ;;  %9330 = vmatprep.subr.bf16.mxu0 %v14928_v12  ;;  %v15007_v31 = vld [vmem:[%s21082_s7 + $0x460] ss:$16 sps:$4 sm:$0xff]   ;;  %v15010_v12 = vld [vmem:[%s21082_s7 + $0x468] ss:$16 sps:$4 sm:$0xff]  }
 0x670   : > { %9249 = vmatpush1.bf16.msra.mxu1 %v14923_v36  ;;  %9331 = vmatpush1.bf16.msra.mxu0 %v14926_v22  ;;  %v15015_v36 = vld [vmem:[%s21082_s7 + $0x484] ss:$16 sps:$4 sm:$0xff]   ;;  %v15018_v22 = vld [vmem:[%s21082_s7 + $0x48c] ss:$16 sps:$4 sm:$0xff]  }
 0x671   : > { %9250 = vmatprep.subr.bf16.mxu1 %v14931_v63  ;;  %9332 = vmatprep.subr.bf16.mxu0 %v14934_v6  ;;  %v15013_v63 = vld [vmem:[%s21082_s7 + $0x480] ss:$16 sps:$4 sm:$0xff]   ;;  %v15016_v6 = vld [vmem:[%s21082_s7 + $0x488] ss:$16 sps:$4 sm:$0xff]  }
 0x674   : > { %9251 = vmatpush1.bf16.msra.mxu1 %v14929_v59  ;;  %9333 = vmatpush1.bf16.msra.mxu0 %v14932_v41  ;;  %v15021_v59 = vld [vmem:[%s21082_s7 + $0x4a4] ss:$16 sps:$4 sm:$0xff]   ;;  %v15024_v41 = vld [vmem:[%s21082_s7 + $0x4ac] ss:$16 sps:$4 sm:$0xff]  }
 0x675   : > { %9252 = vmatprep.subr.bf16.mxu1 %v14937_v45  ;;  %9334 = vmatprep.subr.bf16.mxu0 %v14940_v50  ;;  %v15019_v45 = vld [vmem:[%s21082_s7 + $0x4a0] ss:$16 sps:$4 sm:$0xff]   ;;  %v15022_v50 = vld [vmem:[%s21082_s7 + $0x4a8] ss:$16 sps:$4 sm:$0xff]  }
 0x678   : > { %9253 = vmatpush1.bf16.msra.mxu1 %v14935_v55  ;;  %9335 = vmatpush1.bf16.msra.mxu0 %v14938_v20  ;;  %v15027_v55 = vld [vmem:[%s21082_s7 + $0x4c4] ss:$16 sps:$4 sm:$0xff]   ;;  %v15030_v20 = vld [vmem:[%s21082_s7 + $0x4cc] ss:$16 sps:$4 sm:$0xff]  }
 0x679   : > { %9254 = vmatprep.subr.bf16.mxu1 %v14943_v14  ;;  %9336 = vmatprep.subr.bf16.mxu0 %v14946_v40  ;;  %v15025_v14 = vld [vmem:[%s21082_s7 + $0x4c0] ss:$16 sps:$4 sm:$0xff]   ;;  %v15028_v40 = vld [vmem:[%s21082_s7 + $0x4c8] ss:$16 sps:$4 sm:$0xff]  }
 0x67c   : > { %9255 = vmatpush1.bf16.msra.mxu1 %v14941_v53  ;;  %9337 = vmatpush1.bf16.msra.mxu0 %v14944_v30  ;;  %v15033_v53 = vld [vmem:[%s21082_s7 + $0x4e4] ss:$16 sps:$4 sm:$0xff]   ;;  %v15036_v30 = vld [vmem:[%s21082_s7 + $0x4ec] ss:$16 sps:$4 sm:$0xff]  }
 0x67d   : > { %9256 = vmatprep.subr.bf16.mxu1 %v14949_v38  ;;  %9338 = vmatprep.subr.bf16.mxu0 %v14952_v44  ;;  %v15031_v38 = vld [vmem:[%s21082_s7 + $0x4e0] ss:$16 sps:$4 sm:$0xff]   ;;  %v15034_v44 = vld [vmem:[%s21082_s7 + $0x4e8] ss:$16 sps:$4 sm:$0xff]  }
 0x680   : > { %9257 = vmatpush1.bf16.msra.mxu1 %v14947_v5  ;;  %9339 = vmatpush1.bf16.msra.mxu0 %v14950_v16  ;;  %v15039_v5 = vld [vmem:[%s21082_s7 + $0x504] ss:$16 sps:$4 sm:$0xff]   ;;  %v15042_v16 = vld [vmem:[%s21082_s7 + $0x50c] ss:$16 sps:$4 sm:$0xff]  }
 0x681   : > { %9258 = vmatprep.subr.bf16.mxu1 %v14955_v43  ;;  %9340 = vmatprep.subr.bf16.mxu0 %v14958_v39  ;;  %v15037_v43 = vld [vmem:[%s21082_s7 + $0x500] ss:$16 sps:$4 sm:$0xff]   ;;  %v15040_v39 = vld [vmem:[%s21082_s7 + $0x508] ss:$16 sps:$4 sm:$0xff]  }
 0x684   : > { %9259 = vmatpush1.bf16.msra.mxu1 %v14953_v62  ;;  %9341 = vmatpush1.bf16.msra.mxu0 %v14956_v46  ;;  %v15045_v62 = vld [vmem:[%s21082_s7 + $0x524] ss:$16 sps:$4 sm:$0xff]   ;;  %v15048_v46 = vld [vmem:[%s21082_s7 + $0x52c] ss:$16 sps:$4 sm:$0xff]  }
 0x685   : > { %9260 = vmatprep.subr.bf16.mxu1 %v14961_v32  ;;  %9342 = vmatprep.subr.bf16.mxu0 %v14964_v61  ;;  %v15043_v32 = vld [vmem:[%s21082_s7 + $0x520] ss:$16 sps:$4 sm:$0xff]   ;;  %v15046_v61 = vld [vmem:[%s21082_s7 + $0x528] ss:$16 sps:$4 sm:$0xff]  }
 0x688   : > { %9261 = vmatpush1.bf16.msra.mxu1 %v14959_v47  ;;  %9343 = vmatpush1.bf16.msra.mxu0 %v14962_v54  ;;  %v15051_v47 = vld [vmem:[%s21082_s7 + $0x544] ss:$16 sps:$4 sm:$0xff]   ;;  %v15054_v54 = vld [vmem:[%s21082_s7 + $0x54c] ss:$16 sps:$4 sm:$0xff]  }
 0x689   : > { %9262 = vmatprep.subr.bf16.mxu1 %v14967_v0  ;;  %9344 = vmatprep.subr.bf16.mxu0 %v14970_v2  ;;  %v15049_v0 = vld [vmem:[%s21082_s7 + $0x540] ss:$16 sps:$4 sm:$0xff]   ;;  %v15052_v2 = vld [vmem:[%s21082_s7 + $0x548] ss:$16 sps:$4 sm:$0xff]  }
 0x68c   : > { %9263 = vmatpush1.bf16.msra.mxu1 %v14965_v23  ;;  %9345 = vmatpush1.bf16.msra.mxu0 %v14968_v52  ;;  %v15057_v23 = vld [vmem:[%s21082_s7 + $0x564] ss:$16 sps:$4 sm:$0xff]   ;;  %v15060_v52 = vld [vmem:[%s21082_s7 + $0x56c] ss:$16 sps:$4 sm:$0xff]  }
 0x68d   : > { %9264 = vmatprep.subr.bf16.mxu1 %v14973_v27  ;;  %9346 = vmatprep.subr.bf16.mxu0 %v14976_v19  ;;  %v15055_v27 = vld [vmem:[%s21082_s7 + $0x560] ss:$16 sps:$4 sm:$0xff]   ;;  %v15058_v19 = vld [vmem:[%s21082_s7 + $0x568] ss:$16 sps:$4 sm:$0xff]  }
 0x690   : > { %9265 = vmatpush1.bf16.msra.mxu1 %v14971_v1  ;;  %9347 = vmatpush1.bf16.msra.mxu0 %v14974_v4  ;;  %v15063_v1 = vld [vmem:[%s21082_s7 + $0x584] ss:$16 sps:$4 sm:$0xff]   ;;  %v15066_v4 = vld [vmem:[%s21082_s7 + $0x58c] ss:$16 sps:$4 sm:$0xff]  }
 0x691   : > { %9266 = vmatprep.subr.bf16.mxu1 %v14979_v13  ;;  %9348 = vmatprep.subr.bf16.mxu0 %v14982_v11  ;;  %v15061_v13 = vld [vmem:[%s21082_s7 + $0x580] ss:$16 sps:$4 sm:$0xff]   ;;  %v15064_v11 = vld [vmem:[%s21082_s7 + $0x588] ss:$16 sps:$4 sm:$0xff]  }
 0x694   : > { %9267 = vmatpush1.bf16.msra.mxu1 %v14977_v24  ;;  %9349 = vmatpush1.bf16.msra.mxu0 %v14980_v58  ;;  %v15069_v24 = vld [vmem:[%s21082_s7 + $0x5a4] ss:$16 sps:$4 sm:$0xff]   ;;  %v15072_v58 = vld [vmem:[%s21082_s7 + $0x5ac] ss:$16 sps:$4 sm:$0xff]  }
 0x695   : > { %9268 = vmatprep.subr.bf16.mxu1 %v14985_v17  ;;  %9350 = vmatprep.subr.bf16.mxu0 %v14988_v15  ;;  %v15067_v17 = vld [vmem:[%s21082_s7 + $0x5a0] ss:$16 sps:$4 sm:$0xff]   ;;  %v15070_v15 = vld [vmem:[%s21082_s7 + $0x5a8] ss:$16 sps:$4 sm:$0xff]  }
 0x698   : > { %9269 = vmatpush1.bf16.msra.mxu1 %v14983_v21  ;;  %9351 = vmatpush1.bf16.msra.mxu0 %v14986_v35  ;;  %v15075_v21 = vld [vmem:[%s21082_s7 + $0x5c4] ss:$16 sps:$4 sm:$0xff]   ;;  %v15078_v35 = vld [vmem:[%s21082_s7 + $0x5cc] ss:$16 sps:$4 sm:$0xff]  }
 0x699   : > { %10173 = vmatprep.subr.bf16.mxu1 %v14991_v42  ;;  %10255 = vmatprep.subr.bf16.mxu0 %v14994_v8  ;;  %v15073_v42 = vld [vmem:[%s21082_s7 + $0x5c0] ss:$16 sps:$4 sm:$0xff]   ;;  %v15076_v8 = vld [vmem:[%s21082_s7 + $0x5c8] ss:$16 sps:$4 sm:$0xff]  }
 0x69b   : > { %9271 = vmatmul.mubr.bf16.vlgmr.msra.gmra.mrb[100].mxu1 %v19761_v51  ;;  %9353 = vmatmul.mubr.bf16.vlgmr.msra.gmra.mrb[96].mxu0 %v19761_v51 }
 0x69c   : > { %10174 = vmatpush1.bf16.msra.mxu1 %v14989_v9  ;;  %10205 = vmatprep.mubr.bf16.mxu1 %v19767_v49  ;;  %v15081_v9 = vld [vmem:[%s21082_s7 + $0x5e4] ss:$16 sps:$4 sm:$0xff]  }
 0x69d   : > { %10256 = vmatpush1.bf16.msra.mxu0 %v14992_v60  ;;  %10287 = vmatprep.mubr.bf16.mxu0 %v19767_v49  ;;  %v15084_v60 = vld [vmem:[%s21082_s7 + $0x5ec] ss:$16 sps:$4 sm:$0xff]  }
 0x69e   : > { %10175 = vmatprep.subr.bf16.mxu1 %v14997_v18  ;;  %10257 = vmatprep.subr.bf16.mxu0 %v15000_v26  ;;  %v15079_v18 = vld [vmem:[%s21082_s7 + $0x5e0] ss:$16 sps:$4 sm:$0xff]   ;;  %v15082_v26 = vld [vmem:[%s21082_s7 + $0x5e8] ss:$16 sps:$4 sm:$0xff]  }
 0x6a0   : > { %10176 = vmatpush1.bf16.msra.mxu1 %v14995_v56  ;;  %v15087_v56 = vld [vmem:[%s21082_s7 + $0x604] ss:$16 sps:$4 sm:$0xff]  }
 0x6a1   : > { %10258 = vmatpush1.bf16.msra.mxu0 %v14998_v7  ;;  %10177 = vmatprep.subr.bf16.mxu1 %v15003_v10  ;;  %v15090_v7 = vld [vmem:[%s21082_s7 + $0x60c] ss:$16 sps:$4 sm:$0xff]   ;;  %v15085_v10 = vld [vmem:[%s21082_s7 + $0x600] ss:$16 sps:$4 sm:$0xff]  }
 0x6a2   : > { %10259 = vmatprep.subr.bf16.mxu0 %v15006_v33  ;;  %v15088_v33 = vld [vmem:[%s21082_s7 + $0x608] ss:$16 sps:$4 sm:$0xff]  }
 0x6a4   : > { %10178 = vmatpush1.bf16.msra.mxu1 %v15001_v25  ;;  %v15093_v25 = vld [vmem:[%s21082_s7 + $0x624] ss:$16 sps:$4 sm:$0xff]  }
 0x6a5   : > { %10260 = vmatpush1.bf16.msra.mxu0 %v15004_v57  ;;  %10179 = vmatprep.subr.bf16.mxu1 %v15009_v29  ;;  %v19970_v57 = vshrl.u32 %v19585_v3, 16  ;;  %v15096_v29 = vld [vmem:[%s21082_s7 + $0x62c] ss:$16 sps:$4 sm:$0xff]  }
 0x6a6   : > { %10261 = vmatprep.subr.bf16.mxu0 %v15012_v37  ;;  %v15091_v37 = vld [vmem:[%s21082_s7 + $0x620] ss:$16 sps:$4 sm:$0xff]  }
 0x6a8   : > { %10180 = vmatpush1.bf16.msra.mxu1 %v15007_v31  ;;  %v15094_v31 = vld [vmem:[%s21082_s7 + $0x628] ss:$16 sps:$4 sm:$0xff]  }
 0x6a9   : > { %10262 = vmatpush1.bf16.msra.mxu0 %v15010_v12  ;;  %10181 = vmatprep.subr.bf16.mxu1 %v15015_v36  ;;  %v15099_v12 = vld [vmem:[%s21082_s7 + $0x644] ss:$16 sps:$4 sm:$0xff]   ;;  %v15102_v36 = vld [vmem:[%s21082_s7 + $0x64c] ss:$16 sps:$4 sm:$0xff]  }
 0x6aa   : > { %10263 = vmatprep.subr.bf16.mxu0 %v15018_v22  ;;  %v15097_v22 = vld [vmem:[%s21082_s7 + $0x640] ss:$16 sps:$4 sm:$0xff]  }
 0x6ac   : > { %10182 = vmatpush1.bf16.msra.mxu1 %v15013_v63  ;;  %v15100_v63 = vld [vmem:[%s21082_s7 + $0x648] ss:$16 sps:$4 sm:$0xff]  }
 0x6ad   : > { %10264 = vmatpush1.bf16.msra.mxu0 %v15016_v6  ;;  %10183 = vmatprep.subr.bf16.mxu1 %v15021_v59  ;;  %v15105_v6 = vld [vmem:[%s21082_s7 + $0x664] ss:$16 sps:$4 sm:$0xff]   ;;  %v15108_v59 = vld [vmem:[%s21082_s7 + $0x66c] ss:$16 sps:$4 sm:$0xff]  }
 0x6ae   : > { %10265 = vmatprep.subr.bf16.mxu0 %v15024_v41  ;;  %v15103_v41 = vld [vmem:[%s21082_s7 + $0x660] ss:$16 sps:$4 sm:$0xff]  }
 0x6b0   : > { %10184 = vmatpush1.bf16.msra.mxu1 %v15019_v45  ;;  %v15106_v45 = vld [vmem:[%s21082_s7 + $0x668] ss:$16 sps:$4 sm:$0xff]  }
 0x6b1   : > { %10266 = vmatpush1.bf16.msra.mxu0 %v15022_v50  ;;  %10185 = vmatprep.subr.bf16.mxu1 %v15027_v55  ;;  %v15111_v50 = vld [vmem:[%s21082_s7 + $0x684] ss:$16 sps:$4 sm:$0xff]   ;;  %v15114_v55 = vld [vmem:[%s21082_s7 + $0x68c] ss:$16 sps:$4 sm:$0xff]  }
 0x6b2   : > { %10267 = vmatprep.subr.bf16.mxu0 %v15030_v20  ;;  %v15109_v20 = vld [vmem:[%s21082_s7 + $0x680] ss:$16 sps:$4 sm:$0xff]  }
 0x6b4   : > { %10186 = vmatpush1.bf16.msra.mxu1 %v15025_v14  ;;  %v15112_v14 = vld [vmem:[%s21082_s7 + $0x688] ss:$16 sps:$4 sm:$0xff]  }
 0x6b5   : > { %10268 = vmatpush1.bf16.msra.mxu0 %v15028_v40  ;;  %10187 = vmatprep.subr.bf16.mxu1 %v15033_v53  ;;  %v15117_v40 = vld [vmem:[%s21082_s7 + $0x6a4] ss:$16 sps:$4 sm:$0xff]   ;;  %v15120_v53 = vld [vmem:[%s21082_s7 + $0x6ac] ss:$16 sps:$4 sm:$0xff]  }
 0x6b6   : > { %10269 = vmatprep.subr.bf16.mxu0 %v15036_v30  ;;  %v15115_v30 = vld [vmem:[%s21082_s7 + $0x6a0] ss:$16 sps:$4 sm:$0xff]  }
 0x6b8   : > { %10188 = vmatpush1.bf16.msra.mxu1 %v15031_v38  ;;  %v15118_v38 = vld [vmem:[%s21082_s7 + $0x6a8] ss:$16 sps:$4 sm:$0xff]  }
 0x6b9   : > { %10270 = vmatpush1.bf16.msra.mxu0 %v15034_v44  ;;  %10189 = vmatprep.subr.bf16.mxu1 %v15039_v5  ;;  %v15123_v44 = vld [vmem:[%s21082_s7 + $0x6c4] ss:$16 sps:$4 sm:$0xff]   ;;  %v15126_v5 = vld [vmem:[%s21082_s7 + $0x6cc] ss:$16 sps:$4 sm:$0xff]  }
 0x6ba   : > { %10271 = vmatprep.subr.bf16.mxu0 %v15042_v16  ;;  %v15121_v16 = vld [vmem:[%s21082_s7 + $0x6c0] ss:$16 sps:$4 sm:$0xff]  }
 0x6bc   : > { %10190 = vmatpush1.bf16.msra.mxu1 %v15037_v43  ;;  %v15124_v43 = vld [vmem:[%s21082_s7 + $0x6c8] ss:$16 sps:$4 sm:$0xff]  }
 0x6bd   : > { %10272 = vmatpush1.bf16.msra.mxu0 %v15040_v39  ;;  %10191 = vmatprep.subr.bf16.mxu1 %v15045_v62  ;;  %v15129_v39 = vld [vmem:[%s21082_s7 + $0x6e4] ss:$16 sps:$4 sm:$0xff]   ;;  %v15132_v62 = vld [vmem:[%s21082_s7 + $0x6ec] ss:$16 sps:$4 sm:$0xff]  }
 0x6be   : > { %10273 = vmatprep.subr.bf16.mxu0 %v15048_v46  ;;  %v15127_v46 = vld [vmem:[%s21082_s7 + $0x6e0] ss:$16 sps:$4 sm:$0xff]  }
 0x6c0   : > { %10192 = vmatpush1.bf16.msra.mxu1 %v15043_v32  ;;  %v15130_v32 = vld [vmem:[%s21082_s7 + $0x6e8] ss:$16 sps:$4 sm:$0xff]  }
 0x6c1   : > { %10274 = vmatpush1.bf16.msra.mxu0 %v15046_v61  ;;  %10193 = vmatprep.subr.bf16.mxu1 %v15051_v47  ;;  %v15135_v61 = vld [vmem:[%s21082_s7 + $0x704] ss:$16 sps:$4 sm:$0xff]   ;;  %v15138_v47 = vld [vmem:[%s21082_s7 + $0x70c] ss:$16 sps:$4 sm:$0xff]  }
 0x6c2   : > { %10275 = vmatprep.subr.bf16.mxu0 %v15054_v54  ;;  %v15133_v54 = vld [vmem:[%s21082_s7 + $0x700] ss:$16 sps:$4 sm:$0xff]  }
 0x6c4   : > { %10194 = vmatpush1.bf16.msra.mxu1 %v15049_v0  ;;  %v15136_v0 = vld [vmem:[%s21082_s7 + $0x708] ss:$16 sps:$4 sm:$0xff]  }
 0x6c5   : > { %10276 = vmatpush1.bf16.msra.mxu0 %v15052_v2  ;;  %10195 = vmatprep.subr.bf16.mxu1 %v15057_v23  ;;  %v15141_v2 = vld [vmem:[%s21082_s7 + $0x724] ss:$16 sps:$4 sm:$0xff]   ;;  %v15144_v23 = vld [vmem:[%s21082_s7 + $0x72c] ss:$16 sps:$4 sm:$0xff]  }
 0x6c6   : > { %10277 = vmatprep.subr.bf16.mxu0 %v15060_v52  ;;  %v15139_v52 = vld [vmem:[%s21082_s7 + $0x720] ss:$16 sps:$4 sm:$0xff]  }
 0x6c8   : > { %10196 = vmatpush1.bf16.msra.mxu1 %v15055_v27  ;;  %v15142_v27 = vld [vmem:[%s21082_s7 + $0x728] ss:$16 sps:$4 sm:$0xff]  }
 0x6c9   : > { %10278 = vmatpush1.bf16.msra.mxu0 %v15058_v19  ;;  %10197 = vmatprep.subr.bf16.mxu1 %v15063_v1  ;;  %v15147_v19 = vld [vmem:[%s21082_s7 + $0x744] ss:$16 sps:$4 sm:$0xff]   ;;  %v15150_v1 = vld [vmem:[%s21082_s7 + $0x74c] ss:$16 sps:$4 sm:$0xff]  }
 0x6ca   : > { %10279 = vmatprep.subr.bf16.mxu0 %v15066_v4  ;;  %v15145_v4 = vld [vmem:[%s21082_s7 + $0x740] ss:$16 sps:$4 sm:$0xff]  }
 0x6cc   : > { %10198 = vmatpush1.bf16.msra.mxu1 %v15061_v13  ;;  %v15148_v13 = vld [vmem:[%s21082_s7 + $0x748] ss:$16 sps:$4 sm:$0xff]  }
 0x6cd   : > { %10280 = vmatpush1.bf16.msra.mxu0 %v15064_v11  ;;  %10199 = vmatprep.subr.bf16.mxu1 %v15069_v24  ;;  %v15153_v11 = vld [vmem:[%s21082_s7 + $0x764] ss:$16 sps:$4 sm:$0xff]   ;;  %v15156_v24 = vld [vmem:[%s21082_s7 + $0x76c] ss:$16 sps:$4 sm:$0xff]  }
 0x6ce   : > { %10281 = vmatprep.subr.bf16.mxu0 %v15072_v58  ;;  %v15151_v58 = vld [vmem:[%s21082_s7 + $0x760] ss:$16 sps:$4 sm:$0xff]  }
 0x6d0   : > { %10200 = vmatpush1.bf16.msra.mxu1 %v15067_v17  ;;  %v15154_v17 = vld [vmem:[%s21082_s7 + $0x768] ss:$16 sps:$4 sm:$0xff]  }
 0x6d1   : > { %10282 = vmatpush1.bf16.msra.mxu0 %v15070_v15  ;;  %10201 = vmatprep.subr.bf16.mxu1 %v15075_v21  ;;  %v15159_v15 = vld [vmem:[%s21082_s7 + $0x784] ss:$16 sps:$4 sm:$0xff]   ;;  %v15162_v21 = vld [vmem:[%s21082_s7 + $0x78c] ss:$16 sps:$4 sm:$0xff]  }
 0x6d2   : > { %10283 = vmatprep.subr.bf16.mxu0 %v15078_v35  ;;  %v15157_v35 = vld [vmem:[%s21082_s7 + $0x780] ss:$16 sps:$4 sm:$0xff]  }
 0x6d4   : > { %10202 = vmatpush1.bf16.msra.mxu1 %v15073_v42  ;;  %v15160_v42 = vld [vmem:[%s21082_s7 + $0x788] ss:$16 sps:$4 sm:$0xff]  }
 0x6d5   : > { %10284 = vmatpush1.bf16.msra.mxu0 %v15076_v8  ;;  %10203 = vmatprep.subr.bf16.mxu1 %v15081_v9  ;;  %v15165_v8 = vld [vmem:[%s21082_s7 + $0x7a4] ss:$16 sps:$4 sm:$0xff]   ;;  %v15168_v9 = vld [vmem:[%s21082_s7 + $0x7ac] ss:$16 sps:$4 sm:$0xff]  }
 0x6d6   : > { %10285 = vmatprep.subr.bf16.mxu0 %v15084_v60  ;;  %v15163_v60 = vld [vmem:[%s21082_s7 + $0x7a0] ss:$16 sps:$4 sm:$0xff]  }
 0x6d8   : > { %10204 = vmatpush1.bf16.msra.mxu1 %v15079_v18  ;;  %v15166_v18 = vld [vmem:[%s21082_s7 + $0x7a8] ss:$16 sps:$4 sm:$0xff]  }
 0x6d9   : > { %10286 = vmatpush1.bf16.msra.mxu0 %v15082_v26  ;;  %10214 = vmatprep.subr.bf16.mxu1 %v15087_v56  ;;  %v15171_v26 = vld [vmem:[%s21082_s7 + $0x7c4] ss:$16 sps:$4 sm:$0xff]   ;;  %v15174_v56 = vld [vmem:[%s21082_s7 + $0x7cc] ss:$16 sps:$4 sm:$0xff]  }
 0x6da   : > { %10296 = vmatprep.subr.bf16.mxu0 %v15090_v7  ;;  %v15169_v7 = vld [vmem:[%s21082_s7 + $0x7c0] ss:$16 sps:$4 sm:$0xff]  }
 0x6db   : > { %10206 = vmatmul.mubr.bf16.vlgmr.msra.gmra.mrb[104].mxu1 %v19549_v28 }
 0x6dc   : > { %10288 = vmatmul.mubr.bf16.vlgmr.msra.gmra.mrb[100].mxu0 %v19549_v28  ;;  %10215 = vmatpush1.bf16.msra.mxu1 %v15085_v10  ;;  %v15172_v10 = vld [vmem:[%s21082_s7 + $0x7c8] ss:$16 sps:$4 sm:$0xff]  }
 0x6dd   : > { %10246 = vmatprep.mubr.bf16.mxu1 %v19970_v57  ;;  %10297 = vmatpush1.bf16.msra.mxu0 %v15088_v33  ;;  %v15177_v33 = vld [vmem:[%s21082_s7 + $0x7e4] ss:$16 sps:$4 sm:$0xff]  }
 0x6de   : > { %10328 = vmatprep.mubr.bf16.mxu0 %v19970_v57  ;;  %10216 = vmatprep.subr.bf16.mxu1 %v15093_v25  ;;  %v15180_v25 = vld [vmem:[%s21082_s7 + $0x7ec] ss:$16 sps:$4 sm:$0xff]  }
 0x6df   : > { %10298 = vmatprep.subr.bf16.mxu0 %v15096_v29  ;;  %v15175_v29 = vld [vmem:[%s21082_s7 + $0x7e0] ss:$16 sps:$4 sm:$0xff]  }
 0x6e0   : > { %10217 = vmatpush1.bf16.msra.mxu1 %v15091_v37  ;;  %v15178_v37 = vld [vmem:[%s21082_s7 + $0x7e8] ss:$16 sps:$4 sm:$0xff]  }
 0x6e1   : > { %10299 = vmatpush1.bf16.msra.mxu0 %v15094_v31  ;;  %10218 = vmatprep.subr.bf16.mxu1 %v15099_v12  ;;  %v15183_v31 = vld [vmem:[%s21082_s7 + $0x804] ss:$16 sps:$4 sm:$0xff]   ;;  %v15186_v12 = vld [vmem:[%s21082_s7 + $0x80c] ss:$16 sps:$4 sm:$0xff]  }
 0x6e2   : > { %10300 = vmatprep.subr.bf16.mxu0 %v15102_v36  ;;  %v15181_v36 = vld [vmem:[%s21082_s7 + $0x800] ss:$16 sps:$4 sm:$0xff]  }
 0x6e4   : > { %10219 = vmatpush1.bf16.msra.mxu1 %v15097_v22  ;;  %v20162_v22 = vshrl.u32 %v19761_v51, 16 }
 0x6e5   : > { %10301 = vmatpush1.bf16.msra.mxu0 %v15100_v63  ;;  %10220 = vmatprep.subr.bf16.mxu1 %v15105_v6  ;;  %v15184_v63 = vld [vmem:[%s21082_s7 + $0x808] ss:$16 sps:$4 sm:$0xff]   ;;  %v15189_v6 = vld [vmem:[%s21082_s7 + $0x824] ss:$16 sps:$4 sm:$0xff]  }
 0x6e6   : > { %10302 = vmatprep.subr.bf16.mxu0 %v15108_v59  ;;  %v10497_v59 = vrot.slane %v19553_v34, 1  ;;  %v15195_v34 = vld [vmem:[%s21082_s7 + $0x844] ss:$16 sps:$4 sm:$0xff]  }
 0x6e8   : > { %10221 = vmatpush1.bf16.msra.mxu1 %v15103_v41  ;;  %v15192_v41 = vld [vmem:[%s21082_s7 + $0x82c] ss:$16 sps:$4 sm:$0xff]  }
 0x6e9   : > { %10303 = vmatpush1.bf16.msra.mxu0 %v15106_v45  ;;  %10222 = vmatprep.subr.bf16.mxu1 %v15111_v50  ;;  %v15187_v45 = vld [vmem:[%s21082_s7 + $0x820] ss:$16 sps:$4 sm:$0xff]   ;;  %v15190_v50 = vld [vmem:[%s21082_s7 + $0x828] ss:$16 sps:$4 sm:$0xff]  }
 0x6ea   : > { %10304 = vmatprep.subr.bf16.mxu0 %v15114_v55  ;;  %v15198_v55 = vld [vmem:[%s21082_s7 + $0x84c] ss:$16 sps:$4 sm:$0xff]  }
 0x6ec   : > { %10223 = vmatpush1.bf16.msra.mxu1 %v15109_v20  ;;  %v15193_v20 = vld [vmem:[%s21082_s7 + $0x840] ss:$16 sps:$4 sm:$0xff]  }
 0x6ed   : > { %10305 = vmatpush1.bf16.msra.mxu0 %v15112_v14  ;;  %10224 = vmatprep.subr.bf16.mxu1 %v15117_v40  ;;  %v15196_v14 = vld [vmem:[%s21082_s7 + $0x848] ss:$16 sps:$4 sm:$0xff]   ;;  %v15201_v40 = vld [vmem:[%s21082_s7 + $0x864] ss:$16 sps:$4 sm:$0xff]  }
 0x6ee   : > { %10306 = vmatprep.subr.bf16.mxu0 %v15120_v53  ;;  %v15204_v53 = vld [vmem:[%s21082_s7 + $0x86c] ss:$16 sps:$4 sm:$0xff]  }
 0x6f0   : > { %10225 = vmatpush1.bf16.msra.mxu1 %v15115_v30  ;;  %v15199_v30 = vld [vmem:[%s21082_s7 + $0x860] ss:$16 sps:$4 sm:$0xff]  }
 0x6f1   : > { %10307 = vmatpush1.bf16.msra.mxu0 %v15118_v38  ;;  %10226 = vmatprep.subr.bf16.mxu1 %v15123_v44  ;;  %v15202_v38 = vld [vmem:[%s21082_s7 + $0x868] ss:$16 sps:$4 sm:$0xff]   ;;  %v15207_v44 = vld [vmem:[%s21082_s7 + $0x884] ss:$16 sps:$4 sm:$0xff]  }
 0x6f2   : > { %10308 = vmatprep.subr.bf16.mxu0 %v15126_v5  ;;  %v15210_v5 = vld [vmem:[%s21082_s7 + $0x88c] ss:$16 sps:$4 sm:$0xff]  }
 0x6f4   : > { %10227 = vmatpush1.bf16.msra.mxu1 %v15121_v16  ;;  %v15205_v16 = vld [vmem:[%s21082_s7 + $0x880] ss:$16 sps:$4 sm:$0xff]  }
 0x6f5   : > { %10309 = vmatpush1.bf16.msra.mxu0 %v15124_v43  ;;  %10228 = vmatprep.subr.bf16.mxu1 %v15129_v39  ;;  %v15208_v43 = vld [vmem:[%s21082_s7 + $0x888] ss:$16 sps:$4 sm:$0xff]   ;;  %v15213_v39 = vld [vmem:[%s21082_s7 + $0x8a4] ss:$16 sps:$4 sm:$0xff]  }
 0x6f6   : > { %10310 = vmatprep.subr.bf16.mxu0 %v15132_v62  ;;  %v15216_v62 = vld [vmem:[%s21082_s7 + $0x8ac] ss:$16 sps:$4 sm:$0xff]  }
 0x6f8   : > { %10229 = vmatpush1.bf16.msra.mxu1 %v15127_v46  ;;  %v15211_v46 = vld [vmem:[%s21082_s7 + $0x8a0] ss:$16 sps:$4 sm:$0xff]  }
 0x6f9   : > { %10311 = vmatpush1.bf16.msra.mxu0 %v15130_v32  ;;  %10230 = vmatprep.subr.bf16.mxu1 %v15135_v61  ;;  %v15214_v32 = vld [vmem:[%s21082_s7 + $0x8a8] ss:$16 sps:$4 sm:$0xff]   ;;  %v15219_v61 = vld [vmem:[%s21082_s7 + $0x8c4] ss:$16 sps:$4 sm:$0xff]  }
 0x6fa   : > { %10312 = vmatprep.subr.bf16.mxu0 %v15138_v47  ;;  %v15222_v47 = vld [vmem:[%s21082_s7 + $0x8cc] ss:$16 sps:$4 sm:$0xff]  }
 0x6fc   : > { %10231 = vmatpush1.bf16.msra.mxu1 %v15133_v54  ;;  %v15217_v54 = vld [vmem:[%s21082_s7 + $0x8c0] ss:$16 sps:$4 sm:$0xff]  }
 0x6fd   : > { %10313 = vmatpush1.bf16.msra.mxu0 %v15136_v0  ;;  %10232 = vmatprep.subr.bf16.mxu1 %v15141_v2  ;;  %v15220_v0 = vld [vmem:[%s21082_s7 + $0x8c8] ss:$16 sps:$4 sm:$0xff]   ;;  %v15225_v2 = vld [vmem:[%s21082_s7 + $0x8e4] ss:$16 sps:$4 sm:$0xff]  }
 0x6fe   : > { %10314 = vmatprep.subr.bf16.mxu0 %v15144_v23  ;;  %v15228_v23 = vld [vmem:[%s21082_s7 + $0x8ec] ss:$16 sps:$4 sm:$0xff]  }
 0x700   : > { %10233 = vmatpush1.bf16.msra.mxu1 %v15139_v52  ;;  %v15223_v52 = vld [vmem:[%s21082_s7 + $0x8e0] ss:$16 sps:$4 sm:$0xff]  }
 0x701   : > { %10315 = vmatpush1.bf16.msra.mxu0 %v15142_v27  ;;  %10234 = vmatprep.subr.bf16.mxu1 %v15147_v19  ;;  %v15226_v27 = vld [vmem:[%s21082_s7 + $0x8e8] ss:$16 sps:$4 sm:$0xff]   ;;  %v15231_v19 = vld [vmem:[%s21082_s7 + $0x904] ss:$16 sps:$4 sm:$0xff]  }
 0x702   : > { %10316 = vmatprep.subr.bf16.mxu0 %v15150_v1  ;;  %v15234_v1 = vld [vmem:[%s21082_s7 + $0x90c] ss:$16 sps:$4 sm:$0xff]  }
 0x704   : > { %10235 = vmatpush1.bf16.msra.mxu1 %v15145_v4  ;;  %v15229_v4 = vld [vmem:[%s21082_s7 + $0x900] ss:$16 sps:$4 sm:$0xff]  }
 0x705   : > { %10317 = vmatpush1.bf16.msra.mxu0 %v15148_v13  ;;  %10236 = vmatprep.subr.bf16.mxu1 %v15153_v11  ;;  %v15232_v13 = vld [vmem:[%s21082_s7 + $0x908] ss:$16 sps:$4 sm:$0xff]   ;;  %v15237_v11 = vld [vmem:[%s21082_s7 + $0x924] ss:$16 sps:$4 sm:$0xff]  }
 0x706   : > { %10318 = vmatprep.subr.bf16.mxu0 %v15156_v24  ;;  %v15240_v24 = vld [vmem:[%s21082_s7 + $0x92c] ss:$16 sps:$4 sm:$0xff]  }
 0x708   : > { %10237 = vmatpush1.bf16.msra.mxu1 %v15151_v58  ;;  %v15235_v58 = vld [vmem:[%s21082_s7 + $0x920] ss:$16 sps:$4 sm:$0xff]  }
 0x709   : > { %10319 = vmatpush1.bf16.msra.mxu0 %v15154_v17  ;;  %10238 = vmatprep.subr.bf16.mxu1 %v15159_v15  ;;  %v15238_v17 = vld [vmem:[%s21082_s7 + $0x928] ss:$16 sps:$4 sm:$0xff]   ;;  %v15243_v15 = vld [vmem:[%s21082_s7 + $0x944] ss:$16 sps:$4 sm:$0xff]  }
 0x70a   : > { %10320 = vmatprep.subr.bf16.mxu0 %v15162_v21  ;;  %v15246_v21 = vld [vmem:[%s21082_s7 + $0x94c] ss:$16 sps:$4 sm:$0xff]  }
 0x70c   : > { %10239 = vmatpush1.bf16.msra.mxu1 %v15157_v35  ;;  %v15241_v35 = vld [vmem:[%s21082_s7 + $0x940] ss:$16 sps:$4 sm:$0xff]  }
 0x70d   : > { %10321 = vmatpush1.bf16.msra.mxu0 %v15160_v42  ;;  %10240 = vmatprep.subr.bf16.mxu1 %v15165_v8  ;;  %v15244_v42 = vld [vmem:[%s21082_s7 + $0x948] ss:$16 sps:$4 sm:$0xff]   ;;  %v15249_v8 = vld [vmem:[%s21082_s7 + $0x964] ss:$16 sps:$4 sm:$0xff]  }
 0x70e   : > { %10322 = vmatprep.subr.bf16.mxu0 %v15168_v9  ;;  %v15252_v9 = vld [vmem:[%s21082_s7 + $0x96c] ss:$16 sps:$4 sm:$0xff]  }
 0x710   : > { %10241 = vmatpush1.bf16.msra.mxu1 %v15163_v60  ;;  %v15247_v60 = vld [vmem:[%s21082_s7 + $0x960] ss:$16 sps:$4 sm:$0xff]  }
 0x711   : > { %10323 = vmatpush1.bf16.msra.mxu0 %v15166_v18  ;;  %10242 = vmatprep.subr.bf16.mxu1 %v15171_v26  ;;  %v15250_v18 = vld [vmem:[%s21082_s7 + $0x968] ss:$16 sps:$4 sm:$0xff]   ;;  %v15255_v26 = vld [vmem:[%s21082_s7 + $0x984] ss:$16 sps:$4 sm:$0xff]  }
 0x712   : > { %10324 = vmatprep.subr.bf16.mxu0 %v15174_v56  ;;  %v15258_v56 = vld [vmem:[%s21082_s7 + $0x98c] ss:$16 sps:$4 sm:$0xff]  }
 0x714   : > { %10243 = vmatpush1.bf16.msra.mxu1 %v15169_v7  ;;  %v15253_v7 = vld [vmem:[%s21082_s7 + $0x980] ss:$16 sps:$4 sm:$0xff]  }
 0x715   : > { %10325 = vmatpush1.bf16.msra.mxu0 %v15172_v10  ;;  %10244 = vmatprep.subr.bf16.mxu1 %v15177_v33  ;;  %v15256_v10 = vld [vmem:[%s21082_s7 + $0x988] ss:$16 sps:$4 sm:$0xff]   ;;  %v15261_v33 = vld [vmem:[%s21082_s7 + $0x9a4] ss:$16 sps:$4 sm:$0xff]  }
 0x716   : > { %10326 = vmatprep.subr.bf16.mxu0 %v15180_v25  ;;  %v15264_v25 = vld [vmem:[%s21082_s7 + $0x9ac] ss:$16 sps:$4 sm:$0xff]  }
 0x718   : > { %10245 = vmatpush1.bf16.msra.mxu1 %v15175_v29  ;;  %v15259_v29 = vld [vmem:[%s21082_s7 + $0x9a0] ss:$16 sps:$4 sm:$0xff]  }
 0x719   : > { %10327 = vmatpush1.bf16.msra.mxu0 %v15178_v37  ;;  %11144 = vmatprep.subr.bf16.mxu1 %v15183_v31  ;;  %v15262_v37 = vld [vmem:[%s21082_s7 + $0x9a8] ss:$16 sps:$4 sm:$0xff]   ;;  %v15267_v31 = vld [vmem:[%s21082_s7 + $0x9c4] ss:$16 sps:$4 sm:$0xff]  }
 0x71a   : > { %11226 = vmatprep.subr.bf16.mxu0 %v15186_v12  ;;  %v15270_v12 = vld [vmem:[%s21082_s7 + $0x9cc] ss:$16 sps:$4 sm:$0xff]  }
 0x71b   : > { %10247 = vmatmul.mubr.bf16.vlgmr.msra.gmra.mrb[104].mxu1 %v20162_v22 }
 0x71c   : > { %10329 = vmatmul.mubr.bf16.vlgmr.msra.gmra.mrb[100].mxu0 %v20162_v22  ;;  %11145 = vmatpush1.bf16.msra.mxu1 %v15181_v36  ;;  %v15265_v36 = vld [vmem:[%s21082_s7 + $0x9c0] ss:$16 sps:$4 sm:$0xff]  }
 0x71d   : > { %11176 = vmatprep.mubr.bf16.mxu1 %v10497_v59  ;;  %11227 = vmatpush1.bf16.msra.mxu0 %v15184_v63  ;;  %v15268_v63 = vld [vmem:[%s21082_s7 + $0x9c8] ss:$16 sps:$4 sm:$0xff]  }
 0x71e   : > { %11258 = vmatprep.mubr.bf16.mxu0 %v10497_v59  ;;  %11146 = vmatprep.subr.bf16.mxu1 %v15189_v6  ;;  %v15273_v6 = vld [vmem:[%s21082_s7 + $0x9e4] ss:$16 sps:$4 sm:$0xff]   ;;  %v15276_v59 = vld [vmem:[%s21082_s7 + $0x9ec] ss:$16 sps:$4 sm:$0xff]  }
 0x71f   : > { %11228 = vmatprep.subr.bf16.mxu0 %v15192_v41  ;;  %v15271_v41 = vld [vmem:[%s21082_s7 + $0x9e0] ss:$16 sps:$4 sm:$0xff]  }
 0x720   : > { %11147 = vmatpush1.bf16.msra.mxu1 %v15187_v45  ;;  %v15274_v45 = vld [vmem:[%s21082_s7 + $0x9e8] ss:$16 sps:$4 sm:$0xff]  }
 0x721   : > { %11229 = vmatpush1.bf16.msra.mxu0 %v15190_v50  ;;  %11148 = vmatprep.subr.bf16.mxu1 %v15195_v34  ;;  %v15279_v50 = vld [vmem:[%s21082_s7 + $0xa04] ss:$16 sps:$4 sm:$0xff]   ;;  %v15282_v34 = vld [vmem:[%s21082_s7 + $0xa0c] ss:$16 sps:$4 sm:$0xff]  }
 0x722   : > { %11230 = vmatprep.subr.bf16.mxu0 %v15198_v55  ;;  %v15277_v55 = vld [vmem:[%s21082_s7 + $0xa00] ss:$16 sps:$4 sm:$0xff]  }
 0x724   : > { %11149 = vmatpush1.bf16.msra.mxu1 %v15193_v20  ;;  %v10496_v20 = vrot.slane %v19546_v48, 1  ;;  %v15283_v48 = vld [vmem:[%s21082_s7 + $0xa20] ss:$16 sps:$4 sm:$0xff]  }
 0x725   : > { %11231 = vmatpush1.bf16.msra.mxu0 %v15196_v14  ;;  %11150 = vmatprep.subr.bf16.mxu1 %v15201_v40  ;;  %v15280_v14 = vld [vmem:[%s21082_s7 + $0xa08] ss:$16 sps:$4 sm:$0xff]   ;;  %v15285_v40 = vld [vmem:[%s21082_s7 + $0xa24] ss:$16 sps:$4 sm:$0xff]  }
 0x726   : > { %11232 = vmatprep.subr.bf16.mxu0 %v15204_v53  ;;  %v10499_v53 = vrot.slane %v19585_v3, 1  ;;  %v15291_v3 = vld [vmem:[%s21082_s7 + $0xa44] ss:$16 sps:$4 sm:$0xff]  }
 0x728   : > { %11151 = vmatpush1.bf16.msra.mxu1 %v15199_v30  ;;  %v15288_v30 = vld [vmem:[%s21082_s7 + $0xa2c] ss:$16 sps:$4 sm:$0xff]  }
 0x729   : > { %11233 = vmatpush1.bf16.msra.mxu0 %v15202_v38  ;;  %11152 = vmatprep.subr.bf16.mxu1 %v15207_v44  ;;  %v15286_v38 = vld [vmem:[%s21082_s7 + $0xa28] ss:$16 sps:$4 sm:$0xff]   ;;  %v15294_v44 = vld [vmem:[%s21082_s7 + $0xa4c] ss:$16 sps:$4 sm:$0xff]  }
 0x72a   : > { %11234 = vmatprep.subr.bf16.mxu0 %v15210_v5  ;;  %v15289_v5 = vld [vmem:[%s21082_s7 + $0xa40] ss:$16 sps:$4 sm:$0xff]  }
 0x72c   : > { %11153 = vmatpush1.bf16.msra.mxu1 %v15205_v16  ;;  %v15292_v16 = vld [vmem:[%s21082_s7 + $0xa48] ss:$16 sps:$4 sm:$0xff]  }
 0x72d   : > { %11235 = vmatpush1.bf16.msra.mxu0 %v15208_v43  ;;  %11154 = vmatprep.subr.bf16.mxu1 %v15213_v39  ;;  %v15297_v43 = vld [vmem:[%s21082_s7 + $0xa64] ss:$16 sps:$4 sm:$0xff]   ;;  %v15300_v39 = vld [vmem:[%s21082_s7 + $0xa6c] ss:$16 sps:$4 sm:$0xff]  }
 0x72e   : > { %11236 = vmatprep.subr.bf16.mxu0 %v15216_v62  ;;  %v15295_v62 = vld [vmem:[%s21082_s7 + $0xa60] ss:$16 sps:$4 sm:$0xff]  }
 0x730   : > { %11155 = vmatpush1.bf16.msra.mxu1 %v15211_v46  ;;  %v15298_v46 = vld [vmem:[%s21082_s7 + $0xa68] ss:$16 sps:$4 sm:$0xff]  }
 0x731   : > { %11237 = vmatpush1.bf16.msra.mxu0 %v15214_v32  ;;  %11156 = vmatprep.subr.bf16.mxu1 %v15219_v61  ;;  %v15303_v32 = vld [vmem:[%s21082_s7 + $0xa84] ss:$16 sps:$4 sm:$0xff]   ;;  %v15306_v61 = vld [vmem:[%s21082_s7 + $0xa8c] ss:$16 sps:$4 sm:$0xff]  }
 0x732   : > { %11238 = vmatprep.subr.bf16.mxu0 %v15222_v47  ;;  %v15697_v47 = vmov 1966171168  }
 0x734   : > { %11157 = vmatpush1.bf16.msra.mxu1 %v15217_v54  ;;  %v9368_v54 = vunpack.c.l.s4 %v15697_v47  ;;  %v15361_v47 = vld [vmem:[%s21082_s7 + $0xbc0] ss:$16 sps:$4 sm:$0xff]  }
 0x735   : > { %11239 = vmatpush1.bf16.msra.mxu0 %v15220_v0  ;;  %11158 = vmatprep.subr.bf16.mxu1 %v15225_v2  ;;  %v9370_v0 = vlaneseq  ;;  %v15301_v2 = vld [vmem:[%s21082_s7 + $0xa80] ss:$16 sps:$4 sm:$0xff]  }
 0x736   : > { %11240 = vmatprep.subr.bf16.mxu0 %v15228_v23  ;;  %v15304_v23 = vld [vmem:[%s21082_s7 + $0xa88] ss:$16 sps:$4 sm:$0xff]  }
 0x738   : > { %11159 = vmatpush1.bf16.msra.mxu1 %v15223_v52  ;;  %v15309_v52 = vld [vmem:[%s21082_s7 + $0xaa4] ss:$16 sps:$4 sm:$0xff]  }
 0x739   : > { %11241 = vmatpush1.bf16.msra.mxu0 %v15226_v27  ;;  %11160 = vmatprep.subr.bf16.mxu1 %v15231_v19  ;;  %v9369_v27 = vunpack.c.0.s8 %v9368_v54  ;;  %v20415_v19 = vshrl.u32 %v9370_v0, 7  ;;  %v15364_v54 = vld [vmem:[%s21082_s7 + $0xbc8] ss:$16 sps:$4 sm:$0xff]   ;;  %v15369_v0 = vld [vmem:[%s21082_s7 + $0xbe4] ss:$16 sps:$4 sm:$0xff]  }
 0x73a   : > { %11242 = vmatprep.subr.bf16.mxu0 %v15234_v1  ;;  %v15312_v1 = vld [vmem:[%s21082_s7 + $0xaac] ss:$16 sps:$4 sm:$0xff]  }
 0x73c   : > { %11161 = vmatpush1.bf16.msra.mxu1 %v15229_v4  ;;  %v15307_v4 = vld [vmem:[%s21082_s7 + $0xaa0] ss:$16 sps:$4 sm:$0xff]  }
 0x73d   : > { %11243 = vmatpush1.bf16.msra.mxu0 %v15232_v13  ;;  %11162 = vmatprep.subr.bf16.mxu1 %v15237_v11  ;;  %v15310_v13 = vld [vmem:[%s21082_s7 + $0xaa8] ss:$16 sps:$4 sm:$0xff]   ;;  %v15315_v11 = vld [vmem:[%s21082_s7 + $0xac4] ss:$16 sps:$4 sm:$0xff]  }
 0x73e   : > { %11244 = vmatprep.subr.bf16.mxu0 %v15240_v24 }
 0x740   : > { %11163 = vmatpush1.bf16.msra.mxu1 %v15235_v58 }
 0x741   : > { %11245 = vmatpush1.bf16.msra.mxu0 %v15238_v17  ;;  %11164 = vmatprep.subr.bf16.mxu1 %v15243_v15  ;;  %v20430_v17 = vsub.s32 %v9369_v27, %v20415_v19  ;;  %v15318_v15 = vld [vmem:[%s21082_s7 + $0xacc] ss:$16 sps:$4 sm:$0xff]   ;;  %v15375_v27 = vld [vmem:[%s21082_s7 + $0xc04] ss:$16 sps:$4 sm:$0xff]  }
 0x742   : > { %11246 = vmatprep.subr.bf16.mxu0 %v15246_v21 }
 0x744   : > { %11165 = vmatpush1.bf16.msra.mxu1 %v15241_v35 }
 0x745   : > { %11247 = vmatpush1.bf16.msra.mxu0 %v15244_v42  ;;  %11166 = vmatprep.subr.bf16.mxu1 %v15249_v8 }
 0x746   : > { %11248 = vmatprep.subr.bf16.mxu0 %v15252_v9 }
 0x748   : > { %11167 = vmatpush1.bf16.msra.mxu1 %v15247_v60 }
 0x749   : > { %11249 = vmatpush1.bf16.msra.mxu0 %v15250_v18  ;;  %11168 = vmatprep.subr.bf16.mxu1 %v15255_v26  ;;  %v15313_v18 = vld [vmem:[%s21082_s7 + $0xac0] ss:$16 sps:$4 sm:$0xff]  }
 0x74a   : > { %11250 = vmatprep.subr.bf16.mxu0 %v15258_v56 }
 0x74c   : > { %11169 = vmatpush1.bf16.msra.mxu1 %v15253_v7  ;;  %v15316_v7 = vld [vmem:[%s21082_s7 + $0xac8] ss:$16 sps:$4 sm:$0xff]  }
 0x74d   : > { %11251 = vmatpush1.bf16.msra.mxu0 %v15256_v10  ;;  %11170 = vmatprep.subr.bf16.mxu1 %v15261_v33  ;;  %v15321_v10 = vld [vmem:[%s21082_s7 + $0xae4] ss:$16 sps:$4 sm:$0xff]  }
 0x74e   : > { %11252 = vmatprep.subr.bf16.mxu0 %v15264_v25 }
 0x750   : > { %11171 = vmatpush1.bf16.msra.mxu1 %v15259_v29  ;;  %v15324_v29 = vld [vmem:[%s21082_s7 + $0xaec] ss:$16 sps:$4 sm:$0xff]  }
 0x751   : > { %11253 = vmatpush1.bf16.msra.mxu0 %v15262_v37  ;;  %11172 = vmatprep.subr.bf16.mxu1 %v15267_v31  ;;  %v15319_v31 = vld [vmem:[%s21082_s7 + $0xae0] ss:$16 sps:$4 sm:$0xff]  }
 0x752   : > { %11254 = vmatprep.subr.bf16.mxu0 %v15270_v12  ;;  %v15322_v12 = vld [vmem:[%s21082_s7 + $0xae8] ss:$16 sps:$4 sm:$0xff]  }
 0x754   : > { %11173 = vmatpush1.bf16.msra.mxu1 %v15265_v36  ;;  %v15327_v36 = vld [vmem:[%s21082_s7 + $0xb04] ss:$16 sps:$4 sm:$0xff]  }
 0x755   : > { %11255 = vmatpush1.bf16.msra.mxu0 %v15268_v63  ;;  %11174 = vmatprep.subr.bf16.mxu1 %v15273_v6  ;;  %v15330_v63 = vld [vmem:[%s21082_s7 + $0xb0c] ss:$16 sps:$4 sm:$0xff]   ;;  %v15325_v6 = vld [vmem:[%s21082_s7 + $0xb00] ss:$16 sps:$4 sm:$0xff]  }
 0x756   : > { %11256 = vmatprep.subr.bf16.mxu0 %v15276_v59  ;;  %v15328_v59 = vld [vmem:[%s21082_s7 + $0xb08] ss:$16 sps:$4 sm:$0xff]  }
 0x758   : > { %11175 = vmatpush1.bf16.msra.mxu1 %v15271_v41  ;;  %v15333_v41 = vld [vmem:[%s21082_s7 + $0xb24] ss:$16 sps:$4 sm:$0xff]  }
 0x759   : > { %11257 = vmatpush1.bf16.msra.mxu0 %v15274_v45  ;;  %11185 = vmatprep.subr.bf16.mxu1 %v15279_v50  ;;  %v15336_v45 = vld [vmem:[%s21082_s7 + $0xb2c] ss:$16 sps:$4 sm:$0xff]   ;;  %v15331_v50 = vld [vmem:[%s21082_s7 + $0xb20] ss:$16 sps:$4 sm:$0xff]  }
 0x75a   : > { %11267 = vmatprep.subr.bf16.mxu0 %v15282_v34  ;;  %v15334_v34 = vld [vmem:[%s21082_s7 + $0xb28] ss:$16 sps:$4 sm:$0xff]  }
 0x75b   : > { %11177 = vmatmul.mubr.bf16.vlgmr.msra.gmra.mrb[108].mxu1 %v10496_v20 }
 0x75c   : > { %11259 = vmatmul.mubr.bf16.vlgmr.msra.gmra.mrb[104].mxu0 %v10496_v20  ;;  %11186 = vmatpush1.bf16.msra.mxu1 %v15277_v55  ;;  %v15339_v55 = vld [vmem:[%s21082_s7 + $0xb44] ss:$16 sps:$4 sm:$0xff]   ;;  %v15342_v20 = vld [vmem:[%s21082_s7 + $0xb4c] ss:$16 sps:$4 sm:$0xff]  }
 0x75d   : > { %11217 = vmatprep.mubr.bf16.mxu1 %v10499_v53  ;;  %11268 = vmatpush1.bf16.msra.mxu0 %v15280_v14  ;;  %v15337_v14 = vld [vmem:[%s21082_s7 + $0xb40] ss:$16 sps:$4 sm:$0xff]  }
 0x75e   : > { %11299 = vmatprep.mubr.bf16.mxu0 %v10499_v53  ;;  %11187 = vmatprep.subr.bf16.mxu1 %v15285_v40  ;;  %v15340_v40 = vld [vmem:[%s21082_s7 + $0xb48] ss:$16 sps:$4 sm:$0xff]   ;;  %v15345_v53 = vld [vmem:[%s21082_s7 + $0xb64] ss:$16 sps:$4 sm:$0xff]  }
 0x75f   : > { %11269 = vmatprep.subr.bf16.mxu0 %v15288_v30  ;;  %v15348_v30 = vld [vmem:[%s21082_s7 + $0xb6c] ss:$16 sps:$4 sm:$0xff]  }
 0x760   : > { %11188 = vmatpush1.bf16.msra.mxu1 %v15283_v48  ;;  %v15343_v48 = vld [vmem:[%s21082_s7 + $0xb60] ss:$16 sps:$4 sm:$0xff]  }
 0x761   : > { %11270 = vmatpush1.bf16.msra.mxu0 %v15286_v38  ;;  %11189 = vmatprep.subr.bf16.mxu1 %v15291_v3  ;;  %v15346_v38 = vld [vmem:[%s21082_s7 + $0xb68] ss:$16 sps:$4 sm:$0xff]   ;;  %v15351_v3 = vld [vmem:[%s21082_s7 + $0xb84] ss:$16 sps:$4 sm:$0xff]  }
 0x762   : > { %11271 = vmatprep.subr.bf16.mxu0 %v15294_v44  ;;  %v15354_v44 = vld [vmem:[%s21082_s7 + $0xb8c] ss:$16 sps:$4 sm:$0xff]  }
 0x764   : > { %11190 = vmatpush1.bf16.msra.mxu1 %v15289_v5  ;;  %v15349_v5 = vld [vmem:[%s21082_s7 + $0xb80] ss:$16 sps:$4 sm:$0xff]  }
 0x765   : > { %11272 = vmatpush1.bf16.msra.mxu0 %v15292_v16  ;;  %11191 = vmatprep.subr.bf16.mxu1 %v15297_v43  ;;  %v15352_v16 = vld [vmem:[%s21082_s7 + $0xb88] ss:$16 sps:$4 sm:$0xff]   ;;  %v15357_v43 = vld [vmem:[%s21082_s7 + $0xba4] ss:$16 sps:$4 sm:$0xff]  }
 0x766   : > { %11273 = vmatprep.subr.bf16.mxu0 %v15300_v39  ;;  %v15360_v39 = vld [vmem:[%s21082_s7 + $0xbac] ss:$16 sps:$4 sm:$0xff]  }
 0x768   : > { %11192 = vmatpush1.bf16.msra.mxu1 %v15295_v62  ;;  %v15355_v62 = vld [vmem:[%s21082_s7 + $0xba0] ss:$16 sps:$4 sm:$0xff]  }
 0x769   : > { %11274 = vmatpush1.bf16.msra.mxu0 %v15298_v46  ;;  %11193 = vmatprep.subr.bf16.mxu1 %v15303_v32  ;;  %v15358_v46 = vld [vmem:[%s21082_s7 + $0xba8] ss:$16 sps:$4 sm:$0xff]   ;;  %v15363_v32 = vld [vmem:[%s21082_s7 + $0xbc4] ss:$16 sps:$4 sm:$0xff]  }
 0x76a   : > { %11275 = vmatprep.subr.bf16.mxu0 %v15306_v61  ;;  %v15366_v61 = vld [vmem:[%s21082_s7 + $0xbcc] ss:$16 sps:$4 sm:$0xff]  }
 0x76c   : > { %11194 = vmatpush1.bf16.msra.mxu1 %v15301_v2  ;;  %v15372_v2 = vld [vmem:[%s21082_s7 + $0xbec] ss:$16 sps:$4 sm:$0xff]  }
 0x76d   : > { %11276 = vmatpush1.bf16.msra.mxu0 %v15304_v23  ;;  %11195 = vmatprep.subr.bf16.mxu1 %v15309_v52  ;;  %v15367_v23 = vld [vmem:[%s21082_s7 + $0xbe0] ss:$16 sps:$4 sm:$0xff]   ;;  %v15370_v52 = vld [vmem:[%s21082_s7 + $0xbe8] ss:$16 sps:$4 sm:$0xff]  }
 0x76e   : > { %v9272_v24 = vpop.f32.mrb[100].mxu1  ;;  %v9354_v58 = vpop.f32.mrb[96].mxu0  ;;  %11277 = vmatprep.subr.bf16.mxu0 %v15312_v1  ;;  %v15378_v1 = vld [vmem:[%s21082_s7 + $0xc0c] ss:$16 sps:$4 sm:$0xff]  }
 0x76f   : > { %v9274_v21 = vpop.f32.mrb[101].mxu1  ;;  %v9356_v35 = vpop.f32.mrb[97].mxu0 }
 0x770   : > { %v9365_v42 = vcombine.low %v9272_v24, %v9274_v21  ;;  %v9366_v8 = vcombine.low %v9354_v58, %v9356_v35  ;;  %v9276_v9 = vpop.f32.mrb[102].mxu1  ;;  %v9358_v60 = vpop.f32.mrb[98].mxu0  ;;  %11196 = vmatpush1.bf16.msra.mxu1 %v15307_v4  ;;  %v15373_v4 = vld [vmem:[%s21082_s7 + $0xc00] ss:$16 sps:$4 sm:$0xff]   ;;  %v15381_v24 = vld [vmem:[%s21082_s7 + $0xc24] ss:$16 sps:$4 sm:$0xff]  }
 0x771   : > { %11278 = vmatpush1.bf16.msra.mxu0 %v15310_v13  ;;  %v9277_v26 = vpop.f32.mrb[103].mxu1  ;;  %v9359_v56 = vpop.f32.mrb[99].mxu0  ;;  %11197 = vmatprep.subr.bf16.mxu1 %v15315_v11  ;;  %v10498_v13 = vrot.slane %v19761_v51, 1  ;;  %v15376_v11 = vld [vmem:[%s21082_s7 + $0xc08] ss:$16 sps:$4 sm:$0xff]   ;;  %v11468_v58 = vrot.slane %v19767_v49, 1 }
 0x772   : > { %v20445_v33 = vrot.slane %v9365_v42, %v20430_v17  ;;  %v20448_v25 = vrot.slane %v9366_v8, %v20430_v17  ;;  %11279 = vmatprep.subr.bf16.mxu0 %v15318_v15  ;;  %v15384_v15 = vld [vmem:[%s21082_s7 + $0xc2c] ss:$16 sps:$4 sm:$0xff]   ;;  %v15379_v51 = vld [vmem:[%s21082_s7 + $0xc20] ss:$16 sps:$4 sm:$0xff]   ;;  %v15382_v21 = vld [vmem:[%s21082_s7 + $0xc28] ss:$16 sps:$4 sm:$0xff]  }
 0x773   : > { %v15387_v49 = vld [vmem:[%s21082_s7 + $0xc44] ss:$16 sps:$4 sm:$0xff]   ;;  %v15390_v35 = vld [vmem:[%s21082_s7 + $0xc4c] ss:$16 sps:$4 sm:$0xff]   ;;  %v15385_v42 = vld [vmem:[%s21082_s7 + $0xc40] ss:$16 sps:$4 sm:$0xff]  }
 0x774   : > { %v9381_v37 = vcombine.low %v20445_v33, %v20448_v25  ;;  %11198 = vmatpush1.bf16.msra.mxu1 %v15313_v18  ;;  %v15388_v8 = vld [vmem:[%s21082_s7 + $0xc48] ss:$16 sps:$4 sm:$0xff]   ;;  %v15393_v9 = vld [vmem:[%s21082_s7 + $0xc64] ss:$16 sps:$4 sm:$0xff]   ;;  %v15396_v60 = vld [vmem:[%s21082_s7 + $0xc6c] ss:$16 sps:$4 sm:$0xff]  }
 0x775   : > { %11280 = vmatpush1.bf16.msra.mxu0 %v15316_v7  ;;  %11199 = vmatprep.subr.bf16.mxu1 %v15321_v10  ;;  %v15391_v18 = vld [vmem:[%s21082_s7 + $0xc60] ss:$16 sps:$4 sm:$0xff]   ;;  %v15394_v26 = vld [vmem:[%s21082_s7 + $0xc68] ss:$16 sps:$4 sm:$0xff]   ;;  %v15399_v56 = vld [vmem:[%s21082_s7 + $0xc84] ss:$16 sps:$4 sm:$0xff]  }
 0x776   : > { %11281 = vmatprep.subr.bf16.mxu0 %v15324_v29  ;;  %v15402_v7 = vld [vmem:[%s21082_s7 + $0xc8c] ss:$16 sps:$4 sm:$0xff]   ;;  %v15397_v10 = vld [vmem:[%s21082_s7 + $0xc80] ss:$16 sps:$4 sm:$0xff]   ;;  %v15400_v29 = vld [vmem:[%s21082_s7 + $0xc88] ss:$16 sps:$4 sm:$0xff]  }
 0x777   : > { %v15519_v33 = vld [vmem:[%s21082_s7 + $0xf04] ss:$16 sps:$4 sm:$0xff]   ;;  %v15522_v25 = vld [vmem:[%s21082_s7 + $0xf0c] ss:$16 sps:$4 sm:$0xff]  }
 0x778   : > { %11200 = vmatpush1.bf16.msra.mxu1 %v15319_v31  ;;  %v15405_v31 = vld [vmem:[%s21082_s7 + $0xca4] ss:$16 sps:$4 sm:$0xff]  }
 0x779   : > { %11282 = vmatpush1.bf16.msra.mxu0 %v15322_v12  ;;  %11201 = vmatprep.subr.bf16.mxu1 %v15327_v36  ;;  %v15408_v12 = vld [vmem:[%s21082_s7 + $0xcac] ss:$16 sps:$4 sm:$0xff]   ;;  %v15403_v36 = vld [vmem:[%s21082_s7 + $0xca0] ss:$16 sps:$4 sm:$0xff]  }
 0x77a   : > { %11283 = vmatprep.subr.bf16.mxu0 %v15330_v63  ;;  %v15406_v63 = vld [vmem:[%s21082_s7 + $0xca8] ss:$16 sps:$4 sm:$0xff]  }
 0x77c   : > { %11202 = vmatpush1.bf16.msra.mxu1 %v15325_v6  ;;  %v15411_v6 = vld [vmem:[%s21082_s7 + $0xcc4] ss:$16 sps:$4 sm:$0xff]  }
 0x77d   : > { %11284 = vmatpush1.bf16.msra.mxu0 %v15328_v59  ;;  %11203 = vmatprep.subr.bf16.mxu1 %v15333_v41  ;;  %v15414_v59 = vld [vmem:[%s21082_s7 + $0xccc] ss:$16 sps:$4 sm:$0xff]   ;;  %v15409_v41 = vld [vmem:[%s21082_s7 + $0xcc0] ss:$16 sps:$4 sm:$0xff]  }
 0x77e   : > { %11285 = vmatprep.subr.bf16.mxu0 %v15336_v45  ;;  %v15412_v45 = vld [vmem:[%s21082_s7 + $0xcc8] ss:$16 sps:$4 sm:$0xff]  }
 0x780   : > { %11204 = vmatpush1.bf16.msra.mxu1 %v15331_v50  ;;  %v15417_v50 = vld [vmem:[%s21082_s7 + $0xce4] ss:$16 sps:$4 sm:$0xff]  }
 0x781   : > { %11286 = vmatpush1.bf16.msra.mxu0 %v15334_v34  ;;  %11205 = vmatprep.subr.bf16.mxu1 %v15339_v55  ;;  %v15420_v34 = vld [vmem:[%s21082_s7 + $0xcec] ss:$16 sps:$4 sm:$0xff]   ;;  %v15415_v55 = vld [vmem:[%s21082_s7 + $0xce0] ss:$16 sps:$4 sm:$0xff]  }
 0x782   : > { %11287 = vmatprep.subr.bf16.mxu0 %v15342_v20  ;;  %v15418_v20 = vld [vmem:[%s21082_s7 + $0xce8] ss:$16 sps:$4 sm:$0xff]  }
 0x784   : > { %11206 = vmatpush1.bf16.msra.mxu1 %v15337_v14  ;;  %v15423_v14 = vld [vmem:[%s21082_s7 + $0xd04] ss:$16 sps:$4 sm:$0xff]  }
 0x785   : > { %11288 = vmatpush1.bf16.msra.mxu0 %v15340_v40  ;;  %11207 = vmatprep.subr.bf16.mxu1 %v15345_v53  ;;  %v15426_v40 = vld [vmem:[%s21082_s7 + $0xd0c] ss:$16 sps:$4 sm:$0xff]   ;;  %v15421_v53 = vld [vmem:[%s21082_s7 + $0xd00] ss:$16 sps:$4 sm:$0xff]  }
 0x786   : > { %11289 = vmatprep.subr.bf16.mxu0 %v15348_v30  ;;  %v15424_v30 = vld [vmem:[%s21082_s7 + $0xd08] ss:$16 sps:$4 sm:$0xff]  }
 0x788   : > { %11208 = vmatpush1.bf16.msra.mxu1 %v15343_v48  ;;  %v15429_v48 = vld [vmem:[%s21082_s7 + $0xd24] ss:$16 sps:$4 sm:$0xff]  }
 0x789   : > { %11290 = vmatpush1.bf16.msra.mxu0 %v15346_v38  ;;  %11209 = vmatprep.subr.bf16.mxu1 %v15351_v3  ;;  %v15432_v38 = vld [vmem:[%s21082_s7 + $0xd2c] ss:$16 sps:$4 sm:$0xff]   ;;  %v15427_v3 = vld [vmem:[%s21082_s7 + $0xd20] ss:$16 sps:$4 sm:$0xff]  }
 0x78a   : > { %11291 = vmatprep.subr.bf16.mxu0 %v15354_v44  ;;  %v15430_v44 = vld [vmem:[%s21082_s7 + $0xd28] ss:$16 sps:$4 sm:$0xff]  }
 0x78c   : > { %11210 = vmatpush1.bf16.msra.mxu1 %v15349_v5  ;;  %v15435_v5 = vld [vmem:[%s21082_s7 + $0xd44] ss:$16 sps:$4 sm:$0xff]  }
 0x78d   : > { %11292 = vmatpush1.bf16.msra.mxu0 %v15352_v16  ;;  %11211 = vmatprep.subr.bf16.mxu1 %v15357_v43  ;;  %v15438_v16 = vld [vmem:[%s21082_s7 + $0xd4c] ss:$16 sps:$4 sm:$0xff]   ;;  %v15433_v43 = vld [vmem:[%s21082_s7 + $0xd40] ss:$16 sps:$4 sm:$0xff]  }
 0x78e   : > { %11293 = vmatprep.subr.bf16.mxu0 %v15360_v39  ;;  %v15436_v39 = vld [vmem:[%s21082_s7 + $0xd48] ss:$16 sps:$4 sm:$0xff]  }
 0x790   : > { %11212 = vmatpush1.bf16.msra.mxu1 %v15355_v62  ;;  %v15441_v62 = vld [vmem:[%s21082_s7 + $0xd64] ss:$16 sps:$4 sm:$0xff]  }
 0x791   : > { %11294 = vmatpush1.bf16.msra.mxu0 %v15358_v46  ;;  %11213 = vmatprep.subr.bf16.mxu1 %v15363_v32  ;;  %v15444_v46 = vld [vmem:[%s21082_s7 + $0xd6c] ss:$16 sps:$4 sm:$0xff]   ;;  %v15439_v32 = vld [vmem:[%s21082_s7 + $0xd60] ss:$16 sps:$4 sm:$0xff]  }
 0x792   : > { %11295 = vmatprep.subr.bf16.mxu0 %v15366_v61  ;;  %v15442_v61 = vld [vmem:[%s21082_s7 + $0xd68] ss:$16 sps:$4 sm:$0xff]  }
 0x794   : > { %11214 = vmatpush1.bf16.msra.mxu1 %v15361_v47  ;;  %v15447_v47 = vld [vmem:[%s21082_s7 + $0xd84] ss:$16 sps:$4 sm:$0xff]  }
 0x795   : > { %11296 = vmatpush1.bf16.msra.mxu0 %v15364_v54  ;;  %11215 = vmatprep.subr.bf16.mxu1 %v15369_v0  ;;  %v15450_v54 = vld [vmem:[%s21082_s7 + $0xd8c] ss:$16 sps:$4 sm:$0xff]   ;;  %v15445_v0 = vld [vmem:[%s21082_s7 + $0xd80] ss:$16 sps:$4 sm:$0xff]  }
 0x796   : > { %11297 = vmatprep.subr.bf16.mxu0 %v15372_v2  ;;  %v15448_v2 = vld [vmem:[%s21082_s7 + $0xd88] ss:$16 sps:$4 sm:$0xff]  }
 0x798   : > { %11216 = vmatpush1.bf16.msra.mxu1 %v15367_v23  ;;  %v15453_v23 = vld [vmem:[%s21082_s7 + $0xda4] ss:$16 sps:$4 sm:$0xff]  }
 0x799   : > { %11298 = vmatpush1.bf16.msra.mxu0 %v15370_v52  ;;  %12115 = vmatprep.subr.bf16.mxu1 %v15375_v27  ;;  %v15456_v52 = vld [vmem:[%s21082_s7 + $0xdac] ss:$16 sps:$4 sm:$0xff]   ;;  %v15451_v27 = vld [vmem:[%s21082_s7 + $0xda0] ss:$16 sps:$4 sm:$0xff]  }
 0x79a   : > { %12197 = vmatprep.subr.bf16.mxu0 %v15378_v1  ;;  %v15454_v1 = vld [vmem:[%s21082_s7 + $0xda8] ss:$16 sps:$4 sm:$0xff]  }
 0x79b   : > { %11218 = vmatmul.mubr.bf16.vlgmr.msra.gmra.mrb[108].mxu1 %v10498_v13 }
 0x79c   : > { %11300 = vmatmul.mubr.bf16.vlgmr.msra.gmra.mrb[104].mxu0 %v10498_v13  ;;  %12116 = vmatpush1.bf16.msra.mxu1 %v15373_v4  ;;  %v15459_v4 = vld [vmem:[%s21082_s7 + $0xdc4] ss:$16 sps:$4 sm:$0xff]   ;;  %v15462_v13 = vld [vmem:[%s21082_s7 + $0xdcc] ss:$16 sps:$4 sm:$0xff]  }
 0x79d   : > { %12147 = vmatprep.mubr.bf16.mxu1 %v11468_v58  ;;  %12198 = vmatpush1.bf16.msra.mxu0 %v15376_v11  ;;  %v15457_v11 = vld [vmem:[%s21082_s7 + $0xdc0] ss:$16 sps:$4 sm:$0xff]  }
 0x79e   : > { %12229 = vmatprep.mubr.bf16.mxu0 %v11468_v58  ;;  %12117 = vmatprep.subr.bf16.mxu1 %v15381_v24  ;;  %v15460_v24 = vld [vmem:[%s21082_s7 + $0xdc8] ss:$16 sps:$4 sm:$0xff]   ;;  %v15465_v58 = vld [vmem:[%s21082_s7 + $0xde4] ss:$16 sps:$4 sm:$0xff]  }
 0x79f   : > { %12199 = vmatprep.subr.bf16.mxu0 %v15384_v15  ;;  %v15468_v15 = vld [vmem:[%s21082_s7 + $0xdec] ss:$16 sps:$4 sm:$0xff]  }
 0x7a0   : > { %12118 = vmatpush1.bf16.msra.mxu1 %v15379_v51  ;;  %v15463_v51 = vld [vmem:[%s21082_s7 + $0xde0] ss:$16 sps:$4 sm:$0xff]  }
 0x7a1   : > { %12200 = vmatpush1.bf16.msra.mxu0 %v15382_v21  ;;  %12119 = vmatprep.subr.bf16.mxu1 %v15387_v49  ;;  %v15466_v21 = vld [vmem:[%s21082_s7 + $0xde8] ss:$16 sps:$4 sm:$0xff]   ;;  %v15471_v49 = vld [vmem:[%s21082_s7 + $0xe04] ss:$16 sps:$4 sm:$0xff]  }
 0x7a2   : > { %12201 = vmatprep.subr.bf16.mxu0 %v15390_v35  ;;  %v15474_v35 = vld [vmem:[%s21082_s7 + $0xe0c] ss:$16 sps:$4 sm:$0xff]  }
 0x7a4   : > { %12120 = vmatpush1.bf16.msra.mxu1 %v15385_v42  ;;  %v15469_v42 = vld [vmem:[%s21082_s7 + $0xe00] ss:$16 sps:$4 sm:$0xff]  }
 0x7a5   : > { %12202 = vmatpush1.bf16.msra.mxu0 %v15388_v8  ;;  %12121 = vmatprep.subr.bf16.mxu1 %v15393_v9  ;;  %v11467_v8 = vrot.slane %v19549_v28, 1  ;;  %v15472_v9 = vld [vmem:[%s21082_s7 + $0xe08] ss:$16 sps:$4 sm:$0xff]   ;;  %v15475_v28 = vld [vmem:[%s21082_s7 + $0xe20] ss:$16 sps:$4 sm:$0xff]  }
 0x7a6   : > { %12203 = vmatprep.subr.bf16.mxu0 %v15396_v60  ;;  %v15477_v60 = vld [vmem:[%s21082_s7 + $0xe24] ss:$16 sps:$4 sm:$0xff]  }
 0x7a8   : > { %12122 = vmatpush1.bf16.msra.mxu1 %v15391_v18  ;;  %v11470_v18 = vrot.slane %v19970_v57, 1  ;;  %v15483_v57 = vld [vmem:[%s21082_s7 + $0xe44] ss:$16 sps:$4 sm:$0xff]  }
 0x7a9   : > { %12204 = vmatpush1.bf16.msra.mxu0 %v15394_v26  ;;  %12123 = vmatprep.subr.bf16.mxu1 %v15399_v56  ;;  %v15480_v26 = vld [vmem:[%s21082_s7 + $0xe2c] ss:$16 sps:$4 sm:$0xff]   ;;  %v15478_v56 = vld [vmem:[%s21082_s7 + $0xe28] ss:$16 sps:$4 sm:$0xff]  }
 0x7aa   : > { %12205 = vmatprep.subr.bf16.mxu0 %v15402_v7  ;;  %v15486_v7 = vld [vmem:[%s21082_s7 + $0xe4c] ss:$16 sps:$4 sm:$0xff]  }
 0x7ac   : > { %12124 = vmatpush1.bf16.msra.mxu1 %v15397_v10  ;;  %v15481_v10 = vld [vmem:[%s21082_s7 + $0xe40] ss:$16 sps:$4 sm:$0xff]  }
 0x7ad   : > { %12206 = vmatpush1.bf16.msra.mxu0 %v15400_v29  ;;  %12125 = vmatprep.subr.bf16.mxu1 %v15405_v31  ;;  %v15484_v29 = vld [vmem:[%s21082_s7 + $0xe48] ss:$16 sps:$4 sm:$0xff]   ;;  %v15489_v31 = vld [vmem:[%s21082_s7 + $0xe64] ss:$16 sps:$4 sm:$0xff]  }
 0x7ae   : > { %12207 = vmatprep.subr.bf16.mxu0 %v15408_v12  ;;  %v15492_v12 = vld [vmem:[%s21082_s7 + $0xe6c] ss:$16 sps:$4 sm:$0xff]  }
 0x7b0   : > { %12126 = vmatpush1.bf16.msra.mxu1 %v15403_v36  ;;  %v15487_v36 = vld [vmem:[%s21082_s7 + $0xe60] ss:$16 sps:$4 sm:$0xff]  }
 0x7b1   : > { %12208 = vmatpush1.bf16.msra.mxu0 %v15406_v63  ;;  %12127 = vmatprep.subr.bf16.mxu1 %v15411_v6  ;;  %v15490_v63 = vld [vmem:[%s21082_s7 + $0xe68] ss:$16 sps:$4 sm:$0xff]   ;;  %v15495_v6 = vld [vmem:[%s21082_s7 + $0xe84] ss:$16 sps:$4 sm:$0xff]  }
 0x7b2   : > { %12209 = vmatprep.subr.bf16.mxu0 %v15414_v59  ;;  %v15498_v59 = vld [vmem:[%s21082_s7 + $0xe8c] ss:$16 sps:$4 sm:$0xff]  }
 0x7b4   : > { %12128 = vmatpush1.bf16.msra.mxu1 %v15409_v41  ;;  %v15493_v41 = vld [vmem:[%s21082_s7 + $0xe80] ss:$16 sps:$4 sm:$0xff]  }
 0x7b5   : > { %12210 = vmatpush1.bf16.msra.mxu0 %v15412_v45  ;;  %12129 = vmatprep.subr.bf16.mxu1 %v15417_v50  ;;  %v15496_v45 = vld [vmem:[%s21082_s7 + $0xe88] ss:$16 sps:$4 sm:$0xff]   ;;  %v15501_v50 = vld [vmem:[%s21082_s7 + $0xea4] ss:$16 sps:$4 sm:$0xff]  }
 0x7b6   : > { %12211 = vmatprep.subr.bf16.mxu0 %v15420_v34  ;;  %v15504_v34 = vld [vmem:[%s21082_s7 + $0xeac] ss:$16 sps:$4 sm:$0xff]  }
 0x7b8   : > { %12130 = vmatpush1.bf16.msra.mxu1 %v15415_v55  ;;  %v15499_v55 = vld [vmem:[%s21082_s7 + $0xea0] ss:$16 sps:$4 sm:$0xff]  }
 0x7b9   : > { %12212 = vmatpush1.bf16.msra.mxu0 %v15418_v20  ;;  %12131 = vmatprep.subr.bf16.mxu1 %v15423_v14  ;;  %v15502_v20 = vld [vmem:[%s21082_s7 + $0xea8] ss:$16 sps:$4 sm:$0xff]   ;;  %v15507_v14 = vld [vmem:[%s21082_s7 + $0xec4] ss:$16 sps:$4 sm:$0xff]  }
 0x7ba   : > { %12213 = vmatprep.subr.bf16.mxu0 %v15426_v40 }
 0x7bc   : > { %12132 = vmatpush1.bf16.msra.mxu1 %v15421_v53  ;;  %v15510_v53 = vld [vmem:[%s21082_s7 + $0xecc] ss:$16 sps:$4 sm:$0xff]  }
 0x7bd   : > { %12214 = vmatpush1.bf16.msra.mxu0 %v15424_v30  ;;  %12133 = vmatprep.subr.bf16.mxu1 %v15429_v48 }
 0x7be   : > { %12215 = vmatprep.subr.bf16.mxu0 %v15432_v38 }
 0x7c0   : > { %12134 = vmatpush1.bf16.msra.mxu1 %v15427_v3 }
 0x7c1   : > { %12216 = vmatpush1.bf16.msra.mxu0 %v15430_v44  ;;  %12135 = vmatprep.subr.bf16.mxu1 %v15435_v5  ;;  %v15505_v5 = vld [vmem:[%s21082_s7 + $0xec0] ss:$16 sps:$4 sm:$0xff]  }
 0x7c2   : > { %12217 = vmatprep.subr.bf16.mxu0 %v15438_v16 }
 0x7c4   : > { %12136 = vmatpush1.bf16.msra.mxu1 %v15433_v43 }
 0x7c5   : > { %12218 = vmatpush1.bf16.msra.mxu0 %v15436_v39  ;;  %12137 = vmatprep.subr.bf16.mxu1 %v15441_v62  ;;  %v15508_v62 = vld [vmem:[%s21082_s7 + $0xec8] ss:$16 sps:$4 sm:$0xff]  }
 0x7c6   : > { %12219 = vmatprep.subr.bf16.mxu0 %v15444_v46  ;;  %v15513_v46 = vld [vmem:[%s21082_s7 + $0xee4] ss:$16 sps:$4 sm:$0xff]  }
 0x7c8   : > { %12138 = vmatpush1.bf16.msra.mxu1 %v15439_v32 }
 0x7c9   : > { %12220 = vmatpush1.bf16.msra.mxu0 %v15442_v61  ;;  %12139 = vmatprep.subr.bf16.mxu1 %v15447_v47  ;;  %v15516_v47 = vld [vmem:[%s21082_s7 + $0xeec] ss:$16 sps:$4 sm:$0xff]  }
 0x7ca   : > { %12221 = vmatprep.subr.bf16.mxu0 %v15450_v54  ;;  %v9388_v54 = vrot.slane %v9381_v37, %v20430_v17 }
 0x7cc   : > { %12140 = vmatpush1.bf16.msra.mxu1 %v15445_v0 }
 0x7cd   : > { %12222 = vmatpush1.bf16.msra.mxu0 %v15448_v2  ;;  %12141 = vmatprep.subr.bf16.mxu1 %v15453_v23  ;;  %v8428_v2 = vld [vmem:[%s21083_s8] sm:$0xf] }
 0x7ce   : > { %12223 = vmatprep.subr.bf16.mxu0 %v15456_v52  ;;  %v15511_v23 = vld [vmem:[%s21082_s7 + $0xee0] ss:$16 sps:$4 sm:$0xff]   ;;  %v9390_v37 = vadd.f32 %v9388_v54, %v8428_v2 }
 0x7d0   : > { %12142 = vmatpush1.bf16.msra.mxu1 %v15451_v27  ;;  %v15514_v27 = vld [vmem:[%s21082_s7 + $0xee8] ss:$16 sps:$4 sm:$0xff]  }
 0x7d1   : > { %12224 = vmatpush1.bf16.msra.mxu0 %v15454_v1  ;;  %12143 = vmatprep.subr.bf16.mxu1 %v15459_v4  ;;  %v15517_v4 = vld [vmem:[%s21082_s7 + $0xf00] ss:$16 sps:$4 sm:$0xff]  }
 0x7d2   : > { %12225 = vmatprep.subr.bf16.mxu0 %v15462_v13 }
 0x7d4   : > { %12144 = vmatpush1.bf16.msra.mxu1 %v15457_v11  ;;  %v15520_v11 = vld [vmem:[%s21082_s7 + $0xf08] ss:$16 sps:$4 sm:$0xff]  }
 0x7d5   : > { %12226 = vmatpush1.bf16.msra.mxu0 %v15460_v24  ;;  %12145 = vmatprep.subr.bf16.mxu1 %v15465_v58  ;;  %v15525_v24 = vld [vmem:[%s21082_s7 + $0xf24] ss:$16 sps:$4 sm:$0xff]   ;;  %v15528_v58 = vld [vmem:[%s21082_s7 + $0xf2c] ss:$16 sps:$4 sm:$0xff]  }
 0x7d6   : > { %12227 = vmatprep.subr.bf16.mxu0 %v15468_v15  ;;  %v15523_v15 = vld [vmem:[%s21082_s7 + $0xf20] ss:$16 sps:$4 sm:$0xff]  }
 0x7d8   : > { %12146 = vmatpush1.bf16.msra.mxu1 %v15463_v51  ;;  %v15526_v51 = vld [vmem:[%s21082_s7 + $0xf28] ss:$16 sps:$4 sm:$0xff]  }
 0x7d9   : > { %12228 = vmatpush1.bf16.msra.mxu0 %v15466_v21  ;;  %12156 = vmatprep.subr.bf16.mxu1 %v15471_v49  ;;  %v15531_v21 = vld [vmem:[%s21082_s7 + $0xf44] ss:$16 sps:$4 sm:$0xff]   ;;  %v15534_v49 = vld [vmem:[%s21082_s7 + $0xf4c] ss:$16 sps:$4 sm:$0xff]  }
 0x7da   : > { %12238 = vmatprep.subr.bf16.mxu0 %v15474_v35  ;;  %v15529_v35 = vld [vmem:[%s21082_s7 + $0xf40] ss:$16 sps:$4 sm:$0xff]  }
 0x7db   : > { %12148 = vmatmul.mubr.bf16.vlgmr.msra.gmra.mrb[112].mxu1 %v11467_v8 }
 0x7dc   : > { %12230 = vmatmul.mubr.bf16.vlgmr.msra.gmra.mrb[108].mxu0 %v11467_v8  ;;  %12157 = vmatpush1.bf16.msra.mxu1 %v15469_v42  ;;  %v15532_v42 = vld [vmem:[%s21082_s7 + $0xf48] ss:$16 sps:$4 sm:$0xff]   ;;  %v15537_v8 = vld [vmem:[%s21082_s7 + $0xf64] ss:$16 sps:$4 sm:$0xff]  }
 0x7dd   : > { %12188 = vmatprep.mubr.bf16.mxu1 %v11470_v18  ;;  %12239 = vmatpush1.bf16.msra.mxu0 %v15472_v9  ;;  %v15540_v9 = vld [vmem:[%s21082_s7 + $0xf6c] ss:$16 sps:$4 sm:$0xff]  }
 0x7de   : > { %12270 = vmatprep.mubr.bf16.mxu0 %v11470_v18  ;;  %12158 = vmatprep.subr.bf16.mxu1 %v15477_v60  ;;  %v15535_v60 = vld [vmem:[%s21082_s7 + $0xf60] ss:$16 sps:$4 sm:$0xff]   ;;  %v15538_v18 = vld [vmem:[%s21082_s7 + $0xf68] ss:$16 sps:$4 sm:$0xff]  }
 0x7df   : > { %12240 = vmatprep.subr.bf16.mxu0 %v15480_v26  ;;  %v15543_v26 = vld [vmem:[%s21082_s7 + $0xf84] ss:$16 sps:$4 sm:$0xff]  }
 0x7e0   : > { %12159 = vmatpush1.bf16.msra.mxu1 %v15475_v28  ;;  %v15546_v28 = vld [vmem:[%s21082_s7 + $0xf8c] ss:$16 sps:$4 sm:$0xff]  }
 0x7e1   : > { %12241 = vmatpush1.bf16.msra.mxu0 %v15478_v56  ;;  %12160 = vmatprep.subr.bf16.mxu1 %v15483_v57  ;;  %v15541_v56 = vld [vmem:[%s21082_s7 + $0xf80] ss:$16 sps:$4 sm:$0xff]   ;;  %v15544_v57 = vld [vmem:[%s21082_s7 + $0xf88] ss:$16 sps:$4 sm:$0xff]  }
 0x7e2   : > { %12242 = vmatprep.subr.bf16.mxu0 %v15486_v7  ;;  %v15549_v7 = vld [vmem:[%s21082_s7 + $0xfa4] ss:$16 sps:$4 sm:$0xff]  }
 0x7e4   : > { %12161 = vmatpush1.bf16.msra.mxu1 %v15481_v10  ;;  %v15552_v10 = vld [vmem:[%s21082_s7 + $0xfac] ss:$16 sps:$4 sm:$0xff]  }
 0x7e5   : > { %12243 = vmatpush1.bf16.msra.mxu0 %v15484_v29  ;;  %12162 = vmatprep.subr.bf16.mxu1 %v15489_v31  ;;  %v15547_v29 = vld [vmem:[%s21082_s7 + $0xfa0] ss:$16 sps:$4 sm:$0xff]   ;;  %v15550_v31 = vld [vmem:[%s21082_s7 + $0xfa8] ss:$16 sps:$4 sm:$0xff]  }
 0x7e6   : > { %12244 = vmatprep.subr.bf16.mxu0 %v15492_v12  ;;  %v15555_v12 = vld [vmem:[%s21082_s7 + $0xfc4] ss:$16 sps:$4 sm:$0xff]  }
 0x7e8   : > { %12163 = vmatpush1.bf16.msra.mxu1 %v15487_v36  ;;  %v15558_v36 = vld [vmem:[%s21082_s7 + $0xfcc] ss:$16 sps:$4 sm:$0xff]  }
 0x7e9   : > { %12245 = vmatpush1.bf16.msra.mxu0 %v15490_v63  ;;  %12164 = vmatprep.subr.bf16.mxu1 %v15495_v6  ;;  %v15553_v63 = vld [vmem:[%s21082_s7 + $0xfc0] ss:$16 sps:$4 sm:$0xff]   ;;  %v15556_v6 = vld [vmem:[%s21082_s7 + $0xfc8] ss:$16 sps:$4 sm:$0xff]  }
 0x7ea   : > { %12246 = vmatprep.subr.bf16.mxu0 %v15498_v59  ;;  %v15561_v59 = vld [vmem:[%s21082_s7 + $0xfe4] ss:$16 sps:$4 sm:$0xff]  }
 0x7ec   : > { %12165 = vmatpush1.bf16.msra.mxu1 %v15493_v41  ;;  %v15564_v41 = vld [vmem:[%s21082_s7 + $0xfec] ss:$16 sps:$4 sm:$0xff]  }
 0x7ed   : > { %12247 = vmatpush1.bf16.msra.mxu0 %v15496_v45  ;;  %12166 = vmatprep.subr.bf16.mxu1 %v15501_v50  ;;  %v15559_v45 = vld [vmem:[%s21082_s7 + $0xfe0] ss:$16 sps:$4 sm:$0xff]   ;;  %v15562_v50 = vld [vmem:[%s21082_s7 + $0xfe8] ss:$16 sps:$4 sm:$0xff]  }
 0x7ee   : > { %v10248_v40 = vpop.f32.mrb[104].mxu1  ;;  %12248 = vmatprep.subr.bf16.mxu0 %v15504_v34  ;;  %v15565_v34 = vld [vmem:[%s21084_s9 + $0x40] sm:$0xff]  }
 0x7ef   : > { %v10330_v30 = vpop.f32.mrb[100].mxu0  ;;  %v10250_v48 = vpop.f32.mrb[105].mxu1 }
 0x7f0   : > { %v10341_v38 = vcombine.low %v10248_v40, %v10250_v48  ;;  %v10332_v3 = vpop.f32.mrb[101].mxu0  ;;  %v10252_v44 = vpop.f32.mrb[106].mxu1  ;;  %12167 = vmatpush1.bf16.msra.mxu1 %v15499_v55  ;;  %v15566_v55 = vld [vmem:[%s21084_s9 + $0xc0] sm:$0xff]   ;;  %v15572_v48 = vld [vmem:[%s21084_s9 + $0x88] sm:$0xff]  }
 0x7f1   : > { %v10342_v16 = vcombine.low %v10330_v30, %v10332_v3  ;;  %v10334_v43 = vpop.f32.mrb[102].mxu0  ;;  %12249 = vmatpush1.bf16.msra.mxu0 %v15502_v20  ;;  %v10253_v39 = vpop.f32.mrb[107].mxu1  ;;  %12168 = vmatprep.subr.bf16.mxu1 %v15507_v14  ;;  %v15567_v20 = vld [vmem:[%s21084_s9] sm:$0xff]   ;;  %v11469_v14 = vrot.slane %v20162_v22, 1  ;;  %v15570_v30 = vld [vmem:[%s21084_s9 + $0xc8] sm:$0xff]   ;;  %v15574_v3 = vld [vmem:[%s21084_s9 + $0xd0] sm:$0xff]  }
 0x7f2   : > { %v10349_v32 = vrot.slane %v10341_v38, %v20430_v17  ;;  %v10335_v61 = vpop.f32.mrb[103].mxu0  ;;  %12250 = vmatprep.subr.bf16.mxu0 %v15510_v53  ;;  %v15568_v40 = vld [vmem:[%s21084_s9 + $0x80] sm:$0xff]   ;;  %v15569_v53 = vld [vmem:[%s21084_s9 + $0x48] sm:$0xff]   ;;  %v15573_v38 = vld [vmem:[%s21084_s9 + $0x50] sm:$0xff]  }
 0x7f3   : > { %v10356_v0 = vrot.slane %v10342_v16, %v20430_v17  ;;  %v15571_v22 = vld [vmem:[%s21084_s9 + $0x8] sm:$0xff]   ;;  %v15575_v44 = vld [vmem:[%s21084_s9 + $0x10] sm:$0xff]   ;;  %v15577_v16 = vld [vmem:[%s21084_s9 + $0x58] sm:$0xff]  }
 0x7f4   : > { %12169 = vmatpush1.bf16.msra.mxu1 %v15505_v5  ;;  %v15576_v5 = vld [vmem:[%s21084_s9 + $0x90] sm:$0xff]   ;;  %v15578_v43 = vld [vmem:[%s21084_s9 + $0xd8] sm:$0xff]  }
 0x7f5   : > { %v10357_v52 = vcombine.low %v10349_v32, %v10356_v0  ;;  %12251 = vmatpush1.bf16.msra.mxu0 %v15508_v62  ;;  %12170 = vmatprep.subr.bf16.mxu1 %v15513_v46  ;;  %v15579_v32 = vld [vmem:[%s21084_s9 + $0x18] sm:$0xff]  }
 0x7f6   : > { %12252 = vmatprep.subr.bf16.mxu0 %v15516_v47  ;;  %v15580_v61 = vld [vmem:[%s21084_s9 + $0x98] sm:$0xff]  }
 0x7f7   : > { %v10364_v1 = vrot.slane %v10357_v52, %v20430_v17 }
 0x7f8   : > { %12171 = vmatpush1.bf16.msra.mxu1 %v15511_v23 }
 0x7f9   : > { %v20868_v13 = vadd.f32 %v10364_v1, %v9390_v37  ;;  %12253 = vmatpush1.bf16.msra.mxu0 %v15514_v27  ;;  %12172 = vmatprep.subr.bf16.mxu1 %v15519_v33 }
 0x7fa   : > { %12254 = vmatprep.subr.bf16.mxu0 %v15522_v25 }
 0x7fc   : > { %12173 = vmatpush1.bf16.msra.mxu1 %v15517_v4 }
 0x7fd   : > { %12255 = vmatpush1.bf16.msra.mxu0 %v15520_v11  ;;  %12174 = vmatprep.subr.bf16.mxu1 %v15525_v24  ;;  %v15581_v11 = vld [vmem:[%s21084_s9 + $0x60] sm:$0xff]  }
 0x7fe   : > { %12256 = vmatprep.subr.bf16.mxu0 %v15528_v58  ;;  %v15582_v24 = vld [vmem:[%s21084_s9 + $0xe0] sm:$0xff]  }
 0x7ff   : > { %v15583_v58 = vld [vmem:[%s21084_s9 + $0x20] sm:$0xff]  }
 0x800   : > { %12175 = vmatpush1.bf16.msra.mxu1 %v15523_v15  ;;  %v15584_v15 = vld [vmem:[%s21084_s9 + $0xa0] sm:$0xff]  }
 0x801   : > { %12257 = vmatpush1.bf16.msra.mxu0 %v15526_v51  ;;  %12176 = vmatprep.subr.bf16.mxu1 %v15531_v21  ;;  %v15586_v51 = vld [vmem:[%s21084_s9 + $0xe8] sm:$0xff]  }
 0x802   : > { %12258 = vmatprep.subr.bf16.mxu0 %v15534_v49  ;;  %v15587_v21 = vld [vmem:[%s21084_s9 + $0x28] sm:$0xff]  }
 0x803   : > { %v15588_v49 = vld [vmem:[%s21084_s9 + $0xa8] sm:$0xff]  }
 0x804   : > { %12177 = vmatpush1.bf16.msra.mxu1 %v15529_v35  ;;  %v15589_v35 = vld [vmem:[%s21084_s9 + $0x70] sm:$0xff]  }
 0x805   : > { %12259 = vmatpush1.bf16.msra.mxu0 %v15532_v42  ;;  %12178 = vmatprep.subr.bf16.mxu1 %v15537_v8  ;;  %v15590_v42 = vld [vmem:[%s21084_s9 + $0xf0] sm:$0xff]  }
 0x806   : > { %12260 = vmatprep.subr.bf16.mxu0 %v15540_v9  ;;  %v15591_v8 = vld [vmem:[%s21084_s9 + $0x30] sm:$0xff]  }
 0x807   : > { %v15592_v9 = vld [vmem:[%s21084_s9 + $0xb0] sm:$0xff]  }
 0x808   : > { %12179 = vmatpush1.bf16.msra.mxu1 %v15535_v60  ;;  %v15593_v60 = vld [vmem:[%s21084_s9 + $0x78] sm:$0xff]  }
 0x809   : > { %12261 = vmatpush1.bf16.msra.mxu0 %v15538_v18  ;;  %12180 = vmatprep.subr.bf16.mxu1 %v15543_v26  ;;  %v15594_v18 = vld [vmem:[%s21084_s9 + $0xf8] sm:$0xff]  }
 0x80a   : > { %12262 = vmatprep.subr.bf16.mxu0 %v15546_v28  ;;  %v15595_v26 = vld [vmem:[%s21084_s9 + $0x38] sm:$0xff]  }
 0x80b   : > { %v15596_v28 = vld [vmem:[%s21084_s9 + $0xb8] sm:$0xff]  }
 0x80c   : > { %12181 = vmatpush1.bf16.msra.mxu1 %v15541_v56 }
 0x80d   : > { %12263 = vmatpush1.bf16.msra.mxu0 %v15544_v57  ;;  %12182 = vmatprep.subr.bf16.mxu1 %v15549_v7 }
 0x80e   : > { %12264 = vmatprep.subr.bf16.mxu0 %v15552_v10 }
 0x810   : > { %12183 = vmatpush1.bf16.msra.mxu1 %v15547_v29 }
 0x811   : > { %12265 = vmatpush1.bf16.msra.mxu0 %v15550_v31  ;;  %12184 = vmatprep.subr.bf16.mxu1 %v15555_v12 }
 0x812   : > { %12266 = vmatprep.subr.bf16.mxu0 %v15558_v36 }
 0x814   : > { %12185 = vmatpush1.bf16.msra.mxu1 %v15553_v63 }
 0x815   : > { %12267 = vmatpush1.bf16.msra.mxu0 %v15556_v6  ;;  %12186 = vmatprep.subr.bf16.mxu1 %v15561_v59 }
 0x816   : > { %12268 = vmatprep.subr.bf16.mxu0 %v15564_v41 }
 0x818   : > { %12187 = vmatpush1.bf16.msra.mxu1 %v15559_v45 }
 0x819   : > { %12269 = vmatpush1.bf16.msra.mxu0 %v15562_v50  ;;  %14291 = vmatprep.subr.bf16.mxu1 %v15565_v34  ;;  %v12317_v34 = vsub.s32 1, %v20415_v19 }
 0x81a   : > { %14313 = vmatprep.subr.bf16.mxu0 %v15566_v55 }
 0x81b   : > { %12189 = vmatmul.mubr.bf16.vlgmr.msra.gmra.mrb[112].mxu1 %v11469_v14 }
 0x81c   : > { %12271 = vmatmul.mubr.bf16.vlgmr.msra.gmra.mrb[108].mxu0 %v11469_v14  ;;  %14292 = vmatpush3.bf16.msra.mxu1 %v15567_v20  ;;  %v12325_v20 = vsub.s32 3, %v20415_v19  ;;  %v12313_v14 = vsub.s32 0, %v20415_v19 }
 0x81d   : > { %14314 = vmatpush3.bf16.msra.mxu0 %v15568_v40  ;;  %14293 = vmatprep.subr.bf16.mxu1 %v15569_v53  ;;  %v12321_v40 = vsub.s32 2, %v20415_v19  ;;  %v12399_v19 = vld [vmem:[%s21085_s10] sm:$0x1] }
 0x81e   : > { %14315 = vmatprep.subr.bf16.mxu0 %v15570_v30 }
 0x820   : > { %14294 = vmatpush3.bf16.msra.mxu1 %v15571_v22 }
 0x821   : > { %14316 = vmatpush3.bf16.msra.mxu0 %v15572_v48  ;;  %14295 = vmatprep.subr.bf16.mxu1 %v15573_v38 }
 0x822   : > { %14317 = vmatprep.subr.bf16.mxu0 %v15574_v3 }
 0x824   : > { %14296 = vmatpush3.bf16.msra.mxu1 %v15575_v44 }
 0x825   : > { %14318 = vmatpush3.bf16.msra.mxu0 %v15576_v5  ;;  %14297 = vmatprep.subr.bf16.mxu1 %v15577_v16 }
 0x826   : > { %14319 = vmatprep.subr.bf16.mxu0 %v15578_v43 }
 0x828   : > { %14298 = vmatpush3.bf16.msra.mxu1 %v15579_v32 }
 0x829   : > { %14320 = vmatpush3.bf16.msra.mxu0 %v15580_v61  ;;  %14299 = vmatprep.subr.bf16.mxu1 %v15581_v11 }
 0x82a   : > { %14321 = vmatprep.subr.bf16.mxu0 %v15582_v24 }
 0x82c   : > { %14300 = vmatpush3.bf16.msra.mxu1 %v15583_v58 }
 0x82d   : > { %14322 = vmatpush3.bf16.msra.mxu0 %v15584_v15 }
 0x82e   : > { %14323 = vmatprep.subr.bf16.mxu0 %v15586_v51 }
 0x831   : > { %14324 = vmatpush3.bf16.msra.mxu0 %v15588_v49 }
 0x832   : > { %14325 = vmatprep.subr.bf16.mxu0 %v15590_v42 }
 0x835   : > { %14326 = vmatpush3.bf16.msra.mxu0 %v15592_v9 }
 0x836   : > { %14327 = vmatprep.subr.bf16.mxu0 %v15594_v18 }
 0x839   : > { %14328 = vmatpush3.bf16.msra.mxu0 %v15596_v28 }
 0x86e   : > { %v11219_v39 = vpop.f32.mrb[108].mxu1 }
 0x86f   : > { %v11301_v62 = vpop.f32.mrb[104].mxu0  ;;  %v11221_v46 = vpop.f32.mrb[109].mxu1 }
 0x870   : > { %v11312_v47 = vcombine.low %v11219_v39, %v11221_v46  ;;  %v11303_v54 = vpop.f32.mrb[105].mxu0  ;;  %v11223_v0 = vpop.f32.mrb[110].mxu1 }
 0x871   : > { %v11313_v2 = vcombine.low %v11301_v62, %v11303_v54  ;;  %v11305_v23 = vpop.f32.mrb[106].mxu0  ;;  %v11224_v52 = vpop.f32.mrb[111].mxu1 }
 0x872   : > { %v11320_v27 = vrot.slane %v11312_v47, %v20430_v17  ;;  %v11306_v33 = vpop.f32.mrb[107].mxu0 }
 0x873   : > { %v11327_v25 = vrot.slane %v11313_v2, %v20430_v17 }
 0x875   : > { %v11328_v37 = vcombine.low %v11320_v27, %v11327_v25 }
 0x877   : > { %v11335_v1 = vrot.slane %v11328_v37, %v20430_v17 }
 0x879   : > { %v11337_v4 = vadd.f32 %v11335_v1, %v20868_v13  ;;  %v15585_v13 = vld [vmem:[%s21084_s9 + $0x68] sm:$0xff]  }
 0x87a   : > { %14301 = vmatprep.subr.bf16.mxu1 %v15585_v13 }
 0x87b   : > { %14302 = vmatpush3.bf16.msra.mxu1 %v15587_v21 }
 0x87c   : > { %14303 = vmatprep.subr.bf16.mxu1 %v15589_v35 }
 0x87f   : > { %14304 = vmatpush3.bf16.msra.mxu1 %v15591_v8 }
 0x880   : > { %14305 = vmatprep.subr.bf16.mxu1 %v15593_v60 }
 0x883   : > { %14306 = vmatpush3.bf16.msra.mxu1 %v15595_v26 }
 0x8ee   : > { %v12190_v56 = vpop.f32.mrb[112].mxu1 }
 0x8ef   : > { %v12272_v57 = vpop.f32.mrb[108].mxu0  ;;  %v12192_v7 = vpop.f32.mrb[113].mxu1 }
 0x8f0   : > { %v12283_v10 = vcombine.low %v12190_v56, %v12192_v7  ;;  %v12274_v29 = vpop.f32.mrb[109].mxu0  ;;  %v12194_v31 = vpop.f32.mrb[114].mxu1 }
 0x8f1   : > { %v12284_v12 = vcombine.low %v12272_v57, %v12274_v29  ;;  %v12276_v36 = vpop.f32.mrb[110].mxu0  ;;  %v12195_v63 = vpop.f32.mrb[115].mxu1 }
 0x8f2   : > { %v12291_v6 = vrot.slane %v12283_v10, %v20430_v17  ;;  %v12277_v59 = vpop.f32.mrb[111].mxu0 }
 0x8f3   : > { %v12298_v41 = vrot.slane %v12284_v12, %v20430_v17 }
 0x8f5   : > { %v12299_v45 = vcombine.low %v12291_v6, %v12298_v41 }
 0x8f7   : > { %v12306_v50 = vrot.slane %v12299_v45, %v20430_v17 }
 0x8f9   : > { %v12308_v55 = vadd.f32 %v12306_v50, %v11337_v4 }
 0x8fb   : > { %v12309_v53 = vmax.f32 %v12308_v55, 0.0 }
 0x8fd   : > { %v12318_v30 = vrot.slane %v12309_v53, %v12317_v34  ;;  %v12326_v22 = vrot.slane %v12309_v53, %v12325_v20  ;;  %v12314_v48 = vrot.slane %v12309_v53, %v12313_v14  ;;  %v12322_v38 = vrot.slane %v12309_v53, %v12321_v40 }
 0x8ff   : > { %v12332_v3 = vpack.c.bf16 %v12318_v30, %v12318_v30  ;;  %v12334_v44 = vpack.c.bf16 %v12326_v22, %v12326_v22  ;;  %v12331_v5 = vpack.c.bf16 %v12314_v48, %v12314_v48  ;;  %v12333_v16 = vpack.c.bf16 %v12322_v38, %v12322_v38 }
 0x901   : > { %12624 = vmatprep.mubr.bf16.mxu1 %v12332_v3  ;;  %12664 = vmatprep.mubr.bf16.mxu0 %v12334_v44 }
 0x902   : > { %12625 = vmatmul.mubr.bf16.vlgmr.msra.gmra.mrb[116].mxu1 %v12331_v5  ;;  %12665 = vmatmul.mubr.bf16.vlgmr.msra.gmra.mrb[112].mxu0 %v12333_v16 }
 0x9d5   : > { %v14307_v17 = vpop.f32.mrb[116].mxu1  ;;  %v14329_v43 = vpop.f32.mrb[112].mxu0 }
 0x9d6   : > { %v14308_v39 = vpop.f32.mrb[117].mxu1  ;;  %v14330_v62 = vpop.f32.mrb[113].mxu0 }
 0x9d7   : > { %v14309_v46 = vadd.f32 %v14308_v39, %v14307_v17  ;;  %v14331_v32 = vadd.f32 %v14330_v62, %v14329_v43  ;;  %v14310_v61 = vpop.f32.mrb[118].mxu1  ;;  %v14332_v47 = vpop.f32.mrb[114].mxu0 }
 0x9d8   : > { %v14311_v54 = vpop.f32.mrb[119].mxu1  ;;  %v14333_v0 = vpop.f32.mrb[115].mxu0 }
 0x9d9   : > { %v12627_v2 = vadd.f32 %v14309_v46, %v12399_v19 }
 0x9db   : > { %v12667_v23 = vadd.f32 %v14331_v32, %v12627_v2 }
 0x9dd   : > { %12672 = vst [vmem:[%s382_s24] sm:$0x1] %v12667_v23 }
 0x9de PF: > { %s21_s17 = sadd.s32 1, %s15684_s17  }
 0x9df   : > { %p18_p4 = scmp.ge.s32.totalorder %s21_s17, 4  }
 0x9e1   :  { %20 = sbr.rel (!%p18_p4) target bundleno = 1 (0x1), region = 97 }

</bundles_post_ra>
